<compile_context>
chip_gen: v7x
topology: tpu7x:2x2x1
jax: 0.10.0
libtpu: 0.0.40
codegen_flags: <defaults>
</compile_context>

<pallas_src>
import functools
import math

import jax
import jax.numpy as jnp
from jax.experimental import pallas as pl
from jax.experimental.pallas import tpu as pltpu

_VMEM = pl.BlockSpec(memory_space=pltpu.MemorySpace.VMEM)
# 32 MiB is safe on every generation (v7x has only 64 MiB physical VMEM/TC);
# the largest working set below is ~9 MiB.
_VMEM_LIMIT = 32 * 1024 * 1024

_LANE = 128
_NEG = float(jnp.finfo(jnp.bfloat16).min)


def _round_up(x, m):
    return (x + m - 1) // m * m


def _pick_tile(dim, mult, max_tile):
    """Pad `dim` to a multiple of `mult`; return the largest tile (multiple of
    `mult`, <= max_tile) that divides the padded extent, plus that extent."""
    padded = _round_up(max(dim, 1), mult)
    tile = mult
    t = mult
    while t <= max_tile:
        if padded % t == 0:
            tile = t
        t += mult
    return tile, padded


def _compiler_params(dim_sem):
    return pltpu.CompilerParams(
        dimension_semantics=dim_sem,
        vmem_limit_bytes=_VMEM_LIMIT)


# ----------------------------- Pallas kernels ------------------------------

def _mm_bn_kernel(x_ref, w_ref, s_ref, b_ref, o_ref, acc_ref, *, relu):
    # bf16 (tm, tk) @ (tk, tn) on the MXU, f32 accumulation in scratch.
    @pl.when(pl.program_id(2) == 0)
    def _init():
        acc_ref[...] = jnp.zeros_like(acc_ref)

    acc_ref[...] += jnp.dot(x_ref[...], w_ref[...],
                            preferred_element_type=jnp.float32)

    @pl.when(pl.program_id(2) == pl.num_programs(2) - 1)
    def _epilogue():
        acc = acc_ref[...] * s_ref[...] + b_ref[...]
        if relu:
            acc = jnp.maximum(acc, 0.0)
        o_ref[...] = acc.astype(o_ref.dtype)


def _mm_bn_res_kernel(x_ref, w_ref, s_ref, b_ref, r_ref, o_ref, acc_ref, *,
                      relu):
    # Same as above, plus residual add before the ReLU.
    @pl.when(pl.program_id(2) == 0)
    def _init():
        acc_ref[...] = jnp.zeros_like(acc_ref)

    acc_ref[...] += jnp.dot(x_ref[...], w_ref[...],
                            preferred_element_type=jnp.float32)

    @pl.when(pl.program_id(2) == pl.num_programs(2) - 1)
    def _epilogue():
        acc = acc_ref[...] * s_ref[...] + b_ref[...]
        acc = acc + r_ref[...].astype(jnp.float32)
        if relu:
            acc = jnp.maximum(acc, 0.0)
        o_ref[...] = acc.astype(o_ref.dtype)


def _maxpool_quad_kernel(q00_ref, q01_ref, q10_ref, q11_ref, o_ref):
    # 3x3 / stride-2 max pool.  q[p][r][b, a, c, :] == x_padded[b, 2a+p, 2c+r, :],
    # so window tap (i, j) is a *contiguous* slice of quadrant (i % 2, j % 2).
    _, ho, wo, _ = o_ref.shape
    quads = ((q00_ref[0], q01_ref[0]), (q10_ref[0], q11_ref[0]))
    m = None
    for i in range(3):
        for j in range(3):
            di, dj = i // 2, j // 2
            tap = quads[i % 2][j % 2][di:di + ho, dj:dj + wo, :]
            m = tap if m is None else jnp.maximum(m, tap)   # bf16 max is exact
    o_ref[0] = m


def _head_kernel(x_ref, w_ref, b_ref, o_ref, *, inv_hw):
    # Global average pool over spatial axis, then the fc matmul + bias.
    pooled = jnp.sum(x_ref[...].astype(jnp.float32), axis=1) * inv_hw  # (B, C)
    o_ref[...] = jnp.dot(pooled, w_ref[...],
                         preferred_element_type=jnp.float32) + b_ref[...]


# ------------------------------ JAX glue ------------------------------------

def _im2col(x, kh, kw, stride, pad):
    """x: (B, H, W, C) NHWC bf16 -> (B*Ho*Wo, kh*kw*C) patch matrix."""
    B, H, W, C = x.shape
    xp = jnp.pad(x, ((0, 0), (pad, pad), (pad, pad), (0, 0)))
    Ho = (H + 2 * pad - kh) // stride + 1
    Wo = (W + 2 * pad - kw) // stride + 1
    cols = []
    for i in range(kh):
        for j in range(kw):
            cols.append(jax.lax.slice(
                xp,
                (0, i, j, 0),
                (B, i + stride * (Ho - 1) + 1, j + stride * (Wo - 1) + 1, C),
                (1, stride, stride, 1)))
    p = jnp.stack(cols, axis=3)                  # (B, Ho, Wo, kh*kw, C)
    return p.reshape(B * Ho * Wo, kh * kw * C), Ho, Wo


def _matmul_bn(patches, w, scale, bias, *, relu, residual=None):
    """Gridded bf16 MXU matmul with fused BN scale/bias (+residual, +ReLU).

    `w` / `scale` / `bias` come pre-padded (K, N multiples of 128)."""
    M, K = patches.shape
    Kp, Np = w.shape

    tm, Mp = _pick_tile(M, 16, 512)
    # Collapse the reduction into one (or at most two) grid steps: these layer
    # sizes are per-grid-step-overhead bound, not MXU bound.
    tk, _ = _pick_tile(Kp, 128, 2560)
    tn, _ = _pick_tile(Np, 128, 256)
    # v7x megacore: keep at least two blocks along some *parallel* axis.
    if Mp // tm == 1 and Np // tn == 1:
        if tn % 256 == 0:
            tn //= 2
        elif tm % 32 == 0:
            tm //= 2

    xp = jnp.pad(patches.astype(jnp.bfloat16), ((0, Mp - M), (0, Kp - K)))

    in_specs = [
        pl.BlockSpec((tm, tk), lambda i, j, k: (i, k)),
        pl.BlockSpec((tk, tn), lambda i, j, k: (k, j)),
        pl.BlockSpec((1, tn), lambda i, j, k: (0, j)),
        pl.BlockSpec((1, tn), lambda i, j, k: (0, j)),
    ]
    args = [xp, w, scale, bias]
    if residual is None:
        kern = functools.partial(_mm_bn_kernel, relu=relu)
    else:
        rp = jnp.pad(residual.astype(jnp.bfloat16), ((0, Mp - M), (0, 0)))
        in_specs.append(pl.BlockSpec((tm, tn), lambda i, j, k: (i, j)))
        args.append(rp)
        kern = functools.partial(_mm_bn_res_kernel, relu=relu)

    bytes_accessed = sum(int(a.size) * a.dtype.itemsize for a in args)
    bytes_accessed += Mp * Np * 2
    cost = pl.CostEstimate(flops=2 * Mp * Np * Kp, transcendentals=0,
                           bytes_accessed=bytes_accessed)

    out = pl.pallas_call(
        kern,
        out_shape=jax.ShapeDtypeStruct((Mp, Np), jnp.bfloat16),
        grid_spec=pltpu.PrefetchScalarGridSpec(
            num_scalar_prefetch=0,
            grid=(Mp // tm, Np // tn, Kp // tk),
            in_specs=in_specs,
            out_specs=pl.BlockSpec((tm, tn), lambda i, j, k: (i, j)),
            scratch_shapes=[pltpu.VMEM((tm, tn), jnp.float32)]),
        compiler_params=_compiler_params(("parallel", "parallel", "arbitrary")),
        cost_estimate=cost,
    )(*args)
    # Lane (N) dim stays padded / dense end-to-end; only row padding is dropped.
    return out[:M] if Mp != M else out


def conv_bn(x, cp, *, relu, residual=None):
    """Conv (no bias) + folded inference BatchNorm (+residual, +ReLU)."""
    B = x.shape[0]
    assert x.shape[-1] == cp["cin_rt"], (x.shape, cp["cin_rt"])
    patches, Ho, Wo = _im2col(x, cp["kh"], cp["kw"], cp["stride"], cp["pad"])
    res2d = (None if residual is None
             else residual.reshape(B * Ho * Wo, residual.shape[-1]))
    out = _matmul_bn(patches, cp["w"], cp["scale"], cp["bias"],
                     relu=relu, residual=res2d)
    return out.reshape(B, Ho, Wo, cp["cout_p"])


def maxpool3x3_s2_p1(x):
    B, H, W, C = x.shape
    assert C % _LANE == 0, C
    Ho = (H + 2 - 3) // 2 + 1
    Wo = (W + 2 - 3) // 2 + 1
    xp = jnp.pad(x, ((0, 0), (1, 1), (1, 1), (0, 0)), constant_values=_NEG)
    # Even/odd (h, w) quadrants: q[p][r][b, a, c, :] = xp[b, 2a+p, 2c+r, :].
    qh, qw = Ho + 1, Wo + 1
    quads = []
    for p in (0, 1):
        for r in (0, 1):
            q = xp[:, p::2, r::2, :]
            q = jnp.pad(q, ((0, 0),
                            (0, max(0, qh - q.shape[1])),
                            (0, max(0, qw - q.shape[2])),
                            (0, 0)), constant_values=_NEG)[:, :qh, :qw, :]
            quads.append(q)
    q_spec = pl.BlockSpec((1, qh, qw, C), lambda b: (b, 0, 0, 0))
    out = pl.pallas_call(
        _maxpool_quad_kernel,
        out_shape=jax.ShapeDtypeStruct((B, Ho, Wo, C), x.dtype),
        grid_spec=pltpu.PrefetchScalarGridSpec(
            num_scalar_prefetch=0,
            grid=(B,),
            in_specs=[q_spec] * 4,
            out_specs=pl.BlockSpec((1, Ho, Wo, C), lambda b: (b, 0, 0, 0))),
        compiler_params=_compiler_params(("parallel",)),
    )(*quads)
    return out


def avgpool_fc(x, fc_w, fc_b, n_class):
    B, H, W, C = x.shape
    HW = H * W
    ncp = fc_w.shape[1]
    Bp = _round_up(B, 8)
    HWp = _round_up(HW, 16)
    xf = jnp.pad(x.reshape(B, HW, C).astype(jnp.bfloat16),
                 ((0, Bp - B), (0, HWp - HW), (0, 0)))
    out = pl.pallas_call(
        functools.partial(_head_kernel, inv_hw=1.0 / HW),
        out_shape=jax.ShapeDtypeStruct((Bp, ncp), jnp.float32),
        in_specs=[_VMEM] * 3,
        out_specs=_VMEM,
        compiler_params=pltpu.CompilerParams(vmem_limit_bytes=_VMEM_LIMIT),
    )(xf, fc_w, fc_b)
    return out[:B, :n_class]


# --------------------------- parameters / model ------------------------------

def _conv_init(key, cout, cin, kh, kw):
    fan = cin * kh * kw
    return (jax.random.normal(key, (cout, cin, kh, kw), jnp.float32)
            / math.sqrt(fan))


def _bn_init(key, c):
    k1, k2, k3, k4 = jax.random.split(key, 4)
    return dict(
        gamma=1.0 + 0.1 * jax.random.normal(k1, (c,), jnp.float32),
        beta=0.1 * jax.random.normal(k2, (c,), jnp.float32),
        mean=0.1 * jax.random.normal(k3, (c,), jnp.float32),
        var=1.0 + 0.1 * jnp.abs(jax.random.normal(k4, (c,), jnp.float32)),
    )


def _block_init(key, cin, cout, stride):
    ks = jax.random.split(key, 6)
    p = dict(
        stride=stride,
        conv1=_conv_init(ks[0], cout, cin, 3, 3),
        bn1=_bn_init(ks[1], cout),
        conv2=_conv_init(ks[2], cout, cout, 3, 3),
        bn2=_bn_init(ks[3], cout),
    )
    if stride != 1 or cin != cout:
        p["sc_conv"] = _conv_init(ks[4], cout, cin, 1, 1)
        p["sc_bn"] = _bn_init(ks[5], cout)
    return p


def init_resnet(n_class=6, seed=42):
    key = jax.random.PRNGKey(seed)
    ks = jax.random.split(key, 12)
    return dict(
        conv1=_conv_init(ks[0], 64, 3, 7, 7),
        bn1=_bn_init(ks[1], 64),
        layer1=[_block_init(ks[2], 64, 64, 1), _block_init(ks[3], 64, 64, 1)],
        layer2=[_block_init(ks[4], 64, 128, 2), _block_init(ks[5], 128, 128, 1)],
        layer3=[_block_init(ks[6], 128, 256, 2), _block_init(ks[7], 256, 256, 1)],
        fc_w=(jax.random.normal(ks[8], (n_class, 256), jnp.float32)
              / math.sqrt(256)),
        fc_b=0.1 * jax.random.normal(ks[9], (n_class,), jnp.float32),
    )


def _prep_conv(w_oihw, bn, *, cin_rt, stride, pad, eps=1e-5):
    """Fold BN and pre-lay-out the conv weight as a lane-padded matmul operand."""
    cout, cin, kh, kw = w_oihw.shape
    cout_p = _round_up(cout, _LANE)
    scale = bn["gamma"] / jnp.sqrt(bn["var"] + eps)
    bias = bn["beta"] - bn["mean"] * scale
    # Embed the true input channels into the runtime (lane-padded) channel
    # count; padded input channels get zero weight rows.
    w_full = jnp.zeros((cout, cin_rt, kh, kw), jnp.float32)
    w_full = w_full.at[:, :cin, :, :].set(w_oihw)
    K = kh * kw * cin_rt
    Kp = _round_up(K, _LANE)
    w2d = jnp.transpose(w_full, (2, 3, 1, 0)).reshape(K, cout)
    w2d = jnp.pad(w2d, ((0, Kp - K), (0, cout_p - cout))).astype(jnp.bfloat16)
    # Padded output channels keep scale = bias = 0, so they stay exactly zero
    # through ReLU / residual adds / pooling downstream.
    s = jnp.pad(scale.reshape(1, cout), ((0, 0), (0, cout_p - cout)))
    b = jnp.pad(bias.reshape(1, cout), ((0, 0), (0, cout_p - cout)))
    return dict(w=w2d, scale=s.astype(jnp.float32), bias=b.astype(jnp.float32),
                kh=kh, kw=kw, stride=stride, pad=pad,
                cin_rt=cin_rt, cout_p=cout_p)


def prepare_params(params):
    """One-time weight layout + BN folding (no per-forward transpose/pad)."""
    prep = {"conv1": _prep_conv(params["conv1"], params["bn1"],
                                cin_rt=3, stride=2, pad=3)}
    cin_rt = prep["conv1"]["cout_p"]
    for name in ("layer1", "layer2", "layer3"):
        blocks = []
        for blk in params[name]:
            b = {"conv1": _prep_conv(blk["conv1"], blk["bn1"], cin_rt=cin_rt,
                                     stride=blk["stride"], pad=1)}
            cout_p = b["conv1"]["cout_p"]
            b["conv2"] = _prep_conv(blk["conv2"], blk["bn2"], cin_rt=cout_p,
                                    stride=1, pad=1)
            if "sc_conv" in blk:
                b["shortcut"] = _prep_conv(blk["sc_conv"], blk["sc_bn"],
                                           cin_rt=cin_rt, stride=blk["stride"],
                                           pad=0)
            blocks.append(b)
            cin_rt = cout_p
        prep[name] = blocks
    nc, c_true = params["fc_w"].shape
    ncp = _round_up(nc, _LANE)
    fc_w = jnp.zeros((cin_rt, ncp), jnp.float32)
    fc_w = fc_w.at[:c_true, :nc].set(params["fc_w"].T)
    fc_b = jnp.pad(params["fc_b"].reshape(1, nc), ((0, 0), (0, ncp - nc)))
    prep["fc_w"] = fc_w
    prep["fc_b"] = fc_b.astype(jnp.float32)
    prep["n_class"] = nc
    return prep


def residual_block(x, bp):
    if "shortcut" in bp:
        # 1x1 shortcut goes through the same gridded/pipelined matmul path.
        res = conv_bn(x, bp["shortcut"], relu=False)
    else:
        res = x
    out = conv_bn(x, bp["conv1"], relu=True)
    out = conv_bn(out, bp["conv2"], relu=True, residual=res)
    return out


def resnet_forward(x_nchw, prep):
    x = jnp.transpose(x_nchw, (0, 2, 3, 1)).astype(jnp.bfloat16)  # NCHW->NHWC
    x = conv_bn(x, prep["conv1"], relu=True)
    x = maxpool3x3_s2_p1(x)
    for layer in ("layer1", "layer2", "layer3"):
        for bp in prep[layer]:
            x = residual_block(x, bp)
    return avgpool_fc(x, prep["fc_w"], prep["fc_b"], prep["n_class"])  # (B, n_class)


if __name__ == "__main__":
    key = jax.random.PRNGKey(0)
    x = jax.random.normal(key, (2, 3, 32, 32), jnp.float32)   # NCHW, like torch
    params = init_resnet(n_class=6)
    prep = prepare_params(params)
    fwd = jax.jit(lambda inp: resnet_forward(inp, prep))
    out = jax.block_until_ready(fwd(x))
    assert out.shape == (2, 6), out.shape
    assert jnp.all(jnp.isfinite(out))
    print("KERNEL_OK")
</pallas_src>

<mosaic_0001>
module attributes {stable_mosaic.version = 11 : i64} {
  func.func @_mm_bn_kernel(%arg0: i32, %arg1: i32, %arg2: i32, %arg3: memref<256x256xbf16, #tpu.memory_space<vmem>>, %arg4: memref<256x128xbf16, #tpu.memory_space<vmem>>, %arg5: memref<1x128xf32, #tpu.memory_space<vmem>>, %arg6: memref<1x128xf32, #tpu.memory_space<vmem>>, %arg7: memref<256x128xbf16, #tpu.memory_space<vmem>>, %arg8: memref<256x128xf32, #tpu.memory_space<vmem>>) attributes {dimension_semantics = [#tpu.dimension_semantics<parallel>, #tpu.dimension_semantics<parallel>, #tpu.dimension_semantics<arbitrary>], iteration_bounds = array<i64: 2, 1, 1>, scalar_prefetch = 0 : i64, scratch_operands = 1 : i64, tpu.core_type = #tpu.core_type<tc>, window_params = [{transform_indices = @transform_0, window_bounds = array<i64: 256, 256>}, {transform_indices = @transform_1, window_bounds = array<i64: 256, 128>}, {transform_indices = @transform_2, window_bounds = array<i64: 1, 128>}, {transform_indices = @transform_3, window_bounds = array<i64: 1, 128>}, {transform_indices = @transform_4, window_bounds = array<i64: 256, 128>}]} {
    %c0_i32 = arith.constant 0 : i32
    %0 = arith.cmpi eq, %arg2, %c0_i32 : i32
    %1 = arith.extui %0 : i1 to i32
    %c0_i32_0 = arith.constant 0 : i32
    %2 = arith.cmpi ne, %1, %c0_i32_0 : i32
    scf.if %2 {
      %cst_10 = arith.constant 0.000000e+00 : f32
      %12 = vector.broadcast %cst_10 : f32 to vector<256x128xf32>
      %c0_11 = arith.constant 0 : index
      %c0_12 = arith.constant 0 : index
      %13 = vector.load %arg8[%c0_11, %c0_12] : memref<256x128xf32, #tpu.memory_space<vmem>>, vector<256x128xf32>
      tpu.vector_store %arg8[%c0_11, %c0_12], %12 {strides = array<i32>} : memref<256x128xf32, #tpu.memory_space<vmem>>, vector<256x128xf32>,
    } else {
    }
    %c0 = arith.constant 0 : index
    %c0_1 = arith.constant 0 : index
    %3 = vector.load %arg8[%c0, %c0_1] : memref<256x128xf32, #tpu.memory_space<vmem>>, vector<256x128xf32>
    %c0_2 = arith.constant 0 : index
    %c0_3 = arith.constant 0 : index
    %4 = vector.load %arg3[%c0_2, %c0_3] : memref<256x256xbf16, #tpu.memory_space<vmem>>, vector<256x256xbf16>
    %c0_4 = arith.constant 0 : index
    %c0_5 = arith.constant 0 : index
    %5 = vector.load %arg4[%c0_4, %c0_5] : memref<256x128xbf16, #tpu.memory_space<vmem>>, vector<256x128xbf16>
    %cst = arith.constant dense<0.000000e+00> : vector<256x128xf32>
    %6 = tpu.matmul %4, %5, %cst {dimension_numbers = #tpu.dot_dimension_numbers<[1], [0], [0], [1], [0, 0, 1, 1], [], []>} : vector<256x256xbf16>, vector<256x128xbf16>, vector<256x128xf32> -> vector<256x128xf32>
    %7 = arith.addf %3, %6 : vector<256x128xf32>
    %c0_6 = arith.constant 0 : index
    %c0_7 = arith.constant 0 : index
    %8 = vector.load %arg8[%c0_6, %c0_7] : memref<256x128xf32, #tpu.memory_space<vmem>>, vector<256x128xf32>
    tpu.vector_store %arg8[%c0_6, %c0_7], %7 {strides = array<i32>} : memref<256x128xf32, #tpu.memory_space<vmem>>, vector<256x128xf32>,
    %c0_i32_8 = arith.constant 0 : i32
    %9 = arith.cmpi eq, %arg2, %c0_i32_8 : i32
    %10 = arith.extui %9 : i1 to i32
    %c0_i32_9 = arith.constant 0 : i32
    %11 = arith.cmpi ne, %10, %c0_i32_9 : i32
    scf.if %11 {
      %c0_10 = arith.constant 0 : index
      %c0_11 = arith.constant 0 : index
      %12 = vector.load %arg8[%c0_10, %c0_11] : memref<256x128xf32, #tpu.memory_space<vmem>>, vector<256x128xf32>
      %c0_12 = arith.constant 0 : index
      %c0_13 = arith.constant 0 : index
      %13 = vector.load %arg5[%c0_12, %c0_13] : memref<1x128xf32, #tpu.memory_space<vmem>>, vector<1x128xf32>
      %14 = vector.broadcast %13 : vector<1x128xf32> to vector<256x128xf32>
      %15 = arith.mulf %12, %14 : vector<256x128xf32>
      %c0_14 = arith.constant 0 : index
      %c0_15 = arith.constant 0 : index
      %16 = vector.load %arg6[%c0_14, %c0_15] : memref<1x128xf32, #tpu.memory_space<vmem>>, vector<1x128xf32>
      %17 = vector.broadcast %16 : vector<1x128xf32> to vector<256x128xf32>
      %18 = arith.addf %15, %17 : vector<256x128xf32>
      %cst_16 = arith.constant 0.000000e+00 : f32
      %19 = vector.broadcast %cst_16 : f32 to vector<256x128xf32>
      %20 = arith.maximumf %18, %19 : vector<256x128xf32>
      %21 = arith.truncf %20 : vector<256x128xf32> to vector<256x128xbf16>
      %c0_17 = arith.constant 0 : index
      %c0_18 = arith.constant 0 : index
      %22 = vector.load %arg7[%c0_17, %c0_18] : memref<256x128xbf16, #tpu.memory_space<vmem>>, vector<256x128xbf16>
      tpu.vector_store %arg7[%c0_17, %c0_18], %21 {strides = array<i32>} : memref<256x128xbf16, #tpu.memory_space<vmem>>, vector<256x128xbf16>,
    } else {
    }
    return
  }
  func.func @transform_0(%arg0: i32, %arg1: i32, %arg2: i32) -> (i32, i32) {
    %c0_i32 = arith.constant 0 : i32
    return %arg0, %arg2 : i32, i32
  }
  func.func @transform_1(%arg0: i32, %arg1: i32, %arg2: i32) -> (i32, i32) {
    %c0_i32 = arith.constant 0 : i32
    return %arg2, %arg1 : i32, i32
  }
  func.func @transform_2(%arg0: i32, %arg1: i32, %arg2: i32) -> (i32, i32) {
    %c0_i32 = arith.constant 0 : i32
    %c0_i32_0 = arith.constant 0 : i32
    return %c0_i32, %arg1 : i32, i32
  }
  func.func @transform_3(%arg0: i32, %arg1: i32, %arg2: i32) -> (i32, i32) {
    %c0_i32 = arith.constant 0 : i32
    %c0_i32_0 = arith.constant 0 : i32
    return %c0_i32, %arg1 : i32, i32
  }
  func.func @transform_4(%arg0: i32, %arg1: i32, %arg2: i32) -> (i32, i32) {
    %c0_i32 = arith.constant 0 : i32
    return %arg0, %arg1 : i32, i32
  }
}

module attributes {stable_mosaic.version = 11 : i64} {
  func.func @_maxpool_quad_kernel(%arg0: i32, %arg1: memref<1x9x9x128xbf16, #tpu.memory_space<vmem>>, %arg2: memref<1x9x9x128xbf16, #tpu.memory_space<vmem>>, %arg3: memref<1x9x9x128xbf16, #tpu.memory_space<vmem>>, %arg4: memref<1x9x9x128xbf16, #tpu.memory_space<vmem>>, %arg5: memref<1x8x8x128xbf16, #tpu.memory_space<vmem>>) attributes {dimension_semantics = [#tpu.dimension_semantics<parallel>], iteration_bounds = array<i64: 2>, scalar_prefetch = 0 : i64, scratch_operands = 0 : i64, tpu.core_type = #tpu.core_type<tc>, window_params = [{transform_indices = @transform_0, window_bounds = array<i64: 1, 9, 9, 128>}, {transform_indices = @transform_1, window_bounds = array<i64: 1, 9, 9, 128>}, {transform_indices = @transform_2, window_bounds = array<i64: 1, 9, 9, 128>}, {transform_indices = @transform_3, window_bounds = array<i64: 1, 9, 9, 128>}, {transform_indices = @transform_4, window_bounds = array<i64: 1, 8, 8, 128>}]} {
    %c0 = arith.constant 0 : index
    %c0_0 = arith.constant 0 : index
    %c0_1 = arith.constant 0 : index
    %c0_2 = arith.constant 0 : index
    %0 = vector.load %arg1[%c0, %c0_0, %c0_1, %c0_2] : memref<1x9x9x128xbf16, #tpu.memory_space<vmem>>, vector<1x9x9x128xbf16>
    %1 = vector.shape_cast %0 : vector<1x9x9x128xbf16> to vector<9x9x128xbf16>
    %c0_3 = arith.constant 0 : index
    %c0_4 = arith.constant 0 : index
    %c0_5 = arith.constant 0 : index
    %c0_6 = arith.constant 0 : index
    %2 = vector.load %arg2[%c0_3, %c0_4, %c0_5, %c0_6] : memref<1x9x9x128xbf16, #tpu.memory_space<vmem>>, vector<1x9x9x128xbf16>
    %3 = vector.shape_cast %2 : vector<1x9x9x128xbf16> to vector<9x9x128xbf16>
    %c0_7 = arith.constant 0 : index
    %c0_8 = arith.constant 0 : index
    %c0_9 = arith.constant 0 : index
    %c0_10 = arith.constant 0 : index
    %4 = vector.load %arg3[%c0_7, %c0_8, %c0_9, %c0_10] : memref<1x9x9x128xbf16, #tpu.memory_space<vmem>>, vector<1x9x9x128xbf16>
    %5 = vector.shape_cast %4 : vector<1x9x9x128xbf16> to vector<9x9x128xbf16>
    %c0_11 = arith.constant 0 : index
    %c0_12 = arith.constant 0 : index
    %c0_13 = arith.constant 0 : index
    %c0_14 = arith.constant 0 : index
    %6 = vector.load %arg4[%c0_11, %c0_12, %c0_13, %c0_14] : memref<1x9x9x128xbf16, #tpu.memory_space<vmem>>, vector<1x9x9x128xbf16>
    %7 = vector.shape_cast %6 : vector<1x9x9x128xbf16> to vector<9x9x128xbf16>
    %8 = vector.extract_strided_slice %1 {offsets = [0, 0, 0], sizes = [8, 8, 128], strides = [1, 1, 1]} : vector<9x9x128xbf16> to vector<8x8x128xbf16>
    %9 = vector.extract_strided_slice %3 {offsets = [0, 0, 0], sizes = [8, 8, 128], strides = [1, 1, 1]} : vector<9x9x128xbf16> to vector<8x8x128xbf16>
    %10 = arith.maximumf %8, %9 : vector<8x8x128xbf16>
    %11 = vector.extract_strided_slice %1 {offsets = [0, 1, 0], sizes = [8, 8, 128], strides = [1, 1, 1]} : vector<9x9x128xbf16> to vector<8x8x128xbf16>
    %12 = arith.maximumf %10, %11 : vector<8x8x128xbf16>
    %13 = vector.extract_strided_slice %5 {offsets = [0, 0, 0], sizes = [8, 8, 128], strides = [1, 1, 1]} : vector<9x9x128xbf16> to vector<8x8x128xbf16>
    %14 = arith.maximumf %12, %13 : vector<8x8x128xbf16>
    %15 = vector.extract_strided_slice %7 {offsets = [0, 0, 0], sizes = [8, 8, 128], strides = [1, 1, 1]} : vector<9x9x128xbf16> to vector<8x8x128xbf16>
    %16 = arith.maximumf %14, %15 : vector<8x8x128xbf16>
    %17 = vector.extract_strided_slice %5 {offsets = [0, 1, 0], sizes = [8, 8, 128], strides = [1, 1, 1]} : vector<9x9x128xbf16> to vector<8x8x128xbf16>
    %18 = arith.maximumf %16, %17 : vector<8x8x128xbf16>
    %19 = vector.extract_strided_slice %1 {offsets = [1, 0, 0], sizes = [8, 8, 128], strides = [1, 1, 1]} : vector<9x9x128xbf16> to vector<8x8x128xbf16>
    %20 = arith.maximumf %18, %19 : vector<8x8x128xbf16>
    %21 = vector.extract_strided_slice %3 {offsets = [1, 0, 0], sizes = [8, 8, 128], strides = [1, 1, 1]} : vector<9x9x128xbf16> to vector<8x8x128xbf16>
    %22 = arith.maximumf %20, %21 : vector<8x8x128xbf16>
    %23 = vector.extract_strided_slice %1 {offsets = [1, 1, 0], sizes = [8, 8, 128], strides = [1, 1, 1]} : vector<9x9x128xbf16> to vector<8x8x128xbf16>
    %24 = arith.maximumf %22, %23 : vector<8x8x128xbf16>
    %c0_15 = arith.constant 0 : index
    %c0_16 = arith.constant 0 : index
    %c0_17 = arith.constant 0 : index
    %c0_18 = arith.constant 0 : index
    %25 = vector.load %arg5[%c0_15, %c0_16, %c0_17, %c0_18] : memref<1x8x8x128xbf16, #tpu.memory_space<vmem>>, vector<1x8x8x128xbf16>
    %26 = vector.shape_cast %25 : vector<1x8x8x128xbf16> to vector<8x8x128xbf16>
    %27 = vector.shape_cast %24 : vector<8x8x128xbf16> to vector<1x8x8x128xbf16>
    tpu.vector_store %arg5[%c0_15, %c0_16, %c0_17, %c0_18], %27 {strides = array<i32>} : memref<1x8x8x128xbf16, #tpu.memory_space<vmem>>, vector<1x8x8x128xbf16>,
    return
  }
  func.func @transform_0(%arg0: i32) -> (i32, i32, i32, i32) {
    %c0_i32 = arith.constant 0 : i32
    %c0_i32_0 = arith.constant 0 : i32
    %c0_i32_1 = arith.constant 0 : i32
    %c0_i32_2 = arith.constant 0 : i32
    return %arg0, %c0_i32, %c0_i32_0, %c0_i32_1 : i32, i32, i32, i32
  }
  func.func @transform_1(%arg0: i32) -> (i32, i32, i32, i32) {
    %c0_i32 = arith.constant 0 : i32
    %c0_i32_0 = arith.constant 0 : i32
    %c0_i32_1 = arith.constant 0 : i32
    %c0_i32_2 = arith.constant 0 : i32
    return %arg0, %c0_i32, %c0_i32_0, %c0_i32_1 : i32, i32, i32, i32
  }
  func.func @transform_2(%arg0: i32) -> (i32, i32, i32, i32) {
    %c0_i32 = arith.constant 0 : i32
    %c0_i32_0 = arith.constant 0 : i32
    %c0_i32_1 = arith.constant 0 : i32
    %c0_i32_2 = arith.constant 0 : i32
    return %arg0, %c0_i32, %c0_i32_0, %c0_i32_1 : i32, i32, i32, i32
  }
  func.func @transform_3(%arg0: i32) -> (i32, i32, i32, i32) {
    %c0_i32 = arith.constant 0 : i32
    %c0_i32_0 = arith.constant 0 : i32
    %c0_i32_1 = arith.constant 0 : i32
    %c0_i32_2 = arith.constant 0 : i32
    return %arg0, %c0_i32, %c0_i32_0, %c0_i32_1 : i32, i32, i32, i32
  }
  func.func @transform_4(%arg0: i32) -> (i32, i32, i32, i32) {
    %c0_i32 = arith.constant 0 : i32
    %c0_i32_0 = arith.constant 0 : i32
    %c0_i32_1 = arith.constant 0 : i32
    %c0_i32_2 = arith.constant 0 : i32
    return %arg0, %c0_i32, %c0_i32_0, %c0_i32_1 : i32, i32, i32, i32
  }
}

module attributes {stable_mosaic.version = 11 : i64} {
  func.func @_mm_bn_kernel(%arg0: i32, %arg1: i32, %arg2: i32, %arg3: memref<64x1152xbf16, #tpu.memory_space<vmem>>, %arg4: memref<1152x128xbf16, #tpu.memory_space<vmem>>, %arg5: memref<1x128xf32, #tpu.memory_space<vmem>>, %arg6: memref<1x128xf32, #tpu.memory_space<vmem>>, %arg7: memref<64x128xbf16, #tpu.memory_space<vmem>>, %arg8: memref<64x128xf32, #tpu.memory_space<vmem>>) attributes {dimension_semantics = [#tpu.dimension_semantics<parallel>, #tpu.dimension_semantics<parallel>, #tpu.dimension_semantics<arbitrary>], iteration_bounds = array<i64: 2, 1, 1>, scalar_prefetch = 0 : i64, scratch_operands = 1 : i64, tpu.core_type = #tpu.core_type<tc>, window_params = [{transform_indices = @transform_0, window_bounds = array<i64: 64, 1152>}, {transform_indices = @transform_1, window_bounds = array<i64: 1152, 128>}, {transform_indices = @transform_2, window_bounds = array<i64: 1, 128>}, {transform_indices = @transform_3, window_bounds = array<i64: 1, 128>}, {transform_indices = @transform_4, window_bounds = array<i64: 64, 128>}]} {
    %c0_i32 = arith.constant 0 : i32
    %0 = arith.cmpi eq, %arg2, %c0_i32 : i32
    %1 = arith.extui %0 : i1 to i32
    %c0_i32_0 = arith.constant 0 : i32
    %2 = arith.cmpi ne, %1, %c0_i32_0 : i32
    scf.if %2 {
      %cst_10 = arith.constant 0.000000e+00 : f32
      %12 = vector.broadcast %cst_10 : f32 to vector<64x128xf32>
      %c0_11 = arith.constant 0 : index
      %c0_12 = arith.constant 0 : index
      %13 = vector.load %arg8[%c0_11, %c0_12] : memref<64x128xf32, #tpu.memory_space<vmem>>, vector<64x128xf32>
      tpu.vector_store %arg8[%c0_11, %c0_12], %12 {strides = array<i32>} : memref<64x128xf32, #tpu.memory_space<vmem>>, vector<64x128xf32>,
    } else {
    }
    %c0 = arith.constant 0 : index
    %c0_1 = arith.constant 0 : index
    %3 = vector.load %arg8[%c0, %c0_1] : memref<64x128xf32, #tpu.memory_space<vmem>>, vector<64x128xf32>
    %c0_2 = arith.constant 0 : index
    %c0_3 = arith.constant 0 : index
    %4 = vector.load %arg3[%c0_2, %c0_3] : memref<64x1152xbf16, #tpu.memory_space<vmem>>, vector<64x1152xbf16>
    %c0_4 = arith.constant 0 : index
    %c0_5 = arith.constant 0 : index
    %5 = vector.load %arg4[%c0_4, %c0_5] : memref<1152x128xbf16, #tpu.memory_space<vmem>>, vector<1152x128xbf16>
    %cst = arith.constant dense<0.000000e+00> : vector<64x128xf32>
    %6 = tpu.matmul %4, %5, %cst {dimension_numbers = #tpu.dot_dimension_numbers<[1], [0], [0], [1], [0, 0, 1, 1], [], []>} : vector<64x1152xbf16>, vector<1152x128xbf16>, vector<64x128xf32> -> vector<64x128xf32>
    %7 = arith.addf %3, %6 : vector<64x128xf32>
    %c0_6 = arith.constant 0 : index
    %c0_7 = arith.constant 0 : index
    %8 = vector.load %arg8[%c0_6, %c0_7] : memref<64x128xf32, #tpu.memory_space<vmem>>, vector<64x128xf32>
    tpu.vector_store %arg8[%c0_6, %c0_7], %7 {strides = array<i32>} : memref<64x128xf32, #tpu.memory_space<vmem>>, vector<64x128xf32>,
    %c0_i32_8 = arith.constant 0 : i32
    %9 = arith.cmpi eq, %arg2, %c0_i32_8 : i32
    %10 = arith.extui %9 : i1 to i32
    %c0_i32_9 = arith.constant 0 : i32
    %11 = arith.cmpi ne, %10, %c0_i32_9 : i32
    scf.if %11 {
      %c0_10 = arith.constant 0 : index
      %c0_11 = arith.constant 0 : index
      %12 = vector.load %arg8[%c0_10, %c0_11] : memref<64x128xf32, #tpu.memory_space<vmem>>, vector<64x128xf32>
      %c0_12 = arith.constant 0 : index
      %c0_13 = arith.constant 0 : index
      %13 = vector.load %arg5[%c0_12, %c0_13] : memref<1x128xf32, #tpu.memory_space<vmem>>, vector<1x128xf32>
      %14 = vector.broadcast %13 : vector<1x128xf32> to vector<64x128xf32>
      %15 = arith.mulf %12, %14 : vector<64x128xf32>
      %c0_14 = arith.constant 0 : index
      %c0_15 = arith.constant 0 : index
      %16 = vector.load %arg6[%c0_14, %c0_15] : memref<1x128xf32, #tpu.memory_space<vmem>>, vector<1x128xf32>
      %17 = vector.broadcast %16 : vector<1x128xf32> to vector<64x128xf32>
      %18 = arith.addf %15, %17 : vector<64x128xf32>
      %cst_16 = arith.constant 0.000000e+00 : f32
      %19 = vector.broadcast %cst_16 : f32 to vector<64x128xf32>
      %20 = arith.maximumf %18, %19 : vector<64x128xf32>
      %21 = arith.truncf %20 : vector<64x128xf32> to vector<64x128xbf16>
      %c0_17 = arith.constant 0 : index
      %c0_18 = arith.constant 0 : index
      %22 = vector.load %arg7[%c0_17, %c0_18] : memref<64x128xbf16, #tpu.memory_space<vmem>>, vector<64x128xbf16>
      tpu.vector_store %arg7[%c0_17, %c0_18], %21 {strides = array<i32>} : memref<64x128xbf16, #tpu.memory_space<vmem>>, vector<64x128xbf16>,
    } else {
    }
    return
  }
  func.func @transform_0(%arg0: i32, %arg1: i32, %arg2: i32) -> (i32, i32) {
    %c0_i32 = arith.constant 0 : i32
    return %arg0, %arg2 : i32, i32
  }
  func.func @transform_1(%arg0: i32, %arg1: i32, %arg2: i32) -> (i32, i32) {
    %c0_i32 = arith.constant 0 : i32
    return %arg2, %arg1 : i32, i32
  }
  func.func @transform_2(%arg0: i32, %arg1: i32, %arg2: i32) -> (i32, i32) {
    %c0_i32 = arith.constant 0 : i32
    %c0_i32_0 = arith.constant 0 : i32
    return %c0_i32, %arg1 : i32, i32
  }
  func.func @transform_3(%arg0: i32, %arg1: i32, %arg2: i32) -> (i32, i32) {
    %c0_i32 = arith.constant 0 : i32
    %c0_i32_0 = arith.constant 0 : i32
    return %c0_i32, %arg1 : i32, i32
  }
  func.func @transform_4(%arg0: i32, %arg1: i32, %arg2: i32) -> (i32, i32) {
    %c0_i32 = arith.constant 0 : i32
    return %arg0, %arg1 : i32, i32
  }
}

module attributes {stable_mosaic.version = 11 : i64} {
  func.func @_mm_bn_res_kernel(%arg0: i32, %arg1: i32, %arg2: i32, %arg3: memref<64x1152xbf16, #tpu.memory_space<vmem>>, %arg4: memref<1152x128xbf16, #tpu.memory_space<vmem>>, %arg5: memref<1x128xf32, #tpu.memory_space<vmem>>, %arg6: memref<1x128xf32, #tpu.memory_space<vmem>>, %arg7: memref<64x128xbf16, #tpu.memory_space<vmem>>, %arg8: memref<64x128xbf16, #tpu.memory_space<vmem>>, %arg9: memref<64x128xf32, #tpu.memory_space<vmem>>) attributes {dimension_semantics = [#tpu.dimension_semantics<parallel>, #tpu.dimension_semantics<parallel>, #tpu.dimension_semantics<arbitrary>], iteration_bounds = array<i64: 2, 1, 1>, scalar_prefetch = 0 : i64, scratch_operands = 1 : i64, tpu.core_type = #tpu.core_type<tc>, window_params = [{transform_indices = @transform_0, window_bounds = array<i64: 64, 1152>}, {transform_indices = @transform_1, window_bounds = array<i64: 1152, 128>}, {transform_indices = @transform_2, window_bounds = array<i64: 1, 128>}, {transform_indices = @transform_3, window_bounds = array<i64: 1, 128>}, {transform_indices = @transform_4, window_bounds = array<i64: 64, 128>}, {transform_indices = @transform_5, window_bounds = array<i64: 64, 128>}]} {
    %c0_i32 = arith.constant 0 : i32
    %0 = arith.cmpi eq, %arg2, %c0_i32 : i32
    %1 = arith.extui %0 : i1 to i32
    %c0_i32_0 = arith.constant 0 : i32
    %2 = arith.cmpi ne, %1, %c0_i32_0 : i32
    scf.if %2 {
      %cst_10 = arith.constant 0.000000e+00 : f32
      %12 = vector.broadcast %cst_10 : f32 to vector<64x128xf32>
      %c0_11 = arith.constant 0 : index
      %c0_12 = arith.constant 0 : index
      %13 = vector.load %arg9[%c0_11, %c0_12] : memref<64x128xf32, #tpu.memory_space<vmem>>, vector<64x128xf32>
      tpu.vector_store %arg9[%c0_11, %c0_12], %12 {strides = array<i32>} : memref<64x128xf32, #tpu.memory_space<vmem>>, vector<64x128xf32>,
    } else {
    }
    %c0 = arith.constant 0 : index
    %c0_1 = arith.constant 0 : index
    %3 = vector.load %arg9[%c0, %c0_1] : memref<64x128xf32, #tpu.memory_space<vmem>>, vector<64x128xf32>
    %c0_2 = arith.constant 0 : index
    %c0_3 = arith.constant 0 : index
    %4 = vector.load %arg3[%c0_2, %c0_3] : memref<64x1152xbf16, #tpu.memory_space<vmem>>, vector<64x1152xbf16>
    %c0_4 = arith.constant 0 : index
    %c0_5 = arith.constant 0 : index
    %5 = vector.load %arg4[%c0_4, %c0_5] : memref<1152x128xbf16, #tpu.memory_space<vmem>>, vector<1152x128xbf16>
    %cst = arith.constant dense<0.000000e+00> : vector<64x128xf32>
    %6 = tpu.matmul %4, %5, %cst {dimension_numbers = #tpu.dot_dimension_numbers<[1], [0], [0], [1], [0, 0, 1, 1], [], []>} : vector<64x1152xbf16>, vector<1152x128xbf16>, vector<64x128xf32> -> vector<64x128xf32>
    %7 = arith.addf %3, %6 : vector<64x128xf32>
    %c0_6 = arith.constant 0 : index
    %c0_7 = arith.constant 0 : index
    %8 = vector.load %arg9[%c0_6, %c0_7] : memref<64x128xf32, #tpu.memory_space<vmem>>, vector<64x128xf32>
    tpu.vector_store %arg9[%c0_6, %c0_7], %7 {strides = array<i32>} : memref<64x128xf32, #tpu.memory_space<vmem>>, vector<64x128xf32>,
    %c0_i32_8 = arith.constant 0 : i32
    %9 = arith.cmpi eq, %arg2, %c0_i32_8 : i32
    %10 = arith.extui %9 : i1 to i32
    %c0_i32_9 = arith.constant 0 : i32
    %11 = arith.cmpi ne, %10, %c0_i32_9 : i32
    scf.if %11 {
      %c0_10 = arith.constant 0 : index
      %c0_11 = arith.constant 0 : index
      %12 = vector.load %arg9[%c0_10, %c0_11] : memref<64x128xf32, #tpu.memory_space<vmem>>, vector<64x128xf32>
      %c0_12 = arith.constant 0 : index
      %c0_13 = arith.constant 0 : index
      %13 = vector.load %arg5[%c0_12, %c0_13] : memref<1x128xf32, #tpu.memory_space<vmem>>, vector<1x128xf32>
      %14 = vector.broadcast %13 : vector<1x128xf32> to vector<64x128xf32>
      %15 = arith.mulf %12, %14 : vector<64x128xf32>
      %c0_14 = arith.constant 0 : index
      %c0_15 = arith.constant 0 : index
      %16 = vector.load %arg6[%c0_14, %c0_15] : memref<1x128xf32, #tpu.memory_space<vmem>>, vector<1x128xf32>
      %17 = vector.broadcast %16 : vector<1x128xf32> to vector<64x128xf32>
      %18 = arith.addf %15, %17 : vector<64x128xf32>
      %c0_16 = arith.constant 0 : index
      %c0_17 = arith.constant 0 : index
      %19 = vector.load %arg7[%c0_16, %c0_17] : memref<64x128xbf16, #tpu.memory_space<vmem>>, vector<64x128xbf16>
      %20 = arith.extf %19 : vector<64x128xbf16> to vector<64x128xf32>
      %21 = arith.addf %18, %20 : vector<64x128xf32>
      %cst_18 = arith.constant 0.000000e+00 : f32
      %22 = vector.broadcast %cst_18 : f32 to vector<64x128xf32>
      %23 = arith.maximumf %21, %22 : vector<64x128xf32>
      %24 = arith.truncf %23 : vector<64x128xf32> to vector<64x128xbf16>
      %c0_19 = arith.constant 0 : index
      %c0_20 = arith.constant 0 : index
      %25 = vector.load %arg8[%c0_19, %c0_20] : memref<64x128xbf16, #tpu.memory_space<vmem>>, vector<64x128xbf16>
      tpu.vector_store %arg8[%c0_19, %c0_20], %24 {strides = array<i32>} : memref<64x128xbf16, #tpu.memory_space<vmem>>, vector<64x128xbf16>,
    } else {
    }
    return
  }
  func.func @transform_0(%arg0: i32, %arg1: i32, %arg2: i32) -> (i32, i32) {
    %c0_i32 = arith.constant 0 : i32
    return %arg0, %arg2 : i32, i32
  }
  func.func @transform_1(%arg0: i32, %arg1: i32, %arg2: i32) -> (i32, i32) {
    %c0_i32 = arith.constant 0 : i32
    return %arg2, %arg1 : i32, i32
  }
  func.func @transform_2(%arg0: i32, %arg1: i32, %arg2: i32) -> (i32, i32) {
    %c0_i32 = arith.constant 0 : i32
    %c0_i32_0 = arith.constant 0 : i32
    return %c0_i32, %arg1 : i32, i32
  }
  func.func @transform_3(%arg0: i32, %arg1: i32, %arg2: i32) -> (i32, i32) {
    %c0_i32 = arith.constant 0 : i32
    %c0_i32_0 = arith.constant 0 : i32
    return %c0_i32, %arg1 : i32, i32
  }
  func.func @transform_4(%arg0: i32, %arg1: i32, %arg2: i32) -> (i32, i32) {
    %c0_i32 = arith.constant 0 : i32
    return %arg0, %arg1 : i32, i32
  }
  func.func @transform_5(%arg0: i32, %arg1: i32, %arg2: i32) -> (i32, i32) {
    %c0_i32 = arith.constant 0 : i32
    return %arg0, %arg1 : i32, i32
  }
}

module attributes {stable_mosaic.version = 11 : i64} {
  func.func @_mm_bn_kernel(%arg0: i32, %arg1: i32, %arg2: i32, %arg3: memref<16x1152xbf16, #tpu.memory_space<vmem>>, %arg4: memref<1152x128xbf16, #tpu.memory_space<vmem>>, %arg5: memref<1x128xf32, #tpu.memory_space<vmem>>, %arg6: memref<1x128xf32, #tpu.memory_space<vmem>>, %arg7: memref<16x128xbf16, #tpu.memory_space<vmem>>, %arg8: memref<16x128xf32, #tpu.memory_space<vmem>>) attributes {dimension_semantics = [#tpu.dimension_semantics<parallel>, #tpu.dimension_semantics<parallel>, #tpu.dimension_semantics<arbitrary>], iteration_bounds = array<i64: 2, 1, 1>, scalar_prefetch = 0 : i64, scratch_operands = 1 : i64, tpu.core_type = #tpu.core_type<tc>, window_params = [{transform_indices = @transform_0, window_bounds = array<i64: 16, 1152>}, {transform_indices = @transform_1, window_bounds = array<i64: 1152, 128>}, {transform_indices = @transform_2, window_bounds = array<i64: 1, 128>}, {transform_indices = @transform_3, window_bounds = array<i64: 1, 128>}, {transform_indices = @transform_4, window_bounds = array<i64: 16, 128>}]} {
    %c0_i32 = arith.constant 0 : i32
    %0 = arith.cmpi eq, %arg2, %c0_i32 : i32
    %1 = arith.extui %0 : i1 to i32
    %c0_i32_0 = arith.constant 0 : i32
    %2 = arith.cmpi ne, %1, %c0_i32_0 : i32
    scf.if %2 {
      %cst_10 = arith.constant 0.000000e+00 : f32
      %12 = vector.broadcast %cst_10 : f32 to vector<16x128xf32>
      %c0_11 = arith.constant 0 : index
      %c0_12 = arith.constant 0 : index
      %13 = vector.load %arg8[%c0_11, %c0_12] : memref<16x128xf32, #tpu.memory_space<vmem>>, vector<16x128xf32>
      tpu.vector_store %arg8[%c0_11, %c0_12], %12 {strides = array<i32>} : memref<16x128xf32, #tpu.memory_space<vmem>>, vector<16x128xf32>,
    } else {
    }
    %c0 = arith.constant 0 : index
    %c0_1 = arith.constant 0 : index
    %3 = vector.load %arg8[%c0, %c0_1] : memref<16x128xf32, #tpu.memory_space<vmem>>, vector<16x128xf32>
    %c0_2 = arith.constant 0 : index
    %c0_3 = arith.constant 0 : index
    %4 = vector.load %arg3[%c0_2, %c0_3] : memref<16x1152xbf16, #tpu.memory_space<vmem>>, vector<16x1152xbf16>
    %c0_4 = arith.constant 0 : index
    %c0_5 = arith.constant 0 : index
    %5 = vector.load %arg4[%c0_4, %c0_5] : memref<1152x128xbf16, #tpu.memory_space<vmem>>, vector<1152x128xbf16>
    %cst = arith.constant dense<0.000000e+00> : vector<16x128xf32>
    %6 = tpu.matmul %4, %5, %cst {dimension_numbers = #tpu.dot_dimension_numbers<[1], [0], [0], [1], [0, 0, 1, 1], [], []>} : vector<16x1152xbf16>, vector<1152x128xbf16>, vector<16x128xf32> -> vector<16x128xf32>
    %7 = arith.addf %3, %6 : vector<16x128xf32>
    %c0_6 = arith.constant 0 : index
    %c0_7 = arith.constant 0 : index
    %8 = vector.load %arg8[%c0_6, %c0_7] : memref<16x128xf32, #tpu.memory_space<vmem>>, vector<16x128xf32>
    tpu.vector_store %arg8[%c0_6, %c0_7], %7 {strides = array<i32>} : memref<16x128xf32, #tpu.memory_space<vmem>>, vector<16x128xf32>,
    %c0_i32_8 = arith.constant 0 : i32
    %9 = arith.cmpi eq, %arg2, %c0_i32_8 : i32
    %10 = arith.extui %9 : i1 to i32
    %c0_i32_9 = arith.constant 0 : i32
    %11 = arith.cmpi ne, %10, %c0_i32_9 : i32
    scf.if %11 {
      %c0_10 = arith.constant 0 : index
      %c0_11 = arith.constant 0 : index
      %12 = vector.load %arg8[%c0_10, %c0_11] : memref<16x128xf32, #tpu.memory_space<vmem>>, vector<16x128xf32>
      %c0_12 = arith.constant 0 : index
      %c0_13 = arith.constant 0 : index
      %13 = vector.load %arg5[%c0_12, %c0_13] : memref<1x128xf32, #tpu.memory_space<vmem>>, vector<1x128xf32>
      %14 = vector.broadcast %13 : vector<1x128xf32> to vector<16x128xf32>
      %15 = arith.mulf %12, %14 : vector<16x128xf32>
      %c0_14 = arith.constant 0 : index
      %c0_15 = arith.constant 0 : index
      %16 = vector.load %arg6[%c0_14, %c0_15] : memref<1x128xf32, #tpu.memory_space<vmem>>, vector<1x128xf32>
      %17 = vector.broadcast %16 : vector<1x128xf32> to vector<16x128xf32>
      %18 = arith.addf %15, %17 : vector<16x128xf32>
      %cst_16 = arith.constant 0.000000e+00 : f32
      %19 = vector.broadcast %cst_16 : f32 to vector<16x128xf32>
      %20 = arith.maximumf %18, %19 : vector<16x128xf32>
      %21 = arith.truncf %20 : vector<16x128xf32> to vector<16x128xbf16>
      %c0_17 = arith.constant 0 : index
      %c0_18 = arith.constant 0 : index
      %22 = vector.load %arg7[%c0_17, %c0_18] : memref<16x128xbf16, #tpu.memory_space<vmem>>, vector<16x128xbf16>
      tpu.vector_store %arg7[%c0_17, %c0_18], %21 {strides = array<i32>} : memref<16x128xbf16, #tpu.memory_space<vmem>>, vector<16x128xbf16>,
    } else {
    }
    return
  }
  func.func @transform_0(%arg0: i32, %arg1: i32, %arg2: i32) -> (i32, i32) {
    %c0_i32 = arith.constant 0 : i32
    return %arg0, %arg2 : i32, i32
  }
  func.func @transform_1(%arg0: i32, %arg1: i32, %arg2: i32) -> (i32, i32) {
    %c0_i32 = arith.constant 0 : i32
    return %arg2, %arg1 : i32, i32
  }
  func.func @transform_2(%arg0: i32, %arg1: i32, %arg2: i32) -> (i32, i32) {
    %c0_i32 = arith.constant 0 : i32
    %c0_i32_0 = arith.constant 0 : i32
    return %c0_i32, %arg1 : i32, i32
  }
  func.func @transform_3(%arg0: i32, %arg1: i32, %arg2: i32) -> (i32, i32) {
    %c0_i32 = arith.constant 0 : i32
    %c0_i32_0 = arith.constant 0 : i32
    return %c0_i32, %arg1 : i32, i32
  }
  func.func @transform_4(%arg0: i32, %arg1: i32, %arg2: i32) -> (i32, i32) {
    %c0_i32 = arith.constant 0 : i32
    return %arg0, %arg1 : i32, i32
  }
}

module attributes {stable_mosaic.version = 11 : i64} {
  func.func @_mm_bn_res_kernel(%arg0: i32, %arg1: i32, %arg2: i32, %arg3: memref<16x1152xbf16, #tpu.memory_space<vmem>>, %arg4: memref<1152x128xbf16, #tpu.memory_space<vmem>>, %arg5: memref<1x128xf32, #tpu.memory_space<vmem>>, %arg6: memref<1x128xf32, #tpu.memory_space<vmem>>, %arg7: memref<16x128xbf16, #tpu.memory_space<vmem>>, %arg8: memref<16x128xbf16, #tpu.memory_space<vmem>>, %arg9: memref<16x128xf32, #tpu.memory_space<vmem>>) attributes {dimension_semantics = [#tpu.dimension_semantics<parallel>, #tpu.dimension_semantics<parallel>, #tpu.dimension_semantics<arbitrary>], iteration_bounds = array<i64: 2, 1, 1>, scalar_prefetch = 0 : i64, scratch_operands = 1 : i64, tpu.core_type = #tpu.core_type<tc>, window_params = [{transform_indices = @transform_0, window_bounds = array<i64: 16, 1152>}, {transform_indices = @transform_1, window_bounds = array<i64: 1152, 128>}, {transform_indices = @transform_2, window_bounds = array<i64: 1, 128>}, {transform_indices = @transform_3, window_bounds = array<i64: 1, 128>}, {transform_indices = @transform_4, window_bounds = array<i64: 16, 128>}, {transform_indices = @transform_5, window_bounds = array<i64: 16, 128>}]} {
    %c0_i32 = arith.constant 0 : i32
    %0 = arith.cmpi eq, %arg2, %c0_i32 : i32
    %1 = arith.extui %0 : i1 to i32
    %c0_i32_0 = arith.constant 0 : i32
    %2 = arith.cmpi ne, %1, %c0_i32_0 : i32
    scf.if %2 {
      %cst_10 = arith.constant 0.000000e+00 : f32
      %12 = vector.broadcast %cst_10 : f32 to vector<16x128xf32>
      %c0_11 = arith.constant 0 : index
      %c0_12 = arith.constant 0 : index
      %13 = vector.load %arg9[%c0_11, %c0_12] : memref<16x128xf32, #tpu.memory_space<vmem>>, vector<16x128xf32>
      tpu.vector_store %arg9[%c0_11, %c0_12], %12 {strides = array<i32>} : memref<16x128xf32, #tpu.memory_space<vmem>>, vector<16x128xf32>,
    } else {
    }
    %c0 = arith.constant 0 : index
    %c0_1 = arith.constant 0 : index
    %3 = vector.load %arg9[%c0, %c0_1] : memref<16x128xf32, #tpu.memory_space<vmem>>, vector<16x128xf32>
    %c0_2 = arith.constant 0 : index
    %c0_3 = arith.constant 0 : index
    %4 = vector.load %arg3[%c0_2, %c0_3] : memref<16x1152xbf16, #tpu.memory_space<vmem>>, vector<16x1152xbf16>
    %c0_4 = arith.constant 0 : index
    %c0_5 = arith.constant 0 : index
    %5 = vector.load %arg4[%c0_4, %c0_5] : memref<1152x128xbf16, #tpu.memory_space<vmem>>, vector<1152x128xbf16>
    %cst = arith.constant dense<0.000000e+00> : vector<16x128xf32>
    %6 = tpu.matmul %4, %5, %cst {dimension_numbers = #tpu.dot_dimension_numbers<[1], [0], [0], [1], [0, 0, 1, 1], [], []>} : vector<16x1152xbf16>, vector<1152x128xbf16>, vector<16x128xf32> -> vector<16x128xf32>
    %7 = arith.addf %3, %6 : vector<16x128xf32>
    %c0_6 = arith.constant 0 : index
    %c0_7 = arith.constant 0 : index
    %8 = vector.load %arg9[%c0_6, %c0_7] : memref<16x128xf32, #tpu.memory_space<vmem>>, vector<16x128xf32>
    tpu.vector_store %arg9[%c0_6, %c0_7], %7 {strides = array<i32>} : memref<16x128xf32, #tpu.memory_space<vmem>>, vector<16x128xf32>,
    %c0_i32_8 = arith.constant 0 : i32
    %9 = arith.cmpi eq, %arg2, %c0_i32_8 : i32
    %10 = arith.extui %9 : i1 to i32
    %c0_i32_9 = arith.constant 0 : i32
    %11 = arith.cmpi ne, %10, %c0_i32_9 : i32
    scf.if %11 {
      %c0_10 = arith.constant 0 : index
      %c0_11 = arith.constant 0 : index
      %12 = vector.load %arg9[%c0_10, %c0_11] : memref<16x128xf32, #tpu.memory_space<vmem>>, vector<16x128xf32>
      %c0_12 = arith.constant 0 : index
      %c0_13 = arith.constant 0 : index
      %13 = vector.load %arg5[%c0_12, %c0_13] : memref<1x128xf32, #tpu.memory_space<vmem>>, vector<1x128xf32>
      %14 = vector.broadcast %13 : vector<1x128xf32> to vector<16x128xf32>
      %15 = arith.mulf %12, %14 : vector<16x128xf32>
      %c0_14 = arith.constant 0 : index
      %c0_15 = arith.constant 0 : index
      %16 = vector.load %arg6[%c0_14, %c0_15] : memref<1x128xf32, #tpu.memory_space<vmem>>, vector<1x128xf32>
      %17 = vector.broadcast %16 : vector<1x128xf32> to vector<16x128xf32>
      %18 = arith.addf %15, %17 : vector<16x128xf32>
      %c0_16 = arith.constant 0 : index
      %c0_17 = arith.constant 0 : index
      %19 = vector.load %arg7[%c0_16, %c0_17] : memref<16x128xbf16, #tpu.memory_space<vmem>>, vector<16x128xbf16>
      %20 = arith.extf %19 : vector<16x128xbf16> to vector<16x128xf32>
      %21 = arith.addf %18, %20 : vector<16x128xf32>
      %cst_18 = arith.constant 0.000000e+00 : f32
      %22 = vector.broadcast %cst_18 : f32 to vector<16x128xf32>
      %23 = arith.maximumf %21, %22 : vector<16x128xf32>
      %24 = arith.truncf %23 : vector<16x128xf32> to vector<16x128xbf16>
      %c0_19 = arith.constant 0 : index
      %c0_20 = arith.constant 0 : index
      %25 = vector.load %arg8[%c0_19, %c0_20] : memref<16x128xbf16, #tpu.memory_space<vmem>>, vector<16x128xbf16>
      tpu.vector_store %arg8[%c0_19, %c0_20], %24 {strides = array<i32>} : memref<16x128xbf16, #tpu.memory_space<vmem>>, vector<16x128xbf16>,
    } else {
    }
    return
  }
  func.func @transform_0(%arg0: i32, %arg1: i32, %arg2: i32) -> (i32, i32) {
    %c0_i32 = arith.constant 0 : i32
    return %arg0, %arg2 : i32, i32
  }
  func.func @transform_1(%arg0: i32, %arg1: i32, %arg2: i32) -> (i32, i32) {
    %c0_i32 = arith.constant 0 : i32
    return %arg2, %arg1 : i32, i32
  }
  func.func @transform_2(%arg0: i32, %arg1: i32, %arg2: i32) -> (i32, i32) {
    %c0_i32 = arith.constant 0 : i32
    %c0_i32_0 = arith.constant 0 : i32
    return %c0_i32, %arg1 : i32, i32
  }
  func.func @transform_3(%arg0: i32, %arg1: i32, %arg2: i32) -> (i32, i32) {
    %c0_i32 = arith.constant 0 : i32
    %c0_i32_0 = arith.constant 0 : i32
    return %c0_i32, %arg1 : i32, i32
  }
  func.func @transform_4(%arg0: i32, %arg1: i32, %arg2: i32) -> (i32, i32) {
    %c0_i32 = arith.constant 0 : i32
    return %arg0, %arg1 : i32, i32
  }
  func.func @transform_5(%arg0: i32, %arg1: i32, %arg2: i32) -> (i32, i32) {
    %c0_i32 = arith.constant 0 : i32
    return %arg0, %arg1 : i32, i32
  }
}

module attributes {stable_mosaic.version = 11 : i64} {
  func.func @_mm_bn_kernel(%arg0: i32, %arg1: i32, %arg2: i32, %arg3: memref<16x128xbf16, #tpu.memory_space<vmem>>, %arg4: memref<128x128xbf16, #tpu.memory_space<vmem>>, %arg5: memref<1x128xf32, #tpu.memory_space<vmem>>, %arg6: memref<1x128xf32, #tpu.memory_space<vmem>>, %arg7: memref<16x128xbf16, #tpu.memory_space<vmem>>, %arg8: memref<16x128xf32, #tpu.memory_space<vmem>>) attributes {dimension_semantics = [#tpu.dimension_semantics<parallel>, #tpu.dimension_semantics<parallel>, #tpu.dimension_semantics<arbitrary>], iteration_bounds = array<i64: 2, 1, 1>, scalar_prefetch = 0 : i64, scratch_operands = 1 : i64, tpu.core_type = #tpu.core_type<tc>, window_params = [{transform_indices = @transform_0, window_bounds = array<i64: 16, 128>}, {transform_indices = @transform_1, window_bounds = array<i64: 128, 128>}, {transform_indices = @transform_2, window_bounds = array<i64: 1, 128>}, {transform_indices = @transform_3, window_bounds = array<i64: 1, 128>}, {transform_indices = @transform_4, window_bounds = array<i64: 16, 128>}]} {
    %c0_i32 = arith.constant 0 : i32
    %0 = arith.cmpi eq, %arg2, %c0_i32 : i32
    %1 = arith.extui %0 : i1 to i32
    %c0_i32_0 = arith.constant 0 : i32
    %2 = arith.cmpi ne, %1, %c0_i32_0 : i32
    scf.if %2 {
      %cst_10 = arith.constant 0.000000e+00 : f32
      %12 = vector.broadcast %cst_10 : f32 to vector<16x128xf32>
      %c0_11 = arith.constant 0 : index
      %c0_12 = arith.constant 0 : index
      %13 = vector.load %arg8[%c0_11, %c0_12] : memref<16x128xf32, #tpu.memory_space<vmem>>, vector<16x128xf32>
      tpu.vector_store %arg8[%c0_11, %c0_12], %12 {strides = array<i32>} : memref<16x128xf32, #tpu.memory_space<vmem>>, vector<16x128xf32>,
    } else {
    }
    %c0 = arith.constant 0 : index
    %c0_1 = arith.constant 0 : index
    %3 = vector.load %arg8[%c0, %c0_1] : memref<16x128xf32, #tpu.memory_space<vmem>>, vector<16x128xf32>
    %c0_2 = arith.constant 0 : index
    %c0_3 = arith.constant 0 : index
    %4 = vector.load %arg3[%c0_2, %c0_3] : memref<16x128xbf16, #tpu.memory_space<vmem>>, vector<16x128xbf16>
    %c0_4 = arith.constant 0 : index
    %c0_5 = arith.constant 0 : index
    %5 = vector.load %arg4[%c0_4, %c0_5] : memref<128x128xbf16, #tpu.memory_space<vmem>>, vector<128x128xbf16>
    %cst = arith.constant dense<0.000000e+00> : vector<16x128xf32>
    %6 = tpu.matmul %4, %5, %cst {dimension_numbers = #tpu.dot_dimension_numbers<[1], [0], [0], [1], [0, 0, 1, 1], [], []>} : vector<16x128xbf16>, vector<128x128xbf16>, vector<16x128xf32> -> vector<16x128xf32>
    %7 = arith.addf %3, %6 : vector<16x128xf32>
    %c0_6 = arith.constant 0 : index
    %c0_7 = arith.constant 0 : index
    %8 = vector.load %arg8[%c0_6, %c0_7] : memref<16x128xf32, #tpu.memory_space<vmem>>, vector<16x128xf32>
    tpu.vector_store %arg8[%c0_6, %c0_7], %7 {strides = array<i32>} : memref<16x128xf32, #tpu.memory_space<vmem>>, vector<16x128xf32>,
    %c0_i32_8 = arith.constant 0 : i32
    %9 = arith.cmpi eq, %arg2, %c0_i32_8 : i32
    %10 = arith.extui %9 : i1 to i32
    %c0_i32_9 = arith.constant 0 : i32
    %11 = arith.cmpi ne, %10, %c0_i32_9 : i32
    scf.if %11 {
      %c0_10 = arith.constant 0 : index
      %c0_11 = arith.constant 0 : index
      %12 = vector.load %arg8[%c0_10, %c0_11] : memref<16x128xf32, #tpu.memory_space<vmem>>, vector<16x128xf32>
      %c0_12 = arith.constant 0 : index
      %c0_13 = arith.constant 0 : index
      %13 = vector.load %arg5[%c0_12, %c0_13] : memref<1x128xf32, #tpu.memory_space<vmem>>, vector<1x128xf32>
      %14 = vector.broadcast %13 : vector<1x128xf32> to vector<16x128xf32>
      %15 = arith.mulf %12, %14 : vector<16x128xf32>
      %c0_14 = arith.constant 0 : index
      %c0_15 = arith.constant 0 : index
      %16 = vector.load %arg6[%c0_14, %c0_15] : memref<1x128xf32, #tpu.memory_space<vmem>>, vector<1x128xf32>
      %17 = vector.broadcast %16 : vector<1x128xf32> to vector<16x128xf32>
      %18 = arith.addf %15, %17 : vector<16x128xf32>
      %19 = arith.truncf %18 : vector<16x128xf32> to vector<16x128xbf16>
      %c0_16 = arith.constant 0 : index
      %c0_17 = arith.constant 0 : index
      %20 = vector.load %arg7[%c0_16, %c0_17] : memref<16x128xbf16, #tpu.memory_space<vmem>>, vector<16x128xbf16>
      tpu.vector_store %arg7[%c0_16, %c0_17], %19 {strides = array<i32>} : memref<16x128xbf16, #tpu.memory_space<vmem>>, vector<16x128xbf16>,
    } else {
    }
    return
  }
  func.func @transform_0(%arg0: i32, %arg1: i32, %arg2: i32) -> (i32, i32) {
    %c0_i32 = arith.constant 0 : i32
    return %arg0, %arg2 : i32, i32
  }
  func.func @transform_1(%arg0: i32, %arg1: i32, %arg2: i32) -> (i32, i32) {
    %c0_i32 = arith.constant 0 : i32
    return %arg2, %arg1 : i32, i32
  }
  func.func @transform_2(%arg0: i32, %arg1: i32, %arg2: i32) -> (i32, i32) {
    %c0_i32 = arith.constant 0 : i32
    %c0_i32_0 = arith.constant 0 : i32
    return %c0_i32, %arg1 : i32, i32
  }
  func.func @transform_3(%arg0: i32, %arg1: i32, %arg2: i32) -> (i32, i32) {
    %c0_i32 = arith.constant 0 : i32
    %c0_i32_0 = arith.constant 0 : i32
    return %c0_i32, %arg1 : i32, i32
  }
  func.func @transform_4(%arg0: i32, %arg1: i32, %arg2: i32) -> (i32, i32) {
    %c0_i32 = arith.constant 0 : i32
    return %arg0, %arg1 : i32, i32
  }
}

module attributes {stable_mosaic.version = 11 : i64} {
  func.func @_mm_bn_kernel(%arg0: i32, %arg1: i32, %arg2: i32, %arg3: memref<16x1152xbf16, #tpu.memory_space<vmem>>, %arg4: memref<1152x128xbf16, #tpu.memory_space<vmem>>, %arg5: memref<1x128xf32, #tpu.memory_space<vmem>>, %arg6: memref<1x128xf32, #tpu.memory_space<vmem>>, %arg7: memref<16x128xbf16, #tpu.memory_space<vmem>>, %arg8: memref<16x128xf32, #tpu.memory_space<vmem>>) attributes {dimension_semantics = [#tpu.dimension_semantics<parallel>, #tpu.dimension_semantics<parallel>, #tpu.dimension_semantics<arbitrary>], iteration_bounds = array<i64: 1, 2, 1>, scalar_prefetch = 0 : i64, scratch_operands = 1 : i64, tpu.core_type = #tpu.core_type<tc>, window_params = [{transform_indices = @transform_0, window_bounds = array<i64: 16, 1152>}, {transform_indices = @transform_1, window_bounds = array<i64: 1152, 128>}, {transform_indices = @transform_2, window_bounds = array<i64: 1, 128>}, {transform_indices = @transform_3, window_bounds = array<i64: 1, 128>}, {transform_indices = @transform_4, window_bounds = array<i64: 16, 128>}]} {
    %c0_i32 = arith.constant 0 : i32
    %0 = arith.cmpi eq, %arg2, %c0_i32 : i32
    %1 = arith.extui %0 : i1 to i32
    %c0_i32_0 = arith.constant 0 : i32
    %2 = arith.cmpi ne, %1, %c0_i32_0 : i32
    scf.if %2 {
      %cst_10 = arith.constant 0.000000e+00 : f32
      %12 = vector.broadcast %cst_10 : f32 to vector<16x128xf32>
      %c0_11 = arith.constant 0 : index
      %c0_12 = arith.constant 0 : index
      %13 = vector.load %arg8[%c0_11, %c0_12] : memref<16x128xf32, #tpu.memory_space<vmem>>, vector<16x128xf32>
      tpu.vector_store %arg8[%c0_11, %c0_12], %12 {strides = array<i32>} : memref<16x128xf32, #tpu.memory_space<vmem>>, vector<16x128xf32>,
    } else {
    }
    %c0 = arith.constant 0 : index
    %c0_1 = arith.constant 0 : index
    %3 = vector.load %arg8[%c0, %c0_1] : memref<16x128xf32, #tpu.memory_space<vmem>>, vector<16x128xf32>
    %c0_2 = arith.constant 0 : index
    %c0_3 = arith.constant 0 : index
    %4 = vector.load %arg3[%c0_2, %c0_3] : memref<16x1152xbf16, #tpu.memory_space<vmem>>, vector<16x1152xbf16>
    %c0_4 = arith.constant 0 : index
    %c0_5 = arith.constant 0 : index
    %5 = vector.load %arg4[%c0_4, %c0_5] : memref<1152x128xbf16, #tpu.memory_space<vmem>>, vector<1152x128xbf16>
    %cst = arith.constant dense<0.000000e+00> : vector<16x128xf32>
    %6 = tpu.matmul %4, %5, %cst {dimension_numbers = #tpu.dot_dimension_numbers<[1], [0], [0], [1], [0, 0, 1, 1], [], []>} : vector<16x1152xbf16>, vector<1152x128xbf16>, vector<16x128xf32> -> vector<16x128xf32>
    %7 = arith.addf %3, %6 : vector<16x128xf32>
    %c0_6 = arith.constant 0 : index
    %c0_7 = arith.constant 0 : index
    %8 = vector.load %arg8[%c0_6, %c0_7] : memref<16x128xf32, #tpu.memory_space<vmem>>, vector<16x128xf32>
    tpu.vector_store %arg8[%c0_6, %c0_7], %7 {strides = array<i32>} : memref<16x128xf32, #tpu.memory_space<vmem>>, vector<16x128xf32>,
    %c0_i32_8 = arith.constant 0 : i32
    %9 = arith.cmpi eq, %arg2, %c0_i32_8 : i32
    %10 = arith.extui %9 : i1 to i32
    %c0_i32_9 = arith.constant 0 : i32
    %11 = arith.cmpi ne, %10, %c0_i32_9 : i32
    scf.if %11 {
      %c0_10 = arith.constant 0 : index
      %c0_11 = arith.constant 0 : index
      %12 = vector.load %arg8[%c0_10, %c0_11] : memref<16x128xf32, #tpu.memory_space<vmem>>, vector<16x128xf32>
      %c0_12 = arith.constant 0 : index
      %c0_13 = arith.constant 0 : index
      %13 = vector.load %arg5[%c0_12, %c0_13] : memref<1x128xf32, #tpu.memory_space<vmem>>, vector<1x128xf32>
      %14 = vector.broadcast %13 : vector<1x128xf32> to vector<16x128xf32>
      %15 = arith.mulf %12, %14 : vector<16x128xf32>
      %c0_14 = arith.constant 0 : index
      %c0_15 = arith.constant 0 : index
      %16 = vector.load %arg6[%c0_14, %c0_15] : memref<1x128xf32, #tpu.memory_space<vmem>>, vector<1x128xf32>
      %17 = vector.broadcast %16 : vector<1x128xf32> to vector<16x128xf32>
      %18 = arith.addf %15, %17 : vector<16x128xf32>
      %cst_16 = arith.constant 0.000000e+00 : f32
      %19 = vector.broadcast %cst_16 : f32 to vector<16x128xf32>
      %20 = arith.maximumf %18, %19 : vector<16x128xf32>
      %21 = arith.truncf %20 : vector<16x128xf32> to vector<16x128xbf16>
      %c0_17 = arith.constant 0 : index
      %c0_18 = arith.constant 0 : index
      %22 = vector.load %arg7[%c0_17, %c0_18] : memref<16x128xbf16, #tpu.memory_space<vmem>>, vector<16x128xbf16>
      tpu.vector_store %arg7[%c0_17, %c0_18], %21 {strides = array<i32>} : memref<16x128xbf16, #tpu.memory_space<vmem>>, vector<16x128xbf16>,
    } else {
    }
    return
  }
  func.func @transform_0(%arg0: i32, %arg1: i32, %arg2: i32) -> (i32, i32) {
    %c0_i32 = arith.constant 0 : i32
    return %arg0, %arg2 : i32, i32
  }
  func.func @transform_1(%arg0: i32, %arg1: i32, %arg2: i32) -> (i32, i32) {
    %c0_i32 = arith.constant 0 : i32
    return %arg2, %arg1 : i32, i32
  }
  func.func @transform_2(%arg0: i32, %arg1: i32, %arg2: i32) -> (i32, i32) {
    %c0_i32 = arith.constant 0 : i32
    %c0_i32_0 = arith.constant 0 : i32
    return %c0_i32, %arg1 : i32, i32
  }
  func.func @transform_3(%arg0: i32, %arg1: i32, %arg2: i32) -> (i32, i32) {
    %c0_i32 = arith.constant 0 : i32
    %c0_i32_0 = arith.constant 0 : i32
    return %c0_i32, %arg1 : i32, i32
  }
  func.func @transform_4(%arg0: i32, %arg1: i32, %arg2: i32) -> (i32, i32) {
    %c0_i32 = arith.constant 0 : i32
    return %arg0, %arg1 : i32, i32
  }
}

module attributes {stable_mosaic.version = 11 : i64} {
  func.func @_mm_bn_kernel(%arg0: i32, %arg1: i32, %arg2: i32, %arg3: memref<16x128xbf16, #tpu.memory_space<vmem>>, %arg4: memref<128x128xbf16, #tpu.memory_space<vmem>>, %arg5: memref<1x128xf32, #tpu.memory_space<vmem>>, %arg6: memref<1x128xf32, #tpu.memory_space<vmem>>, %arg7: memref<16x128xbf16, #tpu.memory_space<vmem>>, %arg8: memref<16x128xf32, #tpu.memory_space<vmem>>) attributes {dimension_semantics = [#tpu.dimension_semantics<parallel>, #tpu.dimension_semantics<parallel>, #tpu.dimension_semantics<arbitrary>], iteration_bounds = array<i64: 1, 2, 1>, scalar_prefetch = 0 : i64, scratch_operands = 1 : i64, tpu.core_type = #tpu.core_type<tc>, window_params = [{transform_indices = @transform_0, window_bounds = array<i64: 16, 128>}, {transform_indices = @transform_1, window_bounds = array<i64: 128, 128>}, {transform_indices = @transform_2, window_bounds = array<i64: 1, 128>}, {transform_indices = @transform_3, window_bounds = array<i64: 1, 128>}, {transform_indices = @transform_4, window_bounds = array<i64: 16, 128>}]} {
    %c0_i32 = arith.constant 0 : i32
    %0 = arith.cmpi eq, %arg2, %c0_i32 : i32
    %1 = arith.extui %0 : i1 to i32
    %c0_i32_0 = arith.constant 0 : i32
    %2 = arith.cmpi ne, %1, %c0_i32_0 : i32
    scf.if %2 {
      %cst_10 = arith.constant 0.000000e+00 : f32
      %12 = vector.broadcast %cst_10 : f32 to vector<16x128xf32>
      %c0_11 = arith.constant 0 : index
      %c0_12 = arith.constant 0 : index
      %13 = vector.load %arg8[%c0_11, %c0_12] : memref<16x128xf32, #tpu.memory_space<vmem>>, vector<16x128xf32>
      tpu.vector_store %arg8[%c0_11, %c0_12], %12 {strides = array<i32>} : memref<16x128xf32, #tpu.memory_space<vmem>>, vector<16x128xf32>,
    } else {
    }
    %c0 = arith.constant 0 : index
    %c0_1 = arith.constant 0 : index
    %3 = vector.load %arg8[%c0, %c0_1] : memref<16x128xf32, #tpu.memory_space<vmem>>, vector<16x128xf32>
    %c0_2 = arith.constant 0 : index
    %c0_3 = arith.constant 0 : index
    %4 = vector.load %arg3[%c0_2, %c0_3] : memref<16x128xbf16, #tpu.memory_space<vmem>>, vector<16x128xbf16>
    %c0_4 = arith.constant 0 : index
    %c0_5 = arith.constant 0 : index
    %5 = vector.load %arg4[%c0_4, %c0_5] : memref<128x128xbf16, #tpu.memory_space<vmem>>, vector<128x128xbf16>
    %cst = arith.constant dense<0.000000e+00> : vector<16x128xf32>
    %6 = tpu.matmul %4, %5, %cst {dimension_numbers = #tpu.dot_dimension_numbers<[1], [0], [0], [1], [0, 0, 1, 1], [], []>} : vector<16x128xbf16>, vector<128x128xbf16>, vector<16x128xf32> -> vector<16x128xf32>
    %7 = arith.addf %3, %6 : vector<16x128xf32>
    %c0_6 = arith.constant 0 : index
    %c0_7 = arith.constant 0 : index
    %8 = vector.load %arg8[%c0_6, %c0_7] : memref<16x128xf32, #tpu.memory_space<vmem>>, vector<16x128xf32>
    tpu.vector_store %arg8[%c0_6, %c0_7], %7 {strides = array<i32>} : memref<16x128xf32, #tpu.memory_space<vmem>>, vector<16x128xf32>,
    %c0_i32_8 = arith.constant 0 : i32
    %9 = arith.cmpi eq, %arg2, %c0_i32_8 : i32
    %10 = arith.extui %9 : i1 to i32
    %c0_i32_9 = arith.constant 0 : i32
    %11 = arith.cmpi ne, %10, %c0_i32_9 : i32
    scf.if %11 {
      %c0_10 = arith.constant 0 : index
      %c0_11 = arith.constant 0 : index
      %12 = vector.load %arg8[%c0_10, %c0_11] : memref<16x128xf32, #tpu.memory_space<vmem>>, vector<16x128xf32>
      %c0_12 = arith.constant 0 : index
      %c0_13 = arith.constant 0 : index
      %13 = vector.load %arg5[%c0_12, %c0_13] : memref<1x128xf32, #tpu.memory_space<vmem>>, vector<1x128xf32>
      %14 = vector.broadcast %13 : vector<1x128xf32> to vector<16x128xf32>
      %15 = arith.mulf %12, %14 : vector<16x128xf32>
      %c0_14 = arith.constant 0 : index
      %c0_15 = arith.constant 0 : index
      %16 = vector.load %arg6[%c0_14, %c0_15] : memref<1x128xf32, #tpu.memory_space<vmem>>, vector<1x128xf32>
      %17 = vector.broadcast %16 : vector<1x128xf32> to vector<16x128xf32>
      %18 = arith.addf %15, %17 : vector<16x128xf32>
      %19 = arith.truncf %18 : vector<16x128xf32> to vector<16x128xbf16>
      %c0_16 = arith.constant 0 : index
      %c0_17 = arith.constant 0 : index
      %20 = vector.load %arg7[%c0_16, %c0_17] : memref<16x128xbf16, #tpu.memory_space<vmem>>, vector<16x128xbf16>
      tpu.vector_store %arg7[%c0_16, %c0_17], %19 {strides = array<i32>} : memref<16x128xbf16, #tpu.memory_space<vmem>>, vector<16x128xbf16>,
    } else {
    }
    return
  }
  func.func @transform_0(%arg0: i32, %arg1: i32, %arg2: i32) -> (i32, i32) {
    %c0_i32 = arith.constant 0 : i32
    return %arg0, %arg2 : i32, i32
  }
  func.func @transform_1(%arg0: i32, %arg1: i32, %arg2: i32) -> (i32, i32) {
    %c0_i32 = arith.constant 0 : i32
    return %arg2, %arg1 : i32, i32
  }
  func.func @transform_2(%arg0: i32, %arg1: i32, %arg2: i32) -> (i32, i32) {
    %c0_i32 = arith.constant 0 : i32
    %c0_i32_0 = arith.constant 0 : i32
    return %c0_i32, %arg1 : i32, i32
  }
  func.func @transform_3(%arg0: i32, %arg1: i32, %arg2: i32) -> (i32, i32) {
    %c0_i32 = arith.constant 0 : i32
    %c0_i32_0 = arith.constant 0 : i32
    return %c0_i32, %arg1 : i32, i32
  }
  func.func @transform_4(%arg0: i32, %arg1: i32, %arg2: i32) -> (i32, i32) {
    %c0_i32 = arith.constant 0 : i32
    return %arg0, %arg1 : i32, i32
  }
}

module attributes {stable_mosaic.version = 11 : i64} {
  func.func @_mm_bn_res_kernel(%arg0: i32, %arg1: i32, %arg2: i32, %arg3: memref<16x2304xbf16, #tpu.memory_space<vmem>>, %arg4: memref<2304x128xbf16, #tpu.memory_space<vmem>>, %arg5: memref<1x128xf32, #tpu.memory_space<vmem>>, %arg6: memref<1x128xf32, #tpu.memory_space<vmem>>, %arg7: memref<16x128xbf16, #tpu.memory_space<vmem>>, %arg8: memref<16x128xbf16, #tpu.memory_space<vmem>>, %arg9: memref<16x128xf32, #tpu.memory_space<vmem>>) attributes {dimension_semantics = [#tpu.dimension_semantics<parallel>, #tpu.dimension_semantics<parallel>, #tpu.dimension_semantics<arbitrary>], iteration_bounds = array<i64: 1, 2, 1>, scalar_prefetch = 0 : i64, scratch_operands = 1 : i64, tpu.core_type = #tpu.core_type<tc>, window_params = [{transform_indices = @transform_0, window_bounds = array<i64: 16, 2304>}, {transform_indices = @transform_1, window_bounds = array<i64: 2304, 128>}, {transform_indices = @transform_2, window_bounds = array<i64: 1, 128>}, {transform_indices = @transform_3, window_bounds = array<i64: 1, 128>}, {transform_indices = @transform_4, window_bounds = array<i64: 16, 128>}, {transform_indices = @transform_5, window_bounds = array<i64: 16, 128>}]} {
    %c0_i32 = arith.constant 0 : i32
    %0 = arith.cmpi eq, %arg2, %c0_i32 : i32
    %1 = arith.extui %0 : i1 to i32
    %c0_i32_0 = arith.constant 0 : i32
    %2 = arith.cmpi ne, %1, %c0_i32_0 : i32
    scf.if %2 {
      %cst_10 = arith.constant 0.000000e+00 : f32
      %12 = vector.broadcast %cst_10 : f32 to vector<16x128xf32>
      %c0_11 = arith.constant 0 : index
      %c0_12 = arith.constant 0 : index
      %13 = vector.load %arg9[%c0_11, %c0_12] : memref<16x128xf32, #tpu.memory_space<vmem>>, vector<16x128xf32>
      tpu.vector_store %arg9[%c0_11, %c0_12], %12 {strides = array<i32>} : memref<16x128xf32, #tpu.memory_space<vmem>>, vector<16x128xf32>,
    } else {
    }
    %c0 = arith.constant 0 : index
    %c0_1 = arith.constant 0 : index
    %3 = vector.load %arg9[%c0, %c0_1] : memref<16x128xf32, #tpu.memory_space<vmem>>, vector<16x128xf32>
    %c0_2 = arith.constant 0 : index
    %c0_3 = arith.constant 0 : index
    %4 = vector.load %arg3[%c0_2, %c0_3] : memref<16x2304xbf16, #tpu.memory_space<vmem>>, vector<16x2304xbf16>
    %c0_4 = arith.constant 0 : index
    %c0_5 = arith.constant 0 : index
    %5 = vector.load %arg4[%c0_4, %c0_5] : memref<2304x128xbf16, #tpu.memory_space<vmem>>, vector<2304x128xbf16>
    %cst = arith.constant dense<0.000000e+00> : vector<16x128xf32>
    %6 = tpu.matmul %4, %5, %cst {dimension_numbers = #tpu.dot_dimension_numbers<[1], [0], [0], [1], [0, 0, 1, 1], [], []>} : vector<16x2304xbf16>, vector<2304x128xbf16>, vector<16x128xf32> -> vector<16x128xf32>
    %7 = arith.addf %3, %6 : vector<16x128xf32>
    %c0_6 = arith.constant 0 : index
    %c0_7 = arith.constant 0 : index
    %8 = vector.load %arg9[%c0_6, %c0_7] : memref<16x128xf32, #tpu.memory_space<vmem>>, vector<16x128xf32>
    tpu.vector_store %arg9[%c0_6, %c0_7], %7 {strides = array<i32>} : memref<16x128xf32, #tpu.memory_space<vmem>>, vector<16x128xf32>,
    %c0_i32_8 = arith.constant 0 : i32
    %9 = arith.cmpi eq, %arg2, %c0_i32_8 : i32
    %10 = arith.extui %9 : i1 to i32
    %c0_i32_9 = arith.constant 0 : i32
    %11 = arith.cmpi ne, %10, %c0_i32_9 : i32
    scf.if %11 {
      %c0_10 = arith.constant 0 : index
      %c0_11 = arith.constant 0 : index
      %12 = vector.load %arg9[%c0_10, %c0_11] : memref<16x128xf32, #tpu.memory_space<vmem>>, vector<16x128xf32>
      %c0_12 = arith.constant 0 : index
      %c0_13 = arith.constant 0 : index
      %13 = vector.load %arg5[%c0_12, %c0_13] : memref<1x128xf32, #tpu.memory_space<vmem>>, vector<1x128xf32>
      %14 = vector.broadcast %13 : vector<1x128xf32> to vector<16x128xf32>
      %15 = arith.mulf %12, %14 : vector<16x128xf32>
      %c0_14 = arith.constant 0 : index
      %c0_15 = arith.constant 0 : index
      %16 = vector.load %arg6[%c0_14, %c0_15] : memref<1x128xf32, #tpu.memory_space<vmem>>, vector<1x128xf32>
      %17 = vector.broadcast %16 : vector<1x128xf32> to vector<16x128xf32>
      %18 = arith.addf %15, %17 : vector<16x128xf32>
      %c0_16 = arith.constant 0 : index
      %c0_17 = arith.constant 0 : index
      %19 = vector.load %arg7[%c0_16, %c0_17] : memref<16x128xbf16, #tpu.memory_space<vmem>>, vector<16x128xbf16>
      %20 = arith.extf %19 : vector<16x128xbf16> to vector<16x128xf32>
      %21 = arith.addf %18, %20 : vector<16x128xf32>
      %cst_18 = arith.constant 0.000000e+00 : f32
      %22 = vector.broadcast %cst_18 : f32 to vector<16x128xf32>
      %23 = arith.maximumf %21, %22 : vector<16x128xf32>
      %24 = arith.truncf %23 : vector<16x128xf32> to vector<16x128xbf16>
      %c0_19 = arith.constant 0 : index
      %c0_20 = arith.constant 0 : index
      %25 = vector.load %arg8[%c0_19, %c0_20] : memref<16x128xbf16, #tpu.memory_space<vmem>>, vector<16x128xbf16>
      tpu.vector_store %arg8[%c0_19, %c0_20], %24 {strides = array<i32>} : memref<16x128xbf16, #tpu.memory_space<vmem>>, vector<16x128xbf16>,
    } else {
    }
    return
  }
  func.func @transform_0(%arg0: i32, %arg1: i32, %arg2: i32) -> (i32, i32) {
    %c0_i32 = arith.constant 0 : i32
    return %arg0, %arg2 : i32, i32
  }
  func.func @transform_1(%arg0: i32, %arg1: i32, %arg2: i32) -> (i32, i32) {
    %c0_i32 = arith.constant 0 : i32
    return %arg2, %arg1 : i32, i32
  }
  func.func @transform_2(%arg0: i32, %arg1: i32, %arg2: i32) -> (i32, i32) {
    %c0_i32 = arith.constant 0 : i32
    %c0_i32_0 = arith.constant 0 : i32
    return %c0_i32, %arg1 : i32, i32
  }
  func.func @transform_3(%arg0: i32, %arg1: i32, %arg2: i32) -> (i32, i32) {
    %c0_i32 = arith.constant 0 : i32
    %c0_i32_0 = arith.constant 0 : i32
    return %c0_i32, %arg1 : i32, i32
  }
  func.func @transform_4(%arg0: i32, %arg1: i32, %arg2: i32) -> (i32, i32) {
    %c0_i32 = arith.constant 0 : i32
    return %arg0, %arg1 : i32, i32
  }
  func.func @transform_5(%arg0: i32, %arg1: i32, %arg2: i32) -> (i32, i32) {
    %c0_i32 = arith.constant 0 : i32
    return %arg0, %arg1 : i32, i32
  }
}

module attributes {stable_mosaic.version = 11 : i64} {
  func.func @_mm_bn_kernel(%arg0: i32, %arg1: i32, %arg2: i32, %arg3: memref<16x2304xbf16, #tpu.memory_space<vmem>>, %arg4: memref<2304x128xbf16, #tpu.memory_space<vmem>>, %arg5: memref<1x128xf32, #tpu.memory_space<vmem>>, %arg6: memref<1x128xf32, #tpu.memory_space<vmem>>, %arg7: memref<16x128xbf16, #tpu.memory_space<vmem>>, %arg8: memref<16x128xf32, #tpu.memory_space<vmem>>) attributes {dimension_semantics = [#tpu.dimension_semantics<parallel>, #tpu.dimension_semantics<parallel>, #tpu.dimension_semantics<arbitrary>], iteration_bounds = array<i64: 1, 2, 1>, scalar_prefetch = 0 : i64, scratch_operands = 1 : i64, tpu.core_type = #tpu.core_type<tc>, window_params = [{transform_indices = @transform_0, window_bounds = array<i64: 16, 2304>}, {transform_indices = @transform_1, window_bounds = array<i64: 2304, 128>}, {transform_indices = @transform_2, window_bounds = array<i64: 1, 128>}, {transform_indices = @transform_3, window_bounds = array<i64: 1, 128>}, {transform_indices = @transform_4, window_bounds = array<i64: 16, 128>}]} {
    %c0_i32 = arith.constant 0 : i32
    %0 = arith.cmpi eq, %arg2, %c0_i32 : i32
    %1 = arith.extui %0 : i1 to i32
    %c0_i32_0 = arith.constant 0 : i32
    %2 = arith.cmpi ne, %1, %c0_i32_0 : i32
    scf.if %2 {
      %cst_10 = arith.constant 0.000000e+00 : f32
      %12 = vector.broadcast %cst_10 : f32 to vector<16x128xf32>
      %c0_11 = arith.constant 0 : index
      %c0_12 = arith.constant 0 : index
      %13 = vector.load %arg8[%c0_11, %c0_12] : memref<16x128xf32, #tpu.memory_space<vmem>>, vector<16x128xf32>
      tpu.vector_store %arg8[%c0_11, %c0_12], %12 {strides = array<i32>} : memref<16x128xf32, #tpu.memory_space<vmem>>, vector<16x128xf32>,
    } else {
    }
    %c0 = arith.constant 0 : index
    %c0_1 = arith.constant 0 : index
    %3 = vector.load %arg8[%c0, %c0_1] : memref<16x128xf32, #tpu.memory_space<vmem>>, vector<16x128xf32>
    %c0_2 = arith.constant 0 : index
    %c0_3 = arith.constant 0 : index
    %4 = vector.load %arg3[%c0_2, %c0_3] : memref<16x2304xbf16, #tpu.memory_space<vmem>>, vector<16x2304xbf16>
    %c0_4 = arith.constant 0 : index
    %c0_5 = arith.constant 0 : index
    %5 = vector.load %arg4[%c0_4, %c0_5] : memref<2304x128xbf16, #tpu.memory_space<vmem>>, vector<2304x128xbf16>
    %cst = arith.constant dense<0.000000e+00> : vector<16x128xf32>
    %6 = tpu.matmul %4, %5, %cst {dimension_numbers = #tpu.dot_dimension_numbers<[1], [0], [0], [1], [0, 0, 1, 1], [], []>} : vector<16x2304xbf16>, vector<2304x128xbf16>, vector<16x128xf32> -> vector<16x128xf32>
    %7 = arith.addf %3, %6 : vector<16x128xf32>
    %c0_6 = arith.constant 0 : index
    %c0_7 = arith.constant 0 : index
    %8 = vector.load %arg8[%c0_6, %c0_7] : memref<16x128xf32, #tpu.memory_space<vmem>>, vector<16x128xf32>
    tpu.vector_store %arg8[%c0_6, %c0_7], %7 {strides = array<i32>} : memref<16x128xf32, #tpu.memory_space<vmem>>, vector<16x128xf32>,
    %c0_i32_8 = arith.constant 0 : i32
    %9 = arith.cmpi eq, %arg2, %c0_i32_8 : i32
    %10 = arith.extui %9 : i1 to i32
    %c0_i32_9 = arith.constant 0 : i32
    %11 = arith.cmpi ne, %10, %c0_i32_9 : i32
    scf.if %11 {
      %c0_10 = arith.constant 0 : index
      %c0_11 = arith.constant 0 : index
      %12 = vector.load %arg8[%c0_10, %c0_11] : memref<16x128xf32, #tpu.memory_space<vmem>>, vector<16x128xf32>
      %c0_12 = arith.constant 0 : index
      %c0_13 = arith.constant 0 : index
      %13 = vector.load %arg5[%c0_12, %c0_13] : memref<1x128xf32, #tpu.memory_space<vmem>>, vector<1x128xf32>
      %14 = vector.broadcast %13 : vector<1x128xf32> to vector<16x128xf32>
      %15 = arith.mulf %12, %14 : vector<16x128xf32>
      %c0_14 = arith.constant 0 : index
      %c0_15 = arith.constant 0 : index
      %16 = vector.load %arg6[%c0_14, %c0_15] : memref<1x128xf32, #tpu.memory_space<vmem>>, vector<1x128xf32>
      %17 = vector.broadcast %16 : vector<1x128xf32> to vector<16x128xf32>
      %18 = arith.addf %15, %17 : vector<16x128xf32>
      %cst_16 = arith.constant 0.000000e+00 : f32
      %19 = vector.broadcast %cst_16 : f32 to vector<16x128xf32>
      %20 = arith.maximumf %18, %19 : vector<16x128xf32>
      %21 = arith.truncf %20 : vector<16x128xf32> to vector<16x128xbf16>
      %c0_17 = arith.constant 0 : index
      %c0_18 = arith.constant 0 : index
      %22 = vector.load %arg7[%c0_17, %c0_18] : memref<16x128xbf16, #tpu.memory_space<vmem>>, vector<16x128xbf16>
      tpu.vector_store %arg7[%c0_17, %c0_18], %21 {strides = array<i32>} : memref<16x128xbf16, #tpu.memory_space<vmem>>, vector<16x128xbf16>,
    } else {
    }
    return
  }
  func.func @transform_0(%arg0: i32, %arg1: i32, %arg2: i32) -> (i32, i32) {
    %c0_i32 = arith.constant 0 : i32
    return %arg0, %arg2 : i32, i32
  }
  func.func @transform_1(%arg0: i32, %arg1: i32, %arg2: i32) -> (i32, i32) {
    %c0_i32 = arith.constant 0 : i32
    return %arg2, %arg1 : i32, i32
  }
  func.func @transform_2(%arg0: i32, %arg1: i32, %arg2: i32) -> (i32, i32) {
    %c0_i32 = arith.constant 0 : i32
    %c0_i32_0 = arith.constant 0 : i32
    return %c0_i32, %arg1 : i32, i32
  }
  func.func @transform_3(%arg0: i32, %arg1: i32, %arg2: i32) -> (i32, i32) {
    %c0_i32 = arith.constant 0 : i32
    %c0_i32_0 = arith.constant 0 : i32
    return %c0_i32, %arg1 : i32, i32
  }
  func.func @transform_4(%arg0: i32, %arg1: i32, %arg2: i32) -> (i32, i32) {
    %c0_i32 = arith.constant 0 : i32
    return %arg0, %arg1 : i32, i32
  }
}

module attributes {stable_mosaic.version = 11 : i64} {
  func.func @_head_kernel(%arg0: memref<8x16x256xbf16, #tpu.memory_space<vmem>>, %arg1: memref<256x128xf32, #tpu.memory_space<vmem>>, %arg2: memref<1x128xf32, #tpu.memory_space<vmem>>, %arg3: memref<8x128xf32, #tpu.memory_space<vmem>>) attributes {dimension_semantics = [], scalar_prefetch = 0 : i64, scratch_operands = 0 : i64, tpu.core_type = #tpu.core_type<tc>} {
    %c0 = arith.constant 0 : index
    %c0_0 = arith.constant 0 : index
    %c0_1 = arith.constant 0 : index
    %0 = vector.load %arg0[%c0, %c0_0, %c0_1] : memref<8x16x256xbf16, #tpu.memory_space<vmem>>, vector<8x16x256xbf16>
    %1 = arith.extf %0 : vector<8x16x256xbf16> to vector<8x16x256xf32>
    %cst = arith.constant dense<0.000000e+00> : vector<8x256xf32>
    %2 = vector.multi_reduction <add>, %1, %cst [1] : vector<8x16x256xf32> to vector<8x256xf32>
    %cst_2 = arith.constant 2.500000e-01 : f32
    %3 = vector.broadcast %cst_2 : f32 to vector<8x256xf32>
    %4 = arith.mulf %2, %3 : vector<8x256xf32>
    %c0_3 = arith.constant 0 : index
    %c0_4 = arith.constant 0 : index
    %5 = vector.load %arg1[%c0_3, %c0_4] : memref<256x128xf32, #tpu.memory_space<vmem>>, vector<256x128xf32>
    %cst_5 = arith.constant dense<0.000000e+00> : vector<8x128xf32>
    %6 = tpu.matmul %4, %5, %cst_5 {dimension_numbers = #tpu.dot_dimension_numbers<[1], [0], [0], [1], [0, 0, 1, 1], [], []>} : vector<8x256xf32>, vector<256x128xf32>, vector<8x128xf32> -> vector<8x128xf32>
    %c0_6 = arith.constant 0 : index
    %c0_7 = arith.constant 0 : index
    %7 = vector.load %arg2[%c0_6, %c0_7] : memref<1x128xf32, #tpu.memory_space<vmem>>, vector<1x128xf32>
    %8 = vector.broadcast %7 : vector<1x128xf32> to vector<8x128xf32>
    %9 = arith.addf %6, %8 : vector<8x128xf32>
    %c0_8 = arith.constant 0 : index
    %c0_9 = arith.constant 0 : index
    %10 = vector.load %arg3[%c0_8, %c0_9] : memref<8x128xf32, #tpu.memory_space<vmem>>, vector<8x128xf32>
    tpu.vector_store %arg3[%c0_8, %c0_9], %9 {strides = array<i32>} : memref<8x128xf32, #tpu.memory_space<vmem>>, vector<8x128xf32>,
    return
  }
}

</mosaic_0001>

<bundles_post_ra>
// kernel: _lambda_.18
= control target key start
LH: loop header
LB: loop body
LE: loop exit
PB: predicated region body
PF: predicated region fallthrough
CT: control target
= control target key end

     0   :  { %s813_s15 = smov 0   ;;  %s1132_s0 = inlined_call_operand.vmem [shape: bf16[2,9,9,128], index: 0, kind: input, shape index: {}]   ;;  %s1133_s1 = inlined_call_operand.vmem [shape: bf16[2,9,9,128], index: 1, kind: input, shape index: {}]   ;;  %s1134_s2 = inlined_call_operand.vmem [shape: bf16[2,9,9,128], index: 2, kind: input, shape index: {}]   ;;  %s1135_s3 = inlined_call_operand.vmem [shape: bf16[2,9,9,128], index: 3, kind: input, shape index: {}]   ;;  %s1136_s4 = inlined_call_operand.vmem [shape: bf16[2,8,8,128], index: 4, kind: output, shape index: {}]  }
   0x1 LB: > { %s730_s16 = sadd.s32 4294967295, %s786_s15   ;;  %p734_p0 = scmp.ge.s32.totalorder %s786_s15, 1  ;;  %s786_s15 = sphi %s813_s15, %s14_s15  }
   0x2   : > { %p192_p1 = scmp.lt.s32.totalorder %s786_s15, 3 }
   0x4   : > { %p193_p2 = pnand %p734_p0, %p192_p1 }
   0x5   : > { %p233_p3 = scmp.lt.s32.totalorder (!%p193_p2), %s730_s16, 1  ;;  %vm317_vm0 = vsmask.f32 (!%p193_p2), 3328  ;;  %vm318_vm1 = vsmask.f32 (!%p193_p2), 7440 }
   0x6   : > { %196 = sbr.rel (%p193_p2) target bundleno = 85 (0x55), region = 36  ;;  %vm917_vm2 = vmor (!%p193_p2), %vm317_vm0, %vm318_vm1 }
   0xd   : > { %s1140_s16 = smov (!%p233_p3, %s730_s16), 1 }
   0xe   : > { %s824_s17 = smul.u32 72, %s1140_s16  ;;  %s743_s30 = sshll.u32 %s1140_s16, 5 }
   0xf   : > { %s257_s7 = scalar_lea.vmem %s1136_s4, %s743_s30 }
  0x10   : > { %s830_s20 = scalar_lea.vmem %s1133_s1, %s824_s17  ;;  %s836_s23 = scalar_lea.vmem %s1132_s0, %s824_s17 }
  0x11   : > { %v839_v0 = vld [vmem:[%s830_s20] sm:$0xf]  ;;  %v842_v1 = vld [vmem:[%s830_s20 + $0x8] sm:$0xf]  ;;  %v259_v3 = vld [vmem:[%s836_s23 + $0x4] sm:$0x1]  ;;  %s944_s26 = scalar_lea.vmem %s1134_s2, %s824_s17  ;;  %s955_s29 = scalar_lea.vmem %s1135_s3, %s824_s17 }
  0x12   : > { %v845_v2 = vld [vmem:[%s836_s23] sm:$0xf]  ;;  %v849_v4 = vld [vmem:[%s836_s23 + $0x8] sm:$0xf]  ;;  %v852_v5 = vld [vmem:[%s830_s20 + $0x10] sm:$0xf] }
  0x13   : > { %v855_v6 = vld [vmem:[%s830_s20 + $0x18] sm:$0xf]  ;;  %v858_v7 = vld [vmem:[%s830_s20 + $0x20] sm:$0xf]  ;;  %v261_v8 = vld [vmem:[%s836_s23 + $0xc] sm:$0x1]  ;;  %v309_v18 = vmax.bf16 %v839_v0, %v845_v2  ;;  %v310_v19 = vmax.bf16 %v842_v1, %v849_v4 }
  0x14   : > { %v862_v9 = vld [vmem:[%s830_s20 + $0x28] sm:$0xf]  ;;  %v865_v10 = vld [vmem:[%s830_s20 + $0x30] sm:$0xf]  ;;  %v868_v11 = vld [vmem:[%s830_s20 + $0x38] sm:$0xf] }
  0x15   : > { %v871_v12 = vld [vmem:[%s836_s23 + $0x10] sm:$0xf]  ;;  %v874_v13 = vld [vmem:[%s836_s23 + $0x18] sm:$0xf]  ;;  %v877_v14 = vld [vmem:[%s836_s23 + $0x20] sm:$0xf] }
  0x16   : > { %v880_v15 = vld [vmem:[%s836_s23 + $0x28] sm:$0xf]  ;;  %v883_v16 = vld [vmem:[%s836_s23 + $0x30] sm:$0xf]  ;;  %v886_v17 = vld [vmem:[%s836_s23 + $0x38] sm:$0xf]  ;;  %v311_v20 = vmax.bf16 %v852_v5, %v871_v12  ;;  %v312_v21 = vmax.bf16 %v855_v6, %v874_v13  ;;  %v313_v22 = vmax.bf16 %v858_v7, %v877_v14 }
  0x17   : > { %v314_v23 = vmax.bf16 %v862_v9, %v880_v15  ;;  %v315_v24 = vmax.bf16 %v865_v10, %v883_v16  ;;  %v316_v25 = vmax.bf16 %v868_v11, %v886_v17  ;;  %v321_v26 = vshrl.u32 %v845_v2, 16  ;;  %v263_v30 = vld [vmem:[%s836_s23 + $0x14] sm:$0x1]  ;;  %v265_v35 = vld [vmem:[%s836_s23 + $0x1c] sm:$0x1] }
  0x18   : > { %v324_v27 = vshll.u32 %v845_v2, 16  ;;  %v330_v28 = vshll.u32 %v259_v3, 16  ;;  %v335_v29 = vshrl.u32 %v849_v4, 16  ;;  %v338_v31 = vshll.u32 %v849_v4, 16  ;;  %v267_v48 = vld [vmem:[%s836_s23 + $0x24] sm:$0x1] }
  0x19   : > { %v344_v32 = vshll.u32 %v261_v8, 16  ;;  %v349_v33 = vshrl.u32 %v871_v12, 16  ;;  %v352_v34 = vshll.u32 %v871_v12, 16  ;;  %v323_v36 = vrot.slane %v321_v26, 4  ;;  %v269_v58 = vld [vmem:[%s836_s23 + $0x2c] sm:$0x1] }
  0x1a   : > { %v326_v37 = vrot.slane %v324_v27, 5  ;;  %v332_v38 = vrot.slane %v330_v28, 5  ;;  %v337_v39 = vrot.slane %v335_v29, 4  ;;  %v340_v40 = vrot.slane %v338_v31, 5  ;;  %v271_v27 = vld [vmem:[%s836_s23 + $0x34] sm:$0x1] }
  0x1b   : > { %v346_v41 = vrot.slane %v344_v32, 5  ;;  %v351_v42 = vrot.slane %v349_v33, 4  ;;  %v354_v43 = vrot.slane %v352_v34, 5  ;;  %v358_v45 = vshll.u32 %v263_v30, 16  ;;  %v978_v2 = vld [vmem:[%s944_s26 + $0x20] sm:$0xf] }
  0x1c   : > { %v327_v44 = vor.u32 %v326_v37, %v323_v36  ;;  %v363_v46 = vshrl.u32 %v874_v13, 16  ;;  %v366_v47 = vshll.u32 %v874_v13, 16  ;;  %v341_v50 = vor.u32 %v340_v40, %v337_v39  ;;  %v273_v36 = vld [vmem:[%s836_s23 + $0x3c] sm:$0x1] }
  0x1d   : > { %v355_v51 = vor.u32 %v354_v43, %v351_v42  ;;  %v372_v52 = vshll.u32 %v265_v35, 16  ;;  %v377_v53 = vshrl.u32 %v877_v14, 16  ;;  %v360_v55 = vrot.slane %v358_v45, 5 }
  0x1e   : > { %v328_v54 = vrot.slane %v327_v44, 4  ;;  %v365_v56 = vrot.slane %v363_v46, 4  ;;  %v368_v57 = vrot.slane %v366_v47, 5  ;;  %v342_v59 = vrot.slane %v341_v50, 4 }
  0x1f   : > { %v356_v60 = vrot.slane %v355_v51, 4  ;;  %v374_v61 = vrot.slane %v372_v52, 5  ;;  %v379_v62 = vrot.slane %v377_v53, 4  ;;  %v380_v8 = vshll.u32 %v877_v14, 16 }
  0x20   : > { %v333_v63 = vsel %vm917_vm2, %v328_v54, %v332_v38  ;;  %v369_v3 = vor.u32 %v368_v57, %v365_v56  ;;  %v386_v26 = vshll.u32 %v267_v48, 16  ;;  %v929_v28 = vsel %vm917_vm2, %v342_v59, %v346_v41  ;;  %v285_v54 = vld [vmem:[%s944_s26] sm:$0xf]  ;;  %v287_v59 = vld [vmem:[%s944_s26 + $0x8] sm:$0xf] }
  0x21   : > { %v933_v29 = vsel %vm917_vm2, %v356_v60, %v360_v55  ;;  %v391_v30 = vshrl.u32 %v880_v15, 16  ;;  %v394_v31 = vshll.u32 %v880_v15, 16  ;;  %v382_v33 = vrot.slane %v380_v8, 5  ;;  %v964_v60 = vld [vmem:[%s944_s26 + $0x10] sm:$0xf] }
  0x22   : > { %v370_v32 = vrot.slane %v369_v3, 4  ;;  %v388_v34 = vrot.slane %v386_v26, 5  ;;  %v400_v35 = vshll.u32 %v269_v58, 16  ;;  %v405_v39 = vshrl.u32 %v883_v16, 16 }
  0x23   : > { %v393_v37 = vrot.slane %v391_v30, 4  ;;  %v396_v38 = vrot.slane %v394_v31, 5  ;;  %v408_v40 = vshll.u32 %v883_v16, 16  ;;  %v383_v42 = vor.u32 %v382_v33, %v379_v62  ;;  %v302_v30 = vld [vmem:[%s955_s29 + $0x8] sm:$0xf] }
  0x24   : > { %v948_v41 = vsel %vm917_vm2, %v370_v32, %v374_v61  ;;  %v402_v43 = vrot.slane %v400_v35, 5  ;;  %v414_v44 = vshll.u32 %v271_v27, 16  ;;  %v407_v46 = vrot.slane %v405_v39, 4  ;;  %v967_v61 = vld [vmem:[%s944_s26 + $0x18] sm:$0xf] }
  0x25   : > { %v397_v45 = vor.u32 %v396_v38, %v393_v37  ;;  %v410_v47 = vrot.slane %v408_v40, 5  ;;  %v419_v48 = vshrl.u32 %v886_v17, 16  ;;  %v384_v50 = vrot.slane %v383_v42, 4  ;;  %v303_v31 = vld [vmem:[%s955_s29 + $0x10] sm:$0xf] }
  0x26   : > { %v416_v51 = vrot.slane %v414_v44, 5  ;;  %v422_v52 = vshll.u32 %v886_v17, 16  ;;  %v428_v53 = vshll.u32 %v273_v36, 16  ;;  %v440_v58 = vmax.bf16 %v333_v63, %v309_v18  ;;  %v301_v18 = vld [vmem:[%s955_s29] sm:$0xf] }
  0x27   : > { %v398_v55 = vrot.slane %v397_v45, 4  ;;  %v411_v56 = vor.u32 %v410_v47, %v407_v46  ;;  %v421_v57 = vrot.slane %v419_v48, 4  ;;  %v971_v62 = vsel %vm917_vm2, %v384_v50, %v388_v34  ;;  %v304_v32 = vld [vmem:[%s955_s29 + $0x18] sm:$0xf]  ;;  %v1005_v36 = vld [vmem:[%s944_s26 + $0x28] sm:$0xf] }
  0x28   : > { %v424_v3 = vrot.slane %v422_v52, 5  ;;  %v430_v8 = vrot.slane %v428_v53, 5  ;;  %v441_v0 = vmax.bf16 %v929_v28, %v310_v19  ;;  %v442_v27 = vmax.bf16 %v933_v29, %v311_v20  ;;  %v306_v37 = vld [vmem:[%s955_s29 + $0x28] sm:$0xf]  ;;  %v286_v42 = vld [vmem:[%s944_s26 + $0x4] sm:$0x1] }
  0x29   : > { %v983_v63 = vsel %vm917_vm2, %v398_v55, %v402_v43  ;;  %v412_v26 = vrot.slane %v411_v56, 4  ;;  %v443_v19 = vmax.bf16 %v948_v41, %v312_v21  ;;  %v444_v34 = vmax.bf16 %v971_v62, %v313_v22  ;;  %v305_v21 = vld [vmem:[%s955_s29 + $0x20] sm:$0xf]  ;;  %v288_v46 = vld [vmem:[%s944_s26 + $0xc] sm:$0x1] }
  0x2a   : > { %v425_v33 = vor.u32 %v424_v3, %v421_v57  ;;  %v445_v20 = vmax.bf16 %v983_v63, %v314_v23  ;;  %v448_v35 = vmax.bf16 %v440_v58, %v285_v54  ;;  %v449_v39 = vmax.bf16 %v441_v0, %v287_v59  ;;  %v1024_v47 = vld [vmem:[%s944_s26 + $0x30] sm:$0xf]  ;;  %v290_v55 = vld [vmem:[%s944_s26 + $0x14] sm:$0x1]  ;;  %v1046_v3 = vld [vmem:[%s944_s26 + $0x38] sm:$0xf] }
  0x2b   : > { %v1011_v38 = vsel %vm917_vm2, %v412_v26, %v416_v51  ;;  %v450_v22 = vmax.bf16 %v442_v27, %v964_v60  ;;  %v451_v40 = vmax.bf16 %v443_v19, %v967_v61  ;;  %v452_v44 = vmax.bf16 %v444_v34, %v978_v2  ;;  %v307_v48 = vld [vmem:[%s955_s29 + $0x30] sm:$0xf]  ;;  %v308_v19 = vld [vmem:[%s955_s29 + $0x38] sm:$0xf] }
  0x2c   : > { %v426_v43 = vrot.slane %v425_v33, 4  ;;  %v446_v23 = vmax.bf16 %v1011_v38, %v315_v24  ;;  %v453_v45 = vmax.bf16 %v445_v20, %v1005_v36  ;;  %v1027_v50 = vmax.bf16 %v448_v35, %v301_v18 }
  0x2d   : > { %v1029_v51 = vmax.bf16 %v449_v39, %v302_v30  ;;  %v1031_v52 = vmax.bf16 %v450_v22, %v303_v31  ;;  %v1033_v53 = vmax.bf16 %v451_v40, %v304_v32  ;;  %v1041_v57 = vmax.bf16 %v452_v44, %v305_v21  ;;  %v292_v21 = vld [vmem:[%s944_s26 + $0x1c] sm:$0x1] }
  0x2e   : > { %v1038_v24 = vsel %vm917_vm2, %v426_v43, %v430_v8  ;;  %v454_v56 = vmax.bf16 %v446_v23, %v1024_v47  ;;  %v1043_v58 = vmax.bf16 %v453_v45, %v306_v37  ;;  %v465_v18 = vshrl.u32 %v285_v54, 16 }
  0x2f   : > { %v447_v0 = vmax.bf16 %v1038_v24, %v316_v25  ;;  %v468_v26 = vshll.u32 %v285_v54, 16  ;;  %v474_v27 = vshll.u32 %v286_v42, 16  ;;  %v479_v30 = vshrl.u32 %v287_v59, 16 }
  0x30   : > { %v1053_v8 = vmax.bf16 %v454_v56, %v307_v48  ;;  %v482_v31 = vshll.u32 %v287_v59, 16  ;;  %v488_v32 = vshll.u32 %v288_v46, 16  ;;  %v467_v34 = vrot.slane %v465_v18, 4  ;;  %v294_v46 = vld [vmem:[%s944_s26 + $0x24] sm:$0x1] }
  0x31   : > { %v455_v33 = vmax.bf16 %v447_v0, %v1046_v3  ;;  %v470_v20 = vrot.slane %v468_v26, 5  ;;  %v476_v35 = vrot.slane %v474_v27, 5  ;;  %v481_v37 = vrot.slane %v479_v30, 4 }
  0x32   : > { %v484_v39 = vrot.slane %v482_v31, 5  ;;  %v490_v22 = vrot.slane %v488_v32, 5  ;;  %v493_v25 = vshrl.u32 %v964_v60, 16  ;;  %v496_v42 = vshll.u32 %v964_v60, 16  ;;  %v296_v31 = vld [vmem:[%s944_s26 + $0x2c] sm:$0x1] }
  0x33   : > { %v1058_v54 = vmax.bf16 %v455_v33, %v308_v19  ;;  %v471_v40 = vor.u32 %v470_v20, %v467_v34  ;;  %v502_v59 = vshll.u32 %v290_v55, 16  ;;  %v507_v44 = vshrl.u32 %v967_v61, 16 }
  0x34   : > { %v485_v43 = vor.u32 %v484_v39, %v481_v37  ;;  %v495_v23 = vrot.slane %v493_v25, 4  ;;  %v510_v45 = vshll.u32 %v967_v61, 16  ;;  %v498_v56 = vrot.slane %v496_v42, 5  ;;  %v298_v42 = vld [vmem:[%s944_s26 + $0x34] sm:$0x1] }
  0x35   : > { %v472_v48 = vrot.slane %v471_v40, 4  ;;  %v504_v0 = vrot.slane %v502_v59, 5  ;;  %v516_v18 = vshll.u32 %v292_v21, 16  ;;  %v509_v27 = vrot.slane %v507_v44, 4  ;;  %v300_v44 = vld [vmem:[%s944_s26 + $0x3c] sm:$0x1] }
  0x36   : > { %v486_v26 = vrot.slane %v485_v43, 4  ;;  %v512_v19 = vrot.slane %v510_v45, 5  ;;  %v521_v30 = vshrl.u32 %v978_v2, 16  ;;  %v499_v55 = vor.u32 %v498_v56, %v495_v23 }
  0x37   : > { %v477_v60 = vsel %vm917_vm2, %v472_v48, %v476_v35  ;;  %v518_v32 = vrot.slane %v516_v18, 5  ;;  %v524_v61 = vshll.u32 %v978_v2, 16  ;;  %v530_v21 = vshll.u32 %v294_v46, 16 }
  0x38   : > { %v491_v33 = vsel %vm917_vm2, %v486_v26, %v490_v22  ;;  %v513_v34 = vor.u32 %v512_v19, %v509_v27  ;;  %v523_v20 = vrot.slane %v521_v30, 4  ;;  %v500_v37 = vrot.slane %v499_v55, 4 }
  0x39   : > { %v526_v39 = vrot.slane %v524_v61, 5  ;;  %v535_v25 = vshrl.u32 %v1005_v36, 16  ;;  %v538_v40 = vshll.u32 %v1005_v36, 16  ;;  %v532_v35 = vrot.slane %v530_v21, 5 }
  0x3a   : > { %v514_v59 = vrot.slane %v513_v34, 4  ;;  %v544_v43 = vshll.u32 %v296_v31, 16  ;;  %v549_v23 = vshrl.u32 %v1024_v47, 16  ;;  %v505_v2 = vsel %vm917_vm2, %v500_v37, %v504_v0 }
  0x3b   : > { %v527_v22 = vor.u32 %v526_v39, %v523_v20  ;;  %v537_v45 = vrot.slane %v535_v25, 4  ;;  %v540_v48 = vrot.slane %v538_v40, 5  ;;  %v552_v36 = vshll.u32 %v1024_v47, 16 }
  0x3c   : > { %v519_v46 = vsel %vm917_vm2, %v514_v59, %v518_v32  ;;  %v546_v56 = vrot.slane %v544_v43, 5  ;;  %v551_v18 = vrot.slane %v549_v23, 4  ;;  %v558_v19 = vshll.u32 %v298_v42, 16  ;;  %v274_v23 = vld [vmem:[%s836_s23 + $0x40] sm:$0xf] }
  0x3d   : > { %v528_v26 = vrot.slane %v527_v22, 4  ;;  %v541_v27 = vor.u32 %v540_v48, %v537_v45  ;;  %v563_v30 = vshrl.u32 %v1046_v3, 16  ;;  %v554_v31 = vrot.slane %v552_v36, 5 }
  0x3e   : > { %v566_v55 = vshll.u32 %v1046_v3, 16  ;;  %v572_v61 = vshll.u32 %v300_v44, 16  ;;  %v584_v0 = vmax.bf16 %v477_v60, %v1027_v50  ;;  %v560_v20 = vrot.slane %v558_v19, 5 }
  0x3f   : > { %v533_v34 = vsel %vm917_vm2, %v528_v26, %v532_v35  ;;  %v542_v32 = vrot.slane %v541_v27, 4  ;;  %v565_v21 = vrot.slane %v563_v30, 4  ;;  %v555_v37 = vor.u32 %v554_v31, %v551_v18 }
  0x40   : > { %v568_v47 = vrot.slane %v566_v55, 5  ;;  %v574_v39 = vrot.slane %v572_v61, 5  ;;  %v585_v25 = vmax.bf16 %v491_v33, %v1029_v51  ;;  %v586_v3 = vmax.bf16 %v505_v2, %v1031_v52  ;;  %v275_v2 = vld [vmem:[%s836_s23 + $0x44] sm:$0x1] }
  0x41   : > { %v547_v40 = vsel %vm917_vm2, %v542_v32, %v546_v56  ;;  %v587_v50 = vmax.bf16 %v519_v46, %v1033_v53  ;;  %v588_v60 = vmax.bf16 %v533_v34, %v1041_v57  ;;  %v556_v42 = vrot.slane %v555_v37, 4 }
  0x42   : > { %v569_v59 = vor.u32 %v568_v47, %v565_v21  ;;  %v589_v35 = vmax.bf16 %v547_v40, %v1043_v58  ;;  %v592_v43 = vmax.bf16 %v584_v0, %v849_v4  ;;  %v593_v44 = vmax.bf16 %v585_v25, %v871_v12 }
  0x43   : > { %v594_v51 = vmax.bf16 %v586_v3, %v874_v13  ;;  %v595_v33 = vmax.bf16 %v587_v50, %v877_v14  ;;  %v596_v52 = vmax.bf16 %v588_v60, %v880_v15  ;;  %v561_v53 = vsel %vm917_vm2, %v556_v42, %v560_v20 }
  0x44   : > { %v570_v57 = vrot.slane %v569_v59, 4  ;;  %v597_v22 = vmax.bf16 %v589_v35, %v883_v16  ;;  %v600_v58 = vmax.bf16 %v592_v43, %v842_v1  ;;  %v590_v4 = vmax.bf16 %v561_v53, %v1053_v8 }
  0x45   : > { %v601_v45 = vmax.bf16 %v593_v44, %v852_v5  ;;  %v602_v12 = vmax.bf16 %v594_v51, %v855_v6  ;;  %v603_v13 = vmax.bf16 %v595_v33, %v858_v7  ;;  %v604_v15 = vmax.bf16 %v596_v52, %v862_v9  ;;  %v284_v9 = vld [vmem:[%s830_s20 + $0x40] sm:$0xf] }
  0x46   : > { %v575_v14 = vsel %vm917_vm2, %v570_v57, %v574_v39  ;;  %v605_v48 = vmax.bf16 %v597_v22, %v865_v10  ;;  %v609_v16 = vshrl.u32 %v274_v23, 16  ;;  %v598_v8 = vmax.bf16 %v590_v4, %v886_v17 }
  0x47   : > { %v591_v1 = vmax.bf16 %v575_v14, %v1058_v54  ;;  %v612_v46 = vshll.u32 %v274_v23, 16  ;;  %v618_v5 = vshll.u32 %v275_v2, 16  ;;  %v623_v6 = vmax.bf16 %v600_v58, %v929_v28 }
  0x48   : > { %v611_v56 = vrot.slane %v609_v16, 4  ;;  %v624_v7 = vmax.bf16 %v601_v45, %v933_v29  ;;  %v625_v18 = vmax.bf16 %v602_v12, %v948_v41  ;;  %v606_v36 = vmax.bf16 %v598_v8, %v868_v11 }
  0x49   : > { %v599_v10 = vmax.bf16 %v591_v1, %v274_v23  ;;  %v614_v54 = vrot.slane %v612_v46, 5  ;;  %v626_v17 = vmax.bf16 %v603_v13, %v971_v62  ;;  %v627_v26 = vmax.bf16 %v604_v15, %v983_v63 }
  0x4a   : > { %v628_v27 = vmax.bf16 %v605_v48, %v1011_v38  ;;  %v764_v28 = vcombine.low %v623_v6, %v624_v7  ;;  %v620_v29 = vrot.slane %v618_v5, 5  ;;  %v629_v61 = vmax.bf16 %v606_v36, %v1038_v24 }
  0x4b   : > { %v615_v19 = vor.u32 %v614_v54, %v611_v56  ;;  %v607_v30 = vmax.bf16 %v599_v10, %v284_v9  ;;  %v765_v41 = vcombine.low %v625_v18, %v626_v17 }
  0x4c   : > { %748 = vst [vmem:[%s257_s7] sm:$0xff] %v764_v28   ;;  %v767_v31 = vcombine.low %v627_v26, %v628_v27 }
  0x4d   : > { %v616_v55 = vrot.slane %v615_v19, 4  ;;  %766 = vst [vmem:[%s257_s7 + $0x8] sm:$0xff] %v765_v41  }
  0x4e   : > { %768 = vst [vmem:[%s257_s7 + $0x10] sm:$0xff] %v767_v31  }
  0x4f   : > { %v621_v11 = vsel %vm917_vm2, %v616_v55, %v620_v29 }
  0x50   : > { %v630_v62 = vmax.bf16 %v621_v11, %v607_v30 }
  0x52   : > { %v769_v0 = vcombine.low %v629_v61, %v630_v62 }
  0x54   : > { %770 = vst [vmem:[%s257_s7 + $0x18] sm:$0xff] %v769_v0  }
  0x55 PF: > { %s14_s15 = sadd.s32 1, %s786_s15  }
  0x56   : > { %p11_p4 = scmp.ge.s32.totalorder %s14_s15, 4  }
  0x58   :  { %13 = sbr.rel (!%p11_p4) target bundleno = 1 (0x1), region = 75 }

// kernel: _lambda_.17
= control target key start
LH: loop header
LB: loop body
LE: loop exit
PB: predicated region body
PF: predicated region fallthrough
CT: control target
= control target key end

     0   :  { %s1843_s15 = smov 0   ;;  %s1845_s16 = smov 0   ;;  %s2054_s0 = inlined_call_operand.vmem [shape: bf16[512,256], index: 0, kind: input, shape index: {}]   ;;  %s2055_s1 = inlined_call_operand.vmem [shape: bf16[256,128], index: 1, kind: input, shape index: {}]   ;;  %s2056_s2 = inlined_call_operand.vmem [shape: f32[1,128], index: 2, kind: input, shape index: {}]   ;;  %s2057_s3 = inlined_call_operand.vmem [shape: f32[1,128], index: 3, kind: input, shape index: {}]   ;;  %s2058_s4 = inlined_call_operand.vmem [shape: bf16[512,128], index: 4, kind: output, shape index: {}]  }
   0x1   :  { %s1847_s17 = smov 0  }
   0x2 LB: > { %s33_s18 = sadd.s32 1, %s1812_s16  ;;  %p1360_p0 = scmp.ge.s32.totalorder %s1816_s17, 1  ;;  %s1816_s17 = sphi %s1847_s17, %s14_s17   ;;  %s1812_s16 = sphi %s1845_s16, %s2060_s16   ;;  %s1808_s15 = sphi %s1843_s15, %s2059_s15  }
   0x3   : > { %p35_p1 = scmp.ge.s32.totalorder %s33_s18, 2  ;;  %p224_p2 = scmp.lt.s32.totalorder %s1816_s17, 3 }
   0x5   : > { %s2062_s18 = smov (%p35_p1, %s33_s18), 0  ;;  %p225_p3 = pnand %p1360_p0, %p224_p2 }
   0x6   : > { %v1730_v0 = vld [vmem:[%s2055_s1 + $0x40] sm:$0xff] (!%p225_p3)   ;;  %s1361_s21 = sshll.u32 (!%p225_p3), %s1808_s15, 5  ;;  %v1732_v2 = vld [vmem:[%s2055_s1 + $0x48] sm:$0xff] (!%p225_p3)   ;;  %v1734_v4 = vld [vmem:[%s2055_s1 + $0x50] sm:$0xff] (!%p225_p3)  }
   0x7   : > { %228 = sbr.rel (%p225_p3) target bundleno = 322 (0x142), region = 36  ;;  %v1731_v1 = vld [vmem:[%s2055_s1] sm:$0xff] (!%p225_p3)   ;;  %1578 = vmatprep.subr.bf16.mxu0 (!%p225_p3), %v1730_v0  ;;  %1690 = vmatprep.subr.bf16.mxu1 (!%p225_p3), %v1730_v0  ;;  %v1733_v3 = vld [vmem:[%s2055_s1 + $0x8] sm:$0xff] (!%p225_p3)   ;;  %p274_p4 = scmp.lt.s32.totalorder (!%p225_p3), %s1361_s21, 63  ;;  %v1735_v5 = vld [vmem:[%s2055_s1 + $0x10] sm:$0xff] (!%p225_p3)  }
   0x8   : > { %1579 = vmatpush3.bf16.msra.mxu0 (!%p225_p3), %v1731_v1  ;;  %1698 = vmatpush3.bf16.msra.mxu1 (!%p225_p3), %v1731_v1  ;;  %v1736_v6 = vld [vmem:[%s2055_s1 + $0x58] sm:$0xff] (!%p225_p3)   ;;  %v1738_v8 = vld [vmem:[%s2055_s1 + $0x60] sm:$0xff] (!%p225_p3)   ;;  %v1740_v10 = vld [vmem:[%s2055_s1 + $0x68] sm:$0xff] (!%p225_p3)  }
   0x9   : > { %1580 = vmatprep.subr.bf16.mxu0 (!%p225_p3), %v1732_v2  ;;  %1691 = vmatprep.subr.bf16.mxu1 (!%p225_p3), %v1732_v2  ;;  %v1737_v7 = vld [vmem:[%s2055_s1 + $0x18] sm:$0xff] (!%p225_p3)   ;;  %v1739_v9 = vld [vmem:[%s2055_s1 + $0x20] sm:$0xff] (!%p225_p3)   ;;  %v1741_v13 = vld [vmem:[%s2055_s1 + $0x28] sm:$0xff] (!%p225_p3)  }
   0xa   : > { %v1742_v14 = vld [vmem:[%s2055_s1 + $0x70] sm:$0xff] (!%p225_p3)   ;;  %v1744_v16 = vld [vmem:[%s2055_s1 + $0x78] sm:$0xff] (!%p225_p3)   ;;  %v1952_v51 = vld [vmem:[%s2056_s2] ss:$0 sm:$0xff] (!%p225_p3) }
   0xb   : > { %v1743_v15 = vld [vmem:[%s2055_s1 + $0x30] sm:$0xff] (!%p225_p3)   ;;  %v1745_v17 = vld [vmem:[%s2055_s1 + $0x38] sm:$0xff] (!%p225_p3)   ;;  %v1957_v57 = vld [vmem:[%s2057_s3] ss:$0 sm:$0xff] (!%p225_p3) }
   0xc   : > { %1581 = vmatpush3.bf16.msra.mxu0 (!%p225_p3), %v1733_v3  ;;  %1699 = vmatpush3.bf16.msra.mxu1 (!%p225_p3), %v1733_v3 }
   0xd   : > { %1582 = vmatprep.subr.bf16.mxu0 (!%p225_p3), %v1734_v4  ;;  %1692 = vmatprep.subr.bf16.mxu1 (!%p225_p3), %v1734_v4 }
   0xe   : > { %s2064_s21 = smov (!%p274_p4, %s1361_s21), 63 }
   0xf   : > { %s1450_s10 = sshll.u32 %s2064_s21, 3  ;;  %s1365_s12 = sshll.u32 %s2064_s21, 2 }
  0x10   : > { %1583 = vmatpush3.bf16.msra.mxu0 %v1735_v5  ;;  %1700 = vmatpush3.bf16.msra.mxu1 %v1735_v5  ;;  %s1894_s15 = scalar_lea.vmem %s2054_s0, %s1450_s10  ;;  %s1971_s21 = scalar_lea.vmem %s2058_s4, %s1365_s12 }
  0x11   : > { %1584 = vmatprep.subr.bf16.mxu0 %v1736_v6  ;;  %1693 = vmatprep.subr.bf16.mxu1 %v1736_v6  ;;  %v1748_v11 = vld [vmem:[%s1894_s15 + $0x4] ss:$8 sps:$4 sm:$0xff]   ;;  %v1746_v18 = vld [vmem:[%s1894_s15] ss:$8 sps:$4 sm:$0xff]   ;;  %v1752_v20 = vld [vmem:[%s1894_s15 + $0x14] ss:$8 sps:$4 sm:$0xff]  }
  0x12   : > { %v1751_v12 = vld [vmem:[%s1894_s15 + $0x84] ss:$8 sps:$4 sm:$0xff]   ;;  %729 = vmatprep.mubr.bf16.mxu0 %v1748_v11  ;;  %v1749_v19 = vld [vmem:[%s1894_s15 + $0x80] ss:$8 sps:$4 sm:$0xff]   ;;  %v1754_v21 = vld [vmem:[%s1894_s15 + $0x94] ss:$8 sps:$4 sm:$0xff]  }
  0x13   : > { %793 = vmatprep.mubr.bf16.mxu1 %v1751_v12  ;;  %v1756_v22 = vld [vmem:[%s1894_s15 + $0x10] ss:$8 sps:$4 sm:$0xff]   ;;  %v1758_v24 = vld [vmem:[%s1894_s15 + $0x24] ss:$8 sps:$4 sm:$0xff]   ;;  %v1762_v26 = vld [vmem:[%s1894_s15 + $0x20] ss:$8 sps:$4 sm:$0xff]  }
  0x14   : > { %1585 = vmatpush3.bf16.msra.mxu0 %v1737_v7  ;;  %1701 = vmatpush3.bf16.msra.mxu1 %v1737_v7  ;;  %v1757_v23 = vld [vmem:[%s1894_s15 + $0x90] ss:$8 sps:$4 sm:$0xff]   ;;  %v1760_v25 = vld [vmem:[%s1894_s15 + $0xa4] ss:$8 sps:$4 sm:$0xff]   ;;  %v1763_v27 = vld [vmem:[%s1894_s15 + $0xa0] ss:$8 sps:$4 sm:$0xff]  }
  0x15   : > { %1586 = vmatprep.subr.bf16.mxu0 %v1738_v8  ;;  %1694 = vmatprep.subr.bf16.mxu1 %v1738_v8  ;;  %v1764_v28 = vld [vmem:[%s1894_s15 + $0x34] ss:$8 sps:$4 sm:$0xff]   ;;  %v1768_v30 = vld [vmem:[%s1894_s15 + $0x30] ss:$8 sps:$4 sm:$0xff]   ;;  %v1770_v32 = vld [vmem:[%s1894_s15 + $0x44] ss:$8 sps:$4 sm:$0xff]  }
  0x16   : > { %v1766_v29 = vld [vmem:[%s1894_s15 + $0xb4] ss:$8 sps:$4 sm:$0xff]   ;;  %v1769_v31 = vld [vmem:[%s1894_s15 + $0xb0] ss:$8 sps:$4 sm:$0xff]   ;;  %v1772_v33 = vld [vmem:[%s1894_s15 + $0xc4] ss:$8 sps:$4 sm:$0xff]  }
  0x17   : > { %v1774_v34 = vld [vmem:[%s1894_s15 + $0x40] ss:$8 sps:$4 sm:$0xff]   ;;  %v1776_v36 = vld [vmem:[%s1894_s15 + $0x54] ss:$8 sps:$4 sm:$0xff]   ;;  %v1780_v38 = vld [vmem:[%s1894_s15 + $0x50] ss:$8 sps:$4 sm:$0xff]  }
  0x18   : > { %1587 = vmatpush3.bf16.msra.mxu0 %v1739_v9  ;;  %1702 = vmatpush3.bf16.msra.mxu1 %v1739_v9  ;;  %v1775_v35 = vld [vmem:[%s1894_s15 + $0xc0] ss:$8 sps:$4 sm:$0xff]   ;;  %v1778_v37 = vld [vmem:[%s1894_s15 + $0xd4] ss:$8 sps:$4 sm:$0xff]   ;;  %v1781_v39 = vld [vmem:[%s1894_s15 + $0xd0] ss:$8 sps:$4 sm:$0xff]  }
  0x19   : > { %1588 = vmatprep.subr.bf16.mxu0 %v1740_v10  ;;  %1695 = vmatprep.subr.bf16.mxu1 %v1740_v10  ;;  %v1782_v40 = vld [vmem:[%s1894_s15 + $0x64] ss:$8 sps:$4 sm:$0xff]   ;;  %v1786_v42 = vld [vmem:[%s1894_s15 + $0x60] ss:$8 sps:$4 sm:$0xff]   ;;  %v1788_v44 = vld [vmem:[%s1894_s15 + $0x74] ss:$8 sps:$4 sm:$0xff]  }
  0x1a   : > { %v1784_v41 = vld [vmem:[%s1894_s15 + $0xe4] ss:$8 sps:$4 sm:$0xff]   ;;  %v1787_v43 = vld [vmem:[%s1894_s15 + $0xe0] ss:$8 sps:$4 sm:$0xff]   ;;  %v1790_v45 = vld [vmem:[%s1894_s15 + $0xf4] ss:$8 sps:$4 sm:$0xff]  }
  0x1b   : > { %v1792_v46 = vld [vmem:[%s1894_s15 + $0x70] ss:$8 sps:$4 sm:$0xff]  }
  0x1c   : > { %1589 = vmatpush3.bf16.msra.mxu0 %v1741_v13  ;;  %1703 = vmatpush3.bf16.msra.mxu1 %v1741_v13  ;;  %v1793_v47 = vld [vmem:[%s1894_s15 + $0xf0] ss:$8 sps:$4 sm:$0xff]  }
  0x1d   : > { %1590 = vmatprep.subr.bf16.mxu0 %v1742_v14  ;;  %1696 = vmatprep.subr.bf16.mxu1 %v1742_v14 }
  0x20   : > { %1591 = vmatpush3.bf16.msra.mxu0 %v1743_v15  ;;  %1704 = vmatpush3.bf16.msra.mxu1 %v1743_v15 }
  0x21   : > { %1592 = vmatprep.subr.bf16.mxu0 %v1744_v16  ;;  %1697 = vmatprep.subr.bf16.mxu1 %v1744_v16 }
  0x24   : > { %1593 = vmatpush3.bf16.msra.mxu0 %v1745_v17  ;;  %1705 = vmatpush3.bf16.msra.mxu1 %v1745_v17 }
  0x27   : > { %730 = vmatmul.mubr.bf16.vlgmr.msra.gmra.mrb[0].mxu0 %v1746_v18  ;;  %794 = vmatmul.mubr.bf16.vlgmr.msra.gmra.mrb[0].mxu1 %v1749_v19 }
  0x28   : > { %737 = vmatprep.mubr.bf16.mxu0 %v1752_v20  ;;  %801 = vmatprep.mubr.bf16.mxu1 %v1754_v21 }
  0x2f   : > { %738 = vmatmul.mubr.bf16.gmra.mrb[4].mxu0 %v1756_v22  ;;  %802 = vmatmul.mubr.bf16.gmra.mrb[4].mxu1 %v1757_v23 }
  0x30   : > { %745 = vmatprep.mubr.bf16.mxu0 %v1758_v24  ;;  %809 = vmatprep.mubr.bf16.mxu1 %v1760_v25 }
  0x37   : > { %746 = vmatmul.mubr.bf16.gmra.mrb[8].mxu0 %v1762_v26  ;;  %810 = vmatmul.mubr.bf16.gmra.mrb[8].mxu1 %v1763_v27 }
  0x38   : > { %753 = vmatprep.mubr.bf16.mxu0 %v1764_v28  ;;  %817 = vmatprep.mubr.bf16.mxu1 %v1766_v29 }
  0x3f   : > { %754 = vmatmul.mubr.bf16.gmra.mrb[12].mxu0 %v1768_v30  ;;  %818 = vmatmul.mubr.bf16.gmra.mrb[12].mxu1 %v1769_v31 }
  0x40   : > { %761 = vmatprep.mubr.bf16.mxu0 %v1770_v32  ;;  %825 = vmatprep.mubr.bf16.mxu1 %v1772_v33 }
  0x47   : > { %762 = vmatmul.mubr.bf16.gmra.mrb[16].mxu0 %v1774_v34  ;;  %826 = vmatmul.mubr.bf16.gmra.mrb[16].mxu1 %v1775_v35 }
  0x48   : > { %769 = vmatprep.mubr.bf16.mxu0 %v1776_v36  ;;  %833 = vmatprep.mubr.bf16.mxu1 %v1778_v37 }
  0x4f   : > { %770 = vmatmul.mubr.bf16.gmra.mrb[20].mxu0 %v1780_v38  ;;  %834 = vmatmul.mubr.bf16.gmra.mrb[20].mxu1 %v1781_v39 }
  0x50   : > { %777 = vmatprep.mubr.bf16.mxu0 %v1782_v40  ;;  %841 = vmatprep.mubr.bf16.mxu1 %v1784_v41 }
  0x57   : > { %778 = vmatmul.mubr.bf16.gmra.mrb[24].mxu0 %v1786_v42  ;;  %842 = vmatmul.mubr.bf16.gmra.mrb[24].mxu1 %v1787_v43 }
  0x58   : > { %785 = vmatprep.mubr.bf16.mxu0 %v1788_v44  ;;  %849 = vmatprep.mubr.bf16.mxu1 %v1790_v45 }
  0x5f   : > { %786 = vmatmul.mubr.bf16.gmra.mrb[28].mxu0 %v1792_v46  ;;  %850 = vmatmul.mubr.bf16.gmra.mrb[28].mxu1 %v1793_v47 }
  0xfa   : > { %v1594_v48 = vpop.f32.mrb[0].mxu0  ;;  %v1642_v49 = vpop.f32.mrb[0].mxu1 }
  0xfb   : > { %v1595_v50 = vpop.f32.mrb[1].mxu0  ;;  %v1643_v52 = vpop.f32.mrb[1].mxu1 }
  0xfc   : > { %v1596_v53 = vadd.f32 %v1595_v50, %v1594_v48  ;;  %v1644_v54 = vadd.f32 %v1643_v52, %v1642_v49  ;;  %v1597_v55 = vpop.f32.mrb[2].mxu0  ;;  %v1645_v56 = vpop.f32.mrb[2].mxu1 }
  0xfd   : > { %v1598_v58 = vpop.f32.mrb[3].mxu0  ;;  %v1646_v59 = vpop.f32.mrb[3].mxu1 }
  0xfe   : > { %v964_v60 = vmul.f32 %v1596_v53, %v1952_v51  ;;  %v980_v61 = vmul.f32 %v1644_v54, %v1952_v51  ;;  %v1599_v62 = vadd.f32 %v1598_v58, %v1597_v55  ;;  %v1647_v63 = vadd.f32 %v1646_v59, %v1645_v56 }
 0x100   : > { %v1003_v0 = vadd.f32 %v1957_v57, %v964_v60  ;;  %v1019_v1 = vadd.f32 %v1957_v57, %v980_v61  ;;  %v965_v2 = vmul.f32 %v1599_v62, %v1952_v51  ;;  %v981_v3 = vmul.f32 %v1647_v63, %v1952_v51 }
 0x102   : > { %v1004_v4 = vadd.f32 %v1957_v57, %v965_v2  ;;  %v1020_v5 = vadd.f32 %v1957_v57, %v981_v3  ;;  %v1600_v6 = vpop.f32.mrb[4].mxu0  ;;  %v1648_v7 = vpop.f32.mrb[4].mxu1  ;;  %v1035_v8 = vmax.f32 %v1003_v0, 0.0  ;;  %v1051_v9 = vmax.f32 %v1019_v1, 0.0 }
 0x103   : > { %v1601_v10 = vpop.f32.mrb[5].mxu0  ;;  %v1649_v11 = vpop.f32.mrb[5].mxu1 }
 0x104   : > { %v1036_v12 = vmax.f32 %v1004_v4, 0.0  ;;  %v1052_v13 = vmax.f32 %v1020_v5, 0.0  ;;  %v1602_v14 = vadd.f32 %v1601_v10, %v1600_v6  ;;  %v1650_v15 = vadd.f32 %v1649_v11, %v1648_v7  ;;  %v1603_v16 = vpop.f32.mrb[6].mxu0  ;;  %v1651_v17 = vpop.f32.mrb[6].mxu1 }
 0x105   : > { %v1604_v18 = vpop.f32.mrb[7].mxu0  ;;  %v1652_v19 = vpop.f32.mrb[7].mxu1 }
 0x106   : > { %v1486_v20 = vpack.c.bf16 %v1036_v12, %v1035_v8  ;;  %v1526_v21 = vpack.c.bf16 %v1052_v13, %v1051_v9  ;;  %v966_v22 = vmul.f32 %v1602_v14, %v1952_v51  ;;  %v982_v23 = vmul.f32 %v1650_v15, %v1952_v51 }
 0x107   : > { %v1605_v24 = vadd.f32 %v1604_v18, %v1603_v16  ;;  %v1653_v25 = vadd.f32 %v1652_v19, %v1651_v17 }
 0x108   : > { %1487 = vst [vmem:[%s1971_s21] sm:$0xff] %v1486_v20   ;;  %1570 = vst [vmem:[%s1971_s21 + $0x40] sm:$0xff] %v1526_v21   ;;  %v1005_v26 = vadd.f32 %v1957_v57, %v966_v22  ;;  %v1021_v27 = vadd.f32 %v1957_v57, %v982_v23 }
 0x109   : > { %v967_v28 = vmul.f32 %v1605_v24, %v1952_v51  ;;  %v983_v29 = vmul.f32 %v1653_v25, %v1952_v51 }
 0x10a   : > { %v1606_v30 = vpop.f32.mrb[8].mxu0  ;;  %v1654_v31 = vpop.f32.mrb[8].mxu1  ;;  %v1037_v40 = vmax.f32 %v1005_v26, 0.0  ;;  %v1053_v41 = vmax.f32 %v1021_v27, 0.0 }
 0x10b   : > { %v1006_v32 = vadd.f32 %v1957_v57, %v967_v28  ;;  %v1022_v33 = vadd.f32 %v1957_v57, %v983_v29  ;;  %v1607_v34 = vpop.f32.mrb[9].mxu0  ;;  %v1655_v35 = vpop.f32.mrb[9].mxu1 }
 0x10c   : > { %v1608_v36 = vadd.f32 %v1607_v34, %v1606_v30  ;;  %v1656_v37 = vadd.f32 %v1655_v35, %v1654_v31  ;;  %v1609_v38 = vpop.f32.mrb[10].mxu0  ;;  %v1657_v39 = vpop.f32.mrb[10].mxu1 }
 0x10d   : > { %v1038_v42 = vmax.f32 %v1006_v32, 0.0  ;;  %v1054_v43 = vmax.f32 %v1022_v33, 0.0  ;;  %v1610_v44 = vpop.f32.mrb[11].mxu0  ;;  %v1658_v45 = vpop.f32.mrb[11].mxu1 }
 0x10e   : > { %v968_v46 = vmul.f32 %v1608_v36, %v1952_v51  ;;  %v984_v47 = vmul.f32 %v1656_v37, %v1952_v51  ;;  %v1611_v48 = vadd.f32 %v1610_v44, %v1609_v38  ;;  %v1659_v49 = vadd.f32 %v1658_v45, %v1657_v39 }
 0x10f   : > { %v1491_v50 = vpack.c.bf16 %v1038_v42, %v1037_v40  ;;  %v1531_v52 = vpack.c.bf16 %v1054_v43, %v1053_v41 }
 0x110   : > { %v1007_v53 = vadd.f32 %v1957_v57, %v968_v46  ;;  %v1023_v54 = vadd.f32 %v1957_v57, %v984_v47  ;;  %v969_v55 = vmul.f32 %v1611_v48, %v1952_v51  ;;  %v985_v56 = vmul.f32 %v1659_v49, %v1952_v51 }
 0x111   : > { %1563 = vst [vmem:[%s1971_s21 + $0x8] sm:$0xff] %v1491_v50   ;;  %1571 = vst [vmem:[%s1971_s21 + $0x48] sm:$0xff] %v1531_v52  }
 0x112   : > { %v1008_v58 = vadd.f32 %v1957_v57, %v969_v55  ;;  %v1024_v59 = vadd.f32 %v1957_v57, %v985_v56  ;;  %v1612_v60 = vpop.f32.mrb[12].mxu0  ;;  %v1660_v61 = vpop.f32.mrb[12].mxu1  ;;  %v1039_v62 = vmax.f32 %v1007_v53, 0.0  ;;  %v1055_v63 = vmax.f32 %v1023_v54, 0.0 }
 0x113   : > { %v1613_v0 = vpop.f32.mrb[13].mxu0  ;;  %v1661_v1 = vpop.f32.mrb[13].mxu1 }
 0x114   : > { %v1040_v2 = vmax.f32 %v1008_v58, 0.0  ;;  %v1056_v3 = vmax.f32 %v1024_v59, 0.0  ;;  %v1614_v4 = vadd.f32 %v1613_v0, %v1612_v60  ;;  %v1662_v5 = vadd.f32 %v1661_v1, %v1660_v61  ;;  %v1615_v6 = vpop.f32.mrb[14].mxu0  ;;  %v1663_v7 = vpop.f32.mrb[14].mxu1 }
 0x115   : > { %v1616_v8 = vpop.f32.mrb[15].mxu0  ;;  %v1664_v9 = vpop.f32.mrb[15].mxu1 }
 0x116   : > { %v1496_v10 = vpack.c.bf16 %v1040_v2, %v1039_v62  ;;  %v1536_v11 = vpack.c.bf16 %v1056_v3, %v1055_v63  ;;  %v970_v12 = vmul.f32 %v1614_v4, %v1952_v51  ;;  %v986_v13 = vmul.f32 %v1662_v5, %v1952_v51 }
 0x117   : > { %v1617_v14 = vadd.f32 %v1616_v8, %v1615_v6  ;;  %v1665_v15 = vadd.f32 %v1664_v9, %v1663_v7 }
 0x118   : > { %1564 = vst [vmem:[%s1971_s21 + $0x10] sm:$0xff] %v1496_v10   ;;  %1572 = vst [vmem:[%s1971_s21 + $0x50] sm:$0xff] %v1536_v11   ;;  %v1009_v16 = vadd.f32 %v1957_v57, %v970_v12  ;;  %v1025_v17 = vadd.f32 %v1957_v57, %v986_v13 }
 0x119   : > { %v971_v18 = vmul.f32 %v1617_v14, %v1952_v51  ;;  %v987_v19 = vmul.f32 %v1665_v15, %v1952_v51 }
 0x11a   : > { %v1618_v20 = vpop.f32.mrb[16].mxu0  ;;  %v1666_v21 = vpop.f32.mrb[16].mxu1  ;;  %v1041_v30 = vmax.f32 %v1009_v16, 0.0  ;;  %v1057_v31 = vmax.f32 %v1025_v17, 0.0 }
 0x11b   : > { %v1010_v22 = vadd.f32 %v1957_v57, %v971_v18  ;;  %v1026_v23 = vadd.f32 %v1957_v57, %v987_v19  ;;  %v1619_v24 = vpop.f32.mrb[17].mxu0  ;;  %v1667_v25 = vpop.f32.mrb[17].mxu1 }
 0x11c   : > { %v1620_v26 = vadd.f32 %v1619_v24, %v1618_v20  ;;  %v1668_v27 = vadd.f32 %v1667_v25, %v1666_v21  ;;  %v1621_v28 = vpop.f32.mrb[18].mxu0  ;;  %v1669_v29 = vpop.f32.mrb[18].mxu1 }
 0x11d   : > { %v1042_v32 = vmax.f32 %v1010_v22, 0.0  ;;  %v1058_v33 = vmax.f32 %v1026_v23, 0.0  ;;  %v1622_v34 = vpop.f32.mrb[19].mxu0  ;;  %v1670_v35 = vpop.f32.mrb[19].mxu1 }
 0x11e   : > { %v972_v36 = vmul.f32 %v1620_v26, %v1952_v51  ;;  %v988_v37 = vmul.f32 %v1668_v27, %v1952_v51  ;;  %v1623_v38 = vadd.f32 %v1622_v34, %v1621_v28  ;;  %v1671_v39 = vadd.f32 %v1670_v35, %v1669_v29 }
 0x11f   : > { %v1501_v40 = vpack.c.bf16 %v1042_v32, %v1041_v30  ;;  %v1541_v41 = vpack.c.bf16 %v1058_v33, %v1057_v31 }
 0x120   : > { %v1011_v42 = vadd.f32 %v1957_v57, %v972_v36  ;;  %v1027_v43 = vadd.f32 %v1957_v57, %v988_v37  ;;  %v973_v44 = vmul.f32 %v1623_v38, %v1952_v51  ;;  %v989_v45 = vmul.f32 %v1671_v39, %v1952_v51 }
 0x121   : > { %1565 = vst [vmem:[%s1971_s21 + $0x18] sm:$0xff] %v1501_v40   ;;  %1573 = vst [vmem:[%s1971_s21 + $0x58] sm:$0xff] %v1541_v41  }
 0x122   : > { %v1012_v46 = vadd.f32 %v1957_v57, %v973_v44  ;;  %v1028_v47 = vadd.f32 %v1957_v57, %v989_v45  ;;  %v1624_v48 = vpop.f32.mrb[20].mxu0  ;;  %v1672_v49 = vpop.f32.mrb[20].mxu1  ;;  %v1043_v50 = vmax.f32 %v1011_v42, 0.0  ;;  %v1059_v52 = vmax.f32 %v1027_v43, 0.0 }
 0x123   : > { %v1625_v53 = vpop.f32.mrb[21].mxu0  ;;  %v1673_v54 = vpop.f32.mrb[21].mxu1 }
 0x124   : > { %v1044_v55 = vmax.f32 %v1012_v46, 0.0  ;;  %v1060_v56 = vmax.f32 %v1028_v47, 0.0  ;;  %v1626_v58 = vadd.f32 %v1625_v53, %v1624_v48  ;;  %v1674_v59 = vadd.f32 %v1673_v54, %v1672_v49  ;;  %v1627_v60 = vpop.f32.mrb[22].mxu0  ;;  %v1675_v61 = vpop.f32.mrb[22].mxu1 }
 0x125   : > { %v1628_v62 = vpop.f32.mrb[23].mxu0  ;;  %v1676_v63 = vpop.f32.mrb[23].mxu1 }
 0x126   : > { %v1506_v0 = vpack.c.bf16 %v1044_v55, %v1043_v50  ;;  %v1546_v1 = vpack.c.bf16 %v1060_v56, %v1059_v52  ;;  %v974_v2 = vmul.f32 %v1626_v58, %v1952_v51  ;;  %v990_v3 = vmul.f32 %v1674_v59, %v1952_v51 }
 0x127   : > { %v1629_v4 = vadd.f32 %v1628_v62, %v1627_v60  ;;  %v1677_v5 = vadd.f32 %v1676_v63, %v1675_v61 }
 0x128   : > { %1566 = vst [vmem:[%s1971_s21 + $0x20] sm:$0xff] %v1506_v0   ;;  %1574 = vst [vmem:[%s1971_s21 + $0x60] sm:$0xff] %v1546_v1   ;;  %v1013_v6 = vadd.f32 %v1957_v57, %v974_v2  ;;  %v1029_v7 = vadd.f32 %v1957_v57, %v990_v3 }
 0x129   : > { %v975_v8 = vmul.f32 %v1629_v4, %v1952_v51  ;;  %v991_v9 = vmul.f32 %v1677_v5, %v1952_v51 }
 0x12a   : > { %v1630_v10 = vpop.f32.mrb[24].mxu0  ;;  %v1678_v11 = vpop.f32.mrb[24].mxu1  ;;  %v1045_v20 = vmax.f32 %v1013_v6, 0.0  ;;  %v1061_v21 = vmax.f32 %v1029_v7, 0.0 }
 0x12b   : > { %v1014_v12 = vadd.f32 %v1957_v57, %v975_v8  ;;  %v1030_v13 = vadd.f32 %v1957_v57, %v991_v9  ;;  %v1631_v14 = vpop.f32.mrb[25].mxu0  ;;  %v1679_v15 = vpop.f32.mrb[25].mxu1 }
 0x12c   : > { %v1632_v16 = vadd.f32 %v1631_v14, %v1630_v10  ;;  %v1680_v17 = vadd.f32 %v1679_v15, %v1678_v11  ;;  %v1633_v18 = vpop.f32.mrb[26].mxu0  ;;  %v1681_v19 = vpop.f32.mrb[26].mxu1 }
 0x12d   : > { %v1046_v22 = vmax.f32 %v1014_v12, 0.0  ;;  %v1062_v23 = vmax.f32 %v1030_v13, 0.0  ;;  %v1634_v24 = vpop.f32.mrb[27].mxu0  ;;  %v1682_v25 = vpop.f32.mrb[27].mxu1 }
 0x12e   : > { %v976_v26 = vmul.f32 %v1632_v16, %v1952_v51  ;;  %v992_v27 = vmul.f32 %v1680_v17, %v1952_v51  ;;  %v1635_v28 = vadd.f32 %v1634_v24, %v1633_v18  ;;  %v1683_v29 = vadd.f32 %v1682_v25, %v1681_v19 }
 0x12f   : > { %v1511_v30 = vpack.c.bf16 %v1046_v22, %v1045_v20  ;;  %v1551_v31 = vpack.c.bf16 %v1062_v23, %v1061_v21 }
 0x130   : > { %v1015_v32 = vadd.f32 %v1957_v57, %v976_v26  ;;  %v1031_v33 = vadd.f32 %v1957_v57, %v992_v27  ;;  %v977_v34 = vmul.f32 %v1635_v28, %v1952_v51  ;;  %v993_v35 = vmul.f32 %v1683_v29, %v1952_v51 }
 0x131   : > { %1567 = vst [vmem:[%s1971_s21 + $0x28] sm:$0xff] %v1511_v30   ;;  %1575 = vst [vmem:[%s1971_s21 + $0x68] sm:$0xff] %v1551_v31  }
 0x132   : > { %v1016_v36 = vadd.f32 %v1957_v57, %v977_v34  ;;  %v1032_v37 = vadd.f32 %v1957_v57, %v993_v35  ;;  %v1636_v38 = vpop.f32.mrb[28].mxu0  ;;  %v1684_v39 = vpop.f32.mrb[28].mxu1  ;;  %v1047_v40 = vmax.f32 %v1015_v32, 0.0  ;;  %v1063_v41 = vmax.f32 %v1031_v33, 0.0 }
 0x133   : > { %v1637_v42 = vpop.f32.mrb[29].mxu0  ;;  %v1685_v43 = vpop.f32.mrb[29].mxu1 }
 0x134   : > { %v1048_v44 = vmax.f32 %v1016_v36, 0.0  ;;  %v1064_v45 = vmax.f32 %v1032_v37, 0.0  ;;  %v1638_v46 = vadd.f32 %v1637_v42, %v1636_v38  ;;  %v1686_v47 = vadd.f32 %v1685_v43, %v1684_v39  ;;  %v1639_v48 = vpop.f32.mrb[30].mxu0  ;;  %v1687_v49 = vpop.f32.mrb[30].mxu1 }
 0x135   : > { %v1640_v50 = vpop.f32.mrb[31].mxu0  ;;  %v1688_v52 = vpop.f32.mrb[31].mxu1 }
 0x136   : > { %v1516_v53 = vpack.c.bf16 %v1048_v44, %v1047_v40  ;;  %v1556_v54 = vpack.c.bf16 %v1064_v45, %v1063_v41  ;;  %v978_v55 = vmul.f32 %v1638_v46, %v1952_v51  ;;  %v994_v56 = vmul.f32 %v1686_v47, %v1952_v51 }
 0x137   : > { %v1641_v58 = vadd.f32 %v1640_v50, %v1639_v48  ;;  %v1689_v59 = vadd.f32 %v1688_v52, %v1687_v49 }
 0x138   : > { %1568 = vst [vmem:[%s1971_s21 + $0x30] sm:$0xff] %v1516_v53   ;;  %1576 = vst [vmem:[%s1971_s21 + $0x70] sm:$0xff] %v1556_v54   ;;  %v1017_v60 = vadd.f32 %v1957_v57, %v978_v55  ;;  %v1033_v61 = vadd.f32 %v1957_v57, %v994_v56 }
 0x139   : > { %v979_v62 = vmul.f32 %v1641_v58, %v1952_v51  ;;  %v995_v63 = vmul.f32 %v1689_v59, %v1952_v51 }
 0x13a   : > { %v1049_v2 = vmax.f32 %v1017_v60, 0.0  ;;  %v1065_v3 = vmax.f32 %v1033_v61, 0.0 }
 0x13b   : > { %v1018_v0 = vadd.f32 %v1957_v57, %v979_v62  ;;  %v1034_v1 = vadd.f32 %v1957_v57, %v995_v63 }
 0x13d   : > { %v1050_v4 = vmax.f32 %v1018_v0, 0.0  ;;  %v1066_v5 = vmax.f32 %v1034_v1, 0.0 }
 0x13f   : > { %v1521_v6 = vpack.c.bf16 %v1050_v4, %v1049_v2  ;;  %v1561_v7 = vpack.c.bf16 %v1066_v5, %v1065_v3 }
 0x141   : > { %1569 = vst [vmem:[%s1971_s21 + $0x38] sm:$0xff] %v1521_v6   ;;  %1577 = vst [vmem:[%s1971_s21 + $0x78] sm:$0xff] %v1561_v7  }
 0x142 PF: > { %s14_s17 = sadd.s32 1, %s1816_s17   ;;  %s2059_s15 = smov %s1812_s16 }
 0x143   : > { %p11_p5 = scmp.ge.s32.totalorder %s14_s17, 4   ;;  %s2060_s16 = smov %s2062_s18 }
 0x145   :  { %13 = sbr.rel (!%p11_p5) target bundleno = 2 (0x2), region = 83 }

// kernel: _lambda_.19
= control target key start
LH: loop header
LB: loop body
LE: loop exit
PB: predicated region body
PF: predicated region fallthrough
CT: control target
= control target key end

     0   :  { %s2258_s15 = smov 0   ;;  %s2260_s16 = smov 0   ;;  %s2561_s0 = inlined_call_operand.vmem [shape: bf16[128,1152], index: 0, kind: input, shape index: {}]   ;;  %s2562_s1 = inlined_call_operand.vmem [shape: bf16[1152,128], index: 1, kind: input, shape index: {}]   ;;  %s2563_s2 = inlined_call_operand.vmem [shape: f32[1,128], index: 2, kind: input, shape index: {}]   ;;  %s2564_s3 = inlined_call_operand.vmem [shape: f32[1,128], index: 3, kind: input, shape index: {}]   ;;  %s2565_s4 = inlined_call_operand.vmem [shape: bf16[128,128], index: 4, kind: output, shape index: {}]  }
   0x1   :  { %s2262_s17 = smov 0  }
   0x2 LB: > { %s33_s18 = sadd.s32 1, %s2227_s16  ;;  %p1692_p0 = scmp.ge.s32.totalorder %s2231_s17, 1  ;;  %s2231_s17 = sphi %s2262_s17, %s14_s17   ;;  %s2227_s16 = sphi %s2260_s16, %s2567_s16   ;;  %s2223_s15 = sphi %s2258_s15, %s2566_s15  }
   0x3   : > { %p35_p1 = scmp.ge.s32.totalorder %s33_s18, 2  ;;  %p224_p2 = scmp.lt.s32.totalorder %s2231_s17, 3 }
   0x5   : > { %s2569_s18 = smov (%p35_p1, %s33_s18), 0  ;;  %p225_p3 = pnand %p1692_p0, %p224_p2 }
   0x6   : > { %v2085_v0 = vld [vmem:[%s2562_s1 + $0x40] sm:$0xff] (!%p225_p3)   ;;  %v2089_v4 = vld [vmem:[%s2562_s1 + $0x48] sm:$0xff] (!%p225_p3)   ;;  %v2093_v8 = vld [vmem:[%s2562_s1 + $0x50] sm:$0xff] (!%p225_p3)   ;;  %s1693_s27 = sshll.u32 (!%p225_p3), %s2223_s15, 3 }
   0x7   : > { %228 = sbr.rel (%p225_p3) target bundleno = 332 (0x14c), region = 36  ;;  %v2086_v1 = vld [vmem:[%s2562_s1 + $0xc0] sm:$0xff] (!%p225_p3)   ;;  %1848 = vmatprep.subr.bf16.mxu0 (!%p225_p3), %v2085_v0  ;;  %v2090_v5 = vld [vmem:[%s2562_s1 + $0xc8] sm:$0xff] (!%p225_p3)   ;;  %v2094_v9 = vld [vmem:[%s2562_s1 + $0xd0] sm:$0xff] (!%p225_p3)   ;;  %p274_p4 = scmp.lt.s32.totalorder (!%p225_p3), %s1693_s27, 15 }
   0x8   : > { %v2087_v2 = vld [vmem:[%s2562_s1] sm:$0xff] (!%p225_p3)   ;;  %1888 = vmatprep.subr.bf16.mxu1 (!%p225_p3), %v2086_v1  ;;  %v2091_v6 = vld [vmem:[%s2562_s1 + $0x8] sm:$0xff] (!%p225_p3)   ;;  %v2095_v10 = vld [vmem:[%s2562_s1 + $0x10] sm:$0xff] (!%p225_p3)  }
   0x9   : > { %v2088_v3 = vld [vmem:[%s2562_s1 + $0x80] sm:$0xff] (!%p225_p3)   ;;  %1849 = vmatpush3.bf16.msra.mxu0 (!%p225_p3), %v2087_v2  ;;  %v2092_v7 = vld [vmem:[%s2562_s1 + $0x88] sm:$0xff] (!%p225_p3)   ;;  %v2096_v11 = vld [vmem:[%s2562_s1 + $0x90] sm:$0xff] (!%p225_p3)  }
   0xa   : > { %1889 = vmatpush3.bf16.msra.mxu1 (!%p225_p3), %v2088_v3  ;;  %1850 = vmatprep.subr.bf16.mxu0 (!%p225_p3), %v2089_v4  ;;  %v2097_v12 = vld [vmem:[%s2562_s1 + $0x58] sm:$0xff] (!%p225_p3)   ;;  %v2101_v16 = vld [vmem:[%s2562_s1 + $0x60] sm:$0xff] (!%p225_p3)   ;;  %v2105_v20 = vld [vmem:[%s2562_s1 + $0x68] sm:$0xff] (!%p225_p3)  }
   0xb   : > { %1890 = vmatprep.subr.bf16.mxu1 (!%p225_p3), %v2090_v5  ;;  %v2098_v13 = vld [vmem:[%s2562_s1 + $0xd8] sm:$0xff] (!%p225_p3)   ;;  %v2102_v17 = vld [vmem:[%s2562_s1 + $0xe0] sm:$0xff] (!%p225_p3)   ;;  %v2106_v21 = vld [vmem:[%s2562_s1 + $0xe8] sm:$0xff] (!%p225_p3)  }
   0xc   : > { %v2099_v14 = vld [vmem:[%s2562_s1 + $0x18] sm:$0xff] (!%p225_p3)   ;;  %v2103_v18 = vld [vmem:[%s2562_s1 + $0x20] sm:$0xff] (!%p225_p3)   ;;  %v2107_v22 = vld [vmem:[%s2562_s1 + $0x28] sm:$0xff] (!%p225_p3)  }
   0xd   : > { %1851 = vmatpush3.bf16.msra.mxu0 (!%p225_p3), %v2091_v6  ;;  %v2100_v15 = vld [vmem:[%s2562_s1 + $0x98] sm:$0xff] (!%p225_p3)   ;;  %v2104_v19 = vld [vmem:[%s2562_s1 + $0xa0] sm:$0xff] (!%p225_p3)   ;;  %v2108_v23 = vld [vmem:[%s2562_s1 + $0xa8] sm:$0xff] (!%p225_p3)  }
   0xe   : > { %1891 = vmatpush3.bf16.msra.mxu1 %v2092_v7  ;;  %1852 = vmatprep.subr.bf16.mxu0 %v2093_v8  ;;  %s2571_s27 = smov (!%p274_p4, %s1693_s27), 15  ;;  %v2109_v24 = vld [vmem:[%s2562_s1 + $0x70] sm:$0xff]   ;;  %v2113_v28 = vld [vmem:[%s2562_s1 + $0x78] sm:$0xff]   ;;  %v2123_v36 = vld [vmem:[%s2562_s1 + $0x140] sm:$0xff]  }
   0xf   : > { %1892 = vmatprep.subr.bf16.mxu1 %v2094_v9  ;;  %v2110_v25 = vld [vmem:[%s2562_s1 + $0xf0] sm:$0xff]   ;;  %s2060_s28 = smul.u32 36, %s2571_s27  ;;  %v2114_v29 = vld [vmem:[%s2562_s1 + $0xf8] sm:$0xff]   ;;  %v2124_v37 = vld [vmem:[%s2562_s1 + $0x1c0] sm:$0xff]   ;;  %s1696_s20 = sshll.u32 %s2571_s27, 2 }
  0x10   : > { %v2111_v26 = vld [vmem:[%s2562_s1 + $0x30] sm:$0xff]   ;;  %v2115_v30 = vld [vmem:[%s2562_s1 + $0x38] sm:$0xff]   ;;  %v2125_v38 = vld [vmem:[%s2562_s1 + $0x100] sm:$0xff]   ;;  %s306_s23 = scalar_lea.vmem %s2565_s4, %s1696_s20 }
  0x11   : > { %1853 = vmatpush3.bf16.msra.mxu0 %v2095_v10  ;;  %v2112_v27 = vld [vmem:[%s2562_s1 + $0xb0] sm:$0xff]   ;;  %s2375_s12 = scalar_lea.vmem %s2561_s0, %s2060_s28  ;;  %v2116_v31 = vld [vmem:[%s2562_s1 + $0xb8] sm:$0xff]   ;;  %v2126_v39 = vld [vmem:[%s2562_s1 + $0x180] sm:$0xff]  }
  0x12   : > { %1893 = vmatpush3.bf16.msra.mxu1 %v2096_v11  ;;  %1854 = vmatprep.subr.bf16.mxu0 %v2097_v12  ;;  %v2117_v32 = vld [vmem:[%s2375_s12] ss:$36 sps:$4 sm:$0xff]   ;;  %v2120_v34 = vld [vmem:[%s2375_s12 + $0x8] ss:$36 sps:$4 sm:$0xff]   ;;  %v2133_v45 = vld [vmem:[%s2375_s12 + $0x54] ss:$36 sps:$4 sm:$0xff]  }
  0x13   : > { %1894 = vmatprep.subr.bf16.mxu1 %v2098_v13  ;;  %v2119_v33 = vld [vmem:[%s2375_s12 + $0x4] ss:$36 sps:$4 sm:$0xff]   ;;  %v2122_v35 = vld [vmem:[%s2375_s12 + $0xc] ss:$36 sps:$4 sm:$0xff]   ;;  %v2141_v52 = vld [vmem:[%s2562_s1 + $0x158] sm:$0xff]  }
  0x14   : > { %1161 = vmatprep.mubr.bf16.mxu0 %v2119_v33  ;;  %1226 = vmatprep.mubr.bf16.mxu1 %v2122_v35  ;;  %v2127_v40 = vld [vmem:[%s2562_s1 + $0x148] sm:$0xff]   ;;  %v2136_v47 = vld [vmem:[%s2375_s12 + $0x50] ss:$36 sps:$4 sm:$0xff]   ;;  %v2142_v53 = vld [vmem:[%s2562_s1 + $0x1d8] sm:$0xff]  }
  0x15   : > { %1855 = vmatpush3.bf16.msra.mxu0 %v2099_v14  ;;  %v2128_v41 = vld [vmem:[%s2562_s1 + $0x1c8] sm:$0xff]   ;;  %v2137_v48 = vld [vmem:[%s2562_s1 + $0x150] sm:$0xff]   ;;  %v2143_v54 = vld [vmem:[%s2562_s1 + $0x118] sm:$0xff]  }
  0x16   : > { %1895 = vmatpush3.bf16.msra.mxu1 %v2100_v15  ;;  %1856 = vmatprep.subr.bf16.mxu0 %v2101_v16  ;;  %v2129_v42 = vld [vmem:[%s2562_s1 + $0x108] sm:$0xff]   ;;  %v2138_v49 = vld [vmem:[%s2562_s1 + $0x1d0] sm:$0xff]   ;;  %v2144_v55 = vld [vmem:[%s2562_s1 + $0x198] sm:$0xff]  }
  0x17   : > { %1896 = vmatprep.subr.bf16.mxu1 %v2102_v17  ;;  %v2130_v43 = vld [vmem:[%s2562_s1 + $0x188] sm:$0xff]   ;;  %v2139_v50 = vld [vmem:[%s2562_s1 + $0x110] sm:$0xff]   ;;  %v2147_v57 = vld [vmem:[%s2375_s12 + $0x9c] ss:$36 sps:$4 sm:$0xff]  }
  0x18   : > { %v2131_v44 = vld [vmem:[%s2375_s12 + $0x4c] ss:$36 sps:$4 sm:$0xff]   ;;  %v2145_v56 = vld [vmem:[%s2375_s12 + $0x94] ss:$36 sps:$4 sm:$0xff]   ;;  %v2151_v60 = vld [vmem:[%s2562_s1 + $0x160] sm:$0xff]  }
  0x19   : > { %1857 = vmatpush3.bf16.msra.mxu0 %v2103_v18  ;;  %v2135_v46 = vld [vmem:[%s2375_s12 + $0x48] ss:$36 sps:$4 sm:$0xff]   ;;  %v2140_v51 = vld [vmem:[%s2562_s1 + $0x190] sm:$0xff]   ;;  %v2150_v59 = vld [vmem:[%s2375_s12 + $0x98] ss:$36 sps:$4 sm:$0xff]  }
  0x1a   : > { %1897 = vmatpush3.bf16.msra.mxu1 %v2104_v19  ;;  %1858 = vmatprep.subr.bf16.mxu0 %v2105_v20  ;;  %v2149_v58 = vld [vmem:[%s2375_s12 + $0x90] ss:$36 sps:$4 sm:$0xff]   ;;  %v2152_v61 = vld [vmem:[%s2562_s1 + $0x1e0] sm:$0xff]   ;;  %v2155_v0 = vld [vmem:[%s2562_s1 + $0x168] sm:$0xff]  }
  0x1b   : > { %1898 = vmatprep.subr.bf16.mxu1 %v2106_v21  ;;  %v2153_v62 = vld [vmem:[%s2562_s1 + $0x120] sm:$0xff]   ;;  %v2156_v1 = vld [vmem:[%s2562_s1 + $0x1e8] sm:$0xff]   ;;  %v2163_v6 = vld [vmem:[%s2375_s12 + $0xd8] ss:$36 sps:$4 sm:$0xff]  }
  0x1c   : > { %v2154_v63 = vld [vmem:[%s2562_s1 + $0x1a0] sm:$0xff]   ;;  %v2157_v2 = vld [vmem:[%s2562_s1 + $0x128] sm:$0xff]   ;;  %v2165_v8 = vld [vmem:[%s2562_s1 + $0x170] sm:$0xff]  }
  0x1d   : > { %1859 = vmatpush3.bf16.msra.mxu0 %v2107_v22  ;;  %v2158_v3 = vld [vmem:[%s2562_s1 + $0x1a8] sm:$0xff]   ;;  %v2159_v4 = vld [vmem:[%s2375_s12 + $0xdc] ss:$36 sps:$4 sm:$0xff]   ;;  %v2166_v9 = vld [vmem:[%s2562_s1 + $0x1f0] sm:$0xff]  }
  0x1e   : > { %1899 = vmatpush3.bf16.msra.mxu1 %v2108_v23  ;;  %1860 = vmatprep.subr.bf16.mxu0 %v2109_v24  ;;  %v2161_v5 = vld [vmem:[%s2375_s12 + $0xe4] ss:$36 sps:$4 sm:$0xff]   ;;  %v2167_v10 = vld [vmem:[%s2562_s1 + $0x130] sm:$0xff]   ;;  %v2169_v12 = vld [vmem:[%s2562_s1 + $0x178] sm:$0xff]  }
  0x1f   : > { %1900 = vmatprep.subr.bf16.mxu1 %v2110_v25  ;;  %v2164_v7 = vld [vmem:[%s2375_s12 + $0xe0] ss:$36 sps:$4 sm:$0xff]   ;;  %v2168_v11 = vld [vmem:[%s2562_s1 + $0x1b0] sm:$0xff]   ;;  %v2170_v13 = vld [vmem:[%s2562_s1 + $0x1f8] sm:$0xff]  }
  0x20   : > { %v2171_v14 = vld [vmem:[%s2562_s1 + $0x138] sm:$0xff]   ;;  %v2173_v16 = vld [vmem:[%s2375_s12 + $0x10] ss:$36 sps:$4 sm:$0xff]   ;;  %v2179_v20 = vld [vmem:[%s2562_s1 + $0x200] sm:$0xff]  }
  0x21   : > { %1861 = vmatpush3.bf16.msra.mxu0 %v2111_v26  ;;  %v2172_v15 = vld [vmem:[%s2562_s1 + $0x1b8] sm:$0xff]   ;;  %v2180_v21 = vld [vmem:[%s2562_s1 + $0x208] sm:$0xff]   ;;  %v2186_v25 = vld [vmem:[%s2375_s12 + $0x60] ss:$36 sps:$4 sm:$0xff]  }
  0x22   : > { %1901 = vmatpush3.bf16.msra.mxu1 %v2112_v27  ;;  %1862 = vmatprep.subr.bf16.mxu0 %v2113_v28  ;;  %v2175_v17 = vld [vmem:[%s2375_s12 + $0x14] ss:$36 sps:$4 sm:$0xff]   ;;  %v2178_v19 = vld [vmem:[%s2375_s12 + $0x1c] ss:$36 sps:$4 sm:$0xff]   ;;  %v2183_v23 = vld [vmem:[%s2375_s12 + $0x64] ss:$36 sps:$4 sm:$0xff]  }
  0x23   : > { %1902 = vmatprep.subr.bf16.mxu1 %v2114_v29  ;;  %v2176_v18 = vld [vmem:[%s2375_s12 + $0x18] ss:$36 sps:$4 sm:$0xff]   ;;  %v2187_v26 = vld [vmem:[%s2562_s1 + $0x210] sm:$0xff]   ;;  %v2189_v27 = vld [vmem:[%s2375_s12 + $0xa4] ss:$36 sps:$4 sm:$0xff]  }
  0x24   : > { %v2181_v22 = vld [vmem:[%s2375_s12 + $0x5c] ss:$36 sps:$4 sm:$0xff]   ;;  %v2191_v28 = vld [vmem:[%s2375_s12 + $0xac] ss:$36 sps:$4 sm:$0xff]  }
  0x25   : > { %1863 = vmatpush3.bf16.msra.mxu0 %v2115_v30  ;;  %v2185_v24 = vld [vmem:[%s2375_s12 + $0x58] ss:$36 sps:$4 sm:$0xff]   ;;  %v2193_v30 = vld [vmem:[%s2375_s12 + $0xa0] ss:$36 sps:$4 sm:$0xff]   ;;  %v2197_v33 = vld [vmem:[%s2375_s12 + $0xec] ss:$36 sps:$4 sm:$0xff]  }
  0x26   : > { %1903 = vmatpush3.bf16.msra.mxu1 %v2116_v31  ;;  %1928 = vmatprep.subr.bf16.mxu0 %v2123_v36  ;;  %v2188_v29 = vld [vmem:[%s2562_s1 + $0x218] sm:$0xff]   ;;  %v2194_v31 = vld [vmem:[%s2375_s12 + $0xa8] ss:$36 sps:$4 sm:$0xff]  }
  0x27   : > { %1968 = vmatprep.subr.bf16.mxu1 %v2124_v37  ;;  %v2196_v35 = vld [vmem:[%s2562_s1 + $0x228] sm:$0xff]   ;;  %v2203_v37 = vld [vmem:[%s2562_s1 + $0x230] sm:$0xff]  }
  0x28   : > { %1162 = vmatmul.mubr.bf16.vlgmr.msra.gmra.mrb[0].mxu0 %v2117_v32  ;;  %v2195_v32 = vld [vmem:[%s2562_s1 + $0x220] sm:$0xff]   ;;  %v2201_v36 = vld [vmem:[%s2375_s12 + $0xe8] ss:$36 sps:$4 sm:$0xff]  }
  0x29   : > { %1227 = vmatmul.mubr.bf16.vlgmr.msra.gmra.mrb[0].mxu1 %v2120_v34  ;;  %1929 = vmatpush3.bf16.msra.mxu0 %v2125_v38  ;;  %v2199_v34 = vld [vmem:[%s2375_s12 + $0xf4] ss:$36 sps:$4 sm:$0xff]  }
  0x2a   : > { %1969 = vmatpush3.bf16.msra.mxu1 %v2126_v39  ;;  %1930 = vmatprep.subr.bf16.mxu0 %v2127_v40  ;;  %v2202_v38 = vld [vmem:[%s2375_s12 + $0xf0] ss:$36 sps:$4 sm:$0xff]   ;;  %v2205_v39 = vld [vmem:[%s2375_s12 + $0x20] ss:$36 sps:$4 sm:$0xff]  }
  0x2b   : > { %1970 = vmatprep.subr.bf16.mxu1 %v2128_v41  ;;  %1169 = vmatprep.mubr.bf16.mxu0 %v2131_v44  ;;  %v2206_v40 = vld [vmem:[%s2375_s12 + $0xb0] ss:$36 sps:$4 sm:$0xff]   ;;  %v2204_v41 = vld [vmem:[%s2562_s1 + $0x238] sm:$0xff]  }
  0x2c   : > { %1234 = vmatprep.mubr.bf16.mxu1 %v2133_v45 }
  0x2d   : > { %1931 = vmatpush3.bf16.msra.mxu0 %v2129_v42  ;;  %v2207_v42 = vld [vmem:[%s2375_s12 + $0x68] ss:$36 sps:$4 sm:$0xff]  }
  0x2e   : > { %1971 = vmatpush3.bf16.msra.mxu1 %v2130_v43  ;;  %1932 = vmatprep.subr.bf16.mxu0 %v2137_v48  ;;  %v2208_v43 = vld [vmem:[%s2375_s12 + $0xf8] ss:$36 sps:$4 sm:$0xff]  }
  0x2f   : > { %1972 = vmatprep.subr.bf16.mxu1 %v2138_v49 }
  0x30   : > { %1170 = vmatmul.mubr.bf16.gmra.mrb[4].mxu0 %v2135_v46 }
  0x31   : > { %1235 = vmatmul.mubr.bf16.gmra.mrb[4].mxu1 %v2136_v47  ;;  %1933 = vmatpush3.bf16.msra.mxu0 %v2139_v50 }
  0x32   : > { %1973 = vmatpush3.bf16.msra.mxu1 %v2140_v51  ;;  %1934 = vmatprep.subr.bf16.mxu0 %v2141_v52 }
  0x33   : > { %1974 = vmatprep.subr.bf16.mxu1 %v2142_v53  ;;  %1177 = vmatprep.mubr.bf16.mxu0 %v2145_v56 }
  0x34   : > { %1242 = vmatprep.mubr.bf16.mxu1 %v2147_v57 }
  0x35   : > { %1935 = vmatpush3.bf16.msra.mxu0 %v2143_v54 }
  0x36   : > { %1975 = vmatpush3.bf16.msra.mxu1 %v2144_v55  ;;  %1936 = vmatprep.subr.bf16.mxu0 %v2151_v60 }
  0x37   : > { %1976 = vmatprep.subr.bf16.mxu1 %v2152_v61 }
  0x38   : > { %1178 = vmatmul.mubr.bf16.gmra.mrb[8].mxu0 %v2149_v58 }
  0x39   : > { %1243 = vmatmul.mubr.bf16.gmra.mrb[8].mxu1 %v2150_v59  ;;  %1937 = vmatpush3.bf16.msra.mxu0 %v2153_v62 }
  0x3a   : > { %1977 = vmatpush3.bf16.msra.mxu1 %v2154_v63  ;;  %1938 = vmatprep.subr.bf16.mxu0 %v2155_v0 }
  0x3b   : > { %1978 = vmatprep.subr.bf16.mxu1 %v2156_v1  ;;  %1185 = vmatprep.mubr.bf16.mxu0 %v2159_v4 }
  0x3c   : > { %1250 = vmatprep.mubr.bf16.mxu1 %v2161_v5 }
  0x3d   : > { %1939 = vmatpush3.bf16.msra.mxu0 %v2157_v2 }
  0x3e   : > { %1979 = vmatpush3.bf16.msra.mxu1 %v2158_v3  ;;  %1940 = vmatprep.subr.bf16.mxu0 %v2165_v8 }
  0x3f   : > { %1980 = vmatprep.subr.bf16.mxu1 %v2166_v9 }
  0x40   : > { %1186 = vmatmul.mubr.bf16.gmra.mrb[12].mxu0 %v2163_v6 }
  0x41   : > { %1251 = vmatmul.mubr.bf16.gmra.mrb[12].mxu1 %v2164_v7  ;;  %1941 = vmatpush3.bf16.msra.mxu0 %v2167_v10 }
  0x42   : > { %1981 = vmatpush3.bf16.msra.mxu1 %v2168_v11  ;;  %1942 = vmatprep.subr.bf16.mxu0 %v2169_v12 }
  0x43   : > { %1982 = vmatprep.subr.bf16.mxu1 %v2170_v13  ;;  %1291 = vmatprep.mubr.bf16.mxu0 %v2175_v17 }
  0x44   : > { %1356 = vmatprep.mubr.bf16.mxu1 %v2178_v19 }
  0x45   : > { %1943 = vmatpush3.bf16.msra.mxu0 %v2171_v14 }
  0x46   : > { %1983 = vmatpush3.bf16.msra.mxu1 %v2172_v15  ;;  %2020 = vmatprep.subr.bf16.mxu0 %v2179_v20 }
  0x47   : > { %2044 = vmatprep.subr.bf16.mxu1 %v2179_v20 }
  0x48   : > { %1292 = vmatmul.mubr.bf16.vlgmr.msra.gmra.mrb[16].mxu0 %v2173_v16 }
  0x49   : > { %1357 = vmatmul.mubr.bf16.vlgmr.msra.gmra.mrb[16].mxu1 %v2176_v18  ;;  %2021 = vmatpush3.bf16.msra.mxu0 %v2179_v20 }
  0x4a   : > { %2052 = vmatpush3.bf16.msra.mxu1 %v2179_v20  ;;  %2022 = vmatprep.subr.bf16.mxu0 %v2180_v21 }
  0x4b   : > { %2045 = vmatprep.subr.bf16.mxu1 %v2180_v21  ;;  %1299 = vmatprep.mubr.bf16.mxu0 %v2181_v22 }
  0x4c   : > { %1364 = vmatprep.mubr.bf16.mxu1 %v2183_v23 }
  0x4d   : > { %2023 = vmatpush3.bf16.msra.mxu0 %v2180_v21 }
  0x4e   : > { %2053 = vmatpush3.bf16.msra.mxu1 %v2180_v21  ;;  %2024 = vmatprep.subr.bf16.mxu0 %v2187_v26 }
  0x4f   : > { %2046 = vmatprep.subr.bf16.mxu1 %v2187_v26 }
  0x50   : > { %1300 = vmatmul.mubr.bf16.gmra.mrb[20].mxu0 %v2185_v24 }
  0x51   : > { %1365 = vmatmul.mubr.bf16.gmra.mrb[20].mxu1 %v2186_v25  ;;  %1307 = vmatprep.mubr.bf16.mxu0 %v2189_v27 }
  0x52   : > { %2025 = vmatpush3.bf16.msra.mxu0 %v2187_v26  ;;  %1372 = vmatprep.mubr.bf16.mxu1 %v2191_v28 }
  0x53   : > { %2054 = vmatpush3.bf16.msra.mxu1 %v2187_v26  ;;  %2026 = vmatprep.subr.bf16.mxu0 %v2188_v29 }
  0x54   : > { %2047 = vmatprep.subr.bf16.mxu1 %v2188_v29 }
  0x56   : > { %2027 = vmatpush3.bf16.msra.mxu0 %v2188_v29 }
  0x57   : > { %2055 = vmatpush3.bf16.msra.mxu1 %v2188_v29  ;;  %2028 = vmatprep.subr.bf16.mxu0 %v2195_v32 }
  0x58   : > { %1308 = vmatmul.mubr.bf16.gmra.mrb[24].mxu0 %v2193_v30  ;;  %2048 = vmatprep.subr.bf16.mxu1 %v2195_v32 }
  0x59   : > { %1373 = vmatmul.mubr.bf16.gmra.mrb[24].mxu1 %v2194_v31  ;;  %1315 = vmatprep.mubr.bf16.mxu0 %v2197_v33 }
  0x5a   : > { %2029 = vmatpush3.bf16.msra.mxu0 %v2195_v32  ;;  %1380 = vmatprep.mubr.bf16.mxu1 %v2199_v34 }
  0x5b   : > { %2056 = vmatpush3.bf16.msra.mxu1 %v2195_v32  ;;  %2030 = vmatprep.subr.bf16.mxu0 %v2196_v35 }
  0x5c   : > { %2049 = vmatprep.subr.bf16.mxu1 %v2196_v35 }
  0x5e   : > { %2031 = vmatpush3.bf16.msra.mxu0 %v2196_v35 }
  0x5f   : > { %2057 = vmatpush3.bf16.msra.mxu1 %v2196_v35  ;;  %2032 = vmatprep.subr.bf16.mxu0 %v2203_v37 }
  0x60   : > { %1316 = vmatmul.mubr.bf16.gmra.mrb[28].mxu0 %v2201_v36  ;;  %2050 = vmatprep.subr.bf16.mxu1 %v2203_v37 }
  0x61   : > { %1381 = vmatmul.mubr.bf16.gmra.mrb[28].mxu1 %v2202_v38  ;;  %2036 = vmatprep.mubr.bf16.mxu0 %v2205_v39 }
  0x62   : > { %2033 = vmatpush3.bf16.msra.mxu0 %v2203_v37  ;;  %2040 = vmatprep.mubr.bf16.mxu1 %v2206_v40 }
  0x63   : > { %2058 = vmatpush3.bf16.msra.mxu1 %v2203_v37  ;;  %2034 = vmatprep.subr.bf16.mxu0 %v2204_v41 }
  0x64   : > { %2051 = vmatprep.subr.bf16.mxu1 %v2204_v41 }
  0x66   : > { %2035 = vmatpush3.bf16.msra.mxu0 %v2204_v41 }
  0x67   : > { %2059 = vmatpush3.bf16.msra.mxu1 %v2204_v41 }
  0x69   : > { %2037 = vmatmul.mubr.bf16.vlgmr.msra.gmra.mrb[32].mxu0 %v2207_v42 }
  0x6a   : > { %2041 = vmatmul.mubr.bf16.vlgmr.msra.gmra.mrb[32].mxu1 %v2208_v43 }
  0xfb   : > { %v1864_v44 = vpop.f32.mrb[0].mxu0 }
  0xfc   : > { %v1904_v45 = vpop.f32.mrb[0].mxu1  ;;  %v1865_v46 = vpop.f32.mrb[1].mxu0 }
  0xfd   : > { %v1866_v47 = vadd.f32 %v1865_v46, %v1864_v44  ;;  %v1905_v48 = vpop.f32.mrb[1].mxu1  ;;  %v1867_v49 = vpop.f32.mrb[2].mxu0 }
  0xfe   : > { %v1906_v50 = vadd.f32 %v1905_v48, %v1904_v45  ;;  %v1907_v51 = vpop.f32.mrb[2].mxu1  ;;  %v1868_v52 = vpop.f32.mrb[3].mxu0 }
  0xff   : > { %v1869_v53 = vadd.f32 %v1868_v52, %v1867_v49  ;;  %v1908_v54 = vpop.f32.mrb[3].mxu1 }
 0x100   : > { %v1229_v55 = vadd.f32 %v1906_v50, %v1866_v47  ;;  %v1909_v56 = vadd.f32 %v1908_v54, %v1907_v51 }
 0x102   : > { %v1232_v57 = vadd.f32 %v1909_v56, %v1869_v53 }
 0x103   : > { %v1870_v58 = vpop.f32.mrb[4].mxu0 }
 0x104   : > { %v1910_v59 = vpop.f32.mrb[4].mxu1  ;;  %v1871_v60 = vpop.f32.mrb[5].mxu0 }
 0x105   : > { %v1872_v61 = vadd.f32 %v1871_v60, %v1870_v58  ;;  %v1911_v62 = vpop.f32.mrb[5].mxu1  ;;  %v1873_v63 = vpop.f32.mrb[6].mxu0 }
 0x106   : > { %v1912_v0 = vadd.f32 %v1911_v62, %v1910_v59  ;;  %v1913_v1 = vpop.f32.mrb[6].mxu1  ;;  %v1874_v2 = vpop.f32.mrb[7].mxu0 }
 0x107   : > { %v1875_v3 = vadd.f32 %v1874_v2, %v1873_v63  ;;  %v1914_v4 = vpop.f32.mrb[7].mxu1 }
 0x108   : > { %v1237_v5 = vadd.f32 %v1912_v0, %v1872_v61  ;;  %v1915_v6 = vadd.f32 %v1914_v4, %v1913_v1 }
 0x10a   : > { %v1240_v7 = vadd.f32 %v1915_v6, %v1875_v3 }
 0x10b   : > { %v1876_v8 = vpop.f32.mrb[8].mxu0 }
 0x10c   : > { %v1916_v9 = vpop.f32.mrb[8].mxu1  ;;  %v1877_v10 = vpop.f32.mrb[9].mxu0 }
 0x10d   : > { %v1878_v11 = vadd.f32 %v1877_v10, %v1876_v8  ;;  %v1917_v12 = vpop.f32.mrb[9].mxu1  ;;  %v1879_v13 = vpop.f32.mrb[10].mxu0 }
 0x10e   : > { %v1918_v14 = vadd.f32 %v1917_v12, %v1916_v9  ;;  %v1919_v15 = vpop.f32.mrb[10].mxu1  ;;  %v1880_v16 = vpop.f32.mrb[11].mxu0 }
 0x10f   : > { %v1881_v17 = vadd.f32 %v1880_v16, %v1879_v13  ;;  %v1920_v18 = vpop.f32.mrb[11].mxu1 }
 0x110   : > { %v1245_v19 = vadd.f32 %v1918_v14, %v1878_v11  ;;  %v1921_v20 = vadd.f32 %v1920_v18, %v1919_v15 }
 0x112   : > { %v1248_v21 = vadd.f32 %v1921_v20, %v1881_v17 }
 0x113   : > { %v1882_v22 = vpop.f32.mrb[12].mxu0 }
 0x114   : > { %v1922_v23 = vpop.f32.mrb[12].mxu1  ;;  %v1883_v24 = vpop.f32.mrb[13].mxu0 }
 0x115   : > { %v1923_v25 = vpop.f32.mrb[13].mxu1  ;;  %v1884_v26 = vadd.f32 %v1883_v24, %v1882_v22  ;;  %v1885_v28 = vpop.f32.mrb[14].mxu0 }
 0x116   : > { %v1924_v27 = vadd.f32 %v1923_v25, %v1922_v23  ;;  %v1925_v29 = vpop.f32.mrb[14].mxu1  ;;  %v1886_v30 = vpop.f32.mrb[15].mxu0 }
 0x117   : > { %v1926_v31 = vpop.f32.mrb[15].mxu1  ;;  %v1887_v33 = vadd.f32 %v1886_v30, %v1885_v28 }
 0x118   : > { %v1253_v32 = vadd.f32 %v1924_v27, %v1884_v26  ;;  %v1927_v34 = vadd.f32 %v1926_v31, %v1925_v29 }
 0x11a   : > { %v1256_v35 = vadd.f32 %v1927_v34, %v1887_v33 }
 0x11b   : > { %v1944_v36 = vpop.f32.mrb[16].mxu0 }
 0x11c   : > { %v1945_v37 = vpop.f32.mrb[17].mxu0  ;;  %v1984_v38 = vpop.f32.mrb[16].mxu1 }
 0x11d   : > { %v1946_v39 = vadd.f32 %v1945_v37, %v1944_v36  ;;  %v1947_v40 = vpop.f32.mrb[18].mxu0  ;;  %v1985_v41 = vpop.f32.mrb[17].mxu1 }
 0x11e   : > { %v1948_v42 = vpop.f32.mrb[19].mxu0  ;;  %v1986_v44 = vadd.f32 %v1985_v41, %v1984_v38  ;;  %v1987_v45 = vpop.f32.mrb[18].mxu1 }
 0x11f   : > { %v1294_v43 = vadd.f32 %v1946_v39, %v1229_v55  ;;  %v1949_v46 = vadd.f32 %v1948_v42, %v1947_v40  ;;  %v1988_v47 = vpop.f32.mrb[19].mxu1  ;;  %v1805_v39 = vld [vmem:[%s2563_s2] ss:$0 sm:$0xff] }
 0x120   : > { %v1989_v49 = vadd.f32 %v1988_v47, %v1987_v45 }
 0x121   : > { %v1297_v48 = vadd.f32 %v1949_v46, %v1232_v57  ;;  %v1359_v50 = vadd.f32 %v1986_v44, %v1294_v43 }
 0x123   : > { %v1950_v51 = vpop.f32.mrb[20].mxu0  ;;  %v2539_v52 = vadd.f32 %v1989_v49, %v1297_v48 }
 0x124   : > { %v1951_v53 = vpop.f32.mrb[21].mxu0  ;;  %v1990_v54 = vpop.f32.mrb[20].mxu1 }
 0x125   : > { %v1952_v56 = vadd.f32 %v1951_v53, %v1950_v51  ;;  %v1953_v58 = vpop.f32.mrb[22].mxu0  ;;  %v1991_v59 = vpop.f32.mrb[21].mxu1 }
 0x126   : > { %v1954_v60 = vpop.f32.mrb[23].mxu0  ;;  %v1992_v62 = vadd.f32 %v1991_v59, %v1990_v54  ;;  %v1993_v63 = vpop.f32.mrb[22].mxu1 }
 0x127   : > { %v1302_v61 = vadd.f32 %v1952_v56, %v1237_v5  ;;  %v1955_v55 = vadd.f32 %v1954_v60, %v1953_v58  ;;  %v1994_v0 = vpop.f32.mrb[23].mxu1 }
 0x128   : > { %v1995_v2 = vadd.f32 %v1994_v0, %v1993_v63 }
 0x129   : > { %v1305_v1 = vadd.f32 %v1955_v55, %v1240_v7  ;;  %v1367_v3 = vadd.f32 %v1992_v62, %v1302_v61 }
 0x12b   : > { %v1956_v57 = vpop.f32.mrb[24].mxu0  ;;  %v1370_v4 = vadd.f32 %v1995_v2, %v1305_v1 }
 0x12c   : > { %v1957_v6 = vpop.f32.mrb[25].mxu0  ;;  %v1996_v8 = vpop.f32.mrb[24].mxu1 }
 0x12d   : > { %v1958_v9 = vadd.f32 %v1957_v6, %v1956_v57  ;;  %v1959_v10 = vpop.f32.mrb[26].mxu0  ;;  %v1997_v11 = vpop.f32.mrb[25].mxu1 }
 0x12e   : > { %v1960_v12 = vpop.f32.mrb[27].mxu0  ;;  %v1998_v14 = vadd.f32 %v1997_v11, %v1996_v8  ;;  %v1999_v15 = vpop.f32.mrb[26].mxu1 }
 0x12f   : > { %v1310_v13 = vadd.f32 %v1958_v9, %v1245_v19  ;;  %v1961_v16 = vadd.f32 %v1960_v12, %v1959_v10  ;;  %v2000_v5 = vpop.f32.mrb[27].mxu1 }
 0x130   : > { %v2001_v18 = vadd.f32 %v2000_v5, %v1999_v15 }
 0x131   : > { %v1313_v17 = vadd.f32 %v1961_v16, %v1248_v21  ;;  %v1375_v20 = vadd.f32 %v1998_v14, %v1310_v13 }
 0x133   : > { %v1962_v22 = vpop.f32.mrb[28].mxu0  ;;  %v1378_v7 = vadd.f32 %v2001_v18, %v1313_v17 }
 0x134   : > { %v1963_v23 = vpop.f32.mrb[29].mxu0  ;;  %v2002_v24 = vpop.f32.mrb[28].mxu1 }
 0x135   : > { %v1964_v25 = vadd.f32 %v1963_v23, %v1962_v22  ;;  %v1965_v26 = vpop.f32.mrb[30].mxu0  ;;  %v2003_v27 = vpop.f32.mrb[29].mxu1 }
 0x136   : > { %v1966_v28 = vpop.f32.mrb[31].mxu0  ;;  %v2004_v30 = vadd.f32 %v2003_v27, %v2002_v24  ;;  %v2005_v31 = vpop.f32.mrb[30].mxu1 }
 0x137   : > { %v1318_v29 = vadd.f32 %v1964_v25, %v1253_v32  ;;  %v1967_v33 = vadd.f32 %v1966_v28, %v1965_v26  ;;  %v2006_v19 = vpop.f32.mrb[31].mxu1  ;;  %v1806_v32 = vld [vmem:[%s2564_s3] ss:$0 sm:$0xff] }
 0x138   : > { %v2007_v36 = vadd.f32 %v2006_v19, %v2005_v31 }
 0x139   : > { %v1321_v34 = vadd.f32 %v1967_v33, %v1256_v35  ;;  %v1383_v37 = vadd.f32 %v2004_v30, %v1318_v29 }
 0x13b   : > { %v1386_v38 = vadd.f32 %v2007_v36, %v1321_v34 }
 0x13c   : > { %v2038_v21 = vpop.f32.mrb[32].mxu0 }
 0x13d   : > { %v1432_v40 = vadd.f32 %v2038_v21, %v1367_v3  ;;  %v2042_v41 = vpop.f32.mrb[32].mxu1  ;;  %v1423_v42 = vpop.f32.mrb[33].mxu0 }
 0x13e   : > { %v1448_v43 = vadd.f32 %v2042_v41, %v1383_v37  ;;  %v1424_v44 = vadd.f32 %v1423_v42, %v1359_v50  ;;  %v1439_v45 = vpop.f32.mrb[33].mxu1  ;;  %v2039_v46 = vpop.f32.mrb[34].mxu0 }
 0x13f   : > { %v1490_v35 = vmul.f32 %v1805_v39, %v1432_v40  ;;  %v1440_v47 = vadd.f32 %v1439_v45, %v1375_v20  ;;  %v1435_v48 = vadd.f32 %v2039_v46, %v1370_v4  ;;  %v2043_v49 = vpop.f32.mrb[34].mxu1  ;;  %v1426_v51 = vpop.f32.mrb[35].mxu0 }
 0x140   : > { %v1494_v53 = vmul.f32 %v1805_v39, %v1448_v43  ;;  %v1488_v54 = vmul.f32 %v1805_v39, %v1424_v44  ;;  %v1451_v56 = vadd.f32 %v2043_v49, %v1386_v38  ;;  %v1427_v58 = vadd.f32 %v1426_v51, %v2539_v52  ;;  %v1442_v59 = vpop.f32.mrb[35].mxu1 }
 0x141   : > { %v1505_v60 = vadd.f32 %v1806_v32, %v1490_v35  ;;  %v1492_v61 = vmul.f32 %v1805_v39, %v1440_v47  ;;  %v1491_v62 = vmul.f32 %v1805_v39, %v1435_v48  ;;  %v1443_v63 = vadd.f32 %v1442_v59, %v1378_v7 }
 0x142   : > { %v1509_v55 = vadd.f32 %v1806_v32, %v1494_v53  ;;  %v1503_v50 = vadd.f32 %v1806_v32, %v1488_v54  ;;  %v1495_v0 = vmul.f32 %v1805_v39, %v1451_v56  ;;  %v1489_v1 = vmul.f32 %v1805_v39, %v1427_v58 }
 0x143   : > { %v1507_v2 = vadd.f32 %v1806_v32, %v1492_v61  ;;  %v1506_v3 = vadd.f32 %v1806_v32, %v1491_v62  ;;  %v1493_v57 = vmul.f32 %v1805_v39, %v1443_v63  ;;  %v1513_v8 = vmax.f32 %v1505_v60, 0.0 }
 0x144   : > { %v1510_v4 = vadd.f32 %v1806_v32, %v1495_v0  ;;  %v1504_v6 = vadd.f32 %v1806_v32, %v1489_v1  ;;  %v1517_v11 = vmax.f32 %v1509_v55, 0.0  ;;  %v1511_v52 = vmax.f32 %v1503_v50, 0.0 }
 0x145   : > { %v1514_v9 = vmax.f32 %v1506_v3, 0.0  ;;  %v1508_v10 = vadd.f32 %v1806_v32, %v1493_v57  ;;  %v1515_v14 = vmax.f32 %v1507_v2, 0.0 }
 0x146   : > { %v1518_v12 = vmax.f32 %v1510_v4, 0.0  ;;  %v1512_v13 = vmax.f32 %v1504_v6, 0.0 }
 0x147   : > { %v1833_v15 = vpack.c.bf16 %v1514_v9, %v1513_v8  ;;  %v1516_v16 = vmax.f32 %v1508_v10, 0.0 }
 0x148   : > { %v1843_v5 = vpack.c.bf16 %v1518_v12, %v1517_v11  ;;  %v1828_v17 = vpack.c.bf16 %v1512_v13, %v1511_v52 }
 0x149   : > { %1845 = vst [vmem:[%s306_s23 + $0x8] sm:$0xff] %v1833_v15   ;;  %v1838_v18 = vpack.c.bf16 %v1516_v16, %v1515_v14 }
 0x14a   : > { %1847 = vst [vmem:[%s306_s23 + $0x18] sm:$0xff] %v1843_v5   ;;  %1829 = vst [vmem:[%s306_s23] sm:$0xff] %v1828_v17  }
 0x14b   : > { %1846 = vst [vmem:[%s306_s23 + $0x10] sm:$0xff] %v1838_v18  }
 0x14c PF: > { %s14_s17 = sadd.s32 1, %s2231_s17   ;;  %s2566_s15 = smov %s2227_s16 }
 0x14d   : > { %p11_p5 = scmp.ge.s32.totalorder %s14_s17, 4   ;;  %s2567_s16 = smov %s2569_s18 }
 0x14f   :  { %13 = sbr.rel (!%p11_p5) target bundleno = 2 (0x2), region = 83 }

// kernel: _lambda_.20
= control target key start
LH: loop header
LB: loop body
LE: loop exit
PB: predicated region body
PF: predicated region fallthrough
CT: control target
= control target key end

     0   :  { %s2383_s18 = smov 0   ;;  %s2385_s19 = smov 0   ;;  %s2699_s0 = inlined_call_operand.vmem [shape: bf16[128,1152], index: 0, kind: input, shape index: {}]   ;;  %s2700_s1 = inlined_call_operand.vmem [shape: bf16[1152,128], index: 1, kind: input, shape index: {}]   ;;  %s2701_s2 = inlined_call_operand.vmem [shape: f32[1,128], index: 2, kind: input, shape index: {}]   ;;  %s2702_s3 = inlined_call_operand.vmem [shape: f32[1,128], index: 3, kind: input, shape index: {}]   ;;  %s2703_s4 = inlined_call_operand.vmem [shape: bf16[128,128], index: 4, kind: input, shape index: {}]   ;;  %s2704_s5 = inlined_call_operand.vmem [shape: bf16[128,128], index: 5, kind: output, shape index: {}]  }
   0x1   :  { %s2387_s20 = smov 0  }
   0x2 LB: > { %s34_s21 = sadd.s32 1, %s2347_s19  ;;  %p1791_p0 = scmp.ge.s32.totalorder %s2351_s20, 1  ;;  %s2351_s20 = sphi %s2387_s20, %s15_s20   ;;  %s2347_s19 = sphi %s2385_s19, %s2706_s19   ;;  %s2343_s18 = sphi %s2383_s18, %s2705_s18  }
   0x3   : > { %p36_p1 = scmp.ge.s32.totalorder %s34_s21, 2  ;;  %p265_p2 = scmp.lt.s32.totalorder %s2351_s20, 3 }
   0x5   : > { %s2708_s21 = smov (%p36_p1, %s34_s21), 0  ;;  %p266_p3 = pnand %p1791_p0, %p265_p2 }
   0x6   : > { %v2205_v0 = vld [vmem:[%s2700_s1 + $0x40] sm:$0xff] (!%p266_p3)   ;;  %v2209_v4 = vld [vmem:[%s2700_s1 + $0x48] sm:$0xff] (!%p266_p3)   ;;  %v2213_v8 = vld [vmem:[%s2700_s1 + $0x50] sm:$0xff] (!%p266_p3)   ;;  %s1792_s6 = sshll.u32 (!%p266_p3), %s2343_s18, 3 }
   0x7   : > { %269 = sbr.rel (%p266_p3) target bundleno = 334 (0x14e), region = 40  ;;  %v2206_v1 = vld [vmem:[%s2700_s1 + $0xc0] sm:$0xff] (!%p266_p3)   ;;  %1968 = vmatprep.subr.bf16.mxu0 (!%p266_p3), %v2205_v0  ;;  %v2210_v5 = vld [vmem:[%s2700_s1 + $0xc8] sm:$0xff] (!%p266_p3)   ;;  %v2214_v9 = vld [vmem:[%s2700_s1 + $0xd0] sm:$0xff] (!%p266_p3)   ;;  %p325_p4 = scmp.lt.s32.totalorder (!%p266_p3), %s1792_s6, 15 }
   0x8   : > { %v2207_v2 = vld [vmem:[%s2700_s1] sm:$0xff] (!%p266_p3)   ;;  %2008 = vmatprep.subr.bf16.mxu1 (!%p266_p3), %v2206_v1  ;;  %v2211_v6 = vld [vmem:[%s2700_s1 + $0x8] sm:$0xff] (!%p266_p3)   ;;  %v2215_v10 = vld [vmem:[%s2700_s1 + $0x10] sm:$0xff] (!%p266_p3)  }
   0x9   : > { %v2208_v3 = vld [vmem:[%s2700_s1 + $0x80] sm:$0xff] (!%p266_p3)   ;;  %1969 = vmatpush3.bf16.msra.mxu0 (!%p266_p3), %v2207_v2  ;;  %v2212_v7 = vld [vmem:[%s2700_s1 + $0x88] sm:$0xff] (!%p266_p3)   ;;  %v2216_v11 = vld [vmem:[%s2700_s1 + $0x90] sm:$0xff] (!%p266_p3)  }
   0xa   : > { %2009 = vmatpush3.bf16.msra.mxu1 (!%p266_p3), %v2208_v3  ;;  %1970 = vmatprep.subr.bf16.mxu0 (!%p266_p3), %v2209_v4  ;;  %v2217_v12 = vld [vmem:[%s2700_s1 + $0x58] sm:$0xff] (!%p266_p3)   ;;  %v2221_v16 = vld [vmem:[%s2700_s1 + $0x60] sm:$0xff] (!%p266_p3)   ;;  %v2225_v20 = vld [vmem:[%s2700_s1 + $0x68] sm:$0xff] (!%p266_p3)  }
   0xb   : > { %2010 = vmatprep.subr.bf16.mxu1 (!%p266_p3), %v2210_v5  ;;  %v2218_v13 = vld [vmem:[%s2700_s1 + $0xd8] sm:$0xff] (!%p266_p3)   ;;  %v2222_v17 = vld [vmem:[%s2700_s1 + $0xe0] sm:$0xff] (!%p266_p3)   ;;  %v2226_v21 = vld [vmem:[%s2700_s1 + $0xe8] sm:$0xff] (!%p266_p3)  }
   0xc   : > { %v2219_v14 = vld [vmem:[%s2700_s1 + $0x18] sm:$0xff] (!%p266_p3)   ;;  %v2223_v18 = vld [vmem:[%s2700_s1 + $0x20] sm:$0xff] (!%p266_p3)   ;;  %v2227_v22 = vld [vmem:[%s2700_s1 + $0x28] sm:$0xff] (!%p266_p3)  }
   0xd   : > { %1971 = vmatpush3.bf16.msra.mxu0 (!%p266_p3), %v2211_v6  ;;  %v2220_v15 = vld [vmem:[%s2700_s1 + $0x98] sm:$0xff] (!%p266_p3)   ;;  %v2224_v19 = vld [vmem:[%s2700_s1 + $0xa0] sm:$0xff] (!%p266_p3)   ;;  %v2228_v23 = vld [vmem:[%s2700_s1 + $0xa8] sm:$0xff] (!%p266_p3)  }
   0xe   : > { %2011 = vmatpush3.bf16.msra.mxu1 %v2212_v7  ;;  %1972 = vmatprep.subr.bf16.mxu0 %v2213_v8  ;;  %s2710_s6 = smov (!%p325_p4, %s1792_s6), 15  ;;  %v2229_v24 = vld [vmem:[%s2700_s1 + $0x70] sm:$0xff]   ;;  %v2233_v28 = vld [vmem:[%s2700_s1 + $0x78] sm:$0xff]   ;;  %v2243_v36 = vld [vmem:[%s2700_s1 + $0x140] sm:$0xff]  }
   0xf   : > { %2012 = vmatprep.subr.bf16.mxu1 %v2214_v9  ;;  %v2230_v25 = vld [vmem:[%s2700_s1 + $0xf0] sm:$0xff]   ;;  %s2180_s8 = smul.u32 36, %s2710_s6  ;;  %v2234_v29 = vld [vmem:[%s2700_s1 + $0xf8] sm:$0xff]   ;;  %v2244_v37 = vld [vmem:[%s2700_s1 + $0x1c0] sm:$0xff]  }
  0x10   : > { %v2231_v26 = vld [vmem:[%s2700_s1 + $0x30] sm:$0xff]   ;;  %v2235_v30 = vld [vmem:[%s2700_s1 + $0x38] sm:$0xff]   ;;  %v2245_v38 = vld [vmem:[%s2700_s1 + $0x100] sm:$0xff]  }
  0x11   : > { %1973 = vmatpush3.bf16.msra.mxu0 %v2215_v10  ;;  %v2232_v27 = vld [vmem:[%s2700_s1 + $0xb0] sm:$0xff]   ;;  %s2500_s22 = scalar_lea.vmem %s2699_s0, %s2180_s8  ;;  %v2236_v31 = vld [vmem:[%s2700_s1 + $0xb8] sm:$0xff]   ;;  %v2246_v39 = vld [vmem:[%s2700_s1 + $0x180] sm:$0xff]  }
  0x12   : > { %2013 = vmatpush3.bf16.msra.mxu1 %v2216_v11  ;;  %1974 = vmatprep.subr.bf16.mxu0 %v2217_v12  ;;  %v2237_v32 = vld [vmem:[%s2500_s22] ss:$36 sps:$4 sm:$0xff]   ;;  %v2240_v34 = vld [vmem:[%s2500_s22 + $0x8] ss:$36 sps:$4 sm:$0xff]   ;;  %v2253_v45 = vld [vmem:[%s2500_s22 + $0x54] ss:$36 sps:$4 sm:$0xff]  }
  0x13   : > { %2014 = vmatprep.subr.bf16.mxu1 %v2218_v13  ;;  %v2239_v33 = vld [vmem:[%s2500_s22 + $0x4] ss:$36 sps:$4 sm:$0xff]   ;;  %v2242_v35 = vld [vmem:[%s2500_s22 + $0xc] ss:$36 sps:$4 sm:$0xff]   ;;  %v2261_v52 = vld [vmem:[%s2700_s1 + $0x158] sm:$0xff]  }
  0x14   : > { %1221 = vmatprep.mubr.bf16.mxu0 %v2239_v33  ;;  %1286 = vmatprep.mubr.bf16.mxu1 %v2242_v35  ;;  %v2247_v40 = vld [vmem:[%s2700_s1 + $0x148] sm:$0xff]   ;;  %v2256_v47 = vld [vmem:[%s2500_s22 + $0x50] ss:$36 sps:$4 sm:$0xff]   ;;  %v2262_v53 = vld [vmem:[%s2700_s1 + $0x1d8] sm:$0xff]  }
  0x15   : > { %1975 = vmatpush3.bf16.msra.mxu0 %v2219_v14  ;;  %v2248_v41 = vld [vmem:[%s2700_s1 + $0x1c8] sm:$0xff]   ;;  %v2257_v48 = vld [vmem:[%s2700_s1 + $0x150] sm:$0xff]   ;;  %v2263_v54 = vld [vmem:[%s2700_s1 + $0x118] sm:$0xff]  }
  0x16   : > { %2015 = vmatpush3.bf16.msra.mxu1 %v2220_v15  ;;  %1976 = vmatprep.subr.bf16.mxu0 %v2221_v16  ;;  %v2249_v42 = vld [vmem:[%s2700_s1 + $0x108] sm:$0xff]   ;;  %v2258_v49 = vld [vmem:[%s2700_s1 + $0x1d0] sm:$0xff]   ;;  %v2264_v55 = vld [vmem:[%s2700_s1 + $0x198] sm:$0xff]  }
  0x17   : > { %2016 = vmatprep.subr.bf16.mxu1 %v2222_v17  ;;  %v2250_v43 = vld [vmem:[%s2700_s1 + $0x188] sm:$0xff]   ;;  %v2259_v50 = vld [vmem:[%s2700_s1 + $0x110] sm:$0xff]   ;;  %v2267_v57 = vld [vmem:[%s2500_s22 + $0x9c] ss:$36 sps:$4 sm:$0xff]  }
  0x18   : > { %v2251_v44 = vld [vmem:[%s2500_s22 + $0x4c] ss:$36 sps:$4 sm:$0xff]   ;;  %v2265_v56 = vld [vmem:[%s2500_s22 + $0x94] ss:$36 sps:$4 sm:$0xff]   ;;  %v2271_v60 = vld [vmem:[%s2700_s1 + $0x160] sm:$0xff]  }
  0x19   : > { %1977 = vmatpush3.bf16.msra.mxu0 %v2223_v18  ;;  %v2255_v46 = vld [vmem:[%s2500_s22 + $0x48] ss:$36 sps:$4 sm:$0xff]   ;;  %v2260_v51 = vld [vmem:[%s2700_s1 + $0x190] sm:$0xff]   ;;  %v2270_v59 = vld [vmem:[%s2500_s22 + $0x98] ss:$36 sps:$4 sm:$0xff]  }
  0x1a   : > { %2017 = vmatpush3.bf16.msra.mxu1 %v2224_v19  ;;  %1978 = vmatprep.subr.bf16.mxu0 %v2225_v20  ;;  %v2269_v58 = vld [vmem:[%s2500_s22 + $0x90] ss:$36 sps:$4 sm:$0xff]   ;;  %v2272_v61 = vld [vmem:[%s2700_s1 + $0x1e0] sm:$0xff]   ;;  %v2275_v0 = vld [vmem:[%s2700_s1 + $0x168] sm:$0xff]  }
  0x1b   : > { %2018 = vmatprep.subr.bf16.mxu1 %v2226_v21  ;;  %v2273_v62 = vld [vmem:[%s2700_s1 + $0x120] sm:$0xff]   ;;  %v2276_v1 = vld [vmem:[%s2700_s1 + $0x1e8] sm:$0xff]   ;;  %v2283_v6 = vld [vmem:[%s2500_s22 + $0xd8] ss:$36 sps:$4 sm:$0xff]  }
  0x1c   : > { %v2274_v63 = vld [vmem:[%s2700_s1 + $0x1a0] sm:$0xff]   ;;  %v2277_v2 = vld [vmem:[%s2700_s1 + $0x128] sm:$0xff]   ;;  %v2285_v8 = vld [vmem:[%s2700_s1 + $0x170] sm:$0xff]  }
  0x1d   : > { %1979 = vmatpush3.bf16.msra.mxu0 %v2227_v22  ;;  %v2278_v3 = vld [vmem:[%s2700_s1 + $0x1a8] sm:$0xff]   ;;  %v2279_v4 = vld [vmem:[%s2500_s22 + $0xdc] ss:$36 sps:$4 sm:$0xff]   ;;  %v2286_v9 = vld [vmem:[%s2700_s1 + $0x1f0] sm:$0xff]  }
  0x1e   : > { %2019 = vmatpush3.bf16.msra.mxu1 %v2228_v23  ;;  %1980 = vmatprep.subr.bf16.mxu0 %v2229_v24  ;;  %v2281_v5 = vld [vmem:[%s2500_s22 + $0xe4] ss:$36 sps:$4 sm:$0xff]   ;;  %v2287_v10 = vld [vmem:[%s2700_s1 + $0x130] sm:$0xff]   ;;  %v2289_v12 = vld [vmem:[%s2700_s1 + $0x178] sm:$0xff]  }
  0x1f   : > { %2020 = vmatprep.subr.bf16.mxu1 %v2230_v25  ;;  %v2284_v7 = vld [vmem:[%s2500_s22 + $0xe0] ss:$36 sps:$4 sm:$0xff]   ;;  %v2288_v11 = vld [vmem:[%s2700_s1 + $0x1b0] sm:$0xff]   ;;  %v2290_v13 = vld [vmem:[%s2700_s1 + $0x1f8] sm:$0xff]  }
  0x20   : > { %v2291_v14 = vld [vmem:[%s2700_s1 + $0x138] sm:$0xff]   ;;  %v2293_v16 = vld [vmem:[%s2500_s22 + $0x10] ss:$36 sps:$4 sm:$0xff]   ;;  %v2299_v20 = vld [vmem:[%s2700_s1 + $0x200] sm:$0xff]  }
  0x21   : > { %1981 = vmatpush3.bf16.msra.mxu0 %v2231_v26  ;;  %v2292_v15 = vld [vmem:[%s2700_s1 + $0x1b8] sm:$0xff]   ;;  %v2300_v21 = vld [vmem:[%s2700_s1 + $0x208] sm:$0xff]   ;;  %v2306_v25 = vld [vmem:[%s2500_s22 + $0x60] ss:$36 sps:$4 sm:$0xff]  }
  0x22   : > { %2021 = vmatpush3.bf16.msra.mxu1 %v2232_v27  ;;  %1982 = vmatprep.subr.bf16.mxu0 %v2233_v28  ;;  %v2295_v17 = vld [vmem:[%s2500_s22 + $0x14] ss:$36 sps:$4 sm:$0xff]   ;;  %v2298_v19 = vld [vmem:[%s2500_s22 + $0x1c] ss:$36 sps:$4 sm:$0xff]   ;;  %v2303_v23 = vld [vmem:[%s2500_s22 + $0x64] ss:$36 sps:$4 sm:$0xff]  }
  0x23   : > { %2022 = vmatprep.subr.bf16.mxu1 %v2234_v29  ;;  %v2296_v18 = vld [vmem:[%s2500_s22 + $0x18] ss:$36 sps:$4 sm:$0xff]   ;;  %v2307_v26 = vld [vmem:[%s2700_s1 + $0x210] sm:$0xff]   ;;  %v2309_v27 = vld [vmem:[%s2500_s22 + $0xa4] ss:$36 sps:$4 sm:$0xff]  }
  0x24   : > { %v2301_v22 = vld [vmem:[%s2500_s22 + $0x5c] ss:$36 sps:$4 sm:$0xff]   ;;  %v2311_v28 = vld [vmem:[%s2500_s22 + $0xac] ss:$36 sps:$4 sm:$0xff]  }
  0x25   : > { %1983 = vmatpush3.bf16.msra.mxu0 %v2235_v30  ;;  %v2305_v24 = vld [vmem:[%s2500_s22 + $0x58] ss:$36 sps:$4 sm:$0xff]   ;;  %v2313_v30 = vld [vmem:[%s2500_s22 + $0xa0] ss:$36 sps:$4 sm:$0xff]   ;;  %v2317_v33 = vld [vmem:[%s2500_s22 + $0xec] ss:$36 sps:$4 sm:$0xff]  }
  0x26   : > { %2023 = vmatpush3.bf16.msra.mxu1 %v2236_v31  ;;  %2048 = vmatprep.subr.bf16.mxu0 %v2243_v36  ;;  %v2308_v29 = vld [vmem:[%s2700_s1 + $0x218] sm:$0xff]   ;;  %v2314_v31 = vld [vmem:[%s2500_s22 + $0xa8] ss:$36 sps:$4 sm:$0xff]  }
  0x27   : > { %2088 = vmatprep.subr.bf16.mxu1 %v2244_v37  ;;  %v2316_v35 = vld [vmem:[%s2700_s1 + $0x228] sm:$0xff]   ;;  %v2323_v37 = vld [vmem:[%s2700_s1 + $0x230] sm:$0xff]  }
  0x28   : > { %1222 = vmatmul.mubr.bf16.vlgmr.msra.gmra.mrb[0].mxu0 %v2237_v32  ;;  %v2315_v32 = vld [vmem:[%s2700_s1 + $0x220] sm:$0xff]   ;;  %v2321_v36 = vld [vmem:[%s2500_s22 + $0xe8] ss:$36 sps:$4 sm:$0xff]  }
  0x29   : > { %1287 = vmatmul.mubr.bf16.vlgmr.msra.gmra.mrb[0].mxu1 %v2240_v34  ;;  %2049 = vmatpush3.bf16.msra.mxu0 %v2245_v38  ;;  %v2319_v34 = vld [vmem:[%s2500_s22 + $0xf4] ss:$36 sps:$4 sm:$0xff]  }
  0x2a   : > { %2089 = vmatpush3.bf16.msra.mxu1 %v2246_v39  ;;  %2050 = vmatprep.subr.bf16.mxu0 %v2247_v40  ;;  %v2322_v38 = vld [vmem:[%s2500_s22 + $0xf0] ss:$36 sps:$4 sm:$0xff]   ;;  %v2325_v39 = vld [vmem:[%s2500_s22 + $0x20] ss:$36 sps:$4 sm:$0xff]  }
  0x2b   : > { %2090 = vmatprep.subr.bf16.mxu1 %v2248_v41  ;;  %1229 = vmatprep.mubr.bf16.mxu0 %v2251_v44  ;;  %v2326_v40 = vld [vmem:[%s2500_s22 + $0xb0] ss:$36 sps:$4 sm:$0xff]   ;;  %v2324_v41 = vld [vmem:[%s2700_s1 + $0x238] sm:$0xff]  }
  0x2c   : > { %1294 = vmatprep.mubr.bf16.mxu1 %v2253_v45 }
  0x2d   : > { %2051 = vmatpush3.bf16.msra.mxu0 %v2249_v42  ;;  %v2327_v42 = vld [vmem:[%s2500_s22 + $0x68] ss:$36 sps:$4 sm:$0xff]  }
  0x2e   : > { %2091 = vmatpush3.bf16.msra.mxu1 %v2250_v43  ;;  %2052 = vmatprep.subr.bf16.mxu0 %v2257_v48  ;;  %v2328_v43 = vld [vmem:[%s2500_s22 + $0xf8] ss:$36 sps:$4 sm:$0xff]   ;;  %s1795_s22 = sshll.u32 %s2710_s6, 2 }
  0x2f   : > { %2092 = vmatprep.subr.bf16.mxu1 %v2258_v49  ;;  %s357_s29 = scalar_lea.vmem %s2703_s4, %s1795_s22  ;;  %s366_s12 = scalar_lea.vmem %s2704_s5, %s1795_s22 }
  0x30   : > { %1230 = vmatmul.mubr.bf16.gmra.mrb[4].mxu0 %v2255_v46 }
  0x31   : > { %1295 = vmatmul.mubr.bf16.gmra.mrb[4].mxu1 %v2256_v47  ;;  %2053 = vmatpush3.bf16.msra.mxu0 %v2259_v50 }
  0x32   : > { %2093 = vmatpush3.bf16.msra.mxu1 %v2260_v51  ;;  %2054 = vmatprep.subr.bf16.mxu0 %v2261_v52 }
  0x33   : > { %2094 = vmatprep.subr.bf16.mxu1 %v2262_v53  ;;  %1237 = vmatprep.mubr.bf16.mxu0 %v2265_v56 }
  0x34   : > { %1302 = vmatprep.mubr.bf16.mxu1 %v2267_v57 }
  0x35   : > { %2055 = vmatpush3.bf16.msra.mxu0 %v2263_v54 }
  0x36   : > { %2095 = vmatpush3.bf16.msra.mxu1 %v2264_v55  ;;  %2056 = vmatprep.subr.bf16.mxu0 %v2271_v60 }
  0x37   : > { %2096 = vmatprep.subr.bf16.mxu1 %v2272_v61 }
  0x38   : > { %1238 = vmatmul.mubr.bf16.gmra.mrb[8].mxu0 %v2269_v58 }
  0x39   : > { %1303 = vmatmul.mubr.bf16.gmra.mrb[8].mxu1 %v2270_v59  ;;  %2057 = vmatpush3.bf16.msra.mxu0 %v2273_v62 }
  0x3a   : > { %2097 = vmatpush3.bf16.msra.mxu1 %v2274_v63  ;;  %2058 = vmatprep.subr.bf16.mxu0 %v2275_v0 }
  0x3b   : > { %2098 = vmatprep.subr.bf16.mxu1 %v2276_v1  ;;  %1245 = vmatprep.mubr.bf16.mxu0 %v2279_v4 }
  0x3c   : > { %1310 = vmatprep.mubr.bf16.mxu1 %v2281_v5 }
  0x3d   : > { %2059 = vmatpush3.bf16.msra.mxu0 %v2277_v2 }
  0x3e   : > { %2099 = vmatpush3.bf16.msra.mxu1 %v2278_v3  ;;  %2060 = vmatprep.subr.bf16.mxu0 %v2285_v8 }
  0x3f   : > { %2100 = vmatprep.subr.bf16.mxu1 %v2286_v9 }
  0x40   : > { %1246 = vmatmul.mubr.bf16.gmra.mrb[12].mxu0 %v2283_v6 }
  0x41   : > { %1311 = vmatmul.mubr.bf16.gmra.mrb[12].mxu1 %v2284_v7  ;;  %2061 = vmatpush3.bf16.msra.mxu0 %v2287_v10 }
  0x42   : > { %2101 = vmatpush3.bf16.msra.mxu1 %v2288_v11  ;;  %2062 = vmatprep.subr.bf16.mxu0 %v2289_v12 }
  0x43   : > { %2102 = vmatprep.subr.bf16.mxu1 %v2290_v13  ;;  %1351 = vmatprep.mubr.bf16.mxu0 %v2295_v17 }
  0x44   : > { %1416 = vmatprep.mubr.bf16.mxu1 %v2298_v19 }
  0x45   : > { %2063 = vmatpush3.bf16.msra.mxu0 %v2291_v14 }
  0x46   : > { %2103 = vmatpush3.bf16.msra.mxu1 %v2292_v15  ;;  %2140 = vmatprep.subr.bf16.mxu0 %v2299_v20 }
  0x47   : > { %2164 = vmatprep.subr.bf16.mxu1 %v2299_v20 }
  0x48   : > { %1352 = vmatmul.mubr.bf16.vlgmr.msra.gmra.mrb[16].mxu0 %v2293_v16 }
  0x49   : > { %1417 = vmatmul.mubr.bf16.vlgmr.msra.gmra.mrb[16].mxu1 %v2296_v18  ;;  %2141 = vmatpush3.bf16.msra.mxu0 %v2299_v20 }
  0x4a   : > { %2172 = vmatpush3.bf16.msra.mxu1 %v2299_v20  ;;  %2142 = vmatprep.subr.bf16.mxu0 %v2300_v21 }
  0x4b   : > { %2165 = vmatprep.subr.bf16.mxu1 %v2300_v21  ;;  %1359 = vmatprep.mubr.bf16.mxu0 %v2301_v22 }
  0x4c   : > { %1424 = vmatprep.mubr.bf16.mxu1 %v2303_v23 }
  0x4d   : > { %2143 = vmatpush3.bf16.msra.mxu0 %v2300_v21 }
  0x4e   : > { %2173 = vmatpush3.bf16.msra.mxu1 %v2300_v21  ;;  %2144 = vmatprep.subr.bf16.mxu0 %v2307_v26 }
  0x4f   : > { %2166 = vmatprep.subr.bf16.mxu1 %v2307_v26 }
  0x50   : > { %1360 = vmatmul.mubr.bf16.gmra.mrb[20].mxu0 %v2305_v24 }
  0x51   : > { %1425 = vmatmul.mubr.bf16.gmra.mrb[20].mxu1 %v2306_v25  ;;  %1367 = vmatprep.mubr.bf16.mxu0 %v2309_v27 }
  0x52   : > { %2145 = vmatpush3.bf16.msra.mxu0 %v2307_v26  ;;  %1432 = vmatprep.mubr.bf16.mxu1 %v2311_v28 }
  0x53   : > { %2174 = vmatpush3.bf16.msra.mxu1 %v2307_v26  ;;  %2146 = vmatprep.subr.bf16.mxu0 %v2308_v29 }
  0x54   : > { %2167 = vmatprep.subr.bf16.mxu1 %v2308_v29 }
  0x56   : > { %2147 = vmatpush3.bf16.msra.mxu0 %v2308_v29 }
  0x57   : > { %2175 = vmatpush3.bf16.msra.mxu1 %v2308_v29  ;;  %2148 = vmatprep.subr.bf16.mxu0 %v2315_v32 }
  0x58   : > { %1368 = vmatmul.mubr.bf16.gmra.mrb[24].mxu0 %v2313_v30  ;;  %2168 = vmatprep.subr.bf16.mxu1 %v2315_v32 }
  0x59   : > { %1433 = vmatmul.mubr.bf16.gmra.mrb[24].mxu1 %v2314_v31  ;;  %1375 = vmatprep.mubr.bf16.mxu0 %v2317_v33 }
  0x5a   : > { %2149 = vmatpush3.bf16.msra.mxu0 %v2315_v32  ;;  %1440 = vmatprep.mubr.bf16.mxu1 %v2319_v34 }
  0x5b   : > { %2176 = vmatpush3.bf16.msra.mxu1 %v2315_v32  ;;  %2150 = vmatprep.subr.bf16.mxu0 %v2316_v35 }
  0x5c   : > { %2169 = vmatprep.subr.bf16.mxu1 %v2316_v35 }
  0x5e   : > { %2151 = vmatpush3.bf16.msra.mxu0 %v2316_v35 }
  0x5f   : > { %2177 = vmatpush3.bf16.msra.mxu1 %v2316_v35  ;;  %2152 = vmatprep.subr.bf16.mxu0 %v2323_v37 }
  0x60   : > { %1376 = vmatmul.mubr.bf16.gmra.mrb[28].mxu0 %v2321_v36  ;;  %2170 = vmatprep.subr.bf16.mxu1 %v2323_v37 }
  0x61   : > { %1441 = vmatmul.mubr.bf16.gmra.mrb[28].mxu1 %v2322_v38  ;;  %2156 = vmatprep.mubr.bf16.mxu0 %v2325_v39 }
  0x62   : > { %2153 = vmatpush3.bf16.msra.mxu0 %v2323_v37  ;;  %2160 = vmatprep.mubr.bf16.mxu1 %v2326_v40 }
  0x63   : > { %2178 = vmatpush3.bf16.msra.mxu1 %v2323_v37  ;;  %2154 = vmatprep.subr.bf16.mxu0 %v2324_v41 }
  0x64   : > { %2171 = vmatprep.subr.bf16.mxu1 %v2324_v41 }
  0x66   : > { %2155 = vmatpush3.bf16.msra.mxu0 %v2324_v41 }
  0x67   : > { %2179 = vmatpush3.bf16.msra.mxu1 %v2324_v41 }
  0x69   : > { %2157 = vmatmul.mubr.bf16.vlgmr.msra.gmra.mrb[32].mxu0 %v2327_v42 }
  0x6a   : > { %2161 = vmatmul.mubr.bf16.vlgmr.msra.gmra.mrb[32].mxu1 %v2328_v43 }
  0xfb   : > { %v1984_v44 = vpop.f32.mrb[0].mxu0 }
  0xfc   : > { %v2024_v45 = vpop.f32.mrb[0].mxu1  ;;  %v1985_v46 = vpop.f32.mrb[1].mxu0 }
  0xfd   : > { %v1986_v47 = vadd.f32 %v1985_v46, %v1984_v44  ;;  %v2025_v48 = vpop.f32.mrb[1].mxu1  ;;  %v1987_v49 = vpop.f32.mrb[2].mxu0 }
  0xfe   : > { %v2026_v50 = vadd.f32 %v2025_v48, %v2024_v45  ;;  %v2027_v51 = vpop.f32.mrb[2].mxu1  ;;  %v1988_v52 = vpop.f32.mrb[3].mxu0 }
  0xff   : > { %v1989_v53 = vadd.f32 %v1988_v52, %v1987_v49  ;;  %v2028_v54 = vpop.f32.mrb[3].mxu1 }
 0x100   : > { %v1289_v55 = vadd.f32 %v2026_v50, %v1986_v47  ;;  %v2029_v56 = vadd.f32 %v2028_v54, %v2027_v51 }
 0x102   : > { %v1292_v57 = vadd.f32 %v2029_v56, %v1989_v53 }
 0x103   : > { %v1990_v58 = vpop.f32.mrb[4].mxu0 }
 0x104   : > { %v2030_v59 = vpop.f32.mrb[4].mxu1  ;;  %v1991_v60 = vpop.f32.mrb[5].mxu0 }
 0x105   : > { %v1992_v61 = vadd.f32 %v1991_v60, %v1990_v58  ;;  %v2031_v62 = vpop.f32.mrb[5].mxu1  ;;  %v1993_v63 = vpop.f32.mrb[6].mxu0 }
 0x106   : > { %v2032_v0 = vadd.f32 %v2031_v62, %v2030_v59  ;;  %v2033_v1 = vpop.f32.mrb[6].mxu1  ;;  %v1994_v2 = vpop.f32.mrb[7].mxu0 }
 0x107   : > { %v1995_v3 = vadd.f32 %v1994_v2, %v1993_v63  ;;  %v2034_v4 = vpop.f32.mrb[7].mxu1 }
 0x108   : > { %v1297_v5 = vadd.f32 %v2032_v0, %v1992_v61  ;;  %v2035_v6 = vadd.f32 %v2034_v4, %v2033_v1 }
 0x10a   : > { %v1300_v7 = vadd.f32 %v2035_v6, %v1995_v3 }
 0x10b   : > { %v1996_v8 = vpop.f32.mrb[8].mxu0 }
 0x10c   : > { %v2036_v9 = vpop.f32.mrb[8].mxu1  ;;  %v1997_v10 = vpop.f32.mrb[9].mxu0 }
 0x10d   : > { %v1998_v11 = vadd.f32 %v1997_v10, %v1996_v8  ;;  %v2037_v12 = vpop.f32.mrb[9].mxu1  ;;  %v1999_v13 = vpop.f32.mrb[10].mxu0 }
 0x10e   : > { %v2038_v14 = vadd.f32 %v2037_v12, %v2036_v9  ;;  %v2039_v15 = vpop.f32.mrb[10].mxu1  ;;  %v2000_v16 = vpop.f32.mrb[11].mxu0 }
 0x10f   : > { %v2001_v17 = vadd.f32 %v2000_v16, %v1999_v13  ;;  %v2040_v18 = vpop.f32.mrb[11].mxu1 }
 0x110   : > { %v1305_v19 = vadd.f32 %v2038_v14, %v1998_v11  ;;  %v2041_v20 = vadd.f32 %v2040_v18, %v2039_v15 }
 0x112   : > { %v1308_v21 = vadd.f32 %v2041_v20, %v2001_v17 }
 0x113   : > { %v2002_v22 = vpop.f32.mrb[12].mxu0 }
 0x114   : > { %v2042_v23 = vpop.f32.mrb[12].mxu1  ;;  %v2003_v24 = vpop.f32.mrb[13].mxu0 }
 0x115   : > { %v2043_v25 = vpop.f32.mrb[13].mxu1  ;;  %v2004_v26 = vadd.f32 %v2003_v24, %v2002_v22  ;;  %v2005_v28 = vpop.f32.mrb[14].mxu0 }
 0x116   : > { %v2044_v27 = vadd.f32 %v2043_v25, %v2042_v23  ;;  %v2045_v29 = vpop.f32.mrb[14].mxu1  ;;  %v2006_v30 = vpop.f32.mrb[15].mxu0 }
 0x117   : > { %v2046_v31 = vpop.f32.mrb[15].mxu1  ;;  %v2007_v33 = vadd.f32 %v2006_v30, %v2005_v28 }
 0x118   : > { %v1313_v32 = vadd.f32 %v2044_v27, %v2004_v26  ;;  %v2047_v34 = vadd.f32 %v2046_v31, %v2045_v29 }
 0x11a   : > { %v2664_v35 = vadd.f32 %v2047_v34, %v2007_v33 }
 0x11b   : > { %v2064_v36 = vpop.f32.mrb[16].mxu0 }
 0x11c   : > { %v2065_v37 = vpop.f32.mrb[17].mxu0  ;;  %v2104_v38 = vpop.f32.mrb[16].mxu1 }
 0x11d   : > { %v2066_v39 = vadd.f32 %v2065_v37, %v2064_v36  ;;  %v2067_v40 = vpop.f32.mrb[18].mxu0  ;;  %v2105_v41 = vpop.f32.mrb[17].mxu1  ;;  %v1962_v37 = vld [vmem:[%s357_s29 + $0x8] sm:$0xff]  }
 0x11e   : > { %v2068_v42 = vpop.f32.mrb[19].mxu0  ;;  %v2106_v44 = vadd.f32 %v2105_v41, %v2104_v38  ;;  %v2107_v45 = vpop.f32.mrb[18].mxu1  ;;  %v1964_v38 = vld [vmem:[%s357_s29 + $0x18] sm:$0xff]  }
 0x11f   : > { %v1354_v43 = vadd.f32 %v2066_v39, %v1289_v55  ;;  %v2069_v46 = vadd.f32 %v2068_v42, %v2067_v40  ;;  %v2108_v47 = vpop.f32.mrb[19].mxu1  ;;  %v1927_v39 = vld [vmem:[%s357_s29] sm:$0xff]   ;;  %v1963_v40 = vld [vmem:[%s357_s29 + $0x10] sm:$0xff]  }
 0x120   : > { %v2109_v49 = vadd.f32 %v2108_v47, %v2107_v45 }
 0x121   : > { %v1357_v48 = vadd.f32 %v2069_v46, %v1292_v57  ;;  %v2666_v50 = vadd.f32 %v2106_v44, %v1354_v43  ;;  %v1932_v43 = vunpack.c.l.bf16 %v1962_v37  ;;  %v1940_v44 = vunpack.c.l.bf16 %v1964_v38 }
 0x123   : > { %v2070_v51 = vpop.f32.mrb[20].mxu0  ;;  %v2668_v52 = vadd.f32 %v2109_v49, %v1357_v48  ;;  %v1928_v48 = vunpack.c.l.bf16 %v1927_v39  ;;  %v1936_v49 = vunpack.c.l.bf16 %v1963_v40 }
 0x124   : > { %v2071_v53 = vpop.f32.mrb[21].mxu0  ;;  %v2110_v54 = vpop.f32.mrb[20].mxu1 }
 0x125   : > { %v2072_v56 = vadd.f32 %v2071_v53, %v2070_v51  ;;  %v2073_v58 = vpop.f32.mrb[22].mxu0  ;;  %v2111_v59 = vpop.f32.mrb[21].mxu1  ;;  %v1907_v51 = vld [vmem:[%s2702_s3] ss:$0 sm:$0xff] }
 0x126   : > { %v2074_v60 = vpop.f32.mrb[23].mxu0  ;;  %v2112_v62 = vadd.f32 %v2111_v59, %v2110_v54  ;;  %v2113_v55 = vpop.f32.mrb[22].mxu1  ;;  %v1941_v59 = vunpack.c.h.bf16 %v1964_v38 }
 0x127   : > { %v1362_v61 = vadd.f32 %v2072_v56, %v1297_v5  ;;  %v2075_v63 = vadd.f32 %v2074_v60, %v2073_v58  ;;  %v2114_v0 = vpop.f32.mrb[23].mxu1  ;;  %v1929_v60 = vunpack.c.h.bf16 %v1927_v39 }
 0x128   : > { %v2115_v2 = vadd.f32 %v2114_v0, %v2113_v55 }
 0x129   : > { %v1365_v1 = vadd.f32 %v2075_v63, %v1300_v7  ;;  %v1427_v57 = vadd.f32 %v2112_v62, %v1362_v61 }
 0x12b   : > { %v2076_v3 = vpop.f32.mrb[24].mxu0  ;;  %v1430_v4 = vadd.f32 %v2115_v2, %v1365_v1  ;;  %v1937_v1 = vunpack.c.h.bf16 %v1963_v40 }
 0x12c   : > { %v2077_v6 = vpop.f32.mrb[25].mxu0  ;;  %v2116_v8 = vpop.f32.mrb[24].mxu1 }
 0x12d   : > { %v2078_v9 = vadd.f32 %v2077_v6, %v2076_v3  ;;  %v2079_v10 = vpop.f32.mrb[26].mxu0  ;;  %v2117_v11 = vpop.f32.mrb[25].mxu1 }
 0x12e   : > { %v2080_v12 = vpop.f32.mrb[27].mxu0  ;;  %v2118_v14 = vadd.f32 %v2117_v11, %v2116_v8  ;;  %v2119_v15 = vpop.f32.mrb[26].mxu1 }
 0x12f   : > { %v1370_v13 = vadd.f32 %v2078_v9, %v1305_v19  ;;  %v2081_v5 = vadd.f32 %v2080_v12, %v2079_v10  ;;  %v2120_v16 = vpop.f32.mrb[27].mxu1 }
 0x130   : > { %v2121_v18 = vadd.f32 %v2120_v16, %v2119_v15 }
 0x131   : > { %v1373_v17 = vadd.f32 %v2081_v5, %v1308_v21  ;;  %v1435_v7 = vadd.f32 %v2118_v14, %v1370_v13 }
 0x133   : > { %v2082_v20 = vpop.f32.mrb[28].mxu0  ;;  %v1438_v22 = vadd.f32 %v2121_v18, %v1373_v17 }
 0x134   : > { %v2083_v23 = vpop.f32.mrb[29].mxu0  ;;  %v2122_v24 = vpop.f32.mrb[28].mxu1 }
 0x135   : > { %v2084_v25 = vadd.f32 %v2083_v23, %v2082_v20  ;;  %v2085_v26 = vpop.f32.mrb[30].mxu0  ;;  %v2123_v27 = vpop.f32.mrb[29].mxu1 }
 0x136   : > { %v2086_v28 = vpop.f32.mrb[31].mxu0  ;;  %v2124_v30 = vadd.f32 %v2123_v27, %v2122_v24  ;;  %v2125_v19 = vpop.f32.mrb[30].mxu1 }
 0x137   : > { %v1378_v29 = vadd.f32 %v2084_v25, %v1313_v32  ;;  %v2087_v31 = vadd.f32 %v2086_v28, %v2085_v26  ;;  %v2126_v21 = vpop.f32.mrb[31].mxu1  ;;  %v1906_v32 = vld [vmem:[%s2701_s2] ss:$0 sm:$0xff] }
 0x138   : > { %v2127_v34 = vadd.f32 %v2126_v21, %v2125_v19 }
 0x139   : > { %v1381_v33 = vadd.f32 %v2087_v31, %v2664_v35  ;;  %v1443_v36 = vadd.f32 %v2124_v30, %v1378_v29  ;;  %v1933_v35 = vunpack.c.h.bf16 %v1962_v37 }
 0x13b   : > { %v1446_v41 = vadd.f32 %v2127_v34, %v1381_v33 }
 0x13c   : > { %v2158_v42 = vpop.f32.mrb[32].mxu0 }
 0x13d   : > { %v1492_v45 = vadd.f32 %v2158_v42, %v1427_v57  ;;  %v2162_v46 = vpop.f32.mrb[32].mxu1  ;;  %v1483_v47 = vpop.f32.mrb[33].mxu0 }
 0x13e   : > { %v1508_v53 = vadd.f32 %v2162_v46, %v1443_v36  ;;  %v1484_v54 = vadd.f32 %v1483_v47, %v2666_v50  ;;  %v1499_v56 = vpop.f32.mrb[33].mxu1  ;;  %v2159_v58 = vpop.f32.mrb[34].mxu0 }
 0x13f   : > { %v1550_v61 = vmul.f32 %v1906_v32, %v1492_v45  ;;  %v1500_v62 = vadd.f32 %v1499_v56, %v1435_v7  ;;  %v1495_v55 = vadd.f32 %v2159_v58, %v1430_v4  ;;  %v2163_v63 = vpop.f32.mrb[34].mxu1  ;;  %v1486_v0 = vpop.f32.mrb[35].mxu0 }
 0x140   : > { %v1554_v2 = vmul.f32 %v1906_v32, %v1508_v53  ;;  %v1548_v57 = vmul.f32 %v1906_v32, %v1484_v54  ;;  %v1511_v3 = vadd.f32 %v2163_v63, %v1446_v41  ;;  %v1487_v6 = vadd.f32 %v1486_v0, %v2668_v52  ;;  %v1502_v8 = vpop.f32.mrb[35].mxu1 }
 0x141   : > { %v1565_v9 = vadd.f32 %v1907_v51, %v1550_v61  ;;  %v1552_v10 = vmul.f32 %v1906_v32, %v1500_v62  ;;  %v1551_v11 = vmul.f32 %v1906_v32, %v1495_v55  ;;  %v1503_v50 = vadd.f32 %v1502_v8, %v1438_v22 }
 0x142   : > { %v1569_v12 = vadd.f32 %v1907_v51, %v1554_v2  ;;  %v1563_v13 = vadd.f32 %v1907_v51, %v1548_v57  ;;  %v1555_v14 = vmul.f32 %v1906_v32, %v1511_v3  ;;  %v1549_v15 = vmul.f32 %v1906_v32, %v1487_v6 }
 0x143   : > { %v1589_v5 = vadd.f32 %v1932_v43, %v1565_v9  ;;  %v1567_v16 = vadd.f32 %v1907_v51, %v1552_v10  ;;  %v1566_v4 = vadd.f32 %v1907_v51, %v1551_v11  ;;  %v1553_v17 = vmul.f32 %v1906_v32, %v1503_v50 }
 0x144   : > { %v1593_v18 = vadd.f32 %v1940_v44, %v1569_v12  ;;  %v1587_v7 = vadd.f32 %v1928_v48, %v1563_v13  ;;  %v1570_v20 = vadd.f32 %v1907_v51, %v1555_v14  ;;  %v1564_v23 = vadd.f32 %v1907_v51, %v1549_v15 }
 0x145   : > { %v1591_v24 = vadd.f32 %v1936_v49, %v1567_v16  ;;  %v1590_v52 = vadd.f32 %v1933_v35, %v1566_v4  ;;  %v1568_v25 = vadd.f32 %v1907_v51, %v1553_v17  ;;  %v1597_v28 = vmax.f32 %v1589_v5, 0.0 }
 0x146   : > { %v1594_v26 = vadd.f32 %v1941_v59, %v1570_v20  ;;  %v1588_v27 = vadd.f32 %v1929_v60, %v1564_v23  ;;  %v1601_v30 = vmax.f32 %v1593_v18, 0.0  ;;  %v1595_v19 = vmax.f32 %v1587_v7, 0.0 }
 0x147   : > { %v1598_v22 = vmax.f32 %v1590_v52, 0.0  ;;  %v1592_v29 = vadd.f32 %v1937_v1, %v1568_v25  ;;  %v1599_v33 = vmax.f32 %v1591_v24, 0.0 }
 0x148   : > { %v1602_v31 = vmax.f32 %v1594_v26, 0.0  ;;  %v1596_v21 = vmax.f32 %v1588_v27, 0.0 }
 0x149   : > { %v1950_v34 = vpack.c.bf16 %v1598_v22, %v1597_v28  ;;  %v1600_v36 = vmax.f32 %v1592_v29, 0.0 }
 0x14a   : > { %v1960_v37 = vpack.c.bf16 %v1602_v31, %v1601_v30  ;;  %v1945_v38 = vpack.c.bf16 %v1596_v21, %v1595_v19 }
 0x14b   : > { %1965 = vst [vmem:[%s366_s12 + $0x8] sm:$0xff] %v1950_v34   ;;  %v1955_v39 = vpack.c.bf16 %v1600_v36, %v1599_v33 }
 0x14c   : > { %1967 = vst [vmem:[%s366_s12 + $0x18] sm:$0xff] %v1960_v37   ;;  %1946 = vst [vmem:[%s366_s12] sm:$0xff] %v1945_v38  }
 0x14d   : > { %1966 = vst [vmem:[%s366_s12 + $0x10] sm:$0xff] %v1955_v39  }
 0x14e PF: > { %s15_s20 = sadd.s32 1, %s2351_s20   ;;  %s2705_s18 = smov %s2347_s19 }
 0x14f   : > { %p12_p5 = scmp.ge.s32.totalorder %s15_s20, 4   ;;  %s2706_s19 = smov %s2708_s21 }
 0x151   :  { %14 = sbr.rel (!%p12_p5) target bundleno = 2 (0x2), region = 90 }

// kernel: _lambda_.24
= control target key start
LH: loop header
LB: loop body
LE: loop exit
PB: predicated region body
PF: predicated region fallthrough
CT: control target
= control target key end

     0   :  { %s1705_s15 = smov 0   ;;  %s1707_s16 = smov 0   ;;  %s1978_s0 = inlined_call_operand.vmem [shape: bf16[32,1152], index: 0, kind: input, shape index: {}]   ;;  %s1979_s1 = inlined_call_operand.vmem [shape: bf16[1152,128], index: 1, kind: input, shape index: {}]   ;;  %s1980_s2 = inlined_call_operand.vmem [shape: f32[1,128], index: 2, kind: input, shape index: {}]   ;;  %s1981_s3 = inlined_call_operand.vmem [shape: f32[1,128], index: 3, kind: input, shape index: {}]   ;;  %s1982_s4 = inlined_call_operand.vmem [shape: bf16[32,128], index: 4, kind: output, shape index: {}]  }
   0x1   :  { %s1709_s17 = smov 0  }
   0x2 LB: > { %s33_s18 = sadd.s32 1, %s1672_s16  ;;  %p1326_p0 = scmp.ge.s32.totalorder %s1676_s17, 1  ;;  %s1676_s17 = sphi %s1709_s17, %s14_s17   ;;  %s1672_s16 = sphi %s1707_s16, %s1984_s16   ;;  %s1668_s15 = sphi %s1705_s15, %s1983_s15  }
   0x3   : > { %p35_p1 = scmp.ge.s32.totalorder %s33_s18, 2  ;;  %p224_p2 = scmp.lt.s32.totalorder %s1676_s17, 3 }
   0x5   : > { %s1986_s18 = smov (%p35_p1, %s33_s18), 0  ;;  %p225_p3 = pnand %p1326_p0, %p224_p2 }
   0x6   : > { %v1569_v0 = vld [vmem:[%s1979_s1 + $0x40] sm:$0xff] (!%p225_p3)   ;;  %v1573_v4 = vld [vmem:[%s1979_s1 + $0x48] sm:$0xff] (!%p225_p3)   ;;  %v1577_v8 = vld [vmem:[%s1979_s1 + $0x50] sm:$0xff] (!%p225_p3)   ;;  %s1327_s27 = sshll.u32 (!%p225_p3), %s1668_s15, 1  ;;  %vm1679_vm0 = vmmov (!%p225_p3), 0  }
   0x7   : > { %228 = sbr.rel (%p225_p3) target bundleno = 329 (0x149), region = 36  ;;  %v1570_v1 = vld [vmem:[%s1979_s1 + $0xc0] sm:$0xff] (!%p225_p3)   ;;  %1425 = vmatprep.subr.bf16.mxu0 (!%p225_p3), %v1569_v0  ;;  %v1574_v5 = vld [vmem:[%s1979_s1 + $0xc8] sm:$0xff] (!%p225_p3)   ;;  %v1578_v9 = vld [vmem:[%s1979_s1 + $0xd0] sm:$0xff] (!%p225_p3)   ;;  %p274_p4 = scmp.lt.s32.totalorder (!%p225_p3), %s1327_s27, 3 }
   0x8   : > { %v1571_v2 = vld [vmem:[%s1979_s1] sm:$0xff] (!%p225_p3)   ;;  %1447 = vmatprep.subr.bf16.mxu1 (!%p225_p3), %v1570_v1  ;;  %v1575_v6 = vld [vmem:[%s1979_s1 + $0x8] sm:$0xff] (!%p225_p3)   ;;  %v1579_v10 = vld [vmem:[%s1979_s1 + $0x10] sm:$0xff] (!%p225_p3)  }
   0x9   : > { %v1572_v3 = vld [vmem:[%s1979_s1 + $0x80] sm:$0xff] (!%p225_p3)   ;;  %1426 = vmatpush3.bf16.msra.mxu0 (!%p225_p3), %v1571_v2  ;;  %v1576_v7 = vld [vmem:[%s1979_s1 + $0x88] sm:$0xff] (!%p225_p3)   ;;  %v1580_v11 = vld [vmem:[%s1979_s1 + $0x90] sm:$0xff] (!%p225_p3)  }
   0xa   : > { %1448 = vmatpush3.bf16.msra.mxu1 (!%p225_p3), %v1572_v3  ;;  %1427 = vmatprep.subr.bf16.mxu0 (!%p225_p3), %v1573_v4  ;;  %v1581_v12 = vld [vmem:[%s1979_s1 + $0x58] sm:$0xff] (!%p225_p3)   ;;  %v1585_v16 = vld [vmem:[%s1979_s1 + $0x60] sm:$0xff] (!%p225_p3)   ;;  %v1589_v20 = vld [vmem:[%s1979_s1 + $0x68] sm:$0xff] (!%p225_p3)  }
   0xb   : > { %1449 = vmatprep.subr.bf16.mxu1 (!%p225_p3), %v1574_v5  ;;  %v1582_v13 = vld [vmem:[%s1979_s1 + $0xd8] sm:$0xff] (!%p225_p3)   ;;  %v1586_v17 = vld [vmem:[%s1979_s1 + $0xe0] sm:$0xff] (!%p225_p3)   ;;  %v1590_v21 = vld [vmem:[%s1979_s1 + $0xe8] sm:$0xff] (!%p225_p3)  }
   0xc   : > { %v1583_v14 = vld [vmem:[%s1979_s1 + $0x18] sm:$0xff] (!%p225_p3)   ;;  %v1587_v18 = vld [vmem:[%s1979_s1 + $0x20] sm:$0xff] (!%p225_p3)   ;;  %v1591_v22 = vld [vmem:[%s1979_s1 + $0x28] sm:$0xff] (!%p225_p3)  }
   0xd   : > { %1428 = vmatpush3.bf16.msra.mxu0 (!%p225_p3), %v1575_v6  ;;  %v1584_v15 = vld [vmem:[%s1979_s1 + $0x98] sm:$0xff] (!%p225_p3)   ;;  %v1588_v19 = vld [vmem:[%s1979_s1 + $0xa0] sm:$0xff] (!%p225_p3)   ;;  %v1592_v23 = vld [vmem:[%s1979_s1 + $0xa8] sm:$0xff] (!%p225_p3)   ;;  %v1678_v6 = vmov (!%p225_p3), 0.0  }
   0xe   : > { %1450 = vmatpush3.bf16.msra.mxu1 %v1576_v7  ;;  %1429 = vmatprep.subr.bf16.mxu0 %v1577_v8  ;;  %s1988_s27 = smov (!%p274_p4, %s1327_s27), 3  ;;  %v1593_v24 = vld [vmem:[%s1979_s1 + $0x70] sm:$0xff]   ;;  %v1597_v28 = vld [vmem:[%s1979_s1 + $0x78] sm:$0xff]   ;;  %v1607_v36 = vld [vmem:[%s1979_s1 + $0x140] sm:$0xff]  }
   0xf   : > { %1451 = vmatprep.subr.bf16.mxu1 %v1578_v9  ;;  %v1594_v25 = vld [vmem:[%s1979_s1 + $0xf0] sm:$0xff]   ;;  %s1542_s28 = smul.u32 36, %s1988_s27  ;;  %v1598_v29 = vld [vmem:[%s1979_s1 + $0xf8] sm:$0xff]   ;;  %v1608_v37 = vld [vmem:[%s1979_s1 + $0x100] sm:$0xff]   ;;  %s1330_s20 = sshll.u32 %s1988_s27, 2 }
  0x10   : > { %v1595_v26 = vld [vmem:[%s1979_s1 + $0x30] sm:$0xff]   ;;  %v1599_v30 = vld [vmem:[%s1979_s1 + $0x38] sm:$0xff]   ;;  %v1609_v38 = vld [vmem:[%s1979_s1 + $0x1c0] sm:$0xff]   ;;  %s306_s23 = scalar_lea.vmem %s1982_s4, %s1330_s20 }
  0x11   : > { %1430 = vmatpush3.bf16.msra.mxu0 %v1579_v10  ;;  %v1596_v27 = vld [vmem:[%s1979_s1 + $0xb0] sm:$0xff]   ;;  %s1822_s12 = scalar_lea.vmem %s1978_s0, %s1542_s28  ;;  %v1600_v31 = vld [vmem:[%s1979_s1 + $0xb8] sm:$0xff]   ;;  %v1610_v39 = vld [vmem:[%s1979_s1 + $0x180] sm:$0xff]  }
  0x12   : > { %1452 = vmatpush3.bf16.msra.mxu1 %v1580_v11  ;;  %1431 = vmatprep.subr.bf16.mxu0 %v1581_v12  ;;  %v1601_v32 = vld [vmem:[%s1822_s12] ss:$36 sps:$4 sm:$0xff]   ;;  %v1604_v34 = vld [vmem:[%s1822_s12 + $0x8] ss:$36 sps:$4 sm:$0xff]   ;;  %v1615_v44 = vld [vmem:[%s1979_s1 + $0x150] sm:$0xff]  }
  0x13   : > { %1453 = vmatprep.subr.bf16.mxu1 %v1582_v13  ;;  %v1603_v33 = vld [vmem:[%s1822_s12 + $0x4] ss:$36 sps:$4 sm:$0xff]   ;;  %v1606_v35 = vld [vmem:[%s1822_s12 + $0xc] ss:$36 sps:$4 sm:$0xff]   ;;  %v1619_v48 = vld [vmem:[%s1979_s1 + $0x158] sm:$0xff]  }
  0x14   : > { %981 = vmatprep.mubr.bf16.mxu0 %v1603_v33  ;;  %1022 = vmatprep.mubr.bf16.mxu1 %v1606_v35  ;;  %v1611_v40 = vld [vmem:[%s1979_s1 + $0x148] sm:$0xff]   ;;  %v1616_v45 = vld [vmem:[%s1979_s1 + $0x110] sm:$0xff]   ;;  %v1620_v49 = vld [vmem:[%s1979_s1 + $0x118] sm:$0xff]  }
  0x15   : > { %1432 = vmatpush3.bf16.msra.mxu0 %v1583_v14  ;;  %v1612_v41 = vld [vmem:[%s1979_s1 + $0x108] sm:$0xff]   ;;  %v1617_v46 = vld [vmem:[%s1979_s1 + $0x1d0] sm:$0xff]   ;;  %v1621_v50 = vld [vmem:[%s1979_s1 + $0x1d8] sm:$0xff]  }
  0x16   : > { %1454 = vmatpush3.bf16.msra.mxu1 %v1584_v15  ;;  %1433 = vmatprep.subr.bf16.mxu0 %v1585_v16  ;;  %v1613_v42 = vld [vmem:[%s1979_s1 + $0x1c8] sm:$0xff]   ;;  %v1618_v47 = vld [vmem:[%s1979_s1 + $0x190] sm:$0xff]   ;;  %v1622_v51 = vld [vmem:[%s1979_s1 + $0x198] sm:$0xff]  }
  0x17   : > { %1455 = vmatprep.subr.bf16.mxu1 %v1586_v17  ;;  %v1614_v43 = vld [vmem:[%s1979_s1 + $0x188] sm:$0xff]   ;;  %v1623_v52 = vld [vmem:[%s1979_s1 + $0x160] sm:$0xff]   ;;  %v1631_v60 = vld [vmem:[%s1979_s1 + $0x170] sm:$0xff]  }
  0x18   : > { %v1624_v53 = vld [vmem:[%s1979_s1 + $0x120] sm:$0xff]   ;;  %v1627_v56 = vld [vmem:[%s1979_s1 + $0x168] sm:$0xff]   ;;  %v1632_v61 = vld [vmem:[%s1979_s1 + $0x130] sm:$0xff]  }
  0x19   : > { %1434 = vmatpush3.bf16.msra.mxu0 %v1587_v18  ;;  %v1625_v54 = vld [vmem:[%s1979_s1 + $0x1e0] sm:$0xff]   ;;  %v1628_v57 = vld [vmem:[%s1979_s1 + $0x128] sm:$0xff]   ;;  %v1633_v62 = vld [vmem:[%s1979_s1 + $0x1f0] sm:$0xff]  }
  0x1a   : > { %1456 = vmatpush3.bf16.msra.mxu1 %v1588_v19  ;;  %1435 = vmatprep.subr.bf16.mxu0 %v1589_v20  ;;  %v1626_v55 = vld [vmem:[%s1979_s1 + $0x1a0] sm:$0xff]   ;;  %v1629_v58 = vld [vmem:[%s1979_s1 + $0x1e8] sm:$0xff]   ;;  %v1634_v63 = vld [vmem:[%s1979_s1 + $0x1b0] sm:$0xff]  }
  0x1b   : > { %1457 = vmatprep.subr.bf16.mxu1 %v1590_v21  ;;  %v1630_v59 = vld [vmem:[%s1979_s1 + $0x1a8] sm:$0xff]   ;;  %v1635_v0 = vld [vmem:[%s1979_s1 + $0x178] sm:$0xff]   ;;  %v1638_v3 = vld [vmem:[%s1822_s12 + $0x10] ss:$36 sps:$4 sm:$0xff]  }
  0x1c   : > { %v1636_v1 = vld [vmem:[%s1979_s1 + $0x138] sm:$0xff]   ;;  %v1645_v9 = vld [vmem:[%s1979_s1 + $0x200] sm:$0xff]   ;;  %v1646_v10 = vld [vmem:[%s1979_s1 + $0x208] sm:$0xff]  }
  0x1d   : > { %1436 = vmatpush3.bf16.msra.mxu0 %v1591_v22  ;;  %v1637_v2 = vld [vmem:[%s1979_s1 + $0x1f8] sm:$0xff]   ;;  %v1647_v11 = vld [vmem:[%s1979_s1 + $0x210] sm:$0xff]   ;;  %v1649_v13 = vld [vmem:[%s1979_s1 + $0x220] sm:$0xff]  }
  0x1e   : > { %1458 = vmatpush3.bf16.msra.mxu1 %v1592_v23  ;;  %1437 = vmatprep.subr.bf16.mxu0 %v1593_v24  ;;  %v1640_v4 = vld [vmem:[%s1822_s12 + $0x14] ss:$36 sps:$4 sm:$0xff]   ;;  %v1644_v8 = vld [vmem:[%s1822_s12 + $0x1c] ss:$36 sps:$4 sm:$0xff]   ;;  %v1650_v14 = vld [vmem:[%s1979_s1 + $0x228] sm:$0xff]  }
  0x1f   : > { %1459 = vmatprep.subr.bf16.mxu1 %v1594_v25  ;;  %v1641_v5 = vld [vmem:[%s1979_s1 + $0x1b8] sm:$0xff]   ;;  %v1651_v15 = vld [vmem:[%s1979_s1 + $0x230] sm:$0xff]   ;;  %v1653_v17 = vld [vmem:[%s1822_s12 + $0x20] ss:$36 sps:$4 sm:$0xff]  }
  0x20   : > { %v1642_v7 = vld [vmem:[%s1822_s12 + $0x18] ss:$36 sps:$4 sm:$0xff]  }
  0x21   : > { %1438 = vmatpush3.bf16.msra.mxu0 %v1595_v26  ;;  %v1648_v12 = vld [vmem:[%s1979_s1 + $0x218] sm:$0xff]  }
  0x22   : > { %1460 = vmatpush3.bf16.msra.mxu1 %v1596_v27  ;;  %1439 = vmatprep.subr.bf16.mxu0 %v1597_v28  ;;  %v1652_v16 = vld [vmem:[%s1979_s1 + $0x238] sm:$0xff]  }
  0x23   : > { %1461 = vmatprep.subr.bf16.mxu1 %v1598_v29 }
  0x25   : > { %1440 = vmatpush3.bf16.msra.mxu0 %v1599_v30 }
  0x26   : > { %1462 = vmatpush3.bf16.msra.mxu1 %v1600_v31  ;;  %1469 = vmatprep.subr.bf16.mxu0 %v1607_v36 }
  0x27   : > { %1491 = vmatprep.subr.bf16.mxu1 %v1609_v38 }
  0x28   : > { %982 = vmatmul.mubr.bf16.vlgmr.msra.gmra.mrb[0].mxu0 %v1601_v32 }
  0x29   : > { %1023 = vmatmul.mubr.bf16.vlgmr.msra.gmra.mrb[0].mxu1 %v1604_v34  ;;  %1470 = vmatpush3.bf16.msra.mxu0 %v1608_v37 }
  0x2a   : > { %1492 = vmatpush3.bf16.msra.mxu1 %v1610_v39  ;;  %1471 = vmatprep.subr.bf16.mxu0 %v1611_v40 }
  0x2b   : > { %1493 = vmatprep.subr.bf16.mxu1 %v1613_v42  ;;  %1063 = vmatprep.mubr.bf16.mxu0 %v1640_v4 }
  0x2c   : > { %1104 = vmatprep.mubr.bf16.mxu1 %v1644_v8 }
  0x2d   : > { %1472 = vmatpush3.bf16.msra.mxu0 %v1612_v41 }
  0x2e   : > { %1494 = vmatpush3.bf16.msra.mxu1 %v1614_v43  ;;  %1473 = vmatprep.subr.bf16.mxu0 %v1615_v44 }
  0x2f   : > { %1495 = vmatprep.subr.bf16.mxu1 %v1617_v46 }
  0x31   : > { %1474 = vmatpush3.bf16.msra.mxu0 %v1616_v45 }
  0x32   : > { %1496 = vmatpush3.bf16.msra.mxu1 %v1618_v47  ;;  %1475 = vmatprep.subr.bf16.mxu0 %v1619_v48 }
  0x33   : > { %1497 = vmatprep.subr.bf16.mxu1 %v1621_v50 }
  0x35   : > { %1476 = vmatpush3.bf16.msra.mxu0 %v1620_v49  ;;  %v1412_v49 = vld [vmem:[%s1980_s2] ss:$0 sm:$0xff] }
  0x36   : > { %1498 = vmatpush3.bf16.msra.mxu1 %v1622_v51  ;;  %1477 = vmatprep.subr.bf16.mxu0 %v1623_v52  ;;  %v1413_v52 = vld [vmem:[%s1981_s3] ss:$0 sm:$0xff] }
  0x37   : > { %1499 = vmatprep.subr.bf16.mxu1 %v1625_v54 }
  0x39   : > { %1478 = vmatpush3.bf16.msra.mxu0 %v1624_v53 }
  0x3a   : > { %1500 = vmatpush3.bf16.msra.mxu1 %v1626_v55  ;;  %1479 = vmatprep.subr.bf16.mxu0 %v1627_v56 }
  0x3b   : > { %1501 = vmatprep.subr.bf16.mxu1 %v1629_v58 }
  0x3d   : > { %1480 = vmatpush3.bf16.msra.mxu0 %v1628_v57 }
  0x3e   : > { %1502 = vmatpush3.bf16.msra.mxu1 %v1630_v59  ;;  %1481 = vmatprep.subr.bf16.mxu0 %v1631_v60 }
  0x3f   : > { %1503 = vmatprep.subr.bf16.mxu1 %v1633_v62 }
  0x41   : > { %1482 = vmatpush3.bf16.msra.mxu0 %v1632_v61 }
  0x42   : > { %1504 = vmatpush3.bf16.msra.mxu1 %v1634_v63  ;;  %1483 = vmatprep.subr.bf16.mxu0 %v1635_v0 }
  0x43   : > { %1505 = vmatprep.subr.bf16.mxu1 %v1637_v2 }
  0x45   : > { %1484 = vmatpush3.bf16.msra.mxu0 %v1636_v1 }
  0x46   : > { %1522 = vmatprep.subr.bf16.mxu0 %v1678_v6  ;;  %1506 = vmatpush3.bf16.msra.mxu1 %v1641_v5 }
  0x48   : > { %1064 = vmatmul.mubr.bf16.vlgmr.msra.gmra.mrb[4].mxu0 %v1638_v3 }
  0x49   : > { %1538 = vmatprep.mubr.msk.bf16.mxu0 %vm1679_vm0, %v1678_v6  ;;  %1523 = vmatpush3.bf16.msra.mxu0 %v1645_v9 }
  0x4a   : > { %1105 = vmatmul.mubr.bf16.vlgmr.msra.gmra.mrb[4].mxu1 %v1642_v7  ;;  %1524 = vmatprep.subr.bf16.mxu0 %v1678_v6 }
  0x4d   : > { %1525 = vmatpush3.bf16.msra.mxu0 %v1646_v10 }
  0x4e   : > { %1526 = vmatprep.subr.bf16.mxu0 %v1678_v6 }
  0x51   : > { %1527 = vmatpush3.bf16.msra.mxu0 %v1647_v11 }
  0x52   : > { %1528 = vmatprep.subr.bf16.mxu0 %v1678_v6 }
  0x55   : > { %1529 = vmatpush3.bf16.msra.mxu0 %v1648_v12 }
  0x56   : > { %1530 = vmatprep.subr.bf16.mxu0 %v1678_v6 }
  0x59   : > { %1531 = vmatpush3.bf16.msra.mxu0 %v1649_v13 }
  0x5a   : > { %1532 = vmatprep.subr.bf16.mxu0 %v1678_v6 }
  0x5d   : > { %1533 = vmatpush3.bf16.msra.mxu0 %v1650_v14 }
  0x5e   : > { %1534 = vmatprep.subr.bf16.mxu0 %v1678_v6 }
  0x61   : > { %1535 = vmatpush3.bf16.msra.mxu0 %v1651_v15 }
  0x62   : > { %1536 = vmatprep.subr.bf16.mxu0 %v1678_v6 }
  0x65   : > { %1537 = vmatpush3.bf16.msra.mxu0 %v1652_v16 }
  0x68   : > { %1539 = vmatmul.mubr.bf16.vlgmr.msra.gmra.mrb[8].mxu0 %v1653_v17 }
  0xfb   : > { %v1441_v18 = vpop.f32.mrb[0].mxu0 }
  0xfc   : > { %v1463_v19 = vpop.f32.mrb[0].mxu1  ;;  %v1442_v20 = vpop.f32.mrb[1].mxu0 }
  0xfd   : > { %v1443_v21 = vadd.f32 %v1442_v20, %v1441_v18  ;;  %v1464_v22 = vpop.f32.mrb[1].mxu1  ;;  %v1444_v23 = vpop.f32.mrb[2].mxu0 }
  0xfe   : > { %v1465_v24 = vadd.f32 %v1464_v22, %v1463_v19  ;;  %v1466_v25 = vpop.f32.mrb[2].mxu1  ;;  %v1445_v26 = vpop.f32.mrb[3].mxu0 }
  0xff   : > { %v1446_v27 = vadd.f32 %v1445_v26, %v1444_v23  ;;  %v1467_v28 = vpop.f32.mrb[3].mxu1 }
 0x100   : > { %v1025_v29 = vadd.f32 %v1465_v24, %v1443_v21  ;;  %v1468_v30 = vadd.f32 %v1467_v28, %v1466_v25 }
 0x102   : > { %v1028_v31 = vadd.f32 %v1468_v30, %v1446_v27 }
 0x11b   : > { %v1485_v32 = vpop.f32.mrb[4].mxu0 }
 0x11c   : > { %v1486_v33 = vpop.f32.mrb[5].mxu0 }
 0x11d   : > { %v1487_v34 = vadd.f32 %v1486_v33, %v1485_v32  ;;  %v1488_v35 = vpop.f32.mrb[6].mxu0  ;;  %v1507_v36 = vpop.f32.mrb[4].mxu1 }
 0x11e   : > { %v1489_v37 = vpop.f32.mrb[7].mxu0  ;;  %v1508_v40 = vpop.f32.mrb[5].mxu1 }
 0x11f   : > { %v1066_v38 = vadd.f32 %v1487_v34, %v1025_v29  ;;  %v1490_v39 = vadd.f32 %v1489_v37, %v1488_v35  ;;  %v1509_v41 = vadd.f32 %v1508_v40, %v1507_v36  ;;  %v1510_v42 = vpop.f32.mrb[6].mxu1 }
 0x120   : > { %v1511_v44 = vpop.f32.mrb[7].mxu1 }
 0x121   : > { %v1069_v43 = vadd.f32 %v1490_v39, %v1028_v31  ;;  %v1512_v45 = vadd.f32 %v1511_v44, %v1510_v42  ;;  %v1107_v46 = vadd.f32 %v1509_v41, %v1066_v38 }
 0x123   : > { %v1110_v47 = vadd.f32 %v1512_v45, %v1069_v43 }
 0x13b   : > { %v1147_v48 = vpop.f32.mrb[8].mxu0 }
 0x13c   : > { %v1148_v50 = vadd.f32 %v1147_v48, %v1107_v46  ;;  %v1540_v51 = vpop.f32.mrb[9].mxu0 }
 0x13d   : > { %v1150_v53 = vpop.f32.mrb[10].mxu0 }
 0x13e   : > { %v1170_v54 = vmul.f32 %v1412_v49, %v1148_v50  ;;  %v1151_v55 = vadd.f32 %v1150_v53, %v1110_v47  ;;  %v1541_v56 = vpop.f32.mrb[11].mxu0 }
 0x140   : > { %v1179_v57 = vadd.f32 %v1413_v52, %v1170_v54  ;;  %v1171_v58 = vmul.f32 %v1412_v49, %v1151_v55 }
 0x142   : > { %v1180_v59 = vadd.f32 %v1413_v52, %v1171_v58  ;;  %v1181_v60 = vmax.f32 %v1179_v57, 0.0 }
 0x144   : > { %v1182_v61 = vmax.f32 %v1180_v59, 0.0 }
 0x146   : > { %v1423_v62 = vpack.c.bf16 %v1182_v61, %v1181_v60 }
 0x148   : > { %1424 = vst [vmem:[%s306_s23] sm:$0xff] %v1423_v62  }
 0x149 PF: > { %s14_s17 = sadd.s32 1, %s1676_s17   ;;  %s1983_s15 = smov %s1672_s16 }
 0x14a   : > { %p11_p5 = scmp.ge.s32.totalorder %s14_s17, 4   ;;  %s1984_s16 = smov %s1986_s18 }
 0x14c   :  { %13 = sbr.rel (!%p11_p5) target bundleno = 2 (0x2), region = 83 }

// kernel: _lambda_.23
= control target key start
LH: loop header
LB: loop body
LE: loop exit
PB: predicated region body
PF: predicated region fallthrough
CT: control target
= control target key end

     0   :  { %s731_s15 = smov 0   ;;  %s733_s16 = smov 0   ;;  %s801_s0 = inlined_call_operand.vmem [shape: bf16[32,128], index: 0, kind: input, shape index: {}]   ;;  %s802_s1 = inlined_call_operand.vmem [shape: bf16[128,128], index: 1, kind: input, shape index: {}]   ;;  %s803_s2 = inlined_call_operand.vmem [shape: f32[1,128], index: 2, kind: input, shape index: {}]   ;;  %s804_s3 = inlined_call_operand.vmem [shape: f32[1,128], index: 3, kind: input, shape index: {}]   ;;  %s805_s4 = inlined_call_operand.vmem [shape: bf16[32,128], index: 4, kind: output, shape index: {}]  }
   0x1   :  { %s735_s17 = smov 0  }
   0x2 LB: > { %s33_s18 = sadd.s32 1, %s698_s16  ;;  %p589_p0 = scmp.ge.s32.totalorder %s702_s17, 1  ;;  %s702_s17 = sphi %s735_s17, %s14_s17   ;;  %s698_s16 = sphi %s733_s16, %s807_s16   ;;  %s694_s15 = sphi %s731_s15, %s806_s15  }
   0x3   : > { %p35_p1 = scmp.ge.s32.totalorder %s33_s18, 2  ;;  %p221_p2 = scmp.lt.s32.totalorder %s702_s17, 3 }
   0x5   : > { %s809_s18 = smov (%p35_p1, %s33_s18), 0  ;;  %p222_p3 = pnand %p589_p0, %p221_p2 }
   0x6   : > { %v671_v0 = vld [vmem:[%s802_s1] sm:$0xff] (!%p222_p3)   ;;  %v704_v1 = vmov (!%p222_p3), 0.0   ;;  %v672_v2 = vld [vmem:[%s802_s1 + $0x8] sm:$0xff] (!%p222_p3)   ;;  %vm705_vm0 = vmmov (!%p222_p3), 0   ;;  %s590_s23 = sshll.u32 (!%p222_p3), %s694_s15, 1  ;;  %v673_v3 = vld [vmem:[%s802_s1 + $0x10] sm:$0xff] (!%p222_p3)  }
   0x7   : > { %225 = sbr.rel (%p222_p3) target bundleno = 260 (0x104), region = 36  ;;  %625 = vmatprep.subr.bf16.mxu0 (!%p222_p3), %v704_v1  ;;  %641 = vmatprep.mubr.msk.bf16.mxu0 (!%p222_p3), %vm705_vm0, %v704_v1  ;;  %p268_p4 = scmp.lt.s32.totalorder (!%p222_p3), %s590_s23, 3  ;;  %v674_v4 = vld [vmem:[%s802_s1 + $0x18] sm:$0xff] (!%p222_p3)   ;;  %v675_v5 = vld [vmem:[%s802_s1 + $0x20] sm:$0xff] (!%p222_p3)   ;;  %v676_v6 = vld [vmem:[%s802_s1 + $0x28] sm:$0xff] (!%p222_p3)  }
   0x8   : > { %626 = vmatpush3.bf16.msra.mxu0 (!%p222_p3), %v671_v0  ;;  %v677_v7 = vld [vmem:[%s802_s1 + $0x30] sm:$0xff] (!%p222_p3)   ;;  %v678_v8 = vld [vmem:[%s802_s1 + $0x38] sm:$0xff] (!%p222_p3)   ;;  %v603_v10 = vld [vmem:[%s803_s2] ss:$0 sm:$0xff] (!%p222_p3) }
   0x9   : > { %627 = vmatprep.subr.bf16.mxu0 (!%p222_p3), %v704_v1  ;;  %v604_v14 = vld [vmem:[%s804_s3] ss:$0 sm:$0xff] (!%p222_p3) }
   0xc   : > { %628 = vmatpush3.bf16.msra.mxu0 (!%p222_p3), %v672_v2 }
   0xd   : > { %629 = vmatprep.subr.bf16.mxu0 (!%p222_p3), %v704_v1 }
   0xe   : > { %s811_s23 = smov (!%p268_p4, %s590_s23), 3 }
   0xf   : > { %s591_s26 = sshll.u32 %s811_s23, 2 }
  0x10   : > { %s274_s29 = scalar_lea.vmem %s801_s0, %s591_s26  ;;  %630 = vmatpush3.bf16.msra.mxu0 %v673_v3  ;;  %s298_s24 = scalar_lea.vmem %s805_s4, %s591_s26 }
  0x11   : > { %631 = vmatprep.subr.bf16.mxu0 %v704_v1  ;;  %v679_v9 = vld [vmem:[%s274_s29] sm:$0xff]  }
  0x14   : > { %632 = vmatpush3.bf16.msra.mxu0 %v674_v4 }
  0x15   : > { %633 = vmatprep.subr.bf16.mxu0 %v704_v1 }
  0x18   : > { %634 = vmatpush3.bf16.msra.mxu0 %v675_v5 }
  0x19   : > { %635 = vmatprep.subr.bf16.mxu0 %v704_v1 }
  0x1c   : > { %636 = vmatpush3.bf16.msra.mxu0 %v676_v6 }
  0x1d   : > { %637 = vmatprep.subr.bf16.mxu0 %v704_v1 }
  0x20   : > { %638 = vmatpush3.bf16.msra.mxu0 %v677_v7 }
  0x21   : > { %639 = vmatprep.subr.bf16.mxu0 %v704_v1 }
  0x24   : > { %640 = vmatpush3.bf16.msra.mxu0 %v678_v8 }
  0x27   : > { %642 = vmatmul.mubr.bf16.vlgmr.msra.gmra.mrb[0].mxu0 %v679_v9 }
  0xfa   : > { %v415_v11 = vpop.f32.mrb[0].mxu0 }
  0xfb   : > { %v438_v12 = vmul.f32 %v603_v10, %v415_v11  ;;  %v643_v13 = vpop.f32.mrb[1].mxu0 }
  0xfc   : > { %v418_v15 = vpop.f32.mrb[2].mxu0 }
  0xfd   : > { %v439_v16 = vmul.f32 %v603_v10, %v418_v15  ;;  %v644_v17 = vpop.f32.mrb[3].mxu0  ;;  %v447_v18 = vadd.f32 %v604_v14, %v438_v12 }
  0xff   : > { %v448_v19 = vadd.f32 %v604_v14, %v439_v16 }
 0x101   : > { %v614_v20 = vpack.c.bf16 %v448_v19, %v447_v18 }
 0x103   : > { %615 = vst [vmem:[%s298_s24] sm:$0xff] %v614_v20  }
 0x104 PF: > { %s14_s17 = sadd.s32 1, %s702_s17   ;;  %s806_s15 = smov %s698_s16 }
 0x105   : > { %p11_p5 = scmp.ge.s32.totalorder %s14_s17, 4   ;;  %s807_s16 = smov %s809_s18 }
 0x107   :  { %13 = sbr.rel (!%p11_p5) target bundleno = 2 (0x2), region = 83 }

// kernel: _lambda_.25
= control target key start
LH: loop header
LB: loop body
LE: loop exit
PB: predicated region body
PF: predicated region fallthrough
CT: control target
= control target key end

     0   :  { %s1797_s18 = smov 0   ;;  %s1799_s19 = smov 0   ;;  %s2073_s0 = inlined_call_operand.vmem [shape: bf16[32,1152], index: 0, kind: input, shape index: {}]   ;;  %s2074_s1 = inlined_call_operand.vmem [shape: bf16[1152,128], index: 1, kind: input, shape index: {}]   ;;  %s2075_s2 = inlined_call_operand.vmem [shape: f32[1,128], index: 2, kind: input, shape index: {}]   ;;  %s2076_s3 = inlined_call_operand.vmem [shape: f32[1,128], index: 3, kind: input, shape index: {}]   ;;  %s2077_s4 = inlined_call_operand.vmem [shape: bf16[32,128], index: 4, kind: input, shape index: {}]   ;;  %s2078_s5 = inlined_call_operand.vmem [shape: bf16[32,128], index: 5, kind: output, shape index: {}]  }
   0x1   :  { %s1801_s20 = smov 0  }
   0x2 LB: > { %s34_s21 = sadd.s32 1, %s1759_s19  ;;  %p1407_p0 = scmp.ge.s32.totalorder %s1763_s20, 1  ;;  %s1763_s20 = sphi %s1801_s20, %s15_s20   ;;  %s1759_s19 = sphi %s1799_s19, %s2080_s19   ;;  %s1755_s18 = sphi %s1797_s18, %s2079_s18  }
   0x3   : > { %p36_p1 = scmp.ge.s32.totalorder %s34_s21, 2  ;;  %p265_p2 = scmp.lt.s32.totalorder %s1763_s20, 3 }
   0x5   : > { %s2082_s21 = smov (%p36_p1, %s34_s21), 0  ;;  %p266_p3 = pnand %p1407_p0, %p265_p2 }
   0x6   : > { %v1656_v0 = vld [vmem:[%s2074_s1 + $0x40] sm:$0xff] (!%p266_p3)   ;;  %v1660_v4 = vld [vmem:[%s2074_s1 + $0x48] sm:$0xff] (!%p266_p3)   ;;  %v1664_v8 = vld [vmem:[%s2074_s1 + $0x50] sm:$0xff] (!%p266_p3)   ;;  %s1408_s6 = sshll.u32 (!%p266_p3), %s1755_s18, 1  ;;  %vm1766_vm0 = vmmov (!%p266_p3), 0  }
   0x7   : > { %269 = sbr.rel (%p266_p3) target bundleno = 331 (0x14b), region = 40  ;;  %v1657_v1 = vld [vmem:[%s2074_s1 + $0xc0] sm:$0xff] (!%p266_p3)   ;;  %1512 = vmatprep.subr.bf16.mxu0 (!%p266_p3), %v1656_v0  ;;  %v1661_v5 = vld [vmem:[%s2074_s1 + $0xc8] sm:$0xff] (!%p266_p3)   ;;  %v1665_v9 = vld [vmem:[%s2074_s1 + $0xd0] sm:$0xff] (!%p266_p3)   ;;  %p325_p4 = scmp.lt.s32.totalorder (!%p266_p3), %s1408_s6, 3 }
   0x8   : > { %v1658_v2 = vld [vmem:[%s2074_s1] sm:$0xff] (!%p266_p3)   ;;  %1534 = vmatprep.subr.bf16.mxu1 (!%p266_p3), %v1657_v1  ;;  %v1662_v6 = vld [vmem:[%s2074_s1 + $0x8] sm:$0xff] (!%p266_p3)   ;;  %v1666_v10 = vld [vmem:[%s2074_s1 + $0x10] sm:$0xff] (!%p266_p3)  }
   0x9   : > { %v1659_v3 = vld [vmem:[%s2074_s1 + $0x80] sm:$0xff] (!%p266_p3)   ;;  %1513 = vmatpush3.bf16.msra.mxu0 (!%p266_p3), %v1658_v2  ;;  %v1663_v7 = vld [vmem:[%s2074_s1 + $0x88] sm:$0xff] (!%p266_p3)   ;;  %v1667_v11 = vld [vmem:[%s2074_s1 + $0x90] sm:$0xff] (!%p266_p3)  }
   0xa   : > { %1535 = vmatpush3.bf16.msra.mxu1 (!%p266_p3), %v1659_v3  ;;  %1514 = vmatprep.subr.bf16.mxu0 (!%p266_p3), %v1660_v4  ;;  %v1668_v12 = vld [vmem:[%s2074_s1 + $0x58] sm:$0xff] (!%p266_p3)   ;;  %v1672_v16 = vld [vmem:[%s2074_s1 + $0x60] sm:$0xff] (!%p266_p3)   ;;  %v1676_v20 = vld [vmem:[%s2074_s1 + $0x68] sm:$0xff] (!%p266_p3)  }
   0xb   : > { %1536 = vmatprep.subr.bf16.mxu1 (!%p266_p3), %v1661_v5  ;;  %v1669_v13 = vld [vmem:[%s2074_s1 + $0xd8] sm:$0xff] (!%p266_p3)   ;;  %v1673_v17 = vld [vmem:[%s2074_s1 + $0xe0] sm:$0xff] (!%p266_p3)   ;;  %v1677_v21 = vld [vmem:[%s2074_s1 + $0xe8] sm:$0xff] (!%p266_p3)  }
   0xc   : > { %v1670_v14 = vld [vmem:[%s2074_s1 + $0x18] sm:$0xff] (!%p266_p3)   ;;  %v1674_v18 = vld [vmem:[%s2074_s1 + $0x20] sm:$0xff] (!%p266_p3)   ;;  %v1678_v22 = vld [vmem:[%s2074_s1 + $0x28] sm:$0xff] (!%p266_p3)  }
   0xd   : > { %1515 = vmatpush3.bf16.msra.mxu0 (!%p266_p3), %v1662_v6  ;;  %v1671_v15 = vld [vmem:[%s2074_s1 + $0x98] sm:$0xff] (!%p266_p3)   ;;  %v1675_v19 = vld [vmem:[%s2074_s1 + $0xa0] sm:$0xff] (!%p266_p3)   ;;  %v1679_v23 = vld [vmem:[%s2074_s1 + $0xa8] sm:$0xff] (!%p266_p3)   ;;  %v1765_v6 = vmov (!%p266_p3), 0.0  }
   0xe   : > { %1537 = vmatpush3.bf16.msra.mxu1 %v1663_v7  ;;  %1516 = vmatprep.subr.bf16.mxu0 %v1664_v8  ;;  %s2084_s6 = smov (!%p325_p4, %s1408_s6), 3  ;;  %v1680_v24 = vld [vmem:[%s2074_s1 + $0x70] sm:$0xff]   ;;  %v1684_v28 = vld [vmem:[%s2074_s1 + $0x78] sm:$0xff]   ;;  %v1694_v36 = vld [vmem:[%s2074_s1 + $0x140] sm:$0xff]  }
   0xf   : > { %1538 = vmatprep.subr.bf16.mxu1 %v1665_v9  ;;  %v1681_v25 = vld [vmem:[%s2074_s1 + $0xf0] sm:$0xff]   ;;  %s1629_s8 = smul.u32 36, %s2084_s6  ;;  %v1685_v29 = vld [vmem:[%s2074_s1 + $0xf8] sm:$0xff]   ;;  %v1695_v37 = vld [vmem:[%s2074_s1 + $0x100] sm:$0xff]  }
  0x10   : > { %v1682_v26 = vld [vmem:[%s2074_s1 + $0x30] sm:$0xff]   ;;  %v1686_v30 = vld [vmem:[%s2074_s1 + $0x38] sm:$0xff]   ;;  %v1696_v38 = vld [vmem:[%s2074_s1 + $0x1c0] sm:$0xff]  }
  0x11   : > { %1517 = vmatpush3.bf16.msra.mxu0 %v1666_v10  ;;  %v1683_v27 = vld [vmem:[%s2074_s1 + $0xb0] sm:$0xff]   ;;  %s1914_s22 = scalar_lea.vmem %s2073_s0, %s1629_s8  ;;  %v1687_v31 = vld [vmem:[%s2074_s1 + $0xb8] sm:$0xff]   ;;  %v1697_v39 = vld [vmem:[%s2074_s1 + $0x180] sm:$0xff]  }
  0x12   : > { %1539 = vmatpush3.bf16.msra.mxu1 %v1667_v11  ;;  %1518 = vmatprep.subr.bf16.mxu0 %v1668_v12  ;;  %v1688_v32 = vld [vmem:[%s1914_s22] ss:$36 sps:$4 sm:$0xff]   ;;  %v1691_v34 = vld [vmem:[%s1914_s22 + $0x8] ss:$36 sps:$4 sm:$0xff]   ;;  %v1702_v44 = vld [vmem:[%s2074_s1 + $0x150] sm:$0xff]  }
  0x13   : > { %1540 = vmatprep.subr.bf16.mxu1 %v1669_v13  ;;  %v1690_v33 = vld [vmem:[%s1914_s22 + $0x4] ss:$36 sps:$4 sm:$0xff]   ;;  %v1693_v35 = vld [vmem:[%s1914_s22 + $0xc] ss:$36 sps:$4 sm:$0xff]   ;;  %v1706_v48 = vld [vmem:[%s2074_s1 + $0x158] sm:$0xff]  }
  0x14   : > { %1041 = vmatprep.mubr.bf16.mxu0 %v1690_v33  ;;  %1082 = vmatprep.mubr.bf16.mxu1 %v1693_v35  ;;  %v1698_v40 = vld [vmem:[%s2074_s1 + $0x148] sm:$0xff]   ;;  %v1703_v45 = vld [vmem:[%s2074_s1 + $0x110] sm:$0xff]   ;;  %v1707_v49 = vld [vmem:[%s2074_s1 + $0x118] sm:$0xff]  }
  0x15   : > { %1519 = vmatpush3.bf16.msra.mxu0 %v1670_v14  ;;  %v1699_v41 = vld [vmem:[%s2074_s1 + $0x108] sm:$0xff]   ;;  %v1704_v46 = vld [vmem:[%s2074_s1 + $0x1d0] sm:$0xff]   ;;  %v1708_v50 = vld [vmem:[%s2074_s1 + $0x1d8] sm:$0xff]  }
  0x16   : > { %1541 = vmatpush3.bf16.msra.mxu1 %v1671_v15  ;;  %1520 = vmatprep.subr.bf16.mxu0 %v1672_v16  ;;  %v1700_v42 = vld [vmem:[%s2074_s1 + $0x1c8] sm:$0xff]   ;;  %v1705_v47 = vld [vmem:[%s2074_s1 + $0x190] sm:$0xff]   ;;  %v1709_v51 = vld [vmem:[%s2074_s1 + $0x198] sm:$0xff]  }
  0x17   : > { %1542 = vmatprep.subr.bf16.mxu1 %v1673_v17  ;;  %v1701_v43 = vld [vmem:[%s2074_s1 + $0x188] sm:$0xff]   ;;  %v1710_v52 = vld [vmem:[%s2074_s1 + $0x160] sm:$0xff]   ;;  %v1718_v60 = vld [vmem:[%s2074_s1 + $0x170] sm:$0xff]  }
  0x18   : > { %v1711_v53 = vld [vmem:[%s2074_s1 + $0x120] sm:$0xff]   ;;  %v1714_v56 = vld [vmem:[%s2074_s1 + $0x168] sm:$0xff]   ;;  %v1719_v61 = vld [vmem:[%s2074_s1 + $0x130] sm:$0xff]  }
  0x19   : > { %1521 = vmatpush3.bf16.msra.mxu0 %v1674_v18  ;;  %v1712_v54 = vld [vmem:[%s2074_s1 + $0x1e0] sm:$0xff]   ;;  %v1715_v57 = vld [vmem:[%s2074_s1 + $0x128] sm:$0xff]   ;;  %v1720_v62 = vld [vmem:[%s2074_s1 + $0x1f0] sm:$0xff]  }
  0x1a   : > { %1543 = vmatpush3.bf16.msra.mxu1 %v1675_v19  ;;  %1522 = vmatprep.subr.bf16.mxu0 %v1676_v20  ;;  %v1713_v55 = vld [vmem:[%s2074_s1 + $0x1a0] sm:$0xff]   ;;  %v1716_v58 = vld [vmem:[%s2074_s1 + $0x1e8] sm:$0xff]   ;;  %v1721_v63 = vld [vmem:[%s2074_s1 + $0x1b0] sm:$0xff]  }
  0x1b   : > { %1544 = vmatprep.subr.bf16.mxu1 %v1677_v21  ;;  %v1717_v59 = vld [vmem:[%s2074_s1 + $0x1a8] sm:$0xff]   ;;  %v1722_v0 = vld [vmem:[%s2074_s1 + $0x178] sm:$0xff]   ;;  %v1725_v3 = vld [vmem:[%s1914_s22 + $0x10] ss:$36 sps:$4 sm:$0xff]  }
  0x1c   : > { %v1723_v1 = vld [vmem:[%s2074_s1 + $0x138] sm:$0xff]   ;;  %v1732_v9 = vld [vmem:[%s2074_s1 + $0x200] sm:$0xff]   ;;  %v1733_v10 = vld [vmem:[%s2074_s1 + $0x208] sm:$0xff]  }
  0x1d   : > { %1523 = vmatpush3.bf16.msra.mxu0 %v1678_v22  ;;  %v1724_v2 = vld [vmem:[%s2074_s1 + $0x1f8] sm:$0xff]   ;;  %v1734_v11 = vld [vmem:[%s2074_s1 + $0x210] sm:$0xff]   ;;  %v1736_v13 = vld [vmem:[%s2074_s1 + $0x220] sm:$0xff]  }
  0x1e   : > { %1545 = vmatpush3.bf16.msra.mxu1 %v1679_v23  ;;  %1524 = vmatprep.subr.bf16.mxu0 %v1680_v24  ;;  %v1727_v4 = vld [vmem:[%s1914_s22 + $0x14] ss:$36 sps:$4 sm:$0xff]   ;;  %v1731_v8 = vld [vmem:[%s1914_s22 + $0x1c] ss:$36 sps:$4 sm:$0xff]   ;;  %v1737_v14 = vld [vmem:[%s2074_s1 + $0x228] sm:$0xff]  }
  0x1f   : > { %1546 = vmatprep.subr.bf16.mxu1 %v1681_v25  ;;  %v1728_v5 = vld [vmem:[%s2074_s1 + $0x1b8] sm:$0xff]   ;;  %v1738_v15 = vld [vmem:[%s2074_s1 + $0x230] sm:$0xff]   ;;  %v1740_v17 = vld [vmem:[%s1914_s22 + $0x20] ss:$36 sps:$4 sm:$0xff]  }
  0x20   : > { %v1729_v7 = vld [vmem:[%s1914_s22 + $0x18] ss:$36 sps:$4 sm:$0xff]   ;;  %s1411_s22 = sshll.u32 %s2084_s6, 2 }
  0x21   : > { %1525 = vmatpush3.bf16.msra.mxu0 %v1682_v26  ;;  %v1735_v12 = vld [vmem:[%s2074_s1 + $0x218] sm:$0xff]   ;;  %s357_s29 = scalar_lea.vmem %s2077_s4, %s1411_s22  ;;  %s366_s11 = scalar_lea.vmem %s2078_s5, %s1411_s22 }
  0x22   : > { %1547 = vmatpush3.bf16.msra.mxu1 %v1683_v27  ;;  %1526 = vmatprep.subr.bf16.mxu0 %v1684_v28  ;;  %v1739_v16 = vld [vmem:[%s2074_s1 + $0x238] sm:$0xff]  }
  0x23   : > { %1548 = vmatprep.subr.bf16.mxu1 %v1685_v29 }
  0x25   : > { %1527 = vmatpush3.bf16.msra.mxu0 %v1686_v30 }
  0x26   : > { %1549 = vmatpush3.bf16.msra.mxu1 %v1687_v31  ;;  %1556 = vmatprep.subr.bf16.mxu0 %v1694_v36 }
  0x27   : > { %1578 = vmatprep.subr.bf16.mxu1 %v1696_v38 }
  0x28   : > { %1042 = vmatmul.mubr.bf16.vlgmr.msra.gmra.mrb[0].mxu0 %v1688_v32 }
  0x29   : > { %1083 = vmatmul.mubr.bf16.vlgmr.msra.gmra.mrb[0].mxu1 %v1691_v34  ;;  %1557 = vmatpush3.bf16.msra.mxu0 %v1695_v37 }
  0x2a   : > { %1579 = vmatpush3.bf16.msra.mxu1 %v1697_v39  ;;  %1558 = vmatprep.subr.bf16.mxu0 %v1698_v40 }
  0x2b   : > { %1580 = vmatprep.subr.bf16.mxu1 %v1700_v42  ;;  %1123 = vmatprep.mubr.bf16.mxu0 %v1727_v4 }
  0x2c   : > { %1164 = vmatprep.mubr.bf16.mxu1 %v1731_v8 }
  0x2d   : > { %1559 = vmatpush3.bf16.msra.mxu0 %v1699_v41 }
  0x2e   : > { %1581 = vmatpush3.bf16.msra.mxu1 %v1701_v43  ;;  %1560 = vmatprep.subr.bf16.mxu0 %v1702_v44 }
  0x2f   : > { %1582 = vmatprep.subr.bf16.mxu1 %v1704_v46 }
  0x31   : > { %1561 = vmatpush3.bf16.msra.mxu0 %v1703_v45 }
  0x32   : > { %1583 = vmatpush3.bf16.msra.mxu1 %v1705_v47  ;;  %1562 = vmatprep.subr.bf16.mxu0 %v1706_v48 }
  0x33   : > { %1584 = vmatprep.subr.bf16.mxu1 %v1708_v50  ;;  %v1504_v50 = vld [vmem:[%s357_s29] sm:$0xff]  }
  0x35   : > { %1563 = vmatpush3.bf16.msra.mxu0 %v1707_v49  ;;  %v1495_v49 = vld [vmem:[%s2075_s2] ss:$0 sm:$0xff] }
  0x36   : > { %1585 = vmatpush3.bf16.msra.mxu1 %v1709_v51  ;;  %1564 = vmatprep.subr.bf16.mxu0 %v1710_v52 }
  0x37   : > { %1586 = vmatprep.subr.bf16.mxu1 %v1712_v54 }
  0x39   : > { %1565 = vmatpush3.bf16.msra.mxu0 %v1711_v53  ;;  %v1496_v53 = vld [vmem:[%s2076_s3] ss:$0 sm:$0xff] }
  0x3a   : > { %1587 = vmatpush3.bf16.msra.mxu1 %v1713_v55  ;;  %1566 = vmatprep.subr.bf16.mxu0 %v1714_v56  ;;  %v1505_v56 = vunpack.c.l.bf16 %v1504_v50 }
  0x3b   : > { %1588 = vmatprep.subr.bf16.mxu1 %v1716_v58 }
  0x3d   : > { %1567 = vmatpush3.bf16.msra.mxu0 %v1715_v57 }
  0x3e   : > { %1589 = vmatpush3.bf16.msra.mxu1 %v1717_v59  ;;  %1568 = vmatprep.subr.bf16.mxu0 %v1718_v60 }
  0x3f   : > { %1590 = vmatprep.subr.bf16.mxu1 %v1720_v62 }
  0x41   : > { %1569 = vmatpush3.bf16.msra.mxu0 %v1719_v61  ;;  %v1506_v61 = vunpack.c.h.bf16 %v1504_v50 }
  0x42   : > { %1591 = vmatpush3.bf16.msra.mxu1 %v1721_v63  ;;  %1570 = vmatprep.subr.bf16.mxu0 %v1722_v0 }
  0x43   : > { %1592 = vmatprep.subr.bf16.mxu1 %v1724_v2 }
  0x45   : > { %1571 = vmatpush3.bf16.msra.mxu0 %v1723_v1 }
  0x46   : > { %1609 = vmatprep.subr.bf16.mxu0 %v1765_v6  ;;  %1593 = vmatpush3.bf16.msra.mxu1 %v1728_v5 }
  0x48   : > { %1124 = vmatmul.mubr.bf16.vlgmr.msra.gmra.mrb[4].mxu0 %v1725_v3 }
  0x49   : > { %1625 = vmatprep.mubr.msk.bf16.mxu0 %vm1766_vm0, %v1765_v6  ;;  %1610 = vmatpush3.bf16.msra.mxu0 %v1732_v9 }
  0x4a   : > { %1165 = vmatmul.mubr.bf16.vlgmr.msra.gmra.mrb[4].mxu1 %v1729_v7  ;;  %1611 = vmatprep.subr.bf16.mxu0 %v1765_v6 }
  0x4d   : > { %1612 = vmatpush3.bf16.msra.mxu0 %v1733_v10 }
  0x4e   : > { %1613 = vmatprep.subr.bf16.mxu0 %v1765_v6 }
  0x51   : > { %1614 = vmatpush3.bf16.msra.mxu0 %v1734_v11 }
  0x52   : > { %1615 = vmatprep.subr.bf16.mxu0 %v1765_v6 }
  0x55   : > { %1616 = vmatpush3.bf16.msra.mxu0 %v1735_v12 }
  0x56   : > { %1617 = vmatprep.subr.bf16.mxu0 %v1765_v6 }
  0x59   : > { %1618 = vmatpush3.bf16.msra.mxu0 %v1736_v13 }
  0x5a   : > { %1619 = vmatprep.subr.bf16.mxu0 %v1765_v6 }
  0x5d   : > { %1620 = vmatpush3.bf16.msra.mxu0 %v1737_v14 }
  0x5e   : > { %1621 = vmatprep.subr.bf16.mxu0 %v1765_v6 }
  0x61   : > { %1622 = vmatpush3.bf16.msra.mxu0 %v1738_v15 }
  0x62   : > { %1623 = vmatprep.subr.bf16.mxu0 %v1765_v6 }
  0x65   : > { %1624 = vmatpush3.bf16.msra.mxu0 %v1739_v16 }
  0x68   : > { %1626 = vmatmul.mubr.bf16.vlgmr.msra.gmra.mrb[8].mxu0 %v1740_v17 }
  0xfb   : > { %v1528_v18 = vpop.f32.mrb[0].mxu0 }
  0xfc   : > { %v1550_v19 = vpop.f32.mrb[0].mxu1  ;;  %v1529_v20 = vpop.f32.mrb[1].mxu0 }
  0xfd   : > { %v1530_v21 = vadd.f32 %v1529_v20, %v1528_v18  ;;  %v1551_v22 = vpop.f32.mrb[1].mxu1  ;;  %v1531_v23 = vpop.f32.mrb[2].mxu0 }
  0xfe   : > { %v1552_v24 = vadd.f32 %v1551_v22, %v1550_v19  ;;  %v1553_v25 = vpop.f32.mrb[2].mxu1  ;;  %v1532_v26 = vpop.f32.mrb[3].mxu0 }
  0xff   : > { %v1533_v27 = vadd.f32 %v1532_v26, %v1531_v23  ;;  %v1554_v28 = vpop.f32.mrb[3].mxu1 }
 0x100   : > { %v1085_v29 = vadd.f32 %v1552_v24, %v1530_v21  ;;  %v1555_v30 = vadd.f32 %v1554_v28, %v1553_v25 }
 0x102   : > { %v1088_v31 = vadd.f32 %v1555_v30, %v1533_v27 }
 0x11b   : > { %v1572_v32 = vpop.f32.mrb[4].mxu0 }
 0x11c   : > { %v1573_v33 = vpop.f32.mrb[5].mxu0 }
 0x11d   : > { %v1574_v34 = vadd.f32 %v1573_v33, %v1572_v32  ;;  %v1575_v35 = vpop.f32.mrb[6].mxu0  ;;  %v1594_v36 = vpop.f32.mrb[4].mxu1 }
 0x11e   : > { %v1576_v37 = vpop.f32.mrb[7].mxu0  ;;  %v1595_v40 = vpop.f32.mrb[5].mxu1 }
 0x11f   : > { %v1126_v38 = vadd.f32 %v1574_v34, %v1085_v29  ;;  %v1577_v39 = vadd.f32 %v1576_v37, %v1575_v35  ;;  %v1596_v41 = vadd.f32 %v1595_v40, %v1594_v36  ;;  %v1597_v42 = vpop.f32.mrb[6].mxu1 }
 0x120   : > { %v1598_v44 = vpop.f32.mrb[7].mxu1 }
 0x121   : > { %v1129_v43 = vadd.f32 %v1577_v39, %v1088_v31  ;;  %v1599_v45 = vadd.f32 %v1598_v44, %v1597_v42  ;;  %v1167_v46 = vadd.f32 %v1596_v41, %v1126_v38 }
 0x123   : > { %v1170_v47 = vadd.f32 %v1599_v45, %v1129_v43 }
 0x13b   : > { %v1207_v48 = vpop.f32.mrb[8].mxu0 }
 0x13c   : > { %v1208_v51 = vadd.f32 %v1207_v48, %v1167_v46  ;;  %v1627_v52 = vpop.f32.mrb[9].mxu0 }
 0x13d   : > { %v1210_v54 = vpop.f32.mrb[10].mxu0 }
 0x13e   : > { %v1230_v55 = vmul.f32 %v1495_v49, %v1208_v51  ;;  %v1211_v57 = vadd.f32 %v1210_v54, %v1170_v47  ;;  %v1628_v58 = vpop.f32.mrb[11].mxu0 }
 0x140   : > { %v1239_v59 = vadd.f32 %v1496_v53, %v1230_v55  ;;  %v1231_v60 = vmul.f32 %v1495_v49, %v1211_v57 }
 0x142   : > { %v1245_v62 = vadd.f32 %v1505_v56, %v1239_v59  ;;  %v1240_v63 = vadd.f32 %v1496_v53, %v1231_v60 }
 0x144   : > { %v1246_v0 = vadd.f32 %v1506_v61, %v1240_v63  ;;  %v1247_v1 = vmax.f32 %v1245_v62, 0.0 }
 0x146   : > { %v1248_v2 = vmax.f32 %v1246_v0, 0.0 }
 0x148   : > { %v1510_v3 = vpack.c.bf16 %v1248_v2, %v1247_v1 }
 0x14a   : > { %1511 = vst [vmem:[%s366_s11] sm:$0xff] %v1510_v3  }
 0x14b PF: > { %s15_s20 = sadd.s32 1, %s1763_s20   ;;  %s2079_s18 = smov %s1759_s19 }
 0x14c   : > { %p12_p5 = scmp.ge.s32.totalorder %s15_s20, 4   ;;  %s2080_s19 = smov %s2082_s21 }
 0x14e   :  { %14 = sbr.rel (!%p12_p5) target bundleno = 2 (0x2), region = 90 }

// kernel: _lambda_.29
= control target key start
LH: loop header
LB: loop body
LE: loop exit
PB: predicated region body
PF: predicated region fallthrough
CT: control target
= control target key end

     0   :  { %s2370_s15 = smov 0   ;;  %s2372_s16 = smov 0   ;;  %s2847_s0 = inlined_call_operand.vmem [shape: bf16[16,1152], index: 0, kind: input, shape index: {}]   ;;  %s2848_s1 = inlined_call_operand.vmem [shape: bf16[1152,256], index: 1, kind: input, shape index: {}]   ;;  %s2849_s2 = inlined_call_operand.vmem [shape: f32[1,256], index: 2, kind: input, shape index: {}]   ;;  %s2850_s3 = inlined_call_operand.vmem [shape: f32[1,256], index: 3, kind: input, shape index: {}]   ;;  %s2851_s4 = inlined_call_operand.vmem [shape: bf16[16,256], index: 4, kind: output, shape index: {}]  }
   0x1   :  { %s2374_s17 = smov 0   ;;  %s2376_s18 = smov 0  }
   0x2   :  { %s2378_s19 = smov 0  }
   0x3 LB: > { %s29_s20 = sadd.s32 1, %s2337_s18  ;;  %s1953_s21 = sadd.s32 4294967295, %s2341_s19   ;;  %s2341_s19 = sphi %s2378_s19, %s14_s19   ;;  %s2337_s18 = sphi %s2376_s18, %s2856_s18   ;;  %s2333_s17 = sphi %s2374_s17, %s2855_s17   ;;  %s2329_s16 = sphi %s2372_s16, %s2854_s16   ;;  %s2325_s15 = sphi %s2370_s15, %s2853_s15  }
   0x4   : > { %p31_p0 = scmp.ge.s32.totalorder %s29_s20, 2  ;;  %p77_p1 = scmp.ne.s32.totalorder %s2329_s16, %s2325_s15 }
   0x5   : > { %p78_p2 = scmp.eq.s32.totalorder %s2341_s19, 0  ;;  %p161_p4 = scmp.eq.s32.totalorder %s1953_s21, 1 }
   0x6   : > { %s2858_s20 = smov (%p31_p0, %s29_s20), 0  ;;  %s70_s23 = sadd.s32 1, %s2329_s16 }
   0x7   : > { %p79_p3 = por %p78_p2, %p77_p1  ;;  %s66_s22 = ssub.s32 %s2337_s18, %s2858_s20 }
   0x8   : > { %p68_p5 = scmp.eq.s32.totalorder %s66_s22, 0  ;;  %p2405_p6 = por %p161_p4, %p77_p1 }
   0x9   : > { %p1957_p7 = scmp.ge.s32.totalorder %s2341_s19, 2 }
   0xa   : > { %s2410_s25 = scalar_select %p68_p5, %s2329_s16, %s70_s23  }
   0xb   : > { %198 = sbr.rel (%p1957_p7) target bundleno = 118 (0x76), region = 20 }
  0x12   : > { %201 = sbr.rel (!%p79_p3) target bundleno = 118 (0x76), region = 24  ;;  %s203_s26 = sand.u32 (%p79_p3), 1, %s2329_s16  }
  0x13   : > { %s1958_s27 = sshll.u32 (%p79_p3), %s2337_s18, 2  ;;  %s2174_s28 = smul.u32 (%p79_p3), 576, %s203_s26 }
  0x14   : > { %s2418_s5 = scalar_lea.vmem (%p79_p3), %s2848_s1, %s1958_s27 }
  0x15   : > { %v226_v0 = vld [vmem:[%s2418_s5] sm:$0xf] (%p79_p3)  ;;  %v228_v1 = vld [vmem:[%s2418_s5 + $0x8] sm:$0xf] (%p79_p3)  ;;  %v230_v2 = vld [vmem:[%s2418_s5 + $0x10] sm:$0xf] (%p79_p3) }
  0x16   : > { %v232_v3 = vld [vmem:[%s2418_s5 + $0x18] sm:$0xf] (%p79_p3)  ;;  %v234_v4 = vld [vmem:[%s2418_s5 + $0x20] sm:$0xf] (%p79_p3)  ;;  %s2425_s6 = scalar_lea.vmem (%p79_p3), [#allocation3], %s2174_s28 }
  0x17   : > { %227 = vst [vmem:[%s2425_s6] sm:$0xf] (%p79_p3), %v226_v0  ;;  %229 = vst [vmem:[%s2425_s6 + $0x4] sm:$0xf] (%p79_p3), %v228_v1  ;;  %v236_v5 = vld [vmem:[%s2418_s5 + $0x28] sm:$0xf] (%p79_p3) }
  0x18   : > { %231 = vst [vmem:[%s2425_s6 + $0x8] sm:$0xf] (%p79_p3), %v230_v2  ;;  %233 = vst [vmem:[%s2425_s6 + $0xc] sm:$0xf] (%p79_p3), %v232_v3  ;;  %v238_v6 = vld [vmem:[%s2418_s5 + $0x30] sm:$0xf] (%p79_p3) }
  0x19   : > { %235 = vst [vmem:[%s2425_s6 + $0x10] sm:$0xf] %v234_v4  ;;  %v240_v7 = vld [vmem:[%s2418_s5 + $0x38] sm:$0xf]  ;;  %237 = vst [vmem:[%s2425_s6 + $0x14] sm:$0xf] %v236_v5 }
  0x1a   : > { %239 = vst [vmem:[%s2425_s6 + $0x18] sm:$0xf] %v238_v6  ;;  %241 = vst [vmem:[%s2425_s6 + $0x1c] sm:$0xf] %v240_v7  ;;  %v242_v8 = vld [vmem:[%s2418_s5 + $0x40] sm:$0xf] }
  0x1b   : > { %v244_v9 = vld [vmem:[%s2418_s5 + $0x48] sm:$0xf]  ;;  %v246_v10 = vld [vmem:[%s2418_s5 + $0x50] sm:$0xf]  ;;  %243 = vst [vmem:[%s2425_s6 + $0x20] sm:$0xf] %v242_v8 }
  0x1c   : > { %245 = vst [vmem:[%s2425_s6 + $0x24] sm:$0xf] %v244_v9  ;;  %247 = vst [vmem:[%s2425_s6 + $0x28] sm:$0xf] %v246_v10  ;;  %v248_v11 = vld [vmem:[%s2418_s5 + $0x58] sm:$0xf] }
  0x1d   : > { %v250_v12 = vld [vmem:[%s2418_s5 + $0x60] sm:$0xf]  ;;  %v252_v13 = vld [vmem:[%s2418_s5 + $0x68] sm:$0xf]  ;;  %249 = vst [vmem:[%s2425_s6 + $0x2c] sm:$0xf] %v248_v11 }
  0x1e   : > { %251 = vst [vmem:[%s2425_s6 + $0x30] sm:$0xf] %v250_v12  ;;  %253 = vst [vmem:[%s2425_s6 + $0x34] sm:$0xf] %v252_v13  ;;  %v254_v14 = vld [vmem:[%s2418_s5 + $0x70] sm:$0xf] }
  0x1f   : > { %v256_v15 = vld [vmem:[%s2418_s5 + $0x78] sm:$0xf]  ;;  %v258_v16 = vld [vmem:[%s2418_s5 + $0x80] sm:$0xf]  ;;  %255 = vst [vmem:[%s2425_s6 + $0x38] sm:$0xf] %v254_v14 }
  0x20   : > { %257 = vst [vmem:[%s2425_s6 + $0x3c] sm:$0xf] %v256_v15  ;;  %259 = vst [vmem:[%s2425_s6 + $0x40] sm:$0xf] %v258_v16  ;;  %v260_v17 = vld [vmem:[%s2418_s5 + $0x88] sm:$0xf] }
  0x21   : > { %v262_v18 = vld [vmem:[%s2418_s5 + $0x90] sm:$0xf]  ;;  %v264_v19 = vld [vmem:[%s2418_s5 + $0x98] sm:$0xf]  ;;  %261 = vst [vmem:[%s2425_s6 + $0x44] sm:$0xf] %v260_v17 }
  0x22   : > { %263 = vst [vmem:[%s2425_s6 + $0x48] sm:$0xf] %v262_v18  ;;  %265 = vst [vmem:[%s2425_s6 + $0x4c] sm:$0xf] %v264_v19  ;;  %v266_v20 = vld [vmem:[%s2418_s5 + $0xa0] sm:$0xf] }
  0x23   : > { %v268_v21 = vld [vmem:[%s2418_s5 + $0xa8] sm:$0xf]  ;;  %v270_v22 = vld [vmem:[%s2418_s5 + $0xb0] sm:$0xf]  ;;  %267 = vst [vmem:[%s2425_s6 + $0x50] sm:$0xf] %v266_v20 }
  0x24   : > { %269 = vst [vmem:[%s2425_s6 + $0x54] sm:$0xf] %v268_v21  ;;  %271 = vst [vmem:[%s2425_s6 + $0x58] sm:$0xf] %v270_v22  ;;  %v272_v23 = vld [vmem:[%s2418_s5 + $0xb8] sm:$0xf] }
  0x25   : > { %v274_v24 = vld [vmem:[%s2418_s5 + $0xc0] sm:$0xf]  ;;  %v276_v25 = vld [vmem:[%s2418_s5 + $0xc8] sm:$0xf]  ;;  %273 = vst [vmem:[%s2425_s6 + $0x5c] sm:$0xf] %v272_v23 }
  0x26   : > { %275 = vst [vmem:[%s2425_s6 + $0x60] sm:$0xf] %v274_v24  ;;  %277 = vst [vmem:[%s2425_s6 + $0x64] sm:$0xf] %v276_v25  ;;  %v278_v26 = vld [vmem:[%s2418_s5 + $0xd0] sm:$0xf] }
  0x27   : > { %v280_v27 = vld [vmem:[%s2418_s5 + $0xd8] sm:$0xf]  ;;  %v282_v28 = vld [vmem:[%s2418_s5 + $0xe0] sm:$0xf]  ;;  %279 = vst [vmem:[%s2425_s6 + $0x68] sm:$0xf] %v278_v26 }
  0x28   : > { %281 = vst [vmem:[%s2425_s6 + $0x6c] sm:$0xf] %v280_v27  ;;  %283 = vst [vmem:[%s2425_s6 + $0x70] sm:$0xf] %v282_v28  ;;  %v284_v29 = vld [vmem:[%s2418_s5 + $0xe8] sm:$0xf] }
  0x29   : > { %v286_v30 = vld [vmem:[%s2418_s5 + $0xf0] sm:$0xf]  ;;  %v288_v31 = vld [vmem:[%s2418_s5 + $0xf8] sm:$0xf]  ;;  %285 = vst [vmem:[%s2425_s6 + $0x74] sm:$0xf] %v284_v29 }
  0x2a   : > { %287 = vst [vmem:[%s2425_s6 + $0x78] sm:$0xf] %v286_v30  ;;  %289 = vst [vmem:[%s2425_s6 + $0x7c] sm:$0xf] %v288_v31  ;;  %v290_v32 = vld [vmem:[%s2418_s5 + $0x100] sm:$0xf] }
  0x2b   : > { %v292_v33 = vld [vmem:[%s2418_s5 + $0x108] sm:$0xf]  ;;  %v294_v34 = vld [vmem:[%s2418_s5 + $0x110] sm:$0xf]  ;;  %291 = vst [vmem:[%s2425_s6 + $0x80] sm:$0xf] %v290_v32 }
  0x2c   : > { %293 = vst [vmem:[%s2425_s6 + $0x84] sm:$0xf] %v292_v33  ;;  %295 = vst [vmem:[%s2425_s6 + $0x88] sm:$0xf] %v294_v34  ;;  %v296_v35 = vld [vmem:[%s2418_s5 + $0x118] sm:$0xf] }
  0x2d   : > { %v298_v36 = vld [vmem:[%s2418_s5 + $0x120] sm:$0xf]  ;;  %v300_v37 = vld [vmem:[%s2418_s5 + $0x128] sm:$0xf]  ;;  %297 = vst [vmem:[%s2425_s6 + $0x8c] sm:$0xf] %v296_v35 }
  0x2e   : > { %299 = vst [vmem:[%s2425_s6 + $0x90] sm:$0xf] %v298_v36  ;;  %301 = vst [vmem:[%s2425_s6 + $0x94] sm:$0xf] %v300_v37  ;;  %v302_v38 = vld [vmem:[%s2418_s5 + $0x130] sm:$0xf] }
  0x2f   : > { %v304_v39 = vld [vmem:[%s2418_s5 + $0x138] sm:$0xf]  ;;  %v306_v40 = vld [vmem:[%s2418_s5 + $0x140] sm:$0xf]  ;;  %303 = vst [vmem:[%s2425_s6 + $0x98] sm:$0xf] %v302_v38 }
  0x30   : > { %305 = vst [vmem:[%s2425_s6 + $0x9c] sm:$0xf] %v304_v39  ;;  %307 = vst [vmem:[%s2425_s6 + $0xa0] sm:$0xf] %v306_v40  ;;  %v308_v41 = vld [vmem:[%s2418_s5 + $0x148] sm:$0xf] }
  0x31   : > { %v310_v42 = vld [vmem:[%s2418_s5 + $0x150] sm:$0xf]  ;;  %v312_v43 = vld [vmem:[%s2418_s5 + $0x158] sm:$0xf]  ;;  %309 = vst [vmem:[%s2425_s6 + $0xa4] sm:$0xf] %v308_v41 }
  0x32   : > { %311 = vst [vmem:[%s2425_s6 + $0xa8] sm:$0xf] %v310_v42  ;;  %313 = vst [vmem:[%s2425_s6 + $0xac] sm:$0xf] %v312_v43  ;;  %v314_v44 = vld [vmem:[%s2418_s5 + $0x160] sm:$0xf] }
  0x33   : > { %v316_v45 = vld [vmem:[%s2418_s5 + $0x168] sm:$0xf]  ;;  %v318_v46 = vld [vmem:[%s2418_s5 + $0x170] sm:$0xf]  ;;  %315 = vst [vmem:[%s2425_s6 + $0xb0] sm:$0xf] %v314_v44 }
  0x34   : > { %317 = vst [vmem:[%s2425_s6 + $0xb4] sm:$0xf] %v316_v45  ;;  %319 = vst [vmem:[%s2425_s6 + $0xb8] sm:$0xf] %v318_v46  ;;  %v320_v47 = vld [vmem:[%s2418_s5 + $0x178] sm:$0xf] }
  0x35   : > { %v322_v48 = vld [vmem:[%s2418_s5 + $0x180] sm:$0xf]  ;;  %v324_v49 = vld [vmem:[%s2418_s5 + $0x188] sm:$0xf]  ;;  %321 = vst [vmem:[%s2425_s6 + $0xbc] sm:$0xf] %v320_v47 }
  0x36   : > { %323 = vst [vmem:[%s2425_s6 + $0xc0] sm:$0xf] %v322_v48  ;;  %325 = vst [vmem:[%s2425_s6 + $0xc4] sm:$0xf] %v324_v49  ;;  %v326_v50 = vld [vmem:[%s2418_s5 + $0x190] sm:$0xf] }
  0x37   : > { %v328_v51 = vld [vmem:[%s2418_s5 + $0x198] sm:$0xf]  ;;  %v330_v52 = vld [vmem:[%s2418_s5 + $0x1a0] sm:$0xf]  ;;  %327 = vst [vmem:[%s2425_s6 + $0xc8] sm:$0xf] %v326_v50 }
  0x38   : > { %329 = vst [vmem:[%s2425_s6 + $0xcc] sm:$0xf] %v328_v51  ;;  %331 = vst [vmem:[%s2425_s6 + $0xd0] sm:$0xf] %v330_v52  ;;  %v332_v53 = vld [vmem:[%s2418_s5 + $0x1a8] sm:$0xf] }
  0x39   : > { %v334_v54 = vld [vmem:[%s2418_s5 + $0x1b0] sm:$0xf]  ;;  %v336_v55 = vld [vmem:[%s2418_s5 + $0x1b8] sm:$0xf]  ;;  %333 = vst [vmem:[%s2425_s6 + $0xd4] sm:$0xf] %v332_v53 }
  0x3a   : > { %335 = vst [vmem:[%s2425_s6 + $0xd8] sm:$0xf] %v334_v54  ;;  %337 = vst [vmem:[%s2425_s6 + $0xdc] sm:$0xf] %v336_v55  ;;  %v338_v56 = vld [vmem:[%s2418_s5 + $0x1c0] sm:$0xf] }
  0x3b   : > { %v340_v57 = vld [vmem:[%s2418_s5 + $0x1c8] sm:$0xf]  ;;  %v342_v58 = vld [vmem:[%s2418_s5 + $0x1d0] sm:$0xf]  ;;  %339 = vst [vmem:[%s2425_s6 + $0xe0] sm:$0xf] %v338_v56 }
  0x3c   : > { %341 = vst [vmem:[%s2425_s6 + $0xe4] sm:$0xf] %v340_v57  ;;  %343 = vst [vmem:[%s2425_s6 + $0xe8] sm:$0xf] %v342_v58  ;;  %v344_v59 = vld [vmem:[%s2418_s5 + $0x1d8] sm:$0xf] }
  0x3d   : > { %v346_v60 = vld [vmem:[%s2418_s5 + $0x1e0] sm:$0xf]  ;;  %v348_v61 = vld [vmem:[%s2418_s5 + $0x1e8] sm:$0xf]  ;;  %345 = vst [vmem:[%s2425_s6 + $0xec] sm:$0xf] %v344_v59 }
  0x3e   : > { %347 = vst [vmem:[%s2425_s6 + $0xf0] sm:$0xf] %v346_v60  ;;  %349 = vst [vmem:[%s2425_s6 + $0xf4] sm:$0xf] %v348_v61  ;;  %v350_v62 = vld [vmem:[%s2418_s5 + $0x1f0] sm:$0xf] }
  0x3f   : > { %v352_v63 = vld [vmem:[%s2418_s5 + $0x1f8] sm:$0xf]  ;;  %v354_v0 = vld [vmem:[%s2418_s5 + $0x200] sm:$0xf]  ;;  %351 = vst [vmem:[%s2425_s6 + $0xf8] sm:$0xf] %v350_v62 }
  0x40   : > { %353 = vst [vmem:[%s2425_s6 + $0xfc] sm:$0xf] %v352_v63  ;;  %355 = vst [vmem:[%s2425_s6 + $0x100] sm:$0xf] %v354_v0  ;;  %v356_v1 = vld [vmem:[%s2418_s5 + $0x208] sm:$0xf] }
  0x41   : > { %v358_v2 = vld [vmem:[%s2418_s5 + $0x210] sm:$0xf]  ;;  %v360_v3 = vld [vmem:[%s2418_s5 + $0x218] sm:$0xf]  ;;  %357 = vst [vmem:[%s2425_s6 + $0x104] sm:$0xf] %v356_v1 }
  0x42   : > { %359 = vst [vmem:[%s2425_s6 + $0x108] sm:$0xf] %v358_v2  ;;  %361 = vst [vmem:[%s2425_s6 + $0x10c] sm:$0xf] %v360_v3  ;;  %v362_v4 = vld [vmem:[%s2418_s5 + $0x220] sm:$0xf] }
  0x43   : > { %v364_v5 = vld [vmem:[%s2418_s5 + $0x228] sm:$0xf]  ;;  %v366_v6 = vld [vmem:[%s2418_s5 + $0x230] sm:$0xf]  ;;  %363 = vst [vmem:[%s2425_s6 + $0x110] sm:$0xf] %v362_v4 }
  0x44   : > { %365 = vst [vmem:[%s2425_s6 + $0x114] sm:$0xf] %v364_v5  ;;  %367 = vst [vmem:[%s2425_s6 + $0x118] sm:$0xf] %v366_v6  ;;  %v368_v7 = vld [vmem:[%s2418_s5 + $0x238] sm:$0xf] }
  0x45   : > { %v370_v8 = vld [vmem:[%s2418_s5 + $0x240] sm:$0xf]  ;;  %v372_v9 = vld [vmem:[%s2418_s5 + $0x248] sm:$0xf]  ;;  %369 = vst [vmem:[%s2425_s6 + $0x11c] sm:$0xf] %v368_v7 }
  0x46   : > { %371 = vst [vmem:[%s2425_s6 + $0x120] sm:$0xf] %v370_v8  ;;  %373 = vst [vmem:[%s2425_s6 + $0x124] sm:$0xf] %v372_v9  ;;  %v374_v10 = vld [vmem:[%s2418_s5 + $0x250] sm:$0xf] }
  0x47   : > { %v376_v11 = vld [vmem:[%s2418_s5 + $0x258] sm:$0xf]  ;;  %v378_v12 = vld [vmem:[%s2418_s5 + $0x260] sm:$0xf]  ;;  %375 = vst [vmem:[%s2425_s6 + $0x128] sm:$0xf] %v374_v10 }
  0x48   : > { %377 = vst [vmem:[%s2425_s6 + $0x12c] sm:$0xf] %v376_v11  ;;  %379 = vst [vmem:[%s2425_s6 + $0x130] sm:$0xf] %v378_v12  ;;  %v380_v13 = vld [vmem:[%s2418_s5 + $0x268] sm:$0xf] }
  0x49   : > { %v382_v14 = vld [vmem:[%s2418_s5 + $0x270] sm:$0xf]  ;;  %v384_v15 = vld [vmem:[%s2418_s5 + $0x278] sm:$0xf]  ;;  %381 = vst [vmem:[%s2425_s6 + $0x134] sm:$0xf] %v380_v13 }
  0x4a   : > { %383 = vst [vmem:[%s2425_s6 + $0x138] sm:$0xf] %v382_v14  ;;  %385 = vst [vmem:[%s2425_s6 + $0x13c] sm:$0xf] %v384_v15  ;;  %v386_v16 = vld [vmem:[%s2418_s5 + $0x280] sm:$0xf] }
  0x4b   : > { %v388_v17 = vld [vmem:[%s2418_s5 + $0x288] sm:$0xf]  ;;  %v390_v18 = vld [vmem:[%s2418_s5 + $0x290] sm:$0xf]  ;;  %387 = vst [vmem:[%s2425_s6 + $0x140] sm:$0xf] %v386_v16 }
  0x4c   : > { %389 = vst [vmem:[%s2425_s6 + $0x144] sm:$0xf] %v388_v17  ;;  %391 = vst [vmem:[%s2425_s6 + $0x148] sm:$0xf] %v390_v18  ;;  %v392_v19 = vld [vmem:[%s2418_s5 + $0x298] sm:$0xf] }
  0x4d   : > { %v394_v20 = vld [vmem:[%s2418_s5 + $0x2a0] sm:$0xf]  ;;  %v396_v21 = vld [vmem:[%s2418_s5 + $0x2a8] sm:$0xf]  ;;  %393 = vst [vmem:[%s2425_s6 + $0x14c] sm:$0xf] %v392_v19 }
  0x4e   : > { %395 = vst [vmem:[%s2425_s6 + $0x150] sm:$0xf] %v394_v20  ;;  %397 = vst [vmem:[%s2425_s6 + $0x154] sm:$0xf] %v396_v21  ;;  %v398_v22 = vld [vmem:[%s2418_s5 + $0x2b0] sm:$0xf] }
  0x4f   : > { %v400_v23 = vld [vmem:[%s2418_s5 + $0x2b8] sm:$0xf]  ;;  %v402_v24 = vld [vmem:[%s2418_s5 + $0x2c0] sm:$0xf]  ;;  %399 = vst [vmem:[%s2425_s6 + $0x158] sm:$0xf] %v398_v22 }
  0x50   : > { %401 = vst [vmem:[%s2425_s6 + $0x15c] sm:$0xf] %v400_v23  ;;  %403 = vst [vmem:[%s2425_s6 + $0x160] sm:$0xf] %v402_v24  ;;  %v404_v25 = vld [vmem:[%s2418_s5 + $0x2c8] sm:$0xf] }
  0x51   : > { %v406_v26 = vld [vmem:[%s2418_s5 + $0x2d0] sm:$0xf]  ;;  %v408_v27 = vld [vmem:[%s2418_s5 + $0x2d8] sm:$0xf]  ;;  %405 = vst [vmem:[%s2425_s6 + $0x164] sm:$0xf] %v404_v25 }
  0x52   : > { %407 = vst [vmem:[%s2425_s6 + $0x168] sm:$0xf] %v406_v26  ;;  %409 = vst [vmem:[%s2425_s6 + $0x16c] sm:$0xf] %v408_v27  ;;  %v410_v28 = vld [vmem:[%s2418_s5 + $0x2e0] sm:$0xf] }
  0x53   : > { %v412_v29 = vld [vmem:[%s2418_s5 + $0x2e8] sm:$0xf]  ;;  %v414_v30 = vld [vmem:[%s2418_s5 + $0x2f0] sm:$0xf]  ;;  %411 = vst [vmem:[%s2425_s6 + $0x170] sm:$0xf] %v410_v28 }
  0x54   : > { %413 = vst [vmem:[%s2425_s6 + $0x174] sm:$0xf] %v412_v29  ;;  %415 = vst [vmem:[%s2425_s6 + $0x178] sm:$0xf] %v414_v30  ;;  %v416_v31 = vld [vmem:[%s2418_s5 + $0x2f8] sm:$0xf] }
  0x55   : > { %v418_v32 = vld [vmem:[%s2418_s5 + $0x300] sm:$0xf]  ;;  %v420_v33 = vld [vmem:[%s2418_s5 + $0x308] sm:$0xf]  ;;  %417 = vst [vmem:[%s2425_s6 + $0x17c] sm:$0xf] %v416_v31 }
  0x56   : > { %419 = vst [vmem:[%s2425_s6 + $0x180] sm:$0xf] %v418_v32  ;;  %421 = vst [vmem:[%s2425_s6 + $0x184] sm:$0xf] %v420_v33  ;;  %v422_v34 = vld [vmem:[%s2418_s5 + $0x310] sm:$0xf] }
  0x57   : > { %v424_v35 = vld [vmem:[%s2418_s5 + $0x318] sm:$0xf]  ;;  %v426_v36 = vld [vmem:[%s2418_s5 + $0x320] sm:$0xf]  ;;  %423 = vst [vmem:[%s2425_s6 + $0x188] sm:$0xf] %v422_v34 }
  0x58   : > { %425 = vst [vmem:[%s2425_s6 + $0x18c] sm:$0xf] %v424_v35  ;;  %427 = vst [vmem:[%s2425_s6 + $0x190] sm:$0xf] %v426_v36  ;;  %v428_v37 = vld [vmem:[%s2418_s5 + $0x328] sm:$0xf] }
  0x59   : > { %v430_v38 = vld [vmem:[%s2418_s5 + $0x330] sm:$0xf]  ;;  %v432_v39 = vld [vmem:[%s2418_s5 + $0x338] sm:$0xf]  ;;  %429 = vst [vmem:[%s2425_s6 + $0x194] sm:$0xf] %v428_v37 }
  0x5a   : > { %431 = vst [vmem:[%s2425_s6 + $0x198] sm:$0xf] %v430_v38  ;;  %433 = vst [vmem:[%s2425_s6 + $0x19c] sm:$0xf] %v432_v39  ;;  %v434_v40 = vld [vmem:[%s2418_s5 + $0x340] sm:$0xf] }
  0x5b   : > { %v436_v41 = vld [vmem:[%s2418_s5 + $0x348] sm:$0xf]  ;;  %v438_v42 = vld [vmem:[%s2418_s5 + $0x350] sm:$0xf]  ;;  %435 = vst [vmem:[%s2425_s6 + $0x1a0] sm:$0xf] %v434_v40 }
  0x5c   : > { %437 = vst [vmem:[%s2425_s6 + $0x1a4] sm:$0xf] %v436_v41  ;;  %439 = vst [vmem:[%s2425_s6 + $0x1a8] sm:$0xf] %v438_v42  ;;  %v440_v43 = vld [vmem:[%s2418_s5 + $0x358] sm:$0xf] }
  0x5d   : > { %v442_v44 = vld [vmem:[%s2418_s5 + $0x360] sm:$0xf]  ;;  %v444_v45 = vld [vmem:[%s2418_s5 + $0x368] sm:$0xf]  ;;  %441 = vst [vmem:[%s2425_s6 + $0x1ac] sm:$0xf] %v440_v43 }
  0x5e   : > { %443 = vst [vmem:[%s2425_s6 + $0x1b0] sm:$0xf] %v442_v44  ;;  %445 = vst [vmem:[%s2425_s6 + $0x1b4] sm:$0xf] %v444_v45  ;;  %v446_v46 = vld [vmem:[%s2418_s5 + $0x370] sm:$0xf] }
  0x5f   : > { %v448_v47 = vld [vmem:[%s2418_s5 + $0x378] sm:$0xf]  ;;  %v450_v48 = vld [vmem:[%s2418_s5 + $0x380] sm:$0xf]  ;;  %447 = vst [vmem:[%s2425_s6 + $0x1b8] sm:$0xf] %v446_v46 }
  0x60   : > { %449 = vst [vmem:[%s2425_s6 + $0x1bc] sm:$0xf] %v448_v47  ;;  %451 = vst [vmem:[%s2425_s6 + $0x1c0] sm:$0xf] %v450_v48  ;;  %v452_v49 = vld [vmem:[%s2418_s5 + $0x388] sm:$0xf] }
  0x61   : > { %v454_v50 = vld [vmem:[%s2418_s5 + $0x390] sm:$0xf]  ;;  %v456_v51 = vld [vmem:[%s2418_s5 + $0x398] sm:$0xf]  ;;  %453 = vst [vmem:[%s2425_s6 + $0x1c4] sm:$0xf] %v452_v49 }
  0x62   : > { %455 = vst [vmem:[%s2425_s6 + $0x1c8] sm:$0xf] %v454_v50  ;;  %457 = vst [vmem:[%s2425_s6 + $0x1cc] sm:$0xf] %v456_v51  ;;  %v458_v52 = vld [vmem:[%s2418_s5 + $0x3a0] sm:$0xf] }
  0x63   : > { %v460_v53 = vld [vmem:[%s2418_s5 + $0x3a8] sm:$0xf]  ;;  %v462_v54 = vld [vmem:[%s2418_s5 + $0x3b0] sm:$0xf]  ;;  %459 = vst [vmem:[%s2425_s6 + $0x1d0] sm:$0xf] %v458_v52 }
  0x64   : > { %461 = vst [vmem:[%s2425_s6 + $0x1d4] sm:$0xf] %v460_v53  ;;  %463 = vst [vmem:[%s2425_s6 + $0x1d8] sm:$0xf] %v462_v54  ;;  %v464_v55 = vld [vmem:[%s2418_s5 + $0x3b8] sm:$0xf] }
  0x65   : > { %v466_v56 = vld [vmem:[%s2418_s5 + $0x3c0] sm:$0xf]  ;;  %v468_v57 = vld [vmem:[%s2418_s5 + $0x3c8] sm:$0xf]  ;;  %465 = vst [vmem:[%s2425_s6 + $0x1dc] sm:$0xf] %v464_v55 }
  0x66   : > { %467 = vst [vmem:[%s2425_s6 + $0x1e0] sm:$0xf] %v466_v56  ;;  %469 = vst [vmem:[%s2425_s6 + $0x1e4] sm:$0xf] %v468_v57  ;;  %v470_v58 = vld [vmem:[%s2418_s5 + $0x3d0] sm:$0xf] }
  0x67   : > { %v472_v59 = vld [vmem:[%s2418_s5 + $0x3d8] sm:$0xf]  ;;  %v474_v60 = vld [vmem:[%s2418_s5 + $0x3e0] sm:$0xf]  ;;  %471 = vst [vmem:[%s2425_s6 + $0x1e8] sm:$0xf] %v470_v58 }
  0x68   : > { %473 = vst [vmem:[%s2425_s6 + $0x1ec] sm:$0xf] %v472_v59  ;;  %475 = vst [vmem:[%s2425_s6 + $0x1f0] sm:$0xf] %v474_v60  ;;  %v476_v61 = vld [vmem:[%s2418_s5 + $0x3e8] sm:$0xf] }
  0x69   : > { %v478_v62 = vld [vmem:[%s2418_s5 + $0x3f0] sm:$0xf]  ;;  %v480_v63 = vld [vmem:[%s2418_s5 + $0x3f8] sm:$0xf]  ;;  %477 = vst [vmem:[%s2425_s6 + $0x1f4] sm:$0xf] %v476_v61 }
  0x6a   : > { %479 = vst [vmem:[%s2425_s6 + $0x1f8] sm:$0xf] %v478_v62  ;;  %481 = vst [vmem:[%s2425_s6 + $0x1fc] sm:$0xf] %v480_v63  ;;  %v482_v0 = vld [vmem:[%s2418_s5 + $0x400] sm:$0xf] }
  0x6b   : > { %v484_v1 = vld [vmem:[%s2418_s5 + $0x408] sm:$0xf]  ;;  %v486_v2 = vld [vmem:[%s2418_s5 + $0x410] sm:$0xf]  ;;  %483 = vst [vmem:[%s2425_s6 + $0x200] sm:$0xf] %v482_v0 }
  0x6c   : > { %485 = vst [vmem:[%s2425_s6 + $0x204] sm:$0xf] %v484_v1  ;;  %487 = vst [vmem:[%s2425_s6 + $0x208] sm:$0xf] %v486_v2  ;;  %v488_v3 = vld [vmem:[%s2418_s5 + $0x418] sm:$0xf] }
  0x6d   : > { %v490_v4 = vld [vmem:[%s2418_s5 + $0x420] sm:$0xf]  ;;  %v492_v5 = vld [vmem:[%s2418_s5 + $0x428] sm:$0xf]  ;;  %489 = vst [vmem:[%s2425_s6 + $0x20c] sm:$0xf] %v488_v3 }
  0x6e   : > { %491 = vst [vmem:[%s2425_s6 + $0x210] sm:$0xf] %v490_v4  ;;  %493 = vst [vmem:[%s2425_s6 + $0x214] sm:$0xf] %v492_v5  ;;  %v494_v6 = vld [vmem:[%s2418_s5 + $0x430] sm:$0xf] }
  0x6f   : > { %v496_v7 = vld [vmem:[%s2418_s5 + $0x438] sm:$0xf]  ;;  %v498_v8 = vld [vmem:[%s2418_s5 + $0x440] sm:$0xf]  ;;  %495 = vst [vmem:[%s2425_s6 + $0x218] sm:$0xf] %v494_v6 }
  0x70   : > { %497 = vst [vmem:[%s2425_s6 + $0x21c] sm:$0xf] %v496_v7  ;;  %499 = vst [vmem:[%s2425_s6 + $0x220] sm:$0xf] %v498_v8  ;;  %v500_v9 = vld [vmem:[%s2418_s5 + $0x448] sm:$0xf] }
  0x71   : > { %v502_v10 = vld [vmem:[%s2418_s5 + $0x450] sm:$0xf]  ;;  %v504_v11 = vld [vmem:[%s2418_s5 + $0x458] sm:$0xf]  ;;  %501 = vst [vmem:[%s2425_s6 + $0x224] sm:$0xf] %v500_v9 }
  0x72   : > { %503 = vst [vmem:[%s2425_s6 + $0x228] sm:$0xf] %v502_v10  ;;  %505 = vst [vmem:[%s2425_s6 + $0x22c] sm:$0xf] %v504_v11  ;;  %v506_v12 = vld [vmem:[%s2418_s5 + $0x460] sm:$0xf] }
  0x73   : > { %v508_v13 = vld [vmem:[%s2418_s5 + $0x468] sm:$0xf]  ;;  %v510_v14 = vld [vmem:[%s2418_s5 + $0x470] sm:$0xf]  ;;  %507 = vst [vmem:[%s2425_s6 + $0x230] sm:$0xf] %v506_v12 }
  0x74   : > { %509 = vst [vmem:[%s2425_s6 + $0x234] sm:$0xf] %v508_v13  ;;  %511 = vst [vmem:[%s2425_s6 + $0x238] sm:$0xf] %v510_v14  ;;  %v512_v15 = vld [vmem:[%s2418_s5 + $0x478] sm:$0xf] }
  0x75   : > { %513 = vst [vmem:[%s2425_s6 + $0x23c] sm:$0xf] %v512_v15 }
  0x76 PF: > { %p1959_p8 = scmp.ge.s32.totalorder %s2341_s19, 1  ;;  %p835_p9 = scmp.lt.s32.totalorder %s2341_s19, 3 }
  0x78   : > { %p836_p10 = pnand %p1959_p8, %p835_p9 }
  0x79   : > { %s842_s7 = sand.u32 (!%p836_p10), 1, %s2325_s15   ;;  %v2252_v16 = vld [vmem:[%s2847_s0 + $0x4] ss:$36 sps:$4 sm:$0xff] (!%p836_p10)   ;;  %v2255_v17 = vld [vmem:[%s2847_s0 + $0xc] ss:$36 sps:$4 sm:$0xff] (!%p836_p10)   ;;  %vm2344_vm0 = vmmov (!%p836_p10), 0  }
  0x7a   : > { %839 = sbr.rel (%p836_p10) target bundleno = 457 (0x1c9), region = 73  ;;  %1575 = vmatprep.mubr.bf16.mxu0 (!%p836_p10), %v2252_v16  ;;  %1616 = vmatprep.mubr.bf16.mxu1 (!%p836_p10), %v2255_v17  ;;  %v2250_v48 = vld [vmem:[%s2847_s0] ss:$36 sps:$4 sm:$0xff] (!%p836_p10)   ;;  %v2253_v50 = vld [vmem:[%s2847_s0 + $0x8] ss:$36 sps:$4 sm:$0xff] (!%p836_p10)   ;;  %p895_p11 = scmp.lt.s32.totalorder (!%p836_p10), %s2333_s17, 1 }
  0x7b   : > { %s2175_s8 = smul.u32 (!%p836_p10), 576, %s842_s7  ;;  %v2289_v52 = vld [vmem:[%s2847_s0 + $0x14] ss:$36 sps:$4 sm:$0xff] (!%p836_p10)   ;;  %s1960_s26 = sshll.u32 (!%p836_p10), %s842_s7, 3 }
  0x7c   : > { %s881_s27 = scalar_lea.vmem (!%p836_p10), [#allocation4], %s1960_s26 }
  0x7d   : > { %s2721_s13 = scalar_lea.vmem (!%p836_p10), [#allocation3], %s2175_s8 }
  0x7e   : > { %v2218_v18 = vld [vmem:[%s2721_s13 + $0x40] sm:$0xff] (!%p836_p10)   ;;  %v2222_v22 = vld [vmem:[%s2721_s13 + $0x48] sm:$0xff] (!%p836_p10)   ;;  %v2226_v26 = vld [vmem:[%s2721_s13 + $0x50] sm:$0xff] (!%p836_p10)  }
  0x7f   : > { %v2219_v19 = vld [vmem:[%s2721_s13 + $0xc0] sm:$0xff] (!%p836_p10)   ;;  %2057 = vmatprep.subr.bf16.mxu0 (!%p836_p10), %v2218_v18  ;;  %v2223_v23 = vld [vmem:[%s2721_s13 + $0xc8] sm:$0xff] (!%p836_p10)   ;;  %v2227_v27 = vld [vmem:[%s2721_s13 + $0xd0] sm:$0xff] (!%p836_p10)  }
  0x80   : > { %v2220_v20 = vld [vmem:[%s2721_s13] sm:$0xff] (!%p836_p10)   ;;  %2079 = vmatprep.subr.bf16.mxu1 (!%p836_p10), %v2219_v19  ;;  %v2224_v24 = vld [vmem:[%s2721_s13 + $0x8] sm:$0xff] (!%p836_p10)   ;;  %v2228_v28 = vld [vmem:[%s2721_s13 + $0x10] sm:$0xff] (!%p836_p10)  }
  0x81   : > { %v2221_v21 = vld [vmem:[%s2721_s13 + $0x80] sm:$0xff]   ;;  %2058 = vmatpush3.bf16.msra.mxu0 %v2220_v20  ;;  %v2225_v25 = vld [vmem:[%s2721_s13 + $0x88] sm:$0xff]   ;;  %v2229_v29 = vld [vmem:[%s2721_s13 + $0x90] sm:$0xff]   ;;  %s896_s11 = scalar_select %p895_p11, %s2333_s17, 1 }
  0x82   : > { %2080 = vmatpush3.bf16.msra.mxu1 %v2221_v21  ;;  %2059 = vmatprep.subr.bf16.mxu0 %v2222_v22  ;;  %v2230_v30 = vld [vmem:[%s2721_s13 + $0x58] sm:$0xff]   ;;  %v2234_v34 = vld [vmem:[%s2721_s13 + $0x60] sm:$0xff]   ;;  %v2238_v38 = vld [vmem:[%s2721_s13 + $0x68] sm:$0xff]   ;;  %s2047_s28 = sshll.u32 (%p2405_p6), %s2333_s17, 2 }
  0x83   : > { %2081 = vmatprep.subr.bf16.mxu1 %v2223_v23  ;;  %v2231_v31 = vld [vmem:[%s2721_s13 + $0xd8] sm:$0xff]   ;;  %v2235_v35 = vld [vmem:[%s2721_s13 + $0xe0] sm:$0xff]   ;;  %v2239_v39 = vld [vmem:[%s2721_s13 + $0xe8] sm:$0xff]   ;;  %v2343_v23 = vmov 0.0   ;;  %s897_s14 = scalar_lea.vmem %s2849_s2, %s896_s11  ;;  %s900_s23 = scalar_lea.vmem %s2850_s3, %s896_s11 }
  0x84   : > { %v2232_v32 = vld [vmem:[%s2721_s13 + $0x18] sm:$0xff]   ;;  %v2236_v36 = vld [vmem:[%s2721_s13 + $0x20] sm:$0xff]   ;;  %v2240_v40 = vld [vmem:[%s2721_s13 + $0x28] sm:$0xff]   ;;  %s1798_s5 = scalar_lea.vmem (%p2405_p6), %s2851_s4, %s2047_s28 }
  0x85   : > { %2060 = vmatpush3.bf16.msra.mxu0 %v2224_v24  ;;  %v2233_v33 = vld [vmem:[%s2721_s13 + $0x98] sm:$0xff]   ;;  %v2237_v37 = vld [vmem:[%s2721_s13 + $0xa0] sm:$0xff]   ;;  %v2241_v41 = vld [vmem:[%s2721_s13 + $0xa8] sm:$0xff]  }
  0x86   : > { %2082 = vmatpush3.bf16.msra.mxu1 %v2225_v25  ;;  %2061 = vmatprep.subr.bf16.mxu0 %v2226_v26  ;;  %v2242_v42 = vld [vmem:[%s2721_s13 + $0x70] sm:$0xff]   ;;  %v2246_v46 = vld [vmem:[%s2721_s13 + $0x78] sm:$0xff]   ;;  %v2256_v53 = vld [vmem:[%s2721_s13 + $0x140] sm:$0xff]  }
  0x87   : > { %2083 = vmatprep.subr.bf16.mxu1 %v2227_v27  ;;  %v2243_v43 = vld [vmem:[%s2721_s13 + $0xf0] sm:$0xff]   ;;  %v2247_v47 = vld [vmem:[%s2721_s13 + $0xf8] sm:$0xff]   ;;  %v2257_v54 = vld [vmem:[%s2721_s13 + $0x100] sm:$0xff]  }
  0x88   : > { %v2244_v44 = vld [vmem:[%s2721_s13 + $0x30] sm:$0xff]   ;;  %v2248_v49 = vld [vmem:[%s2721_s13 + $0x38] sm:$0xff]   ;;  %v2258_v55 = vld [vmem:[%s2721_s13 + $0x1c0] sm:$0xff]  }
  0x89   : > { %2062 = vmatpush3.bf16.msra.mxu0 %v2228_v28  ;;  %v2245_v45 = vld [vmem:[%s2721_s13 + $0xb0] sm:$0xff]   ;;  %v2249_v51 = vld [vmem:[%s2721_s13 + $0xb8] sm:$0xff]   ;;  %v2259_v56 = vld [vmem:[%s2721_s13 + $0x180] sm:$0xff]  }
  0x8a   : > { %2084 = vmatpush3.bf16.msra.mxu1 %v2229_v29  ;;  %2063 = vmatprep.subr.bf16.mxu0 %v2230_v30  ;;  %v2260_v57 = vld [vmem:[%s2721_s13 + $0x148] sm:$0xff]   ;;  %v2264_v61 = vld [vmem:[%s2721_s13 + $0x150] sm:$0xff]   ;;  %v2268_v1 = vld [vmem:[%s2721_s13 + $0x158] sm:$0xff]  }
  0x8b   : > { %2085 = vmatprep.subr.bf16.mxu1 %v2231_v31  ;;  %v2261_v58 = vld [vmem:[%s2721_s13 + $0x108] sm:$0xff]   ;;  %v2265_v62 = vld [vmem:[%s2721_s13 + $0x110] sm:$0xff]   ;;  %v2269_v2 = vld [vmem:[%s2721_s13 + $0x118] sm:$0xff]  }
  0x8c   : > { %v2262_v59 = vld [vmem:[%s2721_s13 + $0x1c8] sm:$0xff]   ;;  %v2266_v63 = vld [vmem:[%s2721_s13 + $0x1d0] sm:$0xff]   ;;  %v2270_v3 = vld [vmem:[%s2721_s13 + $0x1d8] sm:$0xff]  }
  0x8d   : > { %2064 = vmatpush3.bf16.msra.mxu0 %v2232_v32  ;;  %v2263_v60 = vld [vmem:[%s2721_s13 + $0x188] sm:$0xff]   ;;  %v2267_v0 = vld [vmem:[%s2721_s13 + $0x190] sm:$0xff]   ;;  %v2271_v4 = vld [vmem:[%s2721_s13 + $0x198] sm:$0xff]  }
  0x8e   : > { %2086 = vmatpush3.bf16.msra.mxu1 %v2233_v33  ;;  %2065 = vmatprep.subr.bf16.mxu0 %v2234_v34  ;;  %v2272_v5 = vld [vmem:[%s2721_s13 + $0x160] sm:$0xff]   ;;  %v2276_v9 = vld [vmem:[%s2721_s13 + $0x168] sm:$0xff]   ;;  %v2280_v13 = vld [vmem:[%s2721_s13 + $0x170] sm:$0xff]  }
  0x8f   : > { %2087 = vmatprep.subr.bf16.mxu1 %v2235_v35  ;;  %v2273_v6 = vld [vmem:[%s2721_s13 + $0x120] sm:$0xff]   ;;  %v2277_v10 = vld [vmem:[%s2721_s13 + $0x128] sm:$0xff]   ;;  %v2281_v14 = vld [vmem:[%s2721_s13 + $0x130] sm:$0xff]  }
  0x90   : > { %v2274_v7 = vld [vmem:[%s2721_s13 + $0x1e0] sm:$0xff]   ;;  %v2278_v11 = vld [vmem:[%s2721_s13 + $0x1e8] sm:$0xff]   ;;  %v2282_v15 = vld [vmem:[%s2721_s13 + $0x1f0] sm:$0xff]  }
  0x91   : > { %2066 = vmatpush3.bf16.msra.mxu0 %v2236_v36  ;;  %v2275_v8 = vld [vmem:[%s2721_s13 + $0x1a0] sm:$0xff]   ;;  %v2279_v12 = vld [vmem:[%s2721_s13 + $0x1a8] sm:$0xff]   ;;  %v2283_v16 = vld [vmem:[%s2721_s13 + $0x1b0] sm:$0xff]  }
  0x92   : > { %2088 = vmatpush3.bf16.msra.mxu1 %v2237_v37  ;;  %2067 = vmatprep.subr.bf16.mxu0 %v2238_v38  ;;  %v2284_v17 = vld [vmem:[%s2721_s13 + $0x178] sm:$0xff]   ;;  %v2287_v19 = vld [vmem:[%s2847_s0 + $0x10] ss:$36 sps:$4 sm:$0xff]   ;;  %v2294_v25 = vld [vmem:[%s2721_s13 + $0x200] sm:$0xff]  }
  0x93   : > { %2089 = vmatprep.subr.bf16.mxu1 %v2239_v39  ;;  %v2285_v18 = vld [vmem:[%s2721_s13 + $0x138] sm:$0xff]   ;;  %v2295_v26 = vld [vmem:[%s2721_s13 + $0x208] sm:$0xff]   ;;  %v2296_v27 = vld [vmem:[%s2721_s13 + $0x210] sm:$0xff]  }
  0x94   : > { %v2286_v20 = vld [vmem:[%s2721_s13 + $0x1f8] sm:$0xff]   ;;  %v2298_v29 = vld [vmem:[%s2721_s13 + $0x220] sm:$0xff]   ;;  %v2299_v30 = vld [vmem:[%s2721_s13 + $0x228] sm:$0xff]  }
  0x95   : > { %2068 = vmatpush3.bf16.msra.mxu0 %v2240_v40  ;;  %v2290_v21 = vld [vmem:[%s2721_s13 + $0x1b8] sm:$0xff]   ;;  %v2300_v31 = vld [vmem:[%s2721_s13 + $0x230] sm:$0xff]   ;;  %v2302_v33 = vld [vmem:[%s2847_s0 + $0x20] ss:$36 sps:$4 sm:$0xff]  }
  0x96   : > { %2090 = vmatpush3.bf16.msra.mxu1 %v2241_v41  ;;  %2069 = vmatprep.subr.bf16.mxu0 %v2242_v42  ;;  %v2291_v22 = vld [vmem:[%s2847_s0 + $0x18] ss:$36 sps:$4 sm:$0xff]  }
  0x97   : > { %2091 = vmatprep.subr.bf16.mxu1 %v2243_v43  ;;  %v2293_v24 = vld [vmem:[%s2847_s0 + $0x1c] ss:$36 sps:$4 sm:$0xff]  }
  0x98   : > { %v2297_v28 = vld [vmem:[%s2721_s13 + $0x218] sm:$0xff]  }
  0x99   : > { %2070 = vmatpush3.bf16.msra.mxu0 %v2244_v44  ;;  %v2301_v32 = vld [vmem:[%s2721_s13 + $0x238] sm:$0xff]  }
  0x9a   : > { %2092 = vmatpush3.bf16.msra.mxu1 %v2245_v45  ;;  %2071 = vmatprep.subr.bf16.mxu0 %v2246_v46 }
  0x9b   : > { %2093 = vmatprep.subr.bf16.mxu1 %v2247_v47 }
  0x9d   : > { %2072 = vmatpush3.bf16.msra.mxu0 %v2248_v49 }
  0x9e   : > { %2094 = vmatpush3.bf16.msra.mxu1 %v2249_v51  ;;  %2101 = vmatprep.subr.bf16.mxu0 %v2256_v53 }
  0x9f   : > { %2123 = vmatprep.subr.bf16.mxu1 %v2258_v55 }
  0xa0   : > { %1576 = vmatmul.mubr.bf16.vlgmr.msra.gmra.mrb[0].mxu0 %v2250_v48 }
  0xa1   : > { %1617 = vmatmul.mubr.bf16.vlgmr.msra.gmra.mrb[0].mxu1 %v2253_v50  ;;  %2102 = vmatpush3.bf16.msra.mxu0 %v2257_v54 }
  0xa2   : > { %1657 = vmatprep.mubr.bf16.mxu0 %v2289_v52  ;;  %2124 = vmatpush3.bf16.msra.mxu1 %v2259_v56 }
  0xa3   : > { %2103 = vmatprep.subr.bf16.mxu0 %v2260_v57  ;;  %2125 = vmatprep.subr.bf16.mxu1 %v2262_v59 }
  0xa4   : > { %1698 = vmatprep.mubr.bf16.mxu1 %v2293_v24 }
  0xa5   : > { %2104 = vmatpush3.bf16.msra.mxu0 %v2261_v58 }
  0xa6   : > { %2126 = vmatpush3.bf16.msra.mxu1 %v2263_v60  ;;  %2105 = vmatprep.subr.bf16.mxu0 %v2264_v61 }
  0xa7   : > { %2127 = vmatprep.subr.bf16.mxu1 %v2266_v63 }
  0xa9   : > { %2106 = vmatpush3.bf16.msra.mxu0 %v2265_v62 }
  0xaa   : > { %2128 = vmatpush3.bf16.msra.mxu1 %v2267_v0  ;;  %2107 = vmatprep.subr.bf16.mxu0 %v2268_v1  ;;  %v2042_v1 = vld [vmem:[%s897_s14] ss:$0 sm:$0xff] }
  0xab   : > { %2129 = vmatprep.subr.bf16.mxu1 %v2270_v3 }
  0xad   : > { %2108 = vmatpush3.bf16.msra.mxu0 %v2269_v2 }
  0xae   : > { %2130 = vmatpush3.bf16.msra.mxu1 %v2271_v4  ;;  %2109 = vmatprep.subr.bf16.mxu0 %v2272_v5  ;;  %v2043_v4 = vld [vmem:[%s900_s23] ss:$0 sm:$0xff] }
  0xaf   : > { %2131 = vmatprep.subr.bf16.mxu1 %v2274_v7 }
  0xb1   : > { %2110 = vmatpush3.bf16.msra.mxu0 %v2273_v6 }
  0xb2   : > { %2132 = vmatpush3.bf16.msra.mxu1 %v2275_v8  ;;  %2111 = vmatprep.subr.bf16.mxu0 %v2276_v9 }
  0xb3   : > { %2133 = vmatprep.subr.bf16.mxu1 %v2278_v11 }
  0xb5   : > { %2112 = vmatpush3.bf16.msra.mxu0 %v2277_v10 }
  0xb6   : > { %2134 = vmatpush3.bf16.msra.mxu1 %v2279_v12  ;;  %2113 = vmatprep.subr.bf16.mxu0 %v2280_v13 }
  0xb7   : > { %2135 = vmatprep.subr.bf16.mxu1 %v2282_v15 }
  0xb9   : > { %2114 = vmatpush3.bf16.msra.mxu0 %v2281_v14 }
  0xba   : > { %2136 = vmatpush3.bf16.msra.mxu1 %v2283_v16  ;;  %2115 = vmatprep.subr.bf16.mxu0 %v2284_v17 }
  0xbb   : > { %2137 = vmatprep.subr.bf16.mxu1 %v2286_v20 }
  0xbd   : > { %2116 = vmatpush3.bf16.msra.mxu0 %v2285_v18 }
  0xbe   : > { %2154 = vmatprep.subr.bf16.mxu0 %v2343_v23  ;;  %2138 = vmatpush3.bf16.msra.mxu1 %v2290_v21 }
  0xc0   : > { %1658 = vmatmul.mubr.bf16.vlgmr.msra.gmra.mrb[4].mxu0 %v2287_v19 }
  0xc1   : > { %2155 = vmatpush3.bf16.msra.mxu0 %v2294_v25  ;;  %2170 = vmatprep.mubr.msk.bf16.mxu0 %vm2344_vm0, %v2343_v23 }
  0xc2   : > { %1699 = vmatmul.mubr.bf16.vlgmr.msra.gmra.mrb[4].mxu1 %v2291_v22  ;;  %2156 = vmatprep.subr.bf16.mxu0 %v2343_v23 }
  0xc5   : > { %2157 = vmatpush3.bf16.msra.mxu0 %v2295_v26 }
  0xc6   : > { %2158 = vmatprep.subr.bf16.mxu0 %v2343_v23 }
  0xc9   : > { %2159 = vmatpush3.bf16.msra.mxu0 %v2296_v27 }
  0xca   : > { %2160 = vmatprep.subr.bf16.mxu0 %v2343_v23 }
  0xcd   : > { %2161 = vmatpush3.bf16.msra.mxu0 %v2297_v28 }
  0xce   : > { %2162 = vmatprep.subr.bf16.mxu0 %v2343_v23 }
  0xd1   : > { %2163 = vmatpush3.bf16.msra.mxu0 %v2298_v29 }
  0xd2   : > { %2164 = vmatprep.subr.bf16.mxu0 %v2343_v23 }
  0xd5   : > { %2165 = vmatpush3.bf16.msra.mxu0 %v2299_v30 }
  0xd6   : > { %2166 = vmatprep.subr.bf16.mxu0 %v2343_v23 }
  0xd9   : > { %2167 = vmatpush3.bf16.msra.mxu0 %v2300_v31 }
  0xda   : > { %2168 = vmatprep.subr.bf16.mxu0 %v2343_v23 }
  0xdd   : > { %2169 = vmatpush3.bf16.msra.mxu0 %v2301_v32 }
  0xe0   : > { %2171 = vmatmul.mubr.bf16.vlgmr.msra.gmra.mrb[8].mxu0 %v2302_v33 }
 0x173   : > { %v2073_v34 = vpop.f32.mrb[0].mxu0 }
 0x174   : > { %v2095_v35 = vpop.f32.mrb[0].mxu1  ;;  %v2074_v36 = vpop.f32.mrb[1].mxu0 }
 0x175   : > { %v2075_v37 = vadd.f32 %v2074_v36, %v2073_v34  ;;  %v2096_v38 = vpop.f32.mrb[1].mxu1  ;;  %v2076_v39 = vpop.f32.mrb[2].mxu0 }
 0x176   : > { %v2097_v40 = vadd.f32 %v2096_v38, %v2095_v35  ;;  %v2098_v41 = vpop.f32.mrb[2].mxu1  ;;  %v2077_v42 = vpop.f32.mrb[3].mxu0 }
 0x177   : > { %v2078_v43 = vadd.f32 %v2077_v42, %v2076_v39  ;;  %v2099_v44 = vpop.f32.mrb[3].mxu1 }
 0x178   : > { %v1619_v45 = vadd.f32 %v2097_v40, %v2075_v37  ;;  %v2100_v46 = vadd.f32 %v2099_v44, %v2098_v41 }
 0x17a   : > { %v1622_v47 = vadd.f32 %v2100_v46, %v2078_v43 }
 0x193   : > { %v2117_v48 = vpop.f32.mrb[4].mxu0 }
 0x194   : > { %v2118_v49 = vpop.f32.mrb[5].mxu0 }
 0x195   : > { %v2119_v50 = vadd.f32 %v2118_v49, %v2117_v48  ;;  %v2120_v51 = vpop.f32.mrb[6].mxu0  ;;  %v2139_v52 = vpop.f32.mrb[4].mxu1 }
 0x196   : > { %v2121_v53 = vpop.f32.mrb[7].mxu0  ;;  %v2140_v54 = vpop.f32.mrb[5].mxu1 }
 0x197   : > { %v1660_v55 = vadd.f32 %v2119_v50, %v1619_v45  ;;  %v2122_v56 = vadd.f32 %v2121_v53, %v2120_v51  ;;  %v2141_v57 = vadd.f32 %v2140_v54, %v2139_v52  ;;  %v2142_v58 = vpop.f32.mrb[6].mxu1 }
 0x198   : > { %v2143_v59 = vpop.f32.mrb[7].mxu1 }
 0x199   : > { %v1663_v60 = vadd.f32 %v2122_v56, %v1622_v47  ;;  %v2144_v61 = vadd.f32 %v2143_v59, %v2142_v58  ;;  %v1701_v62 = vadd.f32 %v2141_v57, %v1660_v55 }
 0x19b   : > { %v1704_v63 = vadd.f32 %v2144_v61, %v1663_v60 }
 0x1b3   : > { %v1741_v0 = vpop.f32.mrb[8].mxu0 }
 0x1b4   : > { %v1742_v2 = vadd.f32 %v1741_v0, %v1701_v62  ;;  %v2172_v3 = vpop.f32.mrb[9].mxu0 }
 0x1b5   : > { %v1744_v5 = vpop.f32.mrb[10].mxu0 }
 0x1b6   : > { %v1764_v6 = vmul.f32 %v2042_v1, %v1742_v2  ;;  %v1745_v7 = vadd.f32 %v1744_v5, %v1704_v63  ;;  %v2173_v8 = vpop.f32.mrb[11].mxu0 }
 0x1b8   : > { %v1773_v9 = vadd.f32 %v2043_v4, %v1764_v6  ;;  %v1765_v10 = vmul.f32 %v2042_v1, %v1745_v7 }
 0x1ba   : > { %v1774_v11 = vadd.f32 %v2043_v4, %v1765_v10  ;;  %v1775_v12 = vmax.f32 %v1773_v9, 0.0  ;;  %1793 = sbr.rel (!%p2405_p6) target bundleno = 457 (0x1c9), region = 89 }
 0x1bc   : > { %v1776_v13 = vmax.f32 %v1774_v11, 0.0 }
 0x1be   : > { %v2055_v14 = vpack.c.bf16 %v1776_v13, %v1775_v12 }
 0x1c0   : > { %2056 = vst [vmem:[%s881_s27] sm:$0xff] %v2055_v14  }
 0x1c7   : > { %v1814_v15 = vld [vmem:[%s881_s27] sm:$0xf]  ;;  %v1816_v16 = vld [vmem:[%s881_s27 + $0x4] sm:$0xf] }
 0x1c8   : > { %1815 = vst [vmem:[%s1798_s5] sm:$0xf] %v1814_v15  ;;  %1817 = vst [vmem:[%s1798_s5 + $0x8] sm:$0xf] %v1816_v16 }
 0x1c9 PF: > { %s14_s19 = sadd.s32 1, %s2341_s19   ;;  %s2853_s15 = smov %s2329_s16 }
 0x1ca   : > { %p11_p12 = scmp.ge.s32.totalorder %s14_s19, 4   ;;  %s2854_s16 = smov %s2410_s25 }
 0x1cb   : > { %s2855_s17 = smov %s2337_s18  ;;  %s2856_s18 = smov %s2858_s20 }
 0x1cc   :  { %13 = sbr.rel (!%p11_p12) target bundleno = 3 (0x3), region = 170 }

// kernel: _lambda_.28
= control target key start
LH: loop header
LB: loop body
LE: loop exit
PB: predicated region body
PF: predicated region fallthrough
CT: control target
= control target key end

     0   :  { %s885_s15 = smov 0   ;;  %s887_s16 = smov 0   ;;  %s990_s0 = inlined_call_operand.vmem [shape: bf16[16,128], index: 0, kind: input, shape index: {}]   ;;  %s991_s1 = inlined_call_operand.vmem [shape: bf16[128,256], index: 1, kind: input, shape index: {}]   ;;  %s992_s2 = inlined_call_operand.vmem [shape: f32[1,256], index: 2, kind: input, shape index: {}]   ;;  %s993_s3 = inlined_call_operand.vmem [shape: f32[1,256], index: 3, kind: input, shape index: {}]   ;;  %s994_s4 = inlined_call_operand.vmem [shape: bf16[16,256], index: 4, kind: output, shape index: {}]  }
   0x1   :  { %s889_s17 = smov 0   ;;  %s891_s18 = smov 0  }
   0x2   :  { %s893_s19 = smov 0  }
   0x3 LB: > { %s29_s20 = sadd.s32 1, %s852_s18  ;;  %s704_s21 = sadd.s32 4294967295, %s856_s19   ;;  %s856_s19 = sphi %s893_s19, %s14_s19   ;;  %s852_s18 = sphi %s891_s18, %s999_s18   ;;  %s848_s17 = sphi %s889_s17, %s998_s17   ;;  %s844_s16 = sphi %s887_s16, %s997_s16   ;;  %s840_s15 = sphi %s885_s15, %s996_s15  }
   0x4   : > { %p31_p0 = scmp.ge.s32.totalorder %s29_s20, 2  ;;  %p77_p1 = scmp.ne.s32.totalorder %s844_s16, %s840_s15 }
   0x5   : > { %p78_p2 = scmp.eq.s32.totalorder %s856_s19, 0  ;;  %p161_p4 = scmp.eq.s32.totalorder %s704_s21, 1 }
   0x6   : > { %s1001_s20 = smov (%p31_p0, %s29_s20), 0  ;;  %s70_s23 = sadd.s32 1, %s844_s16 }
   0x7   : > { %p79_p3 = por %p78_p2, %p77_p1  ;;  %s66_s22 = ssub.s32 %s852_s18, %s1001_s20 }
   0x8   : > { %p68_p5 = scmp.eq.s32.totalorder %s66_s22, 0  ;;  %p920_p6 = por %p161_p4, %p77_p1 }
   0x9   : > { %p708_p7 = scmp.ge.s32.totalorder %s856_s19, 2 }
   0xa   : > { %s925_s25 = scalar_select %p68_p5, %s844_s16, %s70_s23  }
   0xb   : > { %195 = sbr.rel (%p708_p7) target bundleno = 32 (0x20), region = 20 }
  0x12   : > { %198 = sbr.rel (!%p79_p3) target bundleno = 32 (0x20), region = 24  ;;  %s200_s26 = sand.u32 (%p79_p3), 1, %s844_s16  }
  0x13   : > { %s710_s27 = sshll.u32 (%p79_p3), %s852_s18, 2  ;;  %s709_s28 = sshll.u32 (%p79_p3), %s200_s26, 6 }
  0x14   : > { %s933_s5 = scalar_lea.vmem (%p79_p3), %s991_s1, %s710_s27  ;;  %s202_s6 = scalar_lea.vmem (%p79_p3), [#allocation3], %s709_s28 }
  0x15   : > { %v223_v0 = vld [vmem:[%s933_s5] sm:$0xf] (%p79_p3)  ;;  %v225_v1 = vld [vmem:[%s933_s5 + $0x8] sm:$0xf] (%p79_p3)  ;;  %v227_v2 = vld [vmem:[%s933_s5 + $0x10] sm:$0xf] (%p79_p3) }
  0x16   : > { %224 = vst [vmem:[%s202_s6] sm:$0xf] (%p79_p3), %v223_v0  ;;  %226 = vst [vmem:[%s202_s6 + $0x4] sm:$0xf] (%p79_p3), %v225_v1  ;;  %v229_v3 = vld [vmem:[%s933_s5 + $0x18] sm:$0xf] (%p79_p3) }
  0x17   : > { %v231_v4 = vld [vmem:[%s933_s5 + $0x20] sm:$0xf] (%p79_p3)  ;;  %228 = vst [vmem:[%s202_s6 + $0x8] sm:$0xf] (%p79_p3), %v227_v2  ;;  %230 = vst [vmem:[%s202_s6 + $0xc] sm:$0xf] (%p79_p3), %v229_v3 }
  0x18   : > { %232 = vst [vmem:[%s202_s6 + $0x10] sm:$0xf] (%p79_p3), %v231_v4  ;;  %v233_v5 = vld [vmem:[%s933_s5 + $0x28] sm:$0xf] (%p79_p3)  ;;  %v235_v6 = vld [vmem:[%s933_s5 + $0x30] sm:$0xf] (%p79_p3) }
  0x19   : > { %v237_v7 = vld [vmem:[%s933_s5 + $0x38] sm:$0xf]  ;;  %234 = vst [vmem:[%s202_s6 + $0x14] sm:$0xf] %v233_v5  ;;  %236 = vst [vmem:[%s202_s6 + $0x18] sm:$0xf] %v235_v6 }
  0x1a   : > { %238 = vst [vmem:[%s202_s6 + $0x1c] sm:$0xf] %v237_v7  ;;  %v239_v8 = vld [vmem:[%s933_s5 + $0x40] sm:$0xf]  ;;  %v241_v9 = vld [vmem:[%s933_s5 + $0x48] sm:$0xf] }
  0x1b   : > { %v243_v10 = vld [vmem:[%s933_s5 + $0x50] sm:$0xf]  ;;  %240 = vst [vmem:[%s202_s6 + $0x20] sm:$0xf] %v239_v8  ;;  %242 = vst [vmem:[%s202_s6 + $0x24] sm:$0xf] %v241_v9 }
  0x1c   : > { %244 = vst [vmem:[%s202_s6 + $0x28] sm:$0xf] %v243_v10  ;;  %v245_v11 = vld [vmem:[%s933_s5 + $0x58] sm:$0xf]  ;;  %v247_v12 = vld [vmem:[%s933_s5 + $0x60] sm:$0xf] }
  0x1d   : > { %v249_v13 = vld [vmem:[%s933_s5 + $0x68] sm:$0xf]  ;;  %246 = vst [vmem:[%s202_s6 + $0x2c] sm:$0xf] %v245_v11  ;;  %248 = vst [vmem:[%s202_s6 + $0x30] sm:$0xf] %v247_v12 }
  0x1e   : > { %250 = vst [vmem:[%s202_s6 + $0x34] sm:$0xf] %v249_v13  ;;  %v251_v14 = vld [vmem:[%s933_s5 + $0x70] sm:$0xf]  ;;  %v253_v15 = vld [vmem:[%s933_s5 + $0x78] sm:$0xf] }
  0x1f   : > { %252 = vst [vmem:[%s202_s6 + $0x38] sm:$0xf] %v251_v14  ;;  %254 = vst [vmem:[%s202_s6 + $0x3c] sm:$0xf] %v253_v15 }
  0x20 PF: > { %p711_p8 = scmp.ge.s32.totalorder %s856_s19, 1  ;;  %p320_p9 = scmp.lt.s32.totalorder %s856_s19, 3 }
  0x22   : > { %p321_p10 = pnand %p711_p8, %p320_p9 }
  0x23   : > { %s327_s7 = sand.u32 (!%p321_p10), 1, %s840_s15   ;;  %v858_v16 = vmov (!%p321_p10), 0.0   ;;  %vm859_vm0 = vmmov (!%p321_p10), 0   ;;  %v817_v25 = vld [vmem:[%s990_s0] sm:$0xff] (!%p321_p10)   ;;  %p375_p11 = scmp.lt.s32.totalorder (!%p321_p10), %s848_s17, 1 }
  0x24   : > { %324 = sbr.rel (%p321_p10) target bundleno = 299 (0x12b), region = 73  ;;  %747 = vmatprep.subr.bf16.mxu0 (!%p321_p10), %v858_v16  ;;  %s712_s8 = sshll.u32 (!%p321_p10), %s327_s7, 6  ;;  %763 = vmatprep.mubr.msk.bf16.mxu0 (!%p321_p10), %vm859_vm0, %v858_v16 }
  0x25   : > { %s329_s9 = scalar_lea.vmem (!%p321_p10), [#allocation3], %s712_s8  ;;  %s713_s27 = sshll.u32 (!%p321_p10), %s327_s7, 3 }
  0x26   : > { %v809_v17 = vld [vmem:[%s329_s9] sm:$0xff] (!%p321_p10)   ;;  %v810_v18 = vld [vmem:[%s329_s9 + $0x8] sm:$0xff] (!%p321_p10)   ;;  %v811_v19 = vld [vmem:[%s329_s9 + $0x10] sm:$0xff] (!%p321_p10)   ;;  %s364_s28 = scalar_lea.vmem (!%p321_p10), [#allocation4], %s713_s27 }
  0x27   : > { %748 = vmatpush3.bf16.msra.mxu0 (!%p321_p10), %v809_v17  ;;  %v812_v20 = vld [vmem:[%s329_s9 + $0x18] sm:$0xff] (!%p321_p10)   ;;  %v813_v21 = vld [vmem:[%s329_s9 + $0x20] sm:$0xff] (!%p321_p10)   ;;  %v814_v22 = vld [vmem:[%s329_s9 + $0x28] sm:$0xff] (!%p321_p10)  }
  0x28   : > { %749 = vmatprep.subr.bf16.mxu0 (!%p321_p10), %v858_v16  ;;  %v815_v23 = vld [vmem:[%s329_s9 + $0x30] sm:$0xff] (!%p321_p10)   ;;  %v816_v24 = vld [vmem:[%s329_s9 + $0x38] sm:$0xff] (!%p321_p10)  }
  0x2b   : > { %750 = vmatpush3.bf16.msra.mxu0 %v810_v18  ;;  %s376_s12 = scalar_select %p375_p11, %s848_s17, 1 }
  0x2c   : > { %751 = vmatprep.subr.bf16.mxu0 %v858_v16  ;;  %s728_s29 = sshll.u32 (%p920_p6), %s848_s17, 2 }
  0x2d   : > { %s377_s21 = scalar_lea.vmem %s992_s2, %s376_s12  ;;  %s380_s26 = scalar_lea.vmem %s993_s3, %s376_s12 }
  0x2e   : > { %v723_v26 = vld [vmem:[%s377_s21] ss:$0 sm:$0xff]  ;;  %s552_s6 = scalar_lea.vmem (%p920_p6), %s994_s4, %s728_s29 }
  0x2f   : > { %752 = vmatpush3.bf16.msra.mxu0 %v811_v19  ;;  %v724_v30 = vld [vmem:[%s380_s26] ss:$0 sm:$0xff] }
  0x30   : > { %753 = vmatprep.subr.bf16.mxu0 %v858_v16 }
  0x33   : > { %754 = vmatpush3.bf16.msra.mxu0 %v812_v20 }
  0x34   : > { %755 = vmatprep.subr.bf16.mxu0 %v858_v16 }
  0x37   : > { %756 = vmatpush3.bf16.msra.mxu0 %v813_v21 }
  0x38   : > { %757 = vmatprep.subr.bf16.mxu0 %v858_v16 }
  0x3b   : > { %758 = vmatpush3.bf16.msra.mxu0 %v814_v22 }
  0x3c   : > { %759 = vmatprep.subr.bf16.mxu0 %v858_v16 }
  0x3f   : > { %760 = vmatpush3.bf16.msra.mxu0 %v815_v23 }
  0x40   : > { %761 = vmatprep.subr.bf16.mxu0 %v858_v16 }
  0x43   : > { %762 = vmatpush3.bf16.msra.mxu0 %v816_v24 }
  0x46   : > { %764 = vmatmul.mubr.bf16.vlgmr.msra.gmra.mrb[0].mxu0 %v817_v25 }
 0x119   : > { %v497_v27 = vpop.f32.mrb[0].mxu0 }
 0x11a   : > { %v520_v28 = vmul.f32 %v723_v26, %v497_v27  ;;  %v765_v29 = vpop.f32.mrb[1].mxu0 }
 0x11b   : > { %v500_v31 = vpop.f32.mrb[2].mxu0 }
 0x11c   : > { %v521_v32 = vmul.f32 %v723_v26, %v500_v31  ;;  %v766_v33 = vpop.f32.mrb[3].mxu0  ;;  %v529_v34 = vadd.f32 %v724_v30, %v520_v28  ;;  %547 = sbr.rel (!%p920_p6) target bundleno = 299 (0x12b), region = 89 }
 0x11e   : > { %v530_v35 = vadd.f32 %v724_v30, %v521_v32 }
 0x120   : > { %v736_v36 = vpack.c.bf16 %v530_v35, %v529_v34 }
 0x122   : > { %737 = vst [vmem:[%s364_s28] sm:$0xff] %v736_v36  }
 0x129   : > { %v568_v37 = vld [vmem:[%s364_s28] sm:$0xf]  ;;  %v570_v38 = vld [vmem:[%s364_s28 + $0x4] sm:$0xf] }
 0x12a   : > { %569 = vst [vmem:[%s552_s6] sm:$0xf] %v568_v37  ;;  %571 = vst [vmem:[%s552_s6 + $0x8] sm:$0xf] %v570_v38 }
 0x12b PF: > { %s14_s19 = sadd.s32 1, %s856_s19   ;;  %s996_s15 = smov %s844_s16 }
 0x12c   : > { %p11_p12 = scmp.ge.s32.totalorder %s14_s19, 4   ;;  %s997_s16 = smov %s925_s25 }
 0x12d   : > { %s998_s17 = smov %s852_s18  ;;  %s999_s18 = smov %s1001_s20 }
 0x12e   :  { %13 = sbr.rel (!%p11_p12) target bundleno = 3 (0x3), region = 170 }

// kernel: _lambda_.30
= control target key start
LH: loop header
LB: loop body
LE: loop exit
PB: predicated region body
PF: predicated region fallthrough
CT: control target
= control target key end

     0   :  { %s4118_s18 = smov 0   ;;  %s4120_s19 = smov 0   ;;  %s4995_s0 = inlined_call_operand.vmem [shape: bf16[16,2304], index: 0, kind: input, shape index: {}]   ;;  %s4996_s1 = inlined_call_operand.vmem [shape: bf16[2304,256], index: 1, kind: input, shape index: {}]   ;;  %s4997_s2 = inlined_call_operand.vmem [shape: f32[1,256], index: 2, kind: input, shape index: {}]   ;;  %s4998_s3 = inlined_call_operand.vmem [shape: f32[1,256], index: 3, kind: input, shape index: {}]   ;;  %s4999_s4 = inlined_call_operand.vmem [shape: bf16[16,256], index: 4, kind: input, shape index: {}]   ;;  %s5000_s5 = inlined_call_operand.vmem [shape: bf16[16,256], index: 5, kind: output, shape index: {}]  }
   0x1   :  { %s4122_s20 = smov 0   ;;  %s4124_s21 = smov 0  }
   0x2   :  { %s4126_s22 = smov 0  }
   0x3 LB: > { %s30_s23 = sadd.s32 1, %s4082_s21  ;;  %s3445_s24 = sadd.s32 4294967295, %s4086_s22   ;;  %s4086_s22 = sphi %s4126_s22, %s15_s22   ;;  %s4082_s21 = sphi %s4124_s21, %s5006_s21   ;;  %s4078_s20 = sphi %s4122_s20, %s5005_s20   ;;  %s4074_s19 = sphi %s4120_s19, %s5004_s19   ;;  %s4070_s18 = sphi %s4118_s18, %s5003_s18  }
   0x4   : > { %p32_p0 = scmp.ge.s32.totalorder %s30_s23, 2  ;;  %p78_p1 = scmp.ne.s32.totalorder %s4074_s19, %s4070_s18 }
   0x5   : > { %p79_p2 = scmp.eq.s32.totalorder %s4086_s22, 0  ;;  %p190_p4 = scmp.eq.s32.totalorder %s3445_s24, 1 }
   0x6   : > { %s5008_s23 = smov (%p32_p0, %s30_s23), 0  ;;  %s71_s27 = sadd.s32 1, %s4074_s19 }
   0x7   : > { %p4150_p3 = por %p79_p2, %p78_p1  ;;  %s67_s26 = ssub.s32 %s4082_s21, %s5008_s23 }
   0x8   : > { %p69_p5 = scmp.eq.s32.totalorder %s67_s26, 0  ;;  %p4157_p6 = por %p190_p4, %p78_p1 }
   0x9   : > { %p3449_p7 = scmp.ge.s32.totalorder %s4086_s22, 2 }
   0xa   : > { %s4162_s29 = scalar_select %p69_p5, %s4074_s19, %s71_s27  }
   0xb   : > { %227 = sbr.rel (%p3449_p7) target bundleno = 221 (0xdd), region = 20 }
  0x12   : > { %230 = sbr.rel (!%p4150_p3) target bundleno = 214 (0xd6), region = 24  ;;  %s232_s30 = sand.u32 (%p4150_p3), 1, %s4074_s19  }
  0x13   : > { %s3450_s6 = sshll.u32 (%p4150_p3), %s4082_s21, 2  ;;  %s3835_s7 = smul.u32 (%p4150_p3), 1152, %s232_s30 }
  0x14   : > { %s4172_s10 = scalar_lea.vmem (%p4150_p3), %s4996_s1, %s3450_s6 }
  0x15   : > { %v255_v0 = vld [vmem:[%s4172_s10] sm:$0xf] (%p4150_p3)  ;;  %v257_v1 = vld [vmem:[%s4172_s10 + $0x8] sm:$0xf] (%p4150_p3)  ;;  %v259_v2 = vld [vmem:[%s4172_s10 + $0x10] sm:$0xf] (%p4150_p3) }
  0x16   : > { %v261_v3 = vld [vmem:[%s4172_s10 + $0x18] sm:$0xf] (%p4150_p3)  ;;  %v263_v4 = vld [vmem:[%s4172_s10 + $0x20] sm:$0xf] (%p4150_p3)  ;;  %s4179_s11 = scalar_lea.vmem (%p4150_p3), [#allocation3], %s3835_s7 }
  0x17   : > { %256 = vst [vmem:[%s4179_s11] sm:$0xf] (%p4150_p3), %v255_v0  ;;  %258 = vst [vmem:[%s4179_s11 + $0x4] sm:$0xf] (%p4150_p3), %v257_v1  ;;  %v265_v5 = vld [vmem:[%s4172_s10 + $0x28] sm:$0xf] (%p4150_p3) }
  0x18   : > { %260 = vst [vmem:[%s4179_s11 + $0x8] sm:$0xf] (%p4150_p3), %v259_v2  ;;  %262 = vst [vmem:[%s4179_s11 + $0xc] sm:$0xf] (%p4150_p3), %v261_v3  ;;  %v267_v6 = vld [vmem:[%s4172_s10 + $0x30] sm:$0xf] (%p4150_p3) }
  0x19   : > { %264 = vst [vmem:[%s4179_s11 + $0x10] sm:$0xf] %v263_v4  ;;  %v269_v7 = vld [vmem:[%s4172_s10 + $0x38] sm:$0xf]  ;;  %266 = vst [vmem:[%s4179_s11 + $0x14] sm:$0xf] %v265_v5 }
  0x1a   : > { %268 = vst [vmem:[%s4179_s11 + $0x18] sm:$0xf] %v267_v6  ;;  %270 = vst [vmem:[%s4179_s11 + $0x1c] sm:$0xf] %v269_v7  ;;  %v271_v8 = vld [vmem:[%s4172_s10 + $0x40] sm:$0xf] }
  0x1b   : > { %v273_v9 = vld [vmem:[%s4172_s10 + $0x48] sm:$0xf]  ;;  %v275_v10 = vld [vmem:[%s4172_s10 + $0x50] sm:$0xf]  ;;  %272 = vst [vmem:[%s4179_s11 + $0x20] sm:$0xf] %v271_v8 }
  0x1c   : > { %274 = vst [vmem:[%s4179_s11 + $0x24] sm:$0xf] %v273_v9  ;;  %276 = vst [vmem:[%s4179_s11 + $0x28] sm:$0xf] %v275_v10  ;;  %v277_v11 = vld [vmem:[%s4172_s10 + $0x58] sm:$0xf] }
  0x1d   : > { %v279_v12 = vld [vmem:[%s4172_s10 + $0x60] sm:$0xf]  ;;  %v281_v13 = vld [vmem:[%s4172_s10 + $0x68] sm:$0xf]  ;;  %278 = vst [vmem:[%s4179_s11 + $0x2c] sm:$0xf] %v277_v11 }
  0x1e   : > { %280 = vst [vmem:[%s4179_s11 + $0x30] sm:$0xf] %v279_v12  ;;  %282 = vst [vmem:[%s4179_s11 + $0x34] sm:$0xf] %v281_v13  ;;  %v283_v14 = vld [vmem:[%s4172_s10 + $0x70] sm:$0xf] }
  0x1f   : > { %v285_v15 = vld [vmem:[%s4172_s10 + $0x78] sm:$0xf]  ;;  %v287_v16 = vld [vmem:[%s4172_s10 + $0x80] sm:$0xf]  ;;  %284 = vst [vmem:[%s4179_s11 + $0x38] sm:$0xf] %v283_v14 }
  0x20   : > { %286 = vst [vmem:[%s4179_s11 + $0x3c] sm:$0xf] %v285_v15  ;;  %288 = vst [vmem:[%s4179_s11 + $0x40] sm:$0xf] %v287_v16  ;;  %v289_v17 = vld [vmem:[%s4172_s10 + $0x88] sm:$0xf] }
  0x21   : > { %v291_v18 = vld [vmem:[%s4172_s10 + $0x90] sm:$0xf]  ;;  %v293_v19 = vld [vmem:[%s4172_s10 + $0x98] sm:$0xf]  ;;  %290 = vst [vmem:[%s4179_s11 + $0x44] sm:$0xf] %v289_v17 }
  0x22   : > { %292 = vst [vmem:[%s4179_s11 + $0x48] sm:$0xf] %v291_v18  ;;  %294 = vst [vmem:[%s4179_s11 + $0x4c] sm:$0xf] %v293_v19  ;;  %v295_v20 = vld [vmem:[%s4172_s10 + $0xa0] sm:$0xf] }
  0x23   : > { %v297_v21 = vld [vmem:[%s4172_s10 + $0xa8] sm:$0xf]  ;;  %v299_v22 = vld [vmem:[%s4172_s10 + $0xb0] sm:$0xf]  ;;  %296 = vst [vmem:[%s4179_s11 + $0x50] sm:$0xf] %v295_v20 }
  0x24   : > { %298 = vst [vmem:[%s4179_s11 + $0x54] sm:$0xf] %v297_v21  ;;  %300 = vst [vmem:[%s4179_s11 + $0x58] sm:$0xf] %v299_v22  ;;  %v301_v23 = vld [vmem:[%s4172_s10 + $0xb8] sm:$0xf] }
  0x25   : > { %v303_v24 = vld [vmem:[%s4172_s10 + $0xc0] sm:$0xf]  ;;  %v305_v25 = vld [vmem:[%s4172_s10 + $0xc8] sm:$0xf]  ;;  %302 = vst [vmem:[%s4179_s11 + $0x5c] sm:$0xf] %v301_v23 }
  0x26   : > { %304 = vst [vmem:[%s4179_s11 + $0x60] sm:$0xf] %v303_v24  ;;  %306 = vst [vmem:[%s4179_s11 + $0x64] sm:$0xf] %v305_v25  ;;  %v307_v26 = vld [vmem:[%s4172_s10 + $0xd0] sm:$0xf] }
  0x27   : > { %v309_v27 = vld [vmem:[%s4172_s10 + $0xd8] sm:$0xf]  ;;  %v311_v28 = vld [vmem:[%s4172_s10 + $0xe0] sm:$0xf]  ;;  %308 = vst [vmem:[%s4179_s11 + $0x68] sm:$0xf] %v307_v26 }
  0x28   : > { %310 = vst [vmem:[%s4179_s11 + $0x6c] sm:$0xf] %v309_v27  ;;  %312 = vst [vmem:[%s4179_s11 + $0x70] sm:$0xf] %v311_v28  ;;  %v313_v29 = vld [vmem:[%s4172_s10 + $0xe8] sm:$0xf] }
  0x29   : > { %v315_v30 = vld [vmem:[%s4172_s10 + $0xf0] sm:$0xf]  ;;  %v317_v31 = vld [vmem:[%s4172_s10 + $0xf8] sm:$0xf]  ;;  %314 = vst [vmem:[%s4179_s11 + $0x74] sm:$0xf] %v313_v29 }
  0x2a   : > { %316 = vst [vmem:[%s4179_s11 + $0x78] sm:$0xf] %v315_v30  ;;  %318 = vst [vmem:[%s4179_s11 + $0x7c] sm:$0xf] %v317_v31  ;;  %v319_v32 = vld [vmem:[%s4172_s10 + $0x100] sm:$0xf] }
  0x2b   : > { %v321_v33 = vld [vmem:[%s4172_s10 + $0x108] sm:$0xf]  ;;  %v323_v34 = vld [vmem:[%s4172_s10 + $0x110] sm:$0xf]  ;;  %320 = vst [vmem:[%s4179_s11 + $0x80] sm:$0xf] %v319_v32 }
  0x2c   : > { %322 = vst [vmem:[%s4179_s11 + $0x84] sm:$0xf] %v321_v33  ;;  %324 = vst [vmem:[%s4179_s11 + $0x88] sm:$0xf] %v323_v34  ;;  %v325_v35 = vld [vmem:[%s4172_s10 + $0x118] sm:$0xf] }
  0x2d   : > { %v327_v36 = vld [vmem:[%s4172_s10 + $0x120] sm:$0xf]  ;;  %v329_v37 = vld [vmem:[%s4172_s10 + $0x128] sm:$0xf]  ;;  %326 = vst [vmem:[%s4179_s11 + $0x8c] sm:$0xf] %v325_v35 }
  0x2e   : > { %328 = vst [vmem:[%s4179_s11 + $0x90] sm:$0xf] %v327_v36  ;;  %330 = vst [vmem:[%s4179_s11 + $0x94] sm:$0xf] %v329_v37  ;;  %v331_v38 = vld [vmem:[%s4172_s10 + $0x130] sm:$0xf] }
  0x2f   : > { %v333_v39 = vld [vmem:[%s4172_s10 + $0x138] sm:$0xf]  ;;  %v335_v40 = vld [vmem:[%s4172_s10 + $0x140] sm:$0xf]  ;;  %332 = vst [vmem:[%s4179_s11 + $0x98] sm:$0xf] %v331_v38 }
  0x30   : > { %334 = vst [vmem:[%s4179_s11 + $0x9c] sm:$0xf] %v333_v39  ;;  %336 = vst [vmem:[%s4179_s11 + $0xa0] sm:$0xf] %v335_v40  ;;  %v337_v41 = vld [vmem:[%s4172_s10 + $0x148] sm:$0xf] }
  0x31   : > { %v339_v42 = vld [vmem:[%s4172_s10 + $0x150] sm:$0xf]  ;;  %v341_v43 = vld [vmem:[%s4172_s10 + $0x158] sm:$0xf]  ;;  %338 = vst [vmem:[%s4179_s11 + $0xa4] sm:$0xf] %v337_v41 }
  0x32   : > { %340 = vst [vmem:[%s4179_s11 + $0xa8] sm:$0xf] %v339_v42  ;;  %342 = vst [vmem:[%s4179_s11 + $0xac] sm:$0xf] %v341_v43  ;;  %v343_v44 = vld [vmem:[%s4172_s10 + $0x160] sm:$0xf] }
  0x33   : > { %v345_v45 = vld [vmem:[%s4172_s10 + $0x168] sm:$0xf]  ;;  %v347_v46 = vld [vmem:[%s4172_s10 + $0x170] sm:$0xf]  ;;  %344 = vst [vmem:[%s4179_s11 + $0xb0] sm:$0xf] %v343_v44 }
  0x34   : > { %346 = vst [vmem:[%s4179_s11 + $0xb4] sm:$0xf] %v345_v45  ;;  %348 = vst [vmem:[%s4179_s11 + $0xb8] sm:$0xf] %v347_v46  ;;  %v349_v47 = vld [vmem:[%s4172_s10 + $0x178] sm:$0xf] }
  0x35   : > { %v351_v48 = vld [vmem:[%s4172_s10 + $0x180] sm:$0xf]  ;;  %v353_v49 = vld [vmem:[%s4172_s10 + $0x188] sm:$0xf]  ;;  %350 = vst [vmem:[%s4179_s11 + $0xbc] sm:$0xf] %v349_v47 }
  0x36   : > { %352 = vst [vmem:[%s4179_s11 + $0xc0] sm:$0xf] %v351_v48  ;;  %354 = vst [vmem:[%s4179_s11 + $0xc4] sm:$0xf] %v353_v49  ;;  %v355_v50 = vld [vmem:[%s4172_s10 + $0x190] sm:$0xf] }
  0x37   : > { %v357_v51 = vld [vmem:[%s4172_s10 + $0x198] sm:$0xf]  ;;  %v359_v52 = vld [vmem:[%s4172_s10 + $0x1a0] sm:$0xf]  ;;  %356 = vst [vmem:[%s4179_s11 + $0xc8] sm:$0xf] %v355_v50 }
  0x38   : > { %358 = vst [vmem:[%s4179_s11 + $0xcc] sm:$0xf] %v357_v51  ;;  %360 = vst [vmem:[%s4179_s11 + $0xd0] sm:$0xf] %v359_v52  ;;  %v361_v53 = vld [vmem:[%s4172_s10 + $0x1a8] sm:$0xf] }
  0x39   : > { %v363_v54 = vld [vmem:[%s4172_s10 + $0x1b0] sm:$0xf]  ;;  %v365_v55 = vld [vmem:[%s4172_s10 + $0x1b8] sm:$0xf]  ;;  %362 = vst [vmem:[%s4179_s11 + $0xd4] sm:$0xf] %v361_v53 }
  0x3a   : > { %364 = vst [vmem:[%s4179_s11 + $0xd8] sm:$0xf] %v363_v54  ;;  %366 = vst [vmem:[%s4179_s11 + $0xdc] sm:$0xf] %v365_v55  ;;  %v367_v56 = vld [vmem:[%s4172_s10 + $0x1c0] sm:$0xf] }
  0x3b   : > { %v369_v57 = vld [vmem:[%s4172_s10 + $0x1c8] sm:$0xf]  ;;  %v371_v58 = vld [vmem:[%s4172_s10 + $0x1d0] sm:$0xf]  ;;  %368 = vst [vmem:[%s4179_s11 + $0xe0] sm:$0xf] %v367_v56 }
  0x3c   : > { %370 = vst [vmem:[%s4179_s11 + $0xe4] sm:$0xf] %v369_v57  ;;  %372 = vst [vmem:[%s4179_s11 + $0xe8] sm:$0xf] %v371_v58  ;;  %v373_v59 = vld [vmem:[%s4172_s10 + $0x1d8] sm:$0xf] }
  0x3d   : > { %v375_v60 = vld [vmem:[%s4172_s10 + $0x1e0] sm:$0xf]  ;;  %v377_v61 = vld [vmem:[%s4172_s10 + $0x1e8] sm:$0xf]  ;;  %374 = vst [vmem:[%s4179_s11 + $0xec] sm:$0xf] %v373_v59 }
  0x3e   : > { %376 = vst [vmem:[%s4179_s11 + $0xf0] sm:$0xf] %v375_v60  ;;  %378 = vst [vmem:[%s4179_s11 + $0xf4] sm:$0xf] %v377_v61  ;;  %v379_v62 = vld [vmem:[%s4172_s10 + $0x1f0] sm:$0xf] }
  0x3f   : > { %v381_v63 = vld [vmem:[%s4172_s10 + $0x1f8] sm:$0xf]  ;;  %v383_v0 = vld [vmem:[%s4172_s10 + $0x200] sm:$0xf]  ;;  %380 = vst [vmem:[%s4179_s11 + $0xf8] sm:$0xf] %v379_v62 }
  0x40   : > { %382 = vst [vmem:[%s4179_s11 + $0xfc] sm:$0xf] %v381_v63  ;;  %384 = vst [vmem:[%s4179_s11 + $0x100] sm:$0xf] %v383_v0  ;;  %v385_v1 = vld [vmem:[%s4172_s10 + $0x208] sm:$0xf] }
  0x41   : > { %v387_v2 = vld [vmem:[%s4172_s10 + $0x210] sm:$0xf]  ;;  %v389_v3 = vld [vmem:[%s4172_s10 + $0x218] sm:$0xf]  ;;  %386 = vst [vmem:[%s4179_s11 + $0x104] sm:$0xf] %v385_v1 }
  0x42   : > { %388 = vst [vmem:[%s4179_s11 + $0x108] sm:$0xf] %v387_v2  ;;  %390 = vst [vmem:[%s4179_s11 + $0x10c] sm:$0xf] %v389_v3  ;;  %v391_v4 = vld [vmem:[%s4172_s10 + $0x220] sm:$0xf] }
  0x43   : > { %v393_v5 = vld [vmem:[%s4172_s10 + $0x228] sm:$0xf]  ;;  %v395_v6 = vld [vmem:[%s4172_s10 + $0x230] sm:$0xf]  ;;  %392 = vst [vmem:[%s4179_s11 + $0x110] sm:$0xf] %v391_v4 }
  0x44   : > { %394 = vst [vmem:[%s4179_s11 + $0x114] sm:$0xf] %v393_v5  ;;  %396 = vst [vmem:[%s4179_s11 + $0x118] sm:$0xf] %v395_v6  ;;  %v397_v7 = vld [vmem:[%s4172_s10 + $0x238] sm:$0xf] }
  0x45   : > { %v399_v8 = vld [vmem:[%s4172_s10 + $0x240] sm:$0xf]  ;;  %v401_v9 = vld [vmem:[%s4172_s10 + $0x248] sm:$0xf]  ;;  %398 = vst [vmem:[%s4179_s11 + $0x11c] sm:$0xf] %v397_v7 }
  0x46   : > { %400 = vst [vmem:[%s4179_s11 + $0x120] sm:$0xf] %v399_v8  ;;  %402 = vst [vmem:[%s4179_s11 + $0x124] sm:$0xf] %v401_v9  ;;  %v403_v10 = vld [vmem:[%s4172_s10 + $0x250] sm:$0xf] }
  0x47   : > { %v405_v11 = vld [vmem:[%s4172_s10 + $0x258] sm:$0xf]  ;;  %v407_v12 = vld [vmem:[%s4172_s10 + $0x260] sm:$0xf]  ;;  %404 = vst [vmem:[%s4179_s11 + $0x128] sm:$0xf] %v403_v10 }
  0x48   : > { %406 = vst [vmem:[%s4179_s11 + $0x12c] sm:$0xf] %v405_v11  ;;  %408 = vst [vmem:[%s4179_s11 + $0x130] sm:$0xf] %v407_v12  ;;  %v409_v13 = vld [vmem:[%s4172_s10 + $0x268] sm:$0xf] }
  0x49   : > { %v411_v14 = vld [vmem:[%s4172_s10 + $0x270] sm:$0xf]  ;;  %v413_v15 = vld [vmem:[%s4172_s10 + $0x278] sm:$0xf]  ;;  %410 = vst [vmem:[%s4179_s11 + $0x134] sm:$0xf] %v409_v13 }
  0x4a   : > { %412 = vst [vmem:[%s4179_s11 + $0x138] sm:$0xf] %v411_v14  ;;  %414 = vst [vmem:[%s4179_s11 + $0x13c] sm:$0xf] %v413_v15  ;;  %v415_v16 = vld [vmem:[%s4172_s10 + $0x280] sm:$0xf] }
  0x4b   : > { %v417_v17 = vld [vmem:[%s4172_s10 + $0x288] sm:$0xf]  ;;  %v419_v18 = vld [vmem:[%s4172_s10 + $0x290] sm:$0xf]  ;;  %416 = vst [vmem:[%s4179_s11 + $0x140] sm:$0xf] %v415_v16 }
  0x4c   : > { %418 = vst [vmem:[%s4179_s11 + $0x144] sm:$0xf] %v417_v17  ;;  %420 = vst [vmem:[%s4179_s11 + $0x148] sm:$0xf] %v419_v18  ;;  %v421_v19 = vld [vmem:[%s4172_s10 + $0x298] sm:$0xf] }
  0x4d   : > { %v423_v20 = vld [vmem:[%s4172_s10 + $0x2a0] sm:$0xf]  ;;  %v425_v21 = vld [vmem:[%s4172_s10 + $0x2a8] sm:$0xf]  ;;  %422 = vst [vmem:[%s4179_s11 + $0x14c] sm:$0xf] %v421_v19 }
  0x4e   : > { %424 = vst [vmem:[%s4179_s11 + $0x150] sm:$0xf] %v423_v20  ;;  %426 = vst [vmem:[%s4179_s11 + $0x154] sm:$0xf] %v425_v21  ;;  %v427_v22 = vld [vmem:[%s4172_s10 + $0x2b0] sm:$0xf] }
  0x4f   : > { %v429_v23 = vld [vmem:[%s4172_s10 + $0x2b8] sm:$0xf]  ;;  %v431_v24 = vld [vmem:[%s4172_s10 + $0x2c0] sm:$0xf]  ;;  %428 = vst [vmem:[%s4179_s11 + $0x158] sm:$0xf] %v427_v22 }
  0x50   : > { %430 = vst [vmem:[%s4179_s11 + $0x15c] sm:$0xf] %v429_v23  ;;  %432 = vst [vmem:[%s4179_s11 + $0x160] sm:$0xf] %v431_v24  ;;  %v433_v25 = vld [vmem:[%s4172_s10 + $0x2c8] sm:$0xf] }
  0x51   : > { %v435_v26 = vld [vmem:[%s4172_s10 + $0x2d0] sm:$0xf]  ;;  %v437_v27 = vld [vmem:[%s4172_s10 + $0x2d8] sm:$0xf]  ;;  %434 = vst [vmem:[%s4179_s11 + $0x164] sm:$0xf] %v433_v25 }
  0x52   : > { %436 = vst [vmem:[%s4179_s11 + $0x168] sm:$0xf] %v435_v26  ;;  %438 = vst [vmem:[%s4179_s11 + $0x16c] sm:$0xf] %v437_v27  ;;  %v439_v28 = vld [vmem:[%s4172_s10 + $0x2e0] sm:$0xf] }
  0x53   : > { %v441_v29 = vld [vmem:[%s4172_s10 + $0x2e8] sm:$0xf]  ;;  %v443_v30 = vld [vmem:[%s4172_s10 + $0x2f0] sm:$0xf]  ;;  %440 = vst [vmem:[%s4179_s11 + $0x170] sm:$0xf] %v439_v28 }
  0x54   : > { %442 = vst [vmem:[%s4179_s11 + $0x174] sm:$0xf] %v441_v29  ;;  %444 = vst [vmem:[%s4179_s11 + $0x178] sm:$0xf] %v443_v30  ;;  %v445_v31 = vld [vmem:[%s4172_s10 + $0x2f8] sm:$0xf] }
  0x55   : > { %v447_v32 = vld [vmem:[%s4172_s10 + $0x300] sm:$0xf]  ;;  %v449_v33 = vld [vmem:[%s4172_s10 + $0x308] sm:$0xf]  ;;  %446 = vst [vmem:[%s4179_s11 + $0x17c] sm:$0xf] %v445_v31 }
  0x56   : > { %448 = vst [vmem:[%s4179_s11 + $0x180] sm:$0xf] %v447_v32  ;;  %450 = vst [vmem:[%s4179_s11 + $0x184] sm:$0xf] %v449_v33  ;;  %v451_v34 = vld [vmem:[%s4172_s10 + $0x310] sm:$0xf] }
  0x57   : > { %v453_v35 = vld [vmem:[%s4172_s10 + $0x318] sm:$0xf]  ;;  %v455_v36 = vld [vmem:[%s4172_s10 + $0x320] sm:$0xf]  ;;  %452 = vst [vmem:[%s4179_s11 + $0x188] sm:$0xf] %v451_v34 }
  0x58   : > { %454 = vst [vmem:[%s4179_s11 + $0x18c] sm:$0xf] %v453_v35  ;;  %456 = vst [vmem:[%s4179_s11 + $0x190] sm:$0xf] %v455_v36  ;;  %v457_v37 = vld [vmem:[%s4172_s10 + $0x328] sm:$0xf] }
  0x59   : > { %v459_v38 = vld [vmem:[%s4172_s10 + $0x330] sm:$0xf]  ;;  %v461_v39 = vld [vmem:[%s4172_s10 + $0x338] sm:$0xf]  ;;  %458 = vst [vmem:[%s4179_s11 + $0x194] sm:$0xf] %v457_v37 }
  0x5a   : > { %460 = vst [vmem:[%s4179_s11 + $0x198] sm:$0xf] %v459_v38  ;;  %462 = vst [vmem:[%s4179_s11 + $0x19c] sm:$0xf] %v461_v39  ;;  %v463_v40 = vld [vmem:[%s4172_s10 + $0x340] sm:$0xf] }
  0x5b   : > { %v465_v41 = vld [vmem:[%s4172_s10 + $0x348] sm:$0xf]  ;;  %v467_v42 = vld [vmem:[%s4172_s10 + $0x350] sm:$0xf]  ;;  %464 = vst [vmem:[%s4179_s11 + $0x1a0] sm:$0xf] %v463_v40 }
  0x5c   : > { %466 = vst [vmem:[%s4179_s11 + $0x1a4] sm:$0xf] %v465_v41  ;;  %468 = vst [vmem:[%s4179_s11 + $0x1a8] sm:$0xf] %v467_v42  ;;  %v469_v43 = vld [vmem:[%s4172_s10 + $0x358] sm:$0xf] }
  0x5d   : > { %v471_v44 = vld [vmem:[%s4172_s10 + $0x360] sm:$0xf]  ;;  %v473_v45 = vld [vmem:[%s4172_s10 + $0x368] sm:$0xf]  ;;  %470 = vst [vmem:[%s4179_s11 + $0x1ac] sm:$0xf] %v469_v43 }
  0x5e   : > { %472 = vst [vmem:[%s4179_s11 + $0x1b0] sm:$0xf] %v471_v44  ;;  %474 = vst [vmem:[%s4179_s11 + $0x1b4] sm:$0xf] %v473_v45  ;;  %v475_v46 = vld [vmem:[%s4172_s10 + $0x370] sm:$0xf] }
  0x5f   : > { %v477_v47 = vld [vmem:[%s4172_s10 + $0x378] sm:$0xf]  ;;  %v479_v48 = vld [vmem:[%s4172_s10 + $0x380] sm:$0xf]  ;;  %476 = vst [vmem:[%s4179_s11 + $0x1b8] sm:$0xf] %v475_v46 }
  0x60   : > { %478 = vst [vmem:[%s4179_s11 + $0x1bc] sm:$0xf] %v477_v47  ;;  %480 = vst [vmem:[%s4179_s11 + $0x1c0] sm:$0xf] %v479_v48  ;;  %v481_v49 = vld [vmem:[%s4172_s10 + $0x388] sm:$0xf] }
  0x61   : > { %v483_v50 = vld [vmem:[%s4172_s10 + $0x390] sm:$0xf]  ;;  %v485_v51 = vld [vmem:[%s4172_s10 + $0x398] sm:$0xf]  ;;  %482 = vst [vmem:[%s4179_s11 + $0x1c4] sm:$0xf] %v481_v49 }
  0x62   : > { %484 = vst [vmem:[%s4179_s11 + $0x1c8] sm:$0xf] %v483_v50  ;;  %486 = vst [vmem:[%s4179_s11 + $0x1cc] sm:$0xf] %v485_v51  ;;  %v487_v52 = vld [vmem:[%s4172_s10 + $0x3a0] sm:$0xf] }
  0x63   : > { %v489_v53 = vld [vmem:[%s4172_s10 + $0x3a8] sm:$0xf]  ;;  %v491_v54 = vld [vmem:[%s4172_s10 + $0x3b0] sm:$0xf]  ;;  %488 = vst [vmem:[%s4179_s11 + $0x1d0] sm:$0xf] %v487_v52 }
  0x64   : > { %490 = vst [vmem:[%s4179_s11 + $0x1d4] sm:$0xf] %v489_v53  ;;  %492 = vst [vmem:[%s4179_s11 + $0x1d8] sm:$0xf] %v491_v54  ;;  %v493_v55 = vld [vmem:[%s4172_s10 + $0x3b8] sm:$0xf] }
  0x65   : > { %v495_v56 = vld [vmem:[%s4172_s10 + $0x3c0] sm:$0xf]  ;;  %v497_v57 = vld [vmem:[%s4172_s10 + $0x3c8] sm:$0xf]  ;;  %494 = vst [vmem:[%s4179_s11 + $0x1dc] sm:$0xf] %v493_v55 }
  0x66   : > { %496 = vst [vmem:[%s4179_s11 + $0x1e0] sm:$0xf] %v495_v56  ;;  %498 = vst [vmem:[%s4179_s11 + $0x1e4] sm:$0xf] %v497_v57  ;;  %v499_v58 = vld [vmem:[%s4172_s10 + $0x3d0] sm:$0xf] }
  0x67   : > { %v501_v59 = vld [vmem:[%s4172_s10 + $0x3d8] sm:$0xf]  ;;  %v503_v60 = vld [vmem:[%s4172_s10 + $0x3e0] sm:$0xf]  ;;  %500 = vst [vmem:[%s4179_s11 + $0x1e8] sm:$0xf] %v499_v58 }
  0x68   : > { %502 = vst [vmem:[%s4179_s11 + $0x1ec] sm:$0xf] %v501_v59  ;;  %504 = vst [vmem:[%s4179_s11 + $0x1f0] sm:$0xf] %v503_v60  ;;  %v505_v61 = vld [vmem:[%s4172_s10 + $0x3e8] sm:$0xf] }
  0x69   : > { %v507_v62 = vld [vmem:[%s4172_s10 + $0x3f0] sm:$0xf]  ;;  %v509_v63 = vld [vmem:[%s4172_s10 + $0x3f8] sm:$0xf]  ;;  %506 = vst [vmem:[%s4179_s11 + $0x1f4] sm:$0xf] %v505_v61 }
  0x6a   : > { %508 = vst [vmem:[%s4179_s11 + $0x1f8] sm:$0xf] %v507_v62  ;;  %510 = vst [vmem:[%s4179_s11 + $0x1fc] sm:$0xf] %v509_v63  ;;  %v511_v0 = vld [vmem:[%s4172_s10 + $0x400] sm:$0xf] }
  0x6b   : > { %v513_v1 = vld [vmem:[%s4172_s10 + $0x408] sm:$0xf]  ;;  %v515_v2 = vld [vmem:[%s4172_s10 + $0x410] sm:$0xf]  ;;  %512 = vst [vmem:[%s4179_s11 + $0x200] sm:$0xf] %v511_v0 }
  0x6c   : > { %514 = vst [vmem:[%s4179_s11 + $0x204] sm:$0xf] %v513_v1  ;;  %516 = vst [vmem:[%s4179_s11 + $0x208] sm:$0xf] %v515_v2  ;;  %v517_v3 = vld [vmem:[%s4172_s10 + $0x418] sm:$0xf] }
  0x6d   : > { %v519_v4 = vld [vmem:[%s4172_s10 + $0x420] sm:$0xf]  ;;  %v521_v5 = vld [vmem:[%s4172_s10 + $0x428] sm:$0xf]  ;;  %518 = vst [vmem:[%s4179_s11 + $0x20c] sm:$0xf] %v517_v3 }
  0x6e   : > { %520 = vst [vmem:[%s4179_s11 + $0x210] sm:$0xf] %v519_v4  ;;  %522 = vst [vmem:[%s4179_s11 + $0x214] sm:$0xf] %v521_v5  ;;  %v523_v6 = vld [vmem:[%s4172_s10 + $0x430] sm:$0xf] }
  0x6f   : > { %v525_v7 = vld [vmem:[%s4172_s10 + $0x438] sm:$0xf]  ;;  %v527_v8 = vld [vmem:[%s4172_s10 + $0x440] sm:$0xf]  ;;  %524 = vst [vmem:[%s4179_s11 + $0x218] sm:$0xf] %v523_v6 }
  0x70   : > { %526 = vst [vmem:[%s4179_s11 + $0x21c] sm:$0xf] %v525_v7  ;;  %528 = vst [vmem:[%s4179_s11 + $0x220] sm:$0xf] %v527_v8  ;;  %v529_v9 = vld [vmem:[%s4172_s10 + $0x448] sm:$0xf] }
  0x71   : > { %v531_v10 = vld [vmem:[%s4172_s10 + $0x450] sm:$0xf]  ;;  %v533_v11 = vld [vmem:[%s4172_s10 + $0x458] sm:$0xf]  ;;  %530 = vst [vmem:[%s4179_s11 + $0x224] sm:$0xf] %v529_v9 }
  0x72   : > { %532 = vst [vmem:[%s4179_s11 + $0x228] sm:$0xf] %v531_v10  ;;  %534 = vst [vmem:[%s4179_s11 + $0x22c] sm:$0xf] %v533_v11  ;;  %v535_v12 = vld [vmem:[%s4172_s10 + $0x460] sm:$0xf] }
  0x73   : > { %v537_v13 = vld [vmem:[%s4172_s10 + $0x468] sm:$0xf]  ;;  %v539_v14 = vld [vmem:[%s4172_s10 + $0x470] sm:$0xf]  ;;  %536 = vst [vmem:[%s4179_s11 + $0x230] sm:$0xf] %v535_v12 }
  0x74   : > { %538 = vst [vmem:[%s4179_s11 + $0x234] sm:$0xf] %v537_v13  ;;  %540 = vst [vmem:[%s4179_s11 + $0x238] sm:$0xf] %v539_v14  ;;  %v541_v15 = vld [vmem:[%s4172_s10 + $0x478] sm:$0xf] }
  0x75   : > { %v543_v16 = vld [vmem:[%s4172_s10 + $0x480] sm:$0xf]  ;;  %v545_v17 = vld [vmem:[%s4172_s10 + $0x488] sm:$0xf]  ;;  %542 = vst [vmem:[%s4179_s11 + $0x23c] sm:$0xf] %v541_v15 }
  0x76   : > { %544 = vst [vmem:[%s4179_s11 + $0x240] sm:$0xf] %v543_v16  ;;  %546 = vst [vmem:[%s4179_s11 + $0x244] sm:$0xf] %v545_v17  ;;  %v547_v18 = vld [vmem:[%s4172_s10 + $0x490] sm:$0xf] }
  0x77   : > { %v549_v19 = vld [vmem:[%s4172_s10 + $0x498] sm:$0xf]  ;;  %v551_v20 = vld [vmem:[%s4172_s10 + $0x4a0] sm:$0xf]  ;;  %548 = vst [vmem:[%s4179_s11 + $0x248] sm:$0xf] %v547_v18 }
  0x78   : > { %550 = vst [vmem:[%s4179_s11 + $0x24c] sm:$0xf] %v549_v19  ;;  %552 = vst [vmem:[%s4179_s11 + $0x250] sm:$0xf] %v551_v20  ;;  %v553_v21 = vld [vmem:[%s4172_s10 + $0x4a8] sm:$0xf] }
  0x79   : > { %v555_v22 = vld [vmem:[%s4172_s10 + $0x4b0] sm:$0xf]  ;;  %v557_v23 = vld [vmem:[%s4172_s10 + $0x4b8] sm:$0xf]  ;;  %554 = vst [vmem:[%s4179_s11 + $0x254] sm:$0xf] %v553_v21 }
  0x7a   : > { %556 = vst [vmem:[%s4179_s11 + $0x258] sm:$0xf] %v555_v22  ;;  %558 = vst [vmem:[%s4179_s11 + $0x25c] sm:$0xf] %v557_v23  ;;  %v559_v24 = vld [vmem:[%s4172_s10 + $0x4c0] sm:$0xf] }
  0x7b   : > { %v561_v25 = vld [vmem:[%s4172_s10 + $0x4c8] sm:$0xf]  ;;  %v563_v26 = vld [vmem:[%s4172_s10 + $0x4d0] sm:$0xf]  ;;  %560 = vst [vmem:[%s4179_s11 + $0x260] sm:$0xf] %v559_v24 }
  0x7c   : > { %562 = vst [vmem:[%s4179_s11 + $0x264] sm:$0xf] %v561_v25  ;;  %564 = vst [vmem:[%s4179_s11 + $0x268] sm:$0xf] %v563_v26  ;;  %v565_v27 = vld [vmem:[%s4172_s10 + $0x4d8] sm:$0xf] }
  0x7d   : > { %v567_v28 = vld [vmem:[%s4172_s10 + $0x4e0] sm:$0xf]  ;;  %v569_v29 = vld [vmem:[%s4172_s10 + $0x4e8] sm:$0xf]  ;;  %566 = vst [vmem:[%s4179_s11 + $0x26c] sm:$0xf] %v565_v27 }
  0x7e   : > { %568 = vst [vmem:[%s4179_s11 + $0x270] sm:$0xf] %v567_v28  ;;  %570 = vst [vmem:[%s4179_s11 + $0x274] sm:$0xf] %v569_v29  ;;  %v571_v30 = vld [vmem:[%s4172_s10 + $0x4f0] sm:$0xf] }
  0x7f   : > { %v573_v31 = vld [vmem:[%s4172_s10 + $0x4f8] sm:$0xf]  ;;  %v575_v32 = vld [vmem:[%s4172_s10 + $0x500] sm:$0xf]  ;;  %572 = vst [vmem:[%s4179_s11 + $0x278] sm:$0xf] %v571_v30 }
  0x80   : > { %574 = vst [vmem:[%s4179_s11 + $0x27c] sm:$0xf] %v573_v31  ;;  %576 = vst [vmem:[%s4179_s11 + $0x280] sm:$0xf] %v575_v32  ;;  %v577_v33 = vld [vmem:[%s4172_s10 + $0x508] sm:$0xf] }
  0x81   : > { %v579_v34 = vld [vmem:[%s4172_s10 + $0x510] sm:$0xf]  ;;  %v581_v35 = vld [vmem:[%s4172_s10 + $0x518] sm:$0xf]  ;;  %578 = vst [vmem:[%s4179_s11 + $0x284] sm:$0xf] %v577_v33 }
  0x82   : > { %580 = vst [vmem:[%s4179_s11 + $0x288] sm:$0xf] %v579_v34  ;;  %582 = vst [vmem:[%s4179_s11 + $0x28c] sm:$0xf] %v581_v35  ;;  %v583_v36 = vld [vmem:[%s4172_s10 + $0x520] sm:$0xf] }
  0x83   : > { %v585_v37 = vld [vmem:[%s4172_s10 + $0x528] sm:$0xf]  ;;  %v587_v38 = vld [vmem:[%s4172_s10 + $0x530] sm:$0xf]  ;;  %584 = vst [vmem:[%s4179_s11 + $0x290] sm:$0xf] %v583_v36 }
  0x84   : > { %586 = vst [vmem:[%s4179_s11 + $0x294] sm:$0xf] %v585_v37  ;;  %588 = vst [vmem:[%s4179_s11 + $0x298] sm:$0xf] %v587_v38  ;;  %v589_v39 = vld [vmem:[%s4172_s10 + $0x538] sm:$0xf] }
  0x85   : > { %v591_v40 = vld [vmem:[%s4172_s10 + $0x540] sm:$0xf]  ;;  %v593_v41 = vld [vmem:[%s4172_s10 + $0x548] sm:$0xf]  ;;  %590 = vst [vmem:[%s4179_s11 + $0x29c] sm:$0xf] %v589_v39 }
  0x86   : > { %592 = vst [vmem:[%s4179_s11 + $0x2a0] sm:$0xf] %v591_v40  ;;  %594 = vst [vmem:[%s4179_s11 + $0x2a4] sm:$0xf] %v593_v41  ;;  %v595_v42 = vld [vmem:[%s4172_s10 + $0x550] sm:$0xf] }
  0x87   : > { %v597_v43 = vld [vmem:[%s4172_s10 + $0x558] sm:$0xf]  ;;  %v599_v44 = vld [vmem:[%s4172_s10 + $0x560] sm:$0xf]  ;;  %596 = vst [vmem:[%s4179_s11 + $0x2a8] sm:$0xf] %v595_v42 }
  0x88   : > { %598 = vst [vmem:[%s4179_s11 + $0x2ac] sm:$0xf] %v597_v43  ;;  %600 = vst [vmem:[%s4179_s11 + $0x2b0] sm:$0xf] %v599_v44  ;;  %v601_v45 = vld [vmem:[%s4172_s10 + $0x568] sm:$0xf] }
  0x89   : > { %v603_v46 = vld [vmem:[%s4172_s10 + $0x570] sm:$0xf]  ;;  %v605_v47 = vld [vmem:[%s4172_s10 + $0x578] sm:$0xf]  ;;  %602 = vst [vmem:[%s4179_s11 + $0x2b4] sm:$0xf] %v601_v45 }
  0x8a   : > { %604 = vst [vmem:[%s4179_s11 + $0x2b8] sm:$0xf] %v603_v46  ;;  %606 = vst [vmem:[%s4179_s11 + $0x2bc] sm:$0xf] %v605_v47  ;;  %v607_v48 = vld [vmem:[%s4172_s10 + $0x580] sm:$0xf] }
  0x8b   : > { %v609_v49 = vld [vmem:[%s4172_s10 + $0x588] sm:$0xf]  ;;  %v611_v50 = vld [vmem:[%s4172_s10 + $0x590] sm:$0xf]  ;;  %608 = vst [vmem:[%s4179_s11 + $0x2c0] sm:$0xf] %v607_v48 }
  0x8c   : > { %610 = vst [vmem:[%s4179_s11 + $0x2c4] sm:$0xf] %v609_v49  ;;  %612 = vst [vmem:[%s4179_s11 + $0x2c8] sm:$0xf] %v611_v50  ;;  %v613_v51 = vld [vmem:[%s4172_s10 + $0x598] sm:$0xf] }
  0x8d   : > { %v615_v52 = vld [vmem:[%s4172_s10 + $0x5a0] sm:$0xf]  ;;  %v617_v53 = vld [vmem:[%s4172_s10 + $0x5a8] sm:$0xf]  ;;  %614 = vst [vmem:[%s4179_s11 + $0x2cc] sm:$0xf] %v613_v51 }
  0x8e   : > { %616 = vst [vmem:[%s4179_s11 + $0x2d0] sm:$0xf] %v615_v52  ;;  %618 = vst [vmem:[%s4179_s11 + $0x2d4] sm:$0xf] %v617_v53  ;;  %v619_v54 = vld [vmem:[%s4172_s10 + $0x5b0] sm:$0xf] }
  0x8f   : > { %v621_v55 = vld [vmem:[%s4172_s10 + $0x5b8] sm:$0xf]  ;;  %v623_v56 = vld [vmem:[%s4172_s10 + $0x5c0] sm:$0xf]  ;;  %620 = vst [vmem:[%s4179_s11 + $0x2d8] sm:$0xf] %v619_v54 }
  0x90   : > { %622 = vst [vmem:[%s4179_s11 + $0x2dc] sm:$0xf] %v621_v55  ;;  %624 = vst [vmem:[%s4179_s11 + $0x2e0] sm:$0xf] %v623_v56  ;;  %v625_v57 = vld [vmem:[%s4172_s10 + $0x5c8] sm:$0xf] }
  0x91   : > { %v627_v58 = vld [vmem:[%s4172_s10 + $0x5d0] sm:$0xf]  ;;  %v629_v59 = vld [vmem:[%s4172_s10 + $0x5d8] sm:$0xf]  ;;  %626 = vst [vmem:[%s4179_s11 + $0x2e4] sm:$0xf] %v625_v57 }
  0x92   : > { %628 = vst [vmem:[%s4179_s11 + $0x2e8] sm:$0xf] %v627_v58  ;;  %630 = vst [vmem:[%s4179_s11 + $0x2ec] sm:$0xf] %v629_v59  ;;  %v631_v60 = vld [vmem:[%s4172_s10 + $0x5e0] sm:$0xf] }
  0x93   : > { %v633_v61 = vld [vmem:[%s4172_s10 + $0x5e8] sm:$0xf]  ;;  %v635_v62 = vld [vmem:[%s4172_s10 + $0x5f0] sm:$0xf]  ;;  %632 = vst [vmem:[%s4179_s11 + $0x2f0] sm:$0xf] %v631_v60 }
  0x94   : > { %634 = vst [vmem:[%s4179_s11 + $0x2f4] sm:$0xf] %v633_v61  ;;  %636 = vst [vmem:[%s4179_s11 + $0x2f8] sm:$0xf] %v635_v62  ;;  %v637_v63 = vld [vmem:[%s4172_s10 + $0x5f8] sm:$0xf] }
  0x95   : > { %v639_v0 = vld [vmem:[%s4172_s10 + $0x600] sm:$0xf]  ;;  %v641_v1 = vld [vmem:[%s4172_s10 + $0x608] sm:$0xf]  ;;  %638 = vst [vmem:[%s4179_s11 + $0x2fc] sm:$0xf] %v637_v63 }
  0x96   : > { %640 = vst [vmem:[%s4179_s11 + $0x300] sm:$0xf] %v639_v0  ;;  %642 = vst [vmem:[%s4179_s11 + $0x304] sm:$0xf] %v641_v1  ;;  %v643_v2 = vld [vmem:[%s4172_s10 + $0x610] sm:$0xf] }
  0x97   : > { %v645_v3 = vld [vmem:[%s4172_s10 + $0x618] sm:$0xf]  ;;  %v647_v4 = vld [vmem:[%s4172_s10 + $0x620] sm:$0xf]  ;;  %644 = vst [vmem:[%s4179_s11 + $0x308] sm:$0xf] %v643_v2 }
  0x98   : > { %646 = vst [vmem:[%s4179_s11 + $0x30c] sm:$0xf] %v645_v3  ;;  %648 = vst [vmem:[%s4179_s11 + $0x310] sm:$0xf] %v647_v4  ;;  %v649_v5 = vld [vmem:[%s4172_s10 + $0x628] sm:$0xf] }
  0x99   : > { %v651_v6 = vld [vmem:[%s4172_s10 + $0x630] sm:$0xf]  ;;  %v653_v7 = vld [vmem:[%s4172_s10 + $0x638] sm:$0xf]  ;;  %650 = vst [vmem:[%s4179_s11 + $0x314] sm:$0xf] %v649_v5 }
  0x9a   : > { %652 = vst [vmem:[%s4179_s11 + $0x318] sm:$0xf] %v651_v6  ;;  %654 = vst [vmem:[%s4179_s11 + $0x31c] sm:$0xf] %v653_v7  ;;  %v655_v8 = vld [vmem:[%s4172_s10 + $0x640] sm:$0xf] }
  0x9b   : > { %v657_v9 = vld [vmem:[%s4172_s10 + $0x648] sm:$0xf]  ;;  %v659_v10 = vld [vmem:[%s4172_s10 + $0x650] sm:$0xf]  ;;  %656 = vst [vmem:[%s4179_s11 + $0x320] sm:$0xf] %v655_v8 }
  0x9c   : > { %658 = vst [vmem:[%s4179_s11 + $0x324] sm:$0xf] %v657_v9  ;;  %660 = vst [vmem:[%s4179_s11 + $0x328] sm:$0xf] %v659_v10  ;;  %v661_v11 = vld [vmem:[%s4172_s10 + $0x658] sm:$0xf] }
  0x9d   : > { %v663_v12 = vld [vmem:[%s4172_s10 + $0x660] sm:$0xf]  ;;  %v665_v13 = vld [vmem:[%s4172_s10 + $0x668] sm:$0xf]  ;;  %662 = vst [vmem:[%s4179_s11 + $0x32c] sm:$0xf] %v661_v11 }
  0x9e   : > { %664 = vst [vmem:[%s4179_s11 + $0x330] sm:$0xf] %v663_v12  ;;  %666 = vst [vmem:[%s4179_s11 + $0x334] sm:$0xf] %v665_v13  ;;  %v667_v14 = vld [vmem:[%s4172_s10 + $0x670] sm:$0xf] }
  0x9f   : > { %v669_v15 = vld [vmem:[%s4172_s10 + $0x678] sm:$0xf]  ;;  %v671_v16 = vld [vmem:[%s4172_s10 + $0x680] sm:$0xf]  ;;  %668 = vst [vmem:[%s4179_s11 + $0x338] sm:$0xf] %v667_v14 }
  0xa0   : > { %670 = vst [vmem:[%s4179_s11 + $0x33c] sm:$0xf] %v669_v15  ;;  %672 = vst [vmem:[%s4179_s11 + $0x340] sm:$0xf] %v671_v16  ;;  %v673_v17 = vld [vmem:[%s4172_s10 + $0x688] sm:$0xf] }
  0xa1   : > { %v675_v18 = vld [vmem:[%s4172_s10 + $0x690] sm:$0xf]  ;;  %v677_v19 = vld [vmem:[%s4172_s10 + $0x698] sm:$0xf]  ;;  %674 = vst [vmem:[%s4179_s11 + $0x344] sm:$0xf] %v673_v17 }
  0xa2   : > { %676 = vst [vmem:[%s4179_s11 + $0x348] sm:$0xf] %v675_v18  ;;  %678 = vst [vmem:[%s4179_s11 + $0x34c] sm:$0xf] %v677_v19  ;;  %v679_v20 = vld [vmem:[%s4172_s10 + $0x6a0] sm:$0xf] }
  0xa3   : > { %v681_v21 = vld [vmem:[%s4172_s10 + $0x6a8] sm:$0xf]  ;;  %v683_v22 = vld [vmem:[%s4172_s10 + $0x6b0] sm:$0xf]  ;;  %680 = vst [vmem:[%s4179_s11 + $0x350] sm:$0xf] %v679_v20 }
  0xa4   : > { %682 = vst [vmem:[%s4179_s11 + $0x354] sm:$0xf] %v681_v21  ;;  %684 = vst [vmem:[%s4179_s11 + $0x358] sm:$0xf] %v683_v22  ;;  %v685_v23 = vld [vmem:[%s4172_s10 + $0x6b8] sm:$0xf] }
  0xa5   : > { %v687_v24 = vld [vmem:[%s4172_s10 + $0x6c0] sm:$0xf]  ;;  %v689_v25 = vld [vmem:[%s4172_s10 + $0x6c8] sm:$0xf]  ;;  %686 = vst [vmem:[%s4179_s11 + $0x35c] sm:$0xf] %v685_v23 }
  0xa6   : > { %688 = vst [vmem:[%s4179_s11 + $0x360] sm:$0xf] %v687_v24  ;;  %690 = vst [vmem:[%s4179_s11 + $0x364] sm:$0xf] %v689_v25  ;;  %v691_v26 = vld [vmem:[%s4172_s10 + $0x6d0] sm:$0xf] }
  0xa7   : > { %v693_v27 = vld [vmem:[%s4172_s10 + $0x6d8] sm:$0xf]  ;;  %v695_v28 = vld [vmem:[%s4172_s10 + $0x6e0] sm:$0xf]  ;;  %692 = vst [vmem:[%s4179_s11 + $0x368] sm:$0xf] %v691_v26 }
  0xa8   : > { %694 = vst [vmem:[%s4179_s11 + $0x36c] sm:$0xf] %v693_v27  ;;  %696 = vst [vmem:[%s4179_s11 + $0x370] sm:$0xf] %v695_v28  ;;  %v697_v29 = vld [vmem:[%s4172_s10 + $0x6e8] sm:$0xf] }
  0xa9   : > { %v699_v30 = vld [vmem:[%s4172_s10 + $0x6f0] sm:$0xf]  ;;  %v701_v31 = vld [vmem:[%s4172_s10 + $0x6f8] sm:$0xf]  ;;  %698 = vst [vmem:[%s4179_s11 + $0x374] sm:$0xf] %v697_v29 }
  0xaa   : > { %700 = vst [vmem:[%s4179_s11 + $0x378] sm:$0xf] %v699_v30  ;;  %702 = vst [vmem:[%s4179_s11 + $0x37c] sm:$0xf] %v701_v31  ;;  %v703_v32 = vld [vmem:[%s4172_s10 + $0x700] sm:$0xf] }
  0xab   : > { %v705_v33 = vld [vmem:[%s4172_s10 + $0x708] sm:$0xf]  ;;  %v707_v34 = vld [vmem:[%s4172_s10 + $0x710] sm:$0xf]  ;;  %704 = vst [vmem:[%s4179_s11 + $0x380] sm:$0xf] %v703_v32 }
  0xac   : > { %706 = vst [vmem:[%s4179_s11 + $0x384] sm:$0xf] %v705_v33  ;;  %708 = vst [vmem:[%s4179_s11 + $0x388] sm:$0xf] %v707_v34  ;;  %v709_v35 = vld [vmem:[%s4172_s10 + $0x718] sm:$0xf] }
  0xad   : > { %v711_v36 = vld [vmem:[%s4172_s10 + $0x720] sm:$0xf]  ;;  %v713_v37 = vld [vmem:[%s4172_s10 + $0x728] sm:$0xf]  ;;  %710 = vst [vmem:[%s4179_s11 + $0x38c] sm:$0xf] %v709_v35 }
  0xae   : > { %712 = vst [vmem:[%s4179_s11 + $0x390] sm:$0xf] %v711_v36  ;;  %714 = vst [vmem:[%s4179_s11 + $0x394] sm:$0xf] %v713_v37  ;;  %v715_v38 = vld [vmem:[%s4172_s10 + $0x730] sm:$0xf] }
  0xaf   : > { %v717_v39 = vld [vmem:[%s4172_s10 + $0x738] sm:$0xf]  ;;  %v719_v40 = vld [vmem:[%s4172_s10 + $0x740] sm:$0xf]  ;;  %716 = vst [vmem:[%s4179_s11 + $0x398] sm:$0xf] %v715_v38 }
  0xb0   : > { %718 = vst [vmem:[%s4179_s11 + $0x39c] sm:$0xf] %v717_v39  ;;  %720 = vst [vmem:[%s4179_s11 + $0x3a0] sm:$0xf] %v719_v40  ;;  %v721_v41 = vld [vmem:[%s4172_s10 + $0x748] sm:$0xf] }
  0xb1   : > { %v723_v42 = vld [vmem:[%s4172_s10 + $0x750] sm:$0xf]  ;;  %v725_v43 = vld [vmem:[%s4172_s10 + $0x758] sm:$0xf]  ;;  %722 = vst [vmem:[%s4179_s11 + $0x3a4] sm:$0xf] %v721_v41 }
  0xb2   : > { %724 = vst [vmem:[%s4179_s11 + $0x3a8] sm:$0xf] %v723_v42  ;;  %726 = vst [vmem:[%s4179_s11 + $0x3ac] sm:$0xf] %v725_v43  ;;  %v727_v44 = vld [vmem:[%s4172_s10 + $0x760] sm:$0xf] }
  0xb3   : > { %v729_v45 = vld [vmem:[%s4172_s10 + $0x768] sm:$0xf]  ;;  %v731_v46 = vld [vmem:[%s4172_s10 + $0x770] sm:$0xf]  ;;  %728 = vst [vmem:[%s4179_s11 + $0x3b0] sm:$0xf] %v727_v44 }
  0xb4   : > { %730 = vst [vmem:[%s4179_s11 + $0x3b4] sm:$0xf] %v729_v45  ;;  %732 = vst [vmem:[%s4179_s11 + $0x3b8] sm:$0xf] %v731_v46  ;;  %v733_v47 = vld [vmem:[%s4172_s10 + $0x778] sm:$0xf] }
  0xb5   : > { %v735_v48 = vld [vmem:[%s4172_s10 + $0x780] sm:$0xf]  ;;  %v737_v49 = vld [vmem:[%s4172_s10 + $0x788] sm:$0xf]  ;;  %734 = vst [vmem:[%s4179_s11 + $0x3bc] sm:$0xf] %v733_v47 }
  0xb6   : > { %736 = vst [vmem:[%s4179_s11 + $0x3c0] sm:$0xf] %v735_v48  ;;  %738 = vst [vmem:[%s4179_s11 + $0x3c4] sm:$0xf] %v737_v49  ;;  %v739_v50 = vld [vmem:[%s4172_s10 + $0x790] sm:$0xf] }
  0xb7   : > { %v741_v51 = vld [vmem:[%s4172_s10 + $0x798] sm:$0xf]  ;;  %v743_v52 = vld [vmem:[%s4172_s10 + $0x7a0] sm:$0xf]  ;;  %740 = vst [vmem:[%s4179_s11 + $0x3c8] sm:$0xf] %v739_v50 }
  0xb8   : > { %742 = vst [vmem:[%s4179_s11 + $0x3cc] sm:$0xf] %v741_v51  ;;  %744 = vst [vmem:[%s4179_s11 + $0x3d0] sm:$0xf] %v743_v52  ;;  %v745_v53 = vld [vmem:[%s4172_s10 + $0x7a8] sm:$0xf] }
  0xb9   : > { %v747_v54 = vld [vmem:[%s4172_s10 + $0x7b0] sm:$0xf]  ;;  %v749_v55 = vld [vmem:[%s4172_s10 + $0x7b8] sm:$0xf]  ;;  %746 = vst [vmem:[%s4179_s11 + $0x3d4] sm:$0xf] %v745_v53 }
  0xba   : > { %748 = vst [vmem:[%s4179_s11 + $0x3d8] sm:$0xf] %v747_v54  ;;  %750 = vst [vmem:[%s4179_s11 + $0x3dc] sm:$0xf] %v749_v55  ;;  %v751_v56 = vld [vmem:[%s4172_s10 + $0x7c0] sm:$0xf] }
  0xbb   : > { %v753_v57 = vld [vmem:[%s4172_s10 + $0x7c8] sm:$0xf]  ;;  %v755_v58 = vld [vmem:[%s4172_s10 + $0x7d0] sm:$0xf]  ;;  %752 = vst [vmem:[%s4179_s11 + $0x3e0] sm:$0xf] %v751_v56 }
  0xbc   : > { %754 = vst [vmem:[%s4179_s11 + $0x3e4] sm:$0xf] %v753_v57  ;;  %756 = vst [vmem:[%s4179_s11 + $0x3e8] sm:$0xf] %v755_v58  ;;  %v757_v59 = vld [vmem:[%s4172_s10 + $0x7d8] sm:$0xf] }
  0xbd   : > { %v759_v60 = vld [vmem:[%s4172_s10 + $0x7e0] sm:$0xf]  ;;  %v761_v61 = vld [vmem:[%s4172_s10 + $0x7e8] sm:$0xf]  ;;  %758 = vst [vmem:[%s4179_s11 + $0x3ec] sm:$0xf] %v757_v59 }
  0xbe   : > { %760 = vst [vmem:[%s4179_s11 + $0x3f0] sm:$0xf] %v759_v60  ;;  %762 = vst [vmem:[%s4179_s11 + $0x3f4] sm:$0xf] %v761_v61  ;;  %v763_v62 = vld [vmem:[%s4172_s10 + $0x7f0] sm:$0xf] }
  0xbf   : > { %v765_v63 = vld [vmem:[%s4172_s10 + $0x7f8] sm:$0xf]  ;;  %v767_v0 = vld [vmem:[%s4172_s10 + $0x800] sm:$0xf]  ;;  %764 = vst [vmem:[%s4179_s11 + $0x3f8] sm:$0xf] %v763_v62 }
  0xc0   : > { %766 = vst [vmem:[%s4179_s11 + $0x3fc] sm:$0xf] %v765_v63  ;;  %768 = vst [vmem:[%s4179_s11 + $0x400] sm:$0xf] %v767_v0  ;;  %v769_v1 = vld [vmem:[%s4172_s10 + $0x808] sm:$0xf] }
  0xc1   : > { %v771_v2 = vld [vmem:[%s4172_s10 + $0x810] sm:$0xf]  ;;  %v773_v3 = vld [vmem:[%s4172_s10 + $0x818] sm:$0xf]  ;;  %770 = vst [vmem:[%s4179_s11 + $0x404] sm:$0xf] %v769_v1 }
  0xc2   : > { %772 = vst [vmem:[%s4179_s11 + $0x408] sm:$0xf] %v771_v2  ;;  %774 = vst [vmem:[%s4179_s11 + $0x40c] sm:$0xf] %v773_v3  ;;  %v775_v4 = vld [vmem:[%s4172_s10 + $0x820] sm:$0xf] }
  0xc3   : > { %v777_v5 = vld [vmem:[%s4172_s10 + $0x828] sm:$0xf]  ;;  %v779_v6 = vld [vmem:[%s4172_s10 + $0x830] sm:$0xf]  ;;  %776 = vst [vmem:[%s4179_s11 + $0x410] sm:$0xf] %v775_v4 }
  0xc4   : > { %778 = vst [vmem:[%s4179_s11 + $0x414] sm:$0xf] %v777_v5  ;;  %780 = vst [vmem:[%s4179_s11 + $0x418] sm:$0xf] %v779_v6  ;;  %v781_v7 = vld [vmem:[%s4172_s10 + $0x838] sm:$0xf] }
  0xc5   : > { %v783_v8 = vld [vmem:[%s4172_s10 + $0x840] sm:$0xf]  ;;  %v785_v9 = vld [vmem:[%s4172_s10 + $0x848] sm:$0xf]  ;;  %782 = vst [vmem:[%s4179_s11 + $0x41c] sm:$0xf] %v781_v7 }
  0xc6   : > { %784 = vst [vmem:[%s4179_s11 + $0x420] sm:$0xf] %v783_v8  ;;  %786 = vst [vmem:[%s4179_s11 + $0x424] sm:$0xf] %v785_v9  ;;  %v787_v10 = vld [vmem:[%s4172_s10 + $0x850] sm:$0xf] }
  0xc7   : > { %v789_v11 = vld [vmem:[%s4172_s10 + $0x858] sm:$0xf]  ;;  %v791_v12 = vld [vmem:[%s4172_s10 + $0x860] sm:$0xf]  ;;  %788 = vst [vmem:[%s4179_s11 + $0x428] sm:$0xf] %v787_v10 }
  0xc8   : > { %790 = vst [vmem:[%s4179_s11 + $0x42c] sm:$0xf] %v789_v11  ;;  %792 = vst [vmem:[%s4179_s11 + $0x430] sm:$0xf] %v791_v12  ;;  %v793_v13 = vld [vmem:[%s4172_s10 + $0x868] sm:$0xf] }
  0xc9   : > { %v795_v14 = vld [vmem:[%s4172_s10 + $0x870] sm:$0xf]  ;;  %v797_v15 = vld [vmem:[%s4172_s10 + $0x878] sm:$0xf]  ;;  %794 = vst [vmem:[%s4179_s11 + $0x434] sm:$0xf] %v793_v13 }
  0xca   : > { %796 = vst [vmem:[%s4179_s11 + $0x438] sm:$0xf] %v795_v14  ;;  %798 = vst [vmem:[%s4179_s11 + $0x43c] sm:$0xf] %v797_v15  ;;  %v799_v16 = vld [vmem:[%s4172_s10 + $0x880] sm:$0xf] }
  0xcb   : > { %v801_v17 = vld [vmem:[%s4172_s10 + $0x888] sm:$0xf]  ;;  %v803_v18 = vld [vmem:[%s4172_s10 + $0x890] sm:$0xf]  ;;  %800 = vst [vmem:[%s4179_s11 + $0x440] sm:$0xf] %v799_v16 }
  0xcc   : > { %802 = vst [vmem:[%s4179_s11 + $0x444] sm:$0xf] %v801_v17  ;;  %804 = vst [vmem:[%s4179_s11 + $0x448] sm:$0xf] %v803_v18  ;;  %v805_v19 = vld [vmem:[%s4172_s10 + $0x898] sm:$0xf] }
  0xcd   : > { %v807_v20 = vld [vmem:[%s4172_s10 + $0x8a0] sm:$0xf]  ;;  %v809_v21 = vld [vmem:[%s4172_s10 + $0x8a8] sm:$0xf]  ;;  %806 = vst [vmem:[%s4179_s11 + $0x44c] sm:$0xf] %v805_v19 }
  0xce   : > { %808 = vst [vmem:[%s4179_s11 + $0x450] sm:$0xf] %v807_v20  ;;  %810 = vst [vmem:[%s4179_s11 + $0x454] sm:$0xf] %v809_v21  ;;  %v811_v22 = vld [vmem:[%s4172_s10 + $0x8b0] sm:$0xf] }
  0xcf   : > { %v813_v23 = vld [vmem:[%s4172_s10 + $0x8b8] sm:$0xf]  ;;  %v815_v24 = vld [vmem:[%s4172_s10 + $0x8c0] sm:$0xf]  ;;  %812 = vst [vmem:[%s4179_s11 + $0x458] sm:$0xf] %v811_v22 }
  0xd0   : > { %814 = vst [vmem:[%s4179_s11 + $0x45c] sm:$0xf] %v813_v23  ;;  %816 = vst [vmem:[%s4179_s11 + $0x460] sm:$0xf] %v815_v24  ;;  %v817_v25 = vld [vmem:[%s4172_s10 + $0x8c8] sm:$0xf] }
  0xd1   : > { %v819_v26 = vld [vmem:[%s4172_s10 + $0x8d0] sm:$0xf]  ;;  %v821_v27 = vld [vmem:[%s4172_s10 + $0x8d8] sm:$0xf]  ;;  %818 = vst [vmem:[%s4179_s11 + $0x464] sm:$0xf] %v817_v25 }
  0xd2   : > { %820 = vst [vmem:[%s4179_s11 + $0x468] sm:$0xf] %v819_v26  ;;  %822 = vst [vmem:[%s4179_s11 + $0x46c] sm:$0xf] %v821_v27  ;;  %v823_v28 = vld [vmem:[%s4172_s10 + $0x8e0] sm:$0xf] }
  0xd3   : > { %v825_v29 = vld [vmem:[%s4172_s10 + $0x8e8] sm:$0xf]  ;;  %v827_v30 = vld [vmem:[%s4172_s10 + $0x8f0] sm:$0xf]  ;;  %824 = vst [vmem:[%s4179_s11 + $0x470] sm:$0xf] %v823_v28 }
  0xd4   : > { %826 = vst [vmem:[%s4179_s11 + $0x474] sm:$0xf] %v825_v29  ;;  %828 = vst [vmem:[%s4179_s11 + $0x478] sm:$0xf] %v827_v30  ;;  %v829_v31 = vld [vmem:[%s4172_s10 + $0x8f8] sm:$0xf] }
  0xd5   : > { %830 = vst [vmem:[%s4179_s11 + $0x47c] sm:$0xf] %v829_v31 }
  0xd6 PF: > { %1441 = sbr.rel (!%p4150_p3) target bundleno = 221 (0xdd), region = 73  ;;  %s1443_s12 = sand.u32 (%p4150_p3), 1, %s4074_s19  }
  0xd7   : > { %s3452_s13 = sshll.u32 (%p4150_p3), %s4082_s21, 2  ;;  %s3451_s14 = sshll.u32 (%p4150_p3), %s1443_s12, 3 }
  0xd8   : > { %s1450_s17 = scalar_lea.vmem (%p4150_p3), %s4999_s4, %s3452_s13  ;;  %s1445_s24 = scalar_lea.vmem (%p4150_p3), [#allocation4], %s3451_s14 }
  0xd9   : > { %v1466_v32 = vld [vmem:[%s1450_s17] sm:$0xf] (%p4150_p3)  ;;  %v1468_v33 = vld [vmem:[%s1450_s17 + $0x8] sm:$0xf] (%p4150_p3) }
  0xda   : > { %1467 = vst [vmem:[%s1445_s24] sm:$0xf] (%p4150_p3), %v1466_v32  ;;  %1469 = vst [vmem:[%s1445_s24 + $0x4] sm:$0xf] (%p4150_p3), %v1468_v33 }
  0xdd PF: > { %p3453_p8 = scmp.ge.s32.totalorder %s4086_s22, 1  ;;  %p1495_p9 = scmp.lt.s32.totalorder %s4086_s22, 3 }
  0xdf   : > { %p1496_p10 = pnand %p3453_p8, %p1495_p9 }
  0xe0   : > { %s1502_s25 = sand.u32 (!%p1496_p10), 1, %s4070_s18   ;;  %v3911_v34 = vld [vmem:[%s4995_s0 + $0x4] ss:$72 sps:$4 sm:$0xff] (!%p1496_p10)   ;;  %v3909_v2 = vld [vmem:[%s4995_s0] ss:$72 sps:$4 sm:$0xff] (!%p1496_p10)   ;;  %p1568_p11 = scmp.lt.s32.totalorder (!%p1496_p10), %s4078_s20, 1 }
  0xe1   : > { %1499 = sbr.rel (%p1496_p10) target bundleno = 629 (0x275), region = 114  ;;  %v3914_v35 = vld [vmem:[%s4995_s0 + $0xc] ss:$72 sps:$4 sm:$0xff] (!%p1496_p10)   ;;  %2877 = vmatprep.mubr.bf16.mxu0 (!%p1496_p10), %v3911_v34  ;;  %v3912_v4 = vld [vmem:[%s4995_s0 + $0x8] ss:$72 sps:$4 sm:$0xff] (!%p1496_p10)   ;;  %s3454_s11 = sshll.u32 (!%p1496_p10), %s1502_s25, 3 }
  0xe2   : > { %s3836_s26 = smul.u32 (!%p1496_p10), 1152, %s1502_s25  ;;  %2918 = vmatprep.mubr.bf16.mxu1 (!%p1496_p10), %v3914_v35  ;;  %v3948_v6 = vld [vmem:[%s4995_s0 + $0x14] ss:$72 sps:$4 sm:$0xff] (!%p1496_p10)   ;;  %s1511_s24 = scalar_lea.vmem (!%p1496_p10), [#allocation4], %s3454_s11 }
  0xe3   : > { %s1554_s18 = scalar_lea.vmem (!%p1496_p10), [#allocation5], %s3454_s11 }
  0xe4   : > { %s4770_s8 = scalar_lea.vmem (!%p1496_p10), [#allocation3], %s3836_s26 }
  0xe5   : > { %v3877_v36 = vld [vmem:[%s4770_s8 + $0x40] sm:$0xff] (!%p1496_p10)   ;;  %v3881_v40 = vld [vmem:[%s4770_s8 + $0x48] sm:$0xff] (!%p1496_p10)   ;;  %v3885_v44 = vld [vmem:[%s4770_s8 + $0x50] sm:$0xff] (!%p1496_p10)  }
  0xe6   : > { %v3878_v37 = vld [vmem:[%s4770_s8 + $0xc0] sm:$0xff] (!%p1496_p10)   ;;  %3637 = vmatprep.subr.bf16.mxu0 (!%p1496_p10), %v3877_v36  ;;  %v3882_v41 = vld [vmem:[%s4770_s8 + $0xc8] sm:$0xff] (!%p1496_p10)   ;;  %v3886_v45 = vld [vmem:[%s4770_s8 + $0xd0] sm:$0xff] (!%p1496_p10)  }
  0xe7   : > { %v3879_v38 = vld [vmem:[%s4770_s8] sm:$0xff] (!%p1496_p10)   ;;  %3659 = vmatprep.subr.bf16.mxu1 (!%p1496_p10), %v3878_v37  ;;  %v3883_v42 = vld [vmem:[%s4770_s8 + $0x8] sm:$0xff] (!%p1496_p10)   ;;  %v3887_v46 = vld [vmem:[%s4770_s8 + $0x10] sm:$0xff] (!%p1496_p10)  }
  0xe8   : > { %v3880_v39 = vld [vmem:[%s4770_s8 + $0x80] sm:$0xff]   ;;  %3638 = vmatpush3.bf16.msra.mxu0 %v3879_v38  ;;  %v3884_v43 = vld [vmem:[%s4770_s8 + $0x88] sm:$0xff]   ;;  %v3888_v47 = vld [vmem:[%s4770_s8 + $0x90] sm:$0xff]   ;;  %s3623_s25 = sshll.u32 (%p4157_p6), %s4078_s20, 2 }
  0xe9   : > { %3660 = vmatpush3.bf16.msra.mxu1 %v3880_v39  ;;  %3639 = vmatprep.subr.bf16.mxu0 %v3881_v40  ;;  %v3889_v48 = vld [vmem:[%s4770_s8 + $0x58] sm:$0xff]   ;;  %v3893_v52 = vld [vmem:[%s4770_s8 + $0x60] sm:$0xff]   ;;  %v3897_v56 = vld [vmem:[%s4770_s8 + $0x68] sm:$0xff]   ;;  %s3270_s30 = scalar_lea.vmem (%p4157_p6), %s5000_s5, %s3623_s25 }
  0xea   : > { %3661 = vmatprep.subr.bf16.mxu1 %v3882_v41  ;;  %v3890_v49 = vld [vmem:[%s4770_s8 + $0xd8] sm:$0xff]   ;;  %v3894_v53 = vld [vmem:[%s4770_s8 + $0xe0] sm:$0xff]   ;;  %v3898_v57 = vld [vmem:[%s4770_s8 + $0xe8] sm:$0xff]  }
  0xeb   : > { %v3891_v50 = vld [vmem:[%s4770_s8 + $0x18] sm:$0xff]   ;;  %v3895_v54 = vld [vmem:[%s4770_s8 + $0x20] sm:$0xff]   ;;  %v3899_v58 = vld [vmem:[%s4770_s8 + $0x28] sm:$0xff]  }
  0xec   : > { %3640 = vmatpush3.bf16.msra.mxu0 %v3883_v42  ;;  %v3892_v51 = vld [vmem:[%s4770_s8 + $0x98] sm:$0xff]   ;;  %v3896_v55 = vld [vmem:[%s4770_s8 + $0xa0] sm:$0xff]   ;;  %v3900_v59 = vld [vmem:[%s4770_s8 + $0xa8] sm:$0xff]  }
  0xed   : > { %3662 = vmatpush3.bf16.msra.mxu1 %v3884_v43  ;;  %3641 = vmatprep.subr.bf16.mxu0 %v3885_v44  ;;  %v3901_v60 = vld [vmem:[%s4770_s8 + $0x70] sm:$0xff]   ;;  %v3905_v0 = vld [vmem:[%s4770_s8 + $0x78] sm:$0xff]   ;;  %v3915_v7 = vld [vmem:[%s4770_s8 + $0x140] sm:$0xff]  }
  0xee   : > { %3663 = vmatprep.subr.bf16.mxu1 %v3886_v45  ;;  %v3902_v61 = vld [vmem:[%s4770_s8 + $0xf0] sm:$0xff]   ;;  %v3906_v1 = vld [vmem:[%s4770_s8 + $0xf8] sm:$0xff]   ;;  %v3916_v8 = vld [vmem:[%s4770_s8 + $0x100] sm:$0xff]  }
  0xef   : > { %v3903_v62 = vld [vmem:[%s4770_s8 + $0x30] sm:$0xff]   ;;  %v3907_v3 = vld [vmem:[%s4770_s8 + $0x38] sm:$0xff]   ;;  %v3917_v9 = vld [vmem:[%s4770_s8 + $0x1c0] sm:$0xff]  }
  0xf0   : > { %3642 = vmatpush3.bf16.msra.mxu0 %v3887_v46  ;;  %v3904_v63 = vld [vmem:[%s4770_s8 + $0xb0] sm:$0xff]   ;;  %v3908_v5 = vld [vmem:[%s4770_s8 + $0xb8] sm:$0xff]   ;;  %v3918_v10 = vld [vmem:[%s4770_s8 + $0x180] sm:$0xff]  }
  0xf1   : > { %3664 = vmatpush3.bf16.msra.mxu1 %v3888_v47  ;;  %3643 = vmatprep.subr.bf16.mxu0 %v3889_v48  ;;  %v3919_v11 = vld [vmem:[%s4770_s8 + $0x148] sm:$0xff]   ;;  %v3923_v15 = vld [vmem:[%s4770_s8 + $0x150] sm:$0xff]   ;;  %v3927_v19 = vld [vmem:[%s4770_s8 + $0x158] sm:$0xff]  }
  0xf2   : > { %3665 = vmatprep.subr.bf16.mxu1 %v3890_v49  ;;  %v3920_v12 = vld [vmem:[%s4770_s8 + $0x108] sm:$0xff]   ;;  %v3924_v16 = vld [vmem:[%s4770_s8 + $0x110] sm:$0xff]   ;;  %v3928_v20 = vld [vmem:[%s4770_s8 + $0x118] sm:$0xff]  }
  0xf3   : > { %v3921_v13 = vld [vmem:[%s4770_s8 + $0x1c8] sm:$0xff]   ;;  %v3925_v17 = vld [vmem:[%s4770_s8 + $0x1d0] sm:$0xff]   ;;  %v3929_v21 = vld [vmem:[%s4770_s8 + $0x1d8] sm:$0xff]  }
  0xf4   : > { %3644 = vmatpush3.bf16.msra.mxu0 %v3891_v50  ;;  %v3922_v14 = vld [vmem:[%s4770_s8 + $0x188] sm:$0xff]   ;;  %v3926_v18 = vld [vmem:[%s4770_s8 + $0x190] sm:$0xff]   ;;  %v3930_v22 = vld [vmem:[%s4770_s8 + $0x198] sm:$0xff]  }
  0xf5   : > { %3666 = vmatpush3.bf16.msra.mxu1 %v3892_v51  ;;  %3645 = vmatprep.subr.bf16.mxu0 %v3893_v52  ;;  %v3931_v23 = vld [vmem:[%s4770_s8 + $0x160] sm:$0xff]   ;;  %v3935_v27 = vld [vmem:[%s4770_s8 + $0x168] sm:$0xff]   ;;  %v3939_v31 = vld [vmem:[%s4770_s8 + $0x170] sm:$0xff]  }
  0xf6   : > { %3667 = vmatprep.subr.bf16.mxu1 %v3894_v53  ;;  %v3932_v24 = vld [vmem:[%s4770_s8 + $0x120] sm:$0xff]   ;;  %v3936_v28 = vld [vmem:[%s4770_s8 + $0x128] sm:$0xff]   ;;  %v3940_v32 = vld [vmem:[%s4770_s8 + $0x130] sm:$0xff]  }
  0xf7   : > { %v3933_v25 = vld [vmem:[%s4770_s8 + $0x1e0] sm:$0xff]   ;;  %v3937_v29 = vld [vmem:[%s4770_s8 + $0x1e8] sm:$0xff]   ;;  %v3941_v33 = vld [vmem:[%s4770_s8 + $0x1f0] sm:$0xff]  }
  0xf8   : > { %3646 = vmatpush3.bf16.msra.mxu0 %v3895_v54  ;;  %v3934_v26 = vld [vmem:[%s4770_s8 + $0x1a0] sm:$0xff]   ;;  %v3938_v30 = vld [vmem:[%s4770_s8 + $0x1a8] sm:$0xff]   ;;  %v3942_v34 = vld [vmem:[%s4770_s8 + $0x1b0] sm:$0xff]  }
  0xf9   : > { %3668 = vmatpush3.bf16.msra.mxu1 %v3896_v55  ;;  %3647 = vmatprep.subr.bf16.mxu0 %v3897_v56  ;;  %v3943_v35 = vld [vmem:[%s4770_s8 + $0x178] sm:$0xff]   ;;  %v3950_v40 = vld [vmem:[%s4770_s8 + $0x240] sm:$0xff]   ;;  %v3957_v46 = vld [vmem:[%s4770_s8 + $0x248] sm:$0xff]  }
  0xfa   : > { %3669 = vmatprep.subr.bf16.mxu1 %v3898_v57  ;;  %v3944_v36 = vld [vmem:[%s4770_s8 + $0x138] sm:$0xff]   ;;  %v3954_v43 = vld [vmem:[%s4770_s8 + $0x200] sm:$0xff]   ;;  %v3958_v47 = vld [vmem:[%s4770_s8 + $0x208] sm:$0xff]  }
  0xfb   : > { %v3946_v37 = vld [vmem:[%s4995_s0 + $0x10] ss:$72 sps:$4 sm:$0xff]   ;;  %v3953_v42 = vld [vmem:[%s4995_s0 + $0x1c] ss:$72 sps:$4 sm:$0xff]   ;;  %v3959_v48 = vld [vmem:[%s4770_s8 + $0x2c8] sm:$0xff]  }
  0xfc   : > { %3648 = vmatpush3.bf16.msra.mxu0 %v3899_v58  ;;  %v3945_v38 = vld [vmem:[%s4770_s8 + $0x1f8] sm:$0xff]   ;;  %v3955_v44 = vld [vmem:[%s4770_s8 + $0x2c0] sm:$0xff]   ;;  %v3960_v49 = vld [vmem:[%s4770_s8 + $0x288] sm:$0xff]  }
  0xfd   : > { %3670 = vmatpush3.bf16.msra.mxu1 %v3900_v59  ;;  %3649 = vmatprep.subr.bf16.mxu0 %v3901_v60  ;;  %v3949_v39 = vld [vmem:[%s4770_s8 + $0x1b8] sm:$0xff]   ;;  %v3956_v45 = vld [vmem:[%s4770_s8 + $0x280] sm:$0xff]   ;;  %v3961_v50 = vld [vmem:[%s4770_s8 + $0x250] sm:$0xff]  }
  0xfe   : > { %3671 = vmatprep.subr.bf16.mxu1 %v3902_v61  ;;  %v3951_v41 = vld [vmem:[%s4995_s0 + $0x18] ss:$72 sps:$4 sm:$0xff]   ;;  %v3962_v51 = vld [vmem:[%s4770_s8 + $0x210] sm:$0xff]  }
  0xff   : > { %v3963_v52 = vld [vmem:[%s4770_s8 + $0x2d0] sm:$0xff]   ;;  %v3965_v54 = vld [vmem:[%s4770_s8 + $0x258] sm:$0xff]   ;;  %v3969_v58 = vld [vmem:[%s4770_s8 + $0x260] sm:$0xff]  }
 0x100   : > { %3650 = vmatpush3.bf16.msra.mxu0 %v3903_v62  ;;  %v3964_v53 = vld [vmem:[%s4770_s8 + $0x290] sm:$0xff]   ;;  %v3966_v55 = vld [vmem:[%s4770_s8 + $0x218] sm:$0xff]   ;;  %v3970_v59 = vld [vmem:[%s4770_s8 + $0x220] sm:$0xff]  }
 0x101   : > { %3672 = vmatpush3.bf16.msra.mxu1 %v3904_v63  ;;  %3651 = vmatprep.subr.bf16.mxu0 %v3905_v0  ;;  %v3967_v56 = vld [vmem:[%s4770_s8 + $0x2d8] sm:$0xff]   ;;  %v3971_v60 = vld [vmem:[%s4770_s8 + $0x2e0] sm:$0xff]   ;;  %v3973_v62 = vld [vmem:[%s4770_s8 + $0x268] sm:$0xff]  }
 0x102   : > { %3673 = vmatprep.subr.bf16.mxu1 %v3906_v1  ;;  %v3968_v57 = vld [vmem:[%s4770_s8 + $0x298] sm:$0xff]   ;;  %v3972_v61 = vld [vmem:[%s4770_s8 + $0x2a0] sm:$0xff]   ;;  %v3974_v63 = vld [vmem:[%s4770_s8 + $0x228] sm:$0xff]  }
 0x103   : > { %v3975_v0 = vld [vmem:[%s4770_s8 + $0x2e8] sm:$0xff]  }
 0x104   : > { %3652 = vmatpush3.bf16.msra.mxu0 %v3907_v3  ;;  %v3976_v1 = vld [vmem:[%s4770_s8 + $0x2a8] sm:$0xff]   ;;  %v3978_v3 = vld [vmem:[%s4770_s8 + $0x230] sm:$0xff]  }
 0x105   : > { %3674 = vmatpush3.bf16.msra.mxu1 %v3908_v5  ;;  %3681 = vmatprep.subr.bf16.mxu0 %v3915_v7  ;;  %v3980_v5 = vld [vmem:[%s4770_s8 + $0x2b0] sm:$0xff]   ;;  %v3982_v7 = vld [vmem:[%s4770_s8 + $0x238] sm:$0xff]  }
 0x106   : > { %3703 = vmatprep.subr.bf16.mxu1 %v3917_v9  ;;  %v3984_v9 = vld [vmem:[%s4995_s0 + $0x20] ss:$72 sps:$4 sm:$0xff]  }
 0x107   : > { %2878 = vmatmul.mubr.bf16.vlgmr.msra.gmra.mrb[0].mxu0 %v3909_v2  ;;  %v3977_v2 = vld [vmem:[%s4770_s8 + $0x270] sm:$0xff]  }
 0x108   : > { %2919 = vmatmul.mubr.bf16.vlgmr.msra.gmra.mrb[0].mxu1 %v3912_v4  ;;  %3682 = vmatpush3.bf16.msra.mxu0 %v3916_v8  ;;  %v3979_v4 = vld [vmem:[%s4770_s8 + $0x2f0] sm:$0xff]   ;;  %v3983_v8 = vld [vmem:[%s4770_s8 + $0x2f8] sm:$0xff]  }
 0x109   : > { %2959 = vmatprep.mubr.bf16.mxu0 %v3948_v6  ;;  %3704 = vmatpush3.bf16.msra.mxu1 %v3918_v10  ;;  %v3981_v6 = vld [vmem:[%s4770_s8 + $0x278] sm:$0xff]   ;;  %v3986_v10 = vld [vmem:[%s4995_s0 + $0x24] ss:$72 sps:$4 sm:$0xff]  }
 0x10a   : > { %3683 = vmatprep.subr.bf16.mxu0 %v3919_v11  ;;  %3705 = vmatprep.subr.bf16.mxu1 %v3921_v13  ;;  %v3987_v11 = vld [vmem:[%s4770_s8 + $0x2b8] sm:$0xff]   ;;  %v3989_v13 = vld [vmem:[%s4995_s0 + $0x28] ss:$72 sps:$4 sm:$0xff]  }
 0x10b   : > { %3000 = vmatprep.mubr.bf16.mxu1 %v3953_v42  ;;  %v4019_v42 = vld [vmem:[%s4770_s8 + $0x378] sm:$0xff]  }
 0x10c   : > { %3684 = vmatpush3.bf16.msra.mxu0 %v3920_v12  ;;  %v3988_v12 = vld [vmem:[%s4770_s8 + $0x340] sm:$0xff]  }
 0x10d   : > { %3706 = vmatpush3.bf16.msra.mxu1 %v3922_v14  ;;  %3685 = vmatprep.subr.bf16.mxu0 %v3923_v15  ;;  %v3991_v14 = vld [vmem:[%s4995_s0 + $0x2c] ss:$72 sps:$4 sm:$0xff]   ;;  %v3992_v15 = vld [vmem:[%s4770_s8 + $0x300] sm:$0xff]  }
 0x10e   : > { %3707 = vmatprep.subr.bf16.mxu1 %v3925_v17  ;;  %v3994_v17 = vld [vmem:[%s4770_s8 + $0x380] sm:$0xff]  }
 0x110   : > { %3686 = vmatpush3.bf16.msra.mxu0 %v3924_v16  ;;  %v3993_v16 = vld [vmem:[%s4770_s8 + $0x3c0] sm:$0xff]  }
 0x111   : > { %3708 = vmatpush3.bf16.msra.mxu1 %v3926_v18  ;;  %3687 = vmatprep.subr.bf16.mxu0 %v3927_v19  ;;  %v3995_v18 = vld [vmem:[%s4770_s8 + $0x348] sm:$0xff]  }
 0x112   : > { %3709 = vmatprep.subr.bf16.mxu1 %v3929_v21  ;;  %v3996_v19 = vld [vmem:[%s4770_s8 + $0x308] sm:$0xff]  }
 0x113   : > { %v3998_v21 = vld [vmem:[%s4770_s8 + $0x388] sm:$0xff]  }
 0x114   : > { %3688 = vmatpush3.bf16.msra.mxu0 %v3928_v20  ;;  %v3997_v20 = vld [vmem:[%s4770_s8 + $0x3c8] sm:$0xff]  }
 0x115   : > { %3710 = vmatpush3.bf16.msra.mxu1 %v3930_v22  ;;  %3689 = vmatprep.subr.bf16.mxu0 %v3931_v23  ;;  %v3999_v22 = vld [vmem:[%s4770_s8 + $0x350] sm:$0xff]  }
 0x116   : > { %3711 = vmatprep.subr.bf16.mxu1 %v3933_v25  ;;  %v4000_v23 = vld [vmem:[%s4770_s8 + $0x310] sm:$0xff]  }
 0x117   : > { %v4002_v25 = vld [vmem:[%s4770_s8 + $0x390] sm:$0xff]  }
 0x118   : > { %3690 = vmatpush3.bf16.msra.mxu0 %v3932_v24  ;;  %v4001_v24 = vld [vmem:[%s4770_s8 + $0x3d0] sm:$0xff]  }
 0x119   : > { %3712 = vmatpush3.bf16.msra.mxu1 %v3934_v26  ;;  %3691 = vmatprep.subr.bf16.mxu0 %v3935_v27  ;;  %v4003_v26 = vld [vmem:[%s4770_s8 + $0x358] sm:$0xff]  }
 0x11a   : > { %3713 = vmatprep.subr.bf16.mxu1 %v3937_v29  ;;  %v4004_v27 = vld [vmem:[%s4770_s8 + $0x318] sm:$0xff]  }
 0x11b   : > { %v4006_v29 = vld [vmem:[%s4770_s8 + $0x398] sm:$0xff]  }
 0x11c   : > { %3692 = vmatpush3.bf16.msra.mxu0 %v3936_v28  ;;  %v4005_v28 = vld [vmem:[%s4770_s8 + $0x3d8] sm:$0xff]  }
 0x11d   : > { %3714 = vmatpush3.bf16.msra.mxu1 %v3938_v30  ;;  %3693 = vmatprep.subr.bf16.mxu0 %v3939_v31  ;;  %v4007_v30 = vld [vmem:[%s4770_s8 + $0x360] sm:$0xff]  }
 0x11e   : > { %3715 = vmatprep.subr.bf16.mxu1 %v3941_v33  ;;  %v4008_v31 = vld [vmem:[%s4770_s8 + $0x320] sm:$0xff]  }
 0x11f   : > { %v4010_v33 = vld [vmem:[%s4770_s8 + $0x3a0] sm:$0xff]  }
 0x120   : > { %3694 = vmatpush3.bf16.msra.mxu0 %v3940_v32  ;;  %v4009_v32 = vld [vmem:[%s4770_s8 + $0x3e0] sm:$0xff]  }
 0x121   : > { %3716 = vmatpush3.bf16.msra.mxu1 %v3942_v34  ;;  %3695 = vmatprep.subr.bf16.mxu0 %v3943_v35  ;;  %v4011_v34 = vld [vmem:[%s4770_s8 + $0x368] sm:$0xff]  }
 0x122   : > { %3717 = vmatprep.subr.bf16.mxu1 %v3945_v38  ;;  %v4012_v35 = vld [vmem:[%s4770_s8 + $0x328] sm:$0xff]   ;;  %v4015_v38 = vld [vmem:[%s4770_s8 + $0x370] sm:$0xff]  }
 0x124   : > { %3696 = vmatpush3.bf16.msra.mxu0 %v3944_v36  ;;  %v4013_v36 = vld [vmem:[%s4770_s8 + $0x3e8] sm:$0xff]  }
 0x125   : > { %3718 = vmatpush3.bf16.msra.mxu1 %v3949_v39  ;;  %3725 = vmatprep.subr.bf16.mxu0 %v3950_v40  ;;  %v4016_v39 = vld [vmem:[%s4770_s8 + $0x330] sm:$0xff]  }
 0x126   : > { %3747 = vmatprep.subr.bf16.mxu1 %v3955_v44  ;;  %v4017_v40 = vld [vmem:[%s4770_s8 + $0x3f0] sm:$0xff]   ;;  %v4021_v44 = vld [vmem:[%s4770_s8 + $0x3f8] sm:$0xff]  }
 0x127   : > { %2960 = vmatmul.mubr.bf16.vlgmr.msra.gmra.mrb[4].mxu0 %v3946_v37  ;;  %v4014_v37 = vld [vmem:[%s4770_s8 + $0x3a8] sm:$0xff]  }
 0x128   : > { %3726 = vmatpush3.bf16.msra.mxu0 %v3954_v43  ;;  %3001 = vmatmul.mubr.bf16.vlgmr.msra.gmra.mrb[4].mxu1 %v3951_v41  ;;  %v4018_v41 = vld [vmem:[%s4770_s8 + $0x3b0] sm:$0xff]   ;;  %v4020_v43 = vld [vmem:[%s4770_s8 + $0x338] sm:$0xff]  }
 0x129   : > { %3748 = vmatpush3.bf16.msra.mxu1 %v3956_v45  ;;  %3727 = vmatprep.subr.bf16.mxu0 %v3957_v46  ;;  %v4022_v45 = vld [vmem:[%s4995_s0 + $0x30] ss:$72 sps:$4 sm:$0xff]   ;;  %v4024_v46 = vld [vmem:[%s4995_s0 + $0x34] ss:$72 sps:$4 sm:$0xff]  }
 0x12a   : > { %3749 = vmatprep.subr.bf16.mxu1 %v3959_v48  ;;  %3041 = vmatprep.mubr.bf16.mxu0 %v3986_v10  ;;  %v4026_v48 = vld [vmem:[%s4770_s8 + $0x440] sm:$0xff]  }
 0x12b   : > { %3082 = vmatprep.mubr.bf16.mxu1 %v3991_v14 }
 0x12c   : > { %3728 = vmatpush3.bf16.msra.mxu0 %v3958_v47  ;;  %v4025_v47 = vld [vmem:[%s4770_s8 + $0x3b8] sm:$0xff]  }
 0x12d   : > { %3750 = vmatpush3.bf16.msra.mxu1 %v3960_v49  ;;  %3729 = vmatprep.subr.bf16.mxu0 %v3961_v50  ;;  %v4027_v49 = vld [vmem:[%s4995_s0 + $0x38] ss:$72 sps:$4 sm:$0xff]   ;;  %v4029_v50 = vld [vmem:[%s4995_s0 + $0x3c] ss:$72 sps:$4 sm:$0xff]  }
 0x12e   : > { %3751 = vmatprep.subr.bf16.mxu1 %v3963_v52  ;;  %v4031_v52 = vld [vmem:[%s4770_s8 + $0x448] sm:$0xff]  }
 0x130   : > { %3730 = vmatpush3.bf16.msra.mxu0 %v3962_v51  ;;  %v4030_v51 = vld [vmem:[%s4770_s8 + $0x400] sm:$0xff]  }
 0x131   : > { %3752 = vmatpush3.bf16.msra.mxu1 %v3964_v53  ;;  %3731 = vmatprep.subr.bf16.mxu0 %v3965_v54  ;;  %v4032_v53 = vld [vmem:[%s4770_s8 + $0x408] sm:$0xff]   ;;  %v4033_v54 = vld [vmem:[%s4770_s8 + $0x450] sm:$0xff]  }
 0x132   : > { %3753 = vmatprep.subr.bf16.mxu1 %v3967_v56  ;;  %v4035_v56 = vld [vmem:[%s4770_s8 + $0x458] sm:$0xff]  }
 0x134   : > { %3732 = vmatpush3.bf16.msra.mxu0 %v3966_v55  ;;  %v4034_v55 = vld [vmem:[%s4770_s8 + $0x410] sm:$0xff]  }
 0x135   : > { %3754 = vmatpush3.bf16.msra.mxu1 %v3968_v57  ;;  %3733 = vmatprep.subr.bf16.mxu0 %v3969_v58  ;;  %v4036_v57 = vld [vmem:[%s4770_s8 + $0x418] sm:$0xff]   ;;  %v4037_v58 = vld [vmem:[%s4770_s8 + $0x460] sm:$0xff]  }
 0x136   : > { %3755 = vmatprep.subr.bf16.mxu1 %v3971_v60  ;;  %v4039_v60 = vld [vmem:[%s4770_s8 + $0x468] sm:$0xff]  }
 0x138   : > { %3734 = vmatpush3.bf16.msra.mxu0 %v3970_v59  ;;  %v4038_v59 = vld [vmem:[%s4770_s8 + $0x420] sm:$0xff]  }
 0x139   : > { %3756 = vmatpush3.bf16.msra.mxu1 %v3972_v61  ;;  %3735 = vmatprep.subr.bf16.mxu0 %v3973_v62  ;;  %v4047_v61 = vld [vmem:[%s4995_s0 + $0x44] ss:$72 sps:$4 sm:$0xff]  }
 0x13a   : > { %3757 = vmatprep.subr.bf16.mxu1 %v3975_v0  ;;  %v4040_v62 = vld [vmem:[%s4770_s8 + $0x428] sm:$0xff]   ;;  %v4042_v0 = vld [vmem:[%s4770_s8 + $0x430] sm:$0xff]  }
 0x13c   : > { %3736 = vmatpush3.bf16.msra.mxu0 %v3974_v63  ;;  %v4041_v63 = vld [vmem:[%s4770_s8 + $0x470] sm:$0xff]  }
 0x13d   : > { %3758 = vmatpush3.bf16.msra.mxu1 %v3976_v1  ;;  %3737 = vmatprep.subr.bf16.mxu0 %v3977_v2  ;;  %v4043_v1 = vld [vmem:[%s4770_s8 + $0x478] sm:$0xff]  }
 0x13e   : > { %3759 = vmatprep.subr.bf16.mxu1 %v3979_v4  ;;  %v4044_v2 = vld [vmem:[%s4770_s8 + $0x438] sm:$0xff]   ;;  %s1569_s8 = scalar_select %p1568_p11, %s4078_s20, 1 }
 0x140   : > { %3738 = vmatpush3.bf16.msra.mxu0 %v3978_v3  ;;  %v4045_v3 = vld [vmem:[%s4995_s0 + $0x40] ss:$72 sps:$4 sm:$0xff]   ;;  %s1570_s14 = scalar_lea.vmem %s4997_s2, %s1569_s8  ;;  %s1573_s17 = scalar_lea.vmem %s4998_s3, %s1569_s8 }
 0x141   : > { %3760 = vmatpush3.bf16.msra.mxu1 %v3980_v5  ;;  %3739 = vmatprep.subr.bf16.mxu0 %v3981_v6 }
 0x142   : > { %3761 = vmatprep.subr.bf16.mxu1 %v3983_v8 }
 0x144   : > { %3740 = vmatpush3.bf16.msra.mxu0 %v3982_v7 }
 0x145   : > { %3762 = vmatpush3.bf16.msra.mxu1 %v3987_v11  ;;  %3769 = vmatprep.subr.bf16.mxu0 %v3988_v12 }
 0x146   : > { %3791 = vmatprep.subr.bf16.mxu1 %v3993_v16 }
 0x147   : > { %3042 = vmatmul.mubr.bf16.vlgmr.msra.gmra.mrb[8].mxu0 %v3984_v9 }
 0x148   : > { %3770 = vmatpush3.bf16.msra.mxu0 %v3992_v15  ;;  %3083 = vmatmul.mubr.bf16.vlgmr.msra.gmra.mrb[8].mxu1 %v3989_v13 }
 0x149   : > { %3792 = vmatpush3.bf16.msra.mxu1 %v3994_v17  ;;  %3771 = vmatprep.subr.bf16.mxu0 %v3995_v18 }
 0x14a   : > { %3793 = vmatprep.subr.bf16.mxu1 %v3997_v20  ;;  %3123 = vmatprep.mubr.bf16.mxu0 %v4024_v46 }
 0x14b   : > { %3164 = vmatprep.mubr.bf16.mxu1 %v4029_v50 }
 0x14c   : > { %3772 = vmatpush3.bf16.msra.mxu0 %v3996_v19 }
 0x14d   : > { %3794 = vmatpush3.bf16.msra.mxu1 %v3998_v21  ;;  %3773 = vmatprep.subr.bf16.mxu0 %v3999_v22 }
 0x14e   : > { %3795 = vmatprep.subr.bf16.mxu1 %v4001_v24 }
 0x150   : > { %3774 = vmatpush3.bf16.msra.mxu0 %v4000_v23 }
 0x151   : > { %3796 = vmatpush3.bf16.msra.mxu1 %v4002_v25  ;;  %3775 = vmatprep.subr.bf16.mxu0 %v4003_v26 }
 0x152   : > { %3797 = vmatprep.subr.bf16.mxu1 %v4005_v28 }
 0x154   : > { %3776 = vmatpush3.bf16.msra.mxu0 %v4004_v27 }
 0x155   : > { %3798 = vmatpush3.bf16.msra.mxu1 %v4006_v29  ;;  %3777 = vmatprep.subr.bf16.mxu0 %v4007_v30 }
 0x156   : > { %3799 = vmatprep.subr.bf16.mxu1 %v4009_v32 }
 0x158   : > { %3778 = vmatpush3.bf16.msra.mxu0 %v4008_v31 }
 0x159   : > { %3800 = vmatpush3.bf16.msra.mxu1 %v4010_v33  ;;  %3779 = vmatprep.subr.bf16.mxu0 %v4011_v34 }
 0x15a   : > { %3801 = vmatprep.subr.bf16.mxu1 %v4013_v36 }
 0x15c   : > { %3780 = vmatpush3.bf16.msra.mxu0 %v4012_v35 }
 0x15d   : > { %3802 = vmatpush3.bf16.msra.mxu1 %v4014_v37  ;;  %3781 = vmatprep.subr.bf16.mxu0 %v4015_v38 }
 0x15e   : > { %3803 = vmatprep.subr.bf16.mxu1 %v4017_v40 }
 0x160   : > { %3782 = vmatpush3.bf16.msra.mxu0 %v4016_v39 }
 0x161   : > { %3804 = vmatpush3.bf16.msra.mxu1 %v4018_v41  ;;  %3783 = vmatprep.subr.bf16.mxu0 %v4019_v42 }
 0x162   : > { %3805 = vmatprep.subr.bf16.mxu1 %v4021_v44 }
 0x164   : > { %3784 = vmatpush3.bf16.msra.mxu0 %v4020_v43 }
 0x165   : > { %3806 = vmatpush3.bf16.msra.mxu1 %v4025_v47  ;;  %3813 = vmatprep.subr.bf16.mxu0 %v4026_v48 }
 0x167   : > { %3124 = vmatmul.mubr.bf16.vlgmr.msra.gmra.mrb[12].mxu0 %v4022_v45 }
 0x168   : > { %3814 = vmatpush3.bf16.msra.mxu0 %v4030_v51  ;;  %3165 = vmatmul.mubr.bf16.vlgmr.msra.gmra.mrb[12].mxu1 %v4027_v49 }
 0x169   : > { %3815 = vmatprep.subr.bf16.mxu0 %v4031_v52  ;;  %3205 = vmatprep.mubr.bf16.mxu0 %v4047_v61 }
 0x16c   : > { %3816 = vmatpush3.bf16.msra.mxu0 %v4032_v53 }
 0x16d   : > { %3817 = vmatprep.subr.bf16.mxu0 %v4033_v54 }
 0x170   : > { %3818 = vmatpush3.bf16.msra.mxu0 %v4034_v55 }
 0x171   : > { %3819 = vmatprep.subr.bf16.mxu0 %v4035_v56 }
 0x174   : > { %3820 = vmatpush3.bf16.msra.mxu0 %v4036_v57 }
 0x175   : > { %3821 = vmatprep.subr.bf16.mxu0 %v4037_v58 }
 0x178   : > { %3822 = vmatpush3.bf16.msra.mxu0 %v4038_v59 }
 0x179   : > { %3823 = vmatprep.subr.bf16.mxu0 %v4039_v60 }
 0x17c   : > { %3824 = vmatpush3.bf16.msra.mxu0 %v4040_v62 }
 0x17d   : > { %3825 = vmatprep.subr.bf16.mxu0 %v4041_v63 }
 0x180   : > { %3826 = vmatpush3.bf16.msra.mxu0 %v4042_v0 }
 0x181   : > { %3827 = vmatprep.subr.bf16.mxu0 %v4043_v1 }
 0x184   : > { %3828 = vmatpush3.bf16.msra.mxu0 %v4044_v2 }
 0x187   : > { %3206 = vmatmul.mubr.bf16.vlgmr.msra.gmra.mrb[16].mxu0 %v4045_v3 }
 0x1da   : > { %v3653_v4 = vpop.f32.mrb[0].mxu0 }
 0x1db   : > { %v3675_v5 = vpop.f32.mrb[0].mxu1  ;;  %v3654_v6 = vpop.f32.mrb[1].mxu0 }
 0x1dc   : > { %v3655_v7 = vadd.f32 %v3654_v6, %v3653_v4  ;;  %v3676_v8 = vpop.f32.mrb[1].mxu1  ;;  %v3656_v9 = vpop.f32.mrb[2].mxu0  ;;  %v3618_v6 = vld [vmem:[%s1570_s14] ss:$0 sm:$0xff] }
 0x1dd   : > { %v3677_v10 = vadd.f32 %v3676_v8, %v3675_v5  ;;  %v3678_v11 = vpop.f32.mrb[2].mxu1  ;;  %v3657_v12 = vpop.f32.mrb[3].mxu0 }
 0x1de   : > { %v3658_v13 = vadd.f32 %v3657_v12, %v3656_v9  ;;  %v3679_v14 = vpop.f32.mrb[3].mxu1 }
 0x1df   : > { %v2921_v15 = vadd.f32 %v3677_v10, %v3655_v7  ;;  %v3680_v16 = vadd.f32 %v3679_v14, %v3678_v11  ;;  %v3629_v7 = vld [vmem:[%s1511_s24] sm:$0xff]  }
 0x1e0   : > { %v3619_v11 = vld [vmem:[%s1573_s17] ss:$0 sm:$0xff] }
 0x1e1   : > { %v2924_v17 = vadd.f32 %v3680_v16, %v3658_v13  ;;  %v3630_v13 = vunpack.c.l.bf16 %v3629_v7 }
 0x1fa   : > { %v3697_v18 = vpop.f32.mrb[4].mxu0 }
 0x1fb   : > { %v3698_v19 = vpop.f32.mrb[5].mxu0  ;;  %v3719_v22 = vpop.f32.mrb[4].mxu1 }
 0x1fc   : > { %v3699_v20 = vadd.f32 %v3698_v19, %v3697_v18  ;;  %v3700_v21 = vpop.f32.mrb[6].mxu0  ;;  %v3720_v24 = vpop.f32.mrb[5].mxu1 }
 0x1fd   : > { %v3701_v23 = vpop.f32.mrb[7].mxu0  ;;  %v3721_v27 = vadd.f32 %v3720_v24, %v3719_v22  ;;  %v3722_v28 = vpop.f32.mrb[6].mxu1 }
 0x1fe   : > { %v2962_v25 = vadd.f32 %v3699_v20, %v2921_v15  ;;  %v3702_v26 = vadd.f32 %v3701_v23, %v3700_v21  ;;  %v3723_v29 = vpop.f32.mrb[7].mxu1 }
 0x1ff   : > { %v3724_v32 = vadd.f32 %v3723_v29, %v3722_v28 }
 0x200   : > { %v2965_v30 = vadd.f32 %v3702_v26, %v2924_v17  ;;  %v3003_v31 = vadd.f32 %v3721_v27, %v2962_v25  ;;  %v3631_v17 = vunpack.c.h.bf16 %v3629_v7 }
 0x202   : > { %v3006_v33 = vadd.f32 %v3724_v32, %v2965_v30 }
 0x21a   : > { %v3741_v34 = vpop.f32.mrb[8].mxu0 }
 0x21b   : > { %v3742_v35 = vpop.f32.mrb[9].mxu0  ;;  %v3763_v38 = vpop.f32.mrb[8].mxu1 }
 0x21c   : > { %v3743_v36 = vadd.f32 %v3742_v35, %v3741_v34  ;;  %v3744_v37 = vpop.f32.mrb[10].mxu0  ;;  %v3764_v42 = vpop.f32.mrb[9].mxu1 }
 0x21d   : > { %v3745_v39 = vpop.f32.mrb[11].mxu0  ;;  %v3765_v43 = vadd.f32 %v3764_v42, %v3763_v38  ;;  %v3766_v44 = vpop.f32.mrb[10].mxu1 }
 0x21e   : > { %v3044_v40 = vadd.f32 %v3743_v36, %v3003_v31  ;;  %v3746_v41 = vadd.f32 %v3745_v39, %v3744_v37  ;;  %v3767_v46 = vpop.f32.mrb[11].mxu1 }
 0x21f   : > { %v3768_v48 = vadd.f32 %v3767_v46, %v3766_v44 }
 0x220   : > { %v3047_v45 = vadd.f32 %v3746_v41, %v3006_v33  ;;  %v3085_v47 = vadd.f32 %v3765_v43, %v3044_v40 }
 0x222   : > { %v3088_v49 = vadd.f32 %v3768_v48, %v3047_v45 }
 0x23a   : > { %v3785_v50 = vpop.f32.mrb[12].mxu0 }
 0x23b   : > { %v3786_v51 = vpop.f32.mrb[13].mxu0  ;;  %v3807_v54 = vpop.f32.mrb[12].mxu1 }
 0x23c   : > { %v3787_v52 = vadd.f32 %v3786_v51, %v3785_v50  ;;  %v3788_v53 = vpop.f32.mrb[14].mxu0  ;;  %v3808_v58 = vpop.f32.mrb[13].mxu1 }
 0x23d   : > { %v3789_v55 = vpop.f32.mrb[15].mxu0  ;;  %v3809_v59 = vadd.f32 %v3808_v58, %v3807_v54  ;;  %v3810_v60 = vpop.f32.mrb[14].mxu1 }
 0x23e   : > { %v3126_v56 = vadd.f32 %v3787_v52, %v3085_v47  ;;  %v3790_v57 = vadd.f32 %v3789_v55, %v3788_v53  ;;  %v3811_v62 = vpop.f32.mrb[15].mxu1 }
 0x23f   : > { %v3812_v0 = vadd.f32 %v3811_v62, %v3810_v60 }
 0x240   : > { %v3129_v61 = vadd.f32 %v3790_v57, %v3088_v49  ;;  %v3167_v63 = vadd.f32 %v3809_v59, %v3126_v56 }
 0x242   : > { %v3170_v1 = vadd.f32 %v3812_v0, %v3129_v61 }
 0x25a   : > { %v3829_v2 = vpop.f32.mrb[16].mxu0 }
 0x25b   : > { %v3830_v3 = vpop.f32.mrb[17].mxu0 }
 0x25c   : > { %v3831_v4 = vadd.f32 %v3830_v3, %v3829_v2  ;;  %v3832_v5 = vpop.f32.mrb[18].mxu0 }
 0x25d   : > { %v3833_v8 = vpop.f32.mrb[19].mxu0 }
 0x25e   : > { %v3208_v9 = vadd.f32 %v3831_v4, %v3167_v63  ;;  %v3834_v10 = vadd.f32 %v3833_v8, %v3832_v5 }
 0x260   : > { %v3230_v12 = vmul.f32 %v3618_v6, %v3208_v9  ;;  %v3211_v14 = vadd.f32 %v3834_v10, %v3170_v1 }
 0x262   : > { %v3239_v15 = vadd.f32 %v3619_v11, %v3230_v12  ;;  %v3231_v16 = vmul.f32 %v3618_v6, %v3211_v14 }
 0x264   : > { %v3245_v18 = vadd.f32 %v3630_v13, %v3239_v15  ;;  %v3240_v19 = vadd.f32 %v3619_v11, %v3231_v16 }
 0x266   : > { %v3246_v20 = vadd.f32 %v3631_v17, %v3240_v19  ;;  %v3247_v21 = vmax.f32 %v3245_v18, 0.0  ;;  %3265 = sbr.rel (!%p4157_p6) target bundleno = 629 (0x275), region = 134 }
 0x268   : > { %v3248_v22 = vmax.f32 %v3246_v20, 0.0 }
 0x26a   : > { %v3635_v23 = vpack.c.bf16 %v3248_v22, %v3247_v21 }
 0x26c   : > { %3636 = vst [vmem:[%s1554_s18] sm:$0xff] %v3635_v23  }
 0x273   : > { %v3286_v24 = vld [vmem:[%s1554_s18] sm:$0xf]  ;;  %v3288_v25 = vld [vmem:[%s1554_s18 + $0x4] sm:$0xf] }
 0x274   : > { %3287 = vst [vmem:[%s3270_s30] sm:$0xf] %v3286_v24  ;;  %3289 = vst [vmem:[%s3270_s30 + $0x8] sm:$0xf] %v3288_v25 }
 0x275 PF: > { %s15_s22 = sadd.s32 1, %s4086_s22   ;;  %s5003_s18 = smov %s4074_s19 }
 0x276   : > { %p12_p12 = scmp.ge.s32.totalorder %s15_s22, 4   ;;  %s5004_s19 = smov %s4162_s29 }
 0x277   : > { %s5005_s20 = smov %s4082_s21  ;;  %s5006_s21 = smov %s5008_s23 }
 0x278   :  { %14 = sbr.rel (!%p12_p12) target bundleno = 3 (0x3), region = 223 }

// kernel: _lambda_.31
= control target key start
LH: loop header
LB: loop body
LE: loop exit
PB: predicated region body
PF: predicated region fallthrough
CT: control target
= control target key end

     0   :  { %s3982_s15 = smov 0   ;;  %s3984_s16 = smov 0   ;;  %s4846_s0 = inlined_call_operand.vmem [shape: bf16[16,2304], index: 0, kind: input, shape index: {}]   ;;  %s4847_s1 = inlined_call_operand.vmem [shape: bf16[2304,256], index: 1, kind: input, shape index: {}]   ;;  %s4848_s2 = inlined_call_operand.vmem [shape: f32[1,256], index: 2, kind: input, shape index: {}]   ;;  %s4849_s3 = inlined_call_operand.vmem [shape: f32[1,256], index: 3, kind: input, shape index: {}]   ;;  %s4850_s4 = inlined_call_operand.vmem [shape: bf16[16,256], index: 4, kind: output, shape index: {}]  }
   0x1   :  { %s3986_s17 = smov 0   ;;  %s3988_s18 = smov 0  }
   0x2   :  { %s3990_s19 = smov 0  }
   0x3 LB: > { %s29_s20 = sadd.s32 1, %s3951_s18  ;;  %s3321_s21 = sadd.s32 4294967295, %s3955_s19   ;;  %s3955_s19 = sphi %s3990_s19, %s14_s19   ;;  %s3951_s18 = sphi %s3988_s18, %s4855_s18   ;;  %s3947_s17 = sphi %s3986_s17, %s4854_s17   ;;  %s3943_s16 = sphi %s3984_s16, %s4853_s16   ;;  %s3939_s15 = sphi %s3982_s15, %s4852_s15  }
   0x4   : > { %p31_p0 = scmp.ge.s32.totalorder %s29_s20, 2  ;;  %p77_p1 = scmp.ne.s32.totalorder %s3943_s16, %s3939_s15 }
   0x5   : > { %p78_p2 = scmp.eq.s32.totalorder %s3955_s19, 0  ;;  %p161_p4 = scmp.eq.s32.totalorder %s3321_s21, 1 }
   0x6   : > { %s4857_s20 = smov (%p31_p0, %s29_s20), 0  ;;  %s70_s23 = sadd.s32 1, %s3943_s16 }
   0x7   : > { %p79_p3 = por %p78_p2, %p77_p1  ;;  %s66_s22 = ssub.s32 %s3951_s18, %s4857_s20 }
   0x8   : > { %p68_p5 = scmp.eq.s32.totalorder %s66_s22, 0  ;;  %p4017_p6 = por %p161_p4, %p77_p1 }
   0x9   : > { %p3325_p7 = scmp.ge.s32.totalorder %s3955_s19, 2 }
   0xa   : > { %s4022_s25 = scalar_select %p68_p5, %s3943_s16, %s70_s23  }
   0xb   : > { %198 = sbr.rel (%p3325_p7) target bundleno = 214 (0xd6), region = 20 }
  0x12   : > { %201 = sbr.rel (!%p79_p3) target bundleno = 214 (0xd6), region = 24  ;;  %s203_s26 = sand.u32 (%p79_p3), 1, %s3943_s16  }
  0x13   : > { %s3326_s27 = sshll.u32 (%p79_p3), %s3951_s18, 2  ;;  %s3704_s28 = smul.u32 (%p79_p3), 1152, %s203_s26 }
  0x14   : > { %s4030_s5 = scalar_lea.vmem (%p79_p3), %s4847_s1, %s3326_s27 }
  0x15   : > { %v226_v0 = vld [vmem:[%s4030_s5] sm:$0xf] (%p79_p3)  ;;  %v228_v1 = vld [vmem:[%s4030_s5 + $0x8] sm:$0xf] (%p79_p3)  ;;  %v230_v2 = vld [vmem:[%s4030_s5 + $0x10] sm:$0xf] (%p79_p3) }
  0x16   : > { %v232_v3 = vld [vmem:[%s4030_s5 + $0x18] sm:$0xf] (%p79_p3)  ;;  %v234_v4 = vld [vmem:[%s4030_s5 + $0x20] sm:$0xf] (%p79_p3)  ;;  %s4037_s6 = scalar_lea.vmem (%p79_p3), [#allocation3], %s3704_s28 }
  0x17   : > { %227 = vst [vmem:[%s4037_s6] sm:$0xf] (%p79_p3), %v226_v0  ;;  %229 = vst [vmem:[%s4037_s6 + $0x4] sm:$0xf] (%p79_p3), %v228_v1  ;;  %v236_v5 = vld [vmem:[%s4030_s5 + $0x28] sm:$0xf] (%p79_p3) }
  0x18   : > { %231 = vst [vmem:[%s4037_s6 + $0x8] sm:$0xf] (%p79_p3), %v230_v2  ;;  %233 = vst [vmem:[%s4037_s6 + $0xc] sm:$0xf] (%p79_p3), %v232_v3  ;;  %v238_v6 = vld [vmem:[%s4030_s5 + $0x30] sm:$0xf] (%p79_p3) }
  0x19   : > { %235 = vst [vmem:[%s4037_s6 + $0x10] sm:$0xf] %v234_v4  ;;  %v240_v7 = vld [vmem:[%s4030_s5 + $0x38] sm:$0xf]  ;;  %237 = vst [vmem:[%s4037_s6 + $0x14] sm:$0xf] %v236_v5 }
  0x1a   : > { %239 = vst [vmem:[%s4037_s6 + $0x18] sm:$0xf] %v238_v6  ;;  %241 = vst [vmem:[%s4037_s6 + $0x1c] sm:$0xf] %v240_v7  ;;  %v242_v8 = vld [vmem:[%s4030_s5 + $0x40] sm:$0xf] }
  0x1b   : > { %v244_v9 = vld [vmem:[%s4030_s5 + $0x48] sm:$0xf]  ;;  %v246_v10 = vld [vmem:[%s4030_s5 + $0x50] sm:$0xf]  ;;  %243 = vst [vmem:[%s4037_s6 + $0x20] sm:$0xf] %v242_v8 }
  0x1c   : > { %245 = vst [vmem:[%s4037_s6 + $0x24] sm:$0xf] %v244_v9  ;;  %247 = vst [vmem:[%s4037_s6 + $0x28] sm:$0xf] %v246_v10  ;;  %v248_v11 = vld [vmem:[%s4030_s5 + $0x58] sm:$0xf] }
  0x1d   : > { %v250_v12 = vld [vmem:[%s4030_s5 + $0x60] sm:$0xf]  ;;  %v252_v13 = vld [vmem:[%s4030_s5 + $0x68] sm:$0xf]  ;;  %249 = vst [vmem:[%s4037_s6 + $0x2c] sm:$0xf] %v248_v11 }
  0x1e   : > { %251 = vst [vmem:[%s4037_s6 + $0x30] sm:$0xf] %v250_v12  ;;  %253 = vst [vmem:[%s4037_s6 + $0x34] sm:$0xf] %v252_v13  ;;  %v254_v14 = vld [vmem:[%s4030_s5 + $0x70] sm:$0xf] }
  0x1f   : > { %v256_v15 = vld [vmem:[%s4030_s5 + $0x78] sm:$0xf]  ;;  %v258_v16 = vld [vmem:[%s4030_s5 + $0x80] sm:$0xf]  ;;  %255 = vst [vmem:[%s4037_s6 + $0x38] sm:$0xf] %v254_v14 }
  0x20   : > { %257 = vst [vmem:[%s4037_s6 + $0x3c] sm:$0xf] %v256_v15  ;;  %259 = vst [vmem:[%s4037_s6 + $0x40] sm:$0xf] %v258_v16  ;;  %v260_v17 = vld [vmem:[%s4030_s5 + $0x88] sm:$0xf] }
  0x21   : > { %v262_v18 = vld [vmem:[%s4030_s5 + $0x90] sm:$0xf]  ;;  %v264_v19 = vld [vmem:[%s4030_s5 + $0x98] sm:$0xf]  ;;  %261 = vst [vmem:[%s4037_s6 + $0x44] sm:$0xf] %v260_v17 }
  0x22   : > { %263 = vst [vmem:[%s4037_s6 + $0x48] sm:$0xf] %v262_v18  ;;  %265 = vst [vmem:[%s4037_s6 + $0x4c] sm:$0xf] %v264_v19  ;;  %v266_v20 = vld [vmem:[%s4030_s5 + $0xa0] sm:$0xf] }
  0x23   : > { %v268_v21 = vld [vmem:[%s4030_s5 + $0xa8] sm:$0xf]  ;;  %v270_v22 = vld [vmem:[%s4030_s5 + $0xb0] sm:$0xf]  ;;  %267 = vst [vmem:[%s4037_s6 + $0x50] sm:$0xf] %v266_v20 }
  0x24   : > { %269 = vst [vmem:[%s4037_s6 + $0x54] sm:$0xf] %v268_v21  ;;  %271 = vst [vmem:[%s4037_s6 + $0x58] sm:$0xf] %v270_v22  ;;  %v272_v23 = vld [vmem:[%s4030_s5 + $0xb8] sm:$0xf] }
  0x25   : > { %v274_v24 = vld [vmem:[%s4030_s5 + $0xc0] sm:$0xf]  ;;  %v276_v25 = vld [vmem:[%s4030_s5 + $0xc8] sm:$0xf]  ;;  %273 = vst [vmem:[%s4037_s6 + $0x5c] sm:$0xf] %v272_v23 }
  0x26   : > { %275 = vst [vmem:[%s4037_s6 + $0x60] sm:$0xf] %v274_v24  ;;  %277 = vst [vmem:[%s4037_s6 + $0x64] sm:$0xf] %v276_v25  ;;  %v278_v26 = vld [vmem:[%s4030_s5 + $0xd0] sm:$0xf] }
  0x27   : > { %v280_v27 = vld [vmem:[%s4030_s5 + $0xd8] sm:$0xf]  ;;  %v282_v28 = vld [vmem:[%s4030_s5 + $0xe0] sm:$0xf]  ;;  %279 = vst [vmem:[%s4037_s6 + $0x68] sm:$0xf] %v278_v26 }
  0x28   : > { %281 = vst [vmem:[%s4037_s6 + $0x6c] sm:$0xf] %v280_v27  ;;  %283 = vst [vmem:[%s4037_s6 + $0x70] sm:$0xf] %v282_v28  ;;  %v284_v29 = vld [vmem:[%s4030_s5 + $0xe8] sm:$0xf] }
  0x29   : > { %v286_v30 = vld [vmem:[%s4030_s5 + $0xf0] sm:$0xf]  ;;  %v288_v31 = vld [vmem:[%s4030_s5 + $0xf8] sm:$0xf]  ;;  %285 = vst [vmem:[%s4037_s6 + $0x74] sm:$0xf] %v284_v29 }
  0x2a   : > { %287 = vst [vmem:[%s4037_s6 + $0x78] sm:$0xf] %v286_v30  ;;  %289 = vst [vmem:[%s4037_s6 + $0x7c] sm:$0xf] %v288_v31  ;;  %v290_v32 = vld [vmem:[%s4030_s5 + $0x100] sm:$0xf] }
  0x2b   : > { %v292_v33 = vld [vmem:[%s4030_s5 + $0x108] sm:$0xf]  ;;  %v294_v34 = vld [vmem:[%s4030_s5 + $0x110] sm:$0xf]  ;;  %291 = vst [vmem:[%s4037_s6 + $0x80] sm:$0xf] %v290_v32 }
  0x2c   : > { %293 = vst [vmem:[%s4037_s6 + $0x84] sm:$0xf] %v292_v33  ;;  %295 = vst [vmem:[%s4037_s6 + $0x88] sm:$0xf] %v294_v34  ;;  %v296_v35 = vld [vmem:[%s4030_s5 + $0x118] sm:$0xf] }
  0x2d   : > { %v298_v36 = vld [vmem:[%s4030_s5 + $0x120] sm:$0xf]  ;;  %v300_v37 = vld [vmem:[%s4030_s5 + $0x128] sm:$0xf]  ;;  %297 = vst [vmem:[%s4037_s6 + $0x8c] sm:$0xf] %v296_v35 }
  0x2e   : > { %299 = vst [vmem:[%s4037_s6 + $0x90] sm:$0xf] %v298_v36  ;;  %301 = vst [vmem:[%s4037_s6 + $0x94] sm:$0xf] %v300_v37  ;;  %v302_v38 = vld [vmem:[%s4030_s5 + $0x130] sm:$0xf] }
  0x2f   : > { %v304_v39 = vld [vmem:[%s4030_s5 + $0x138] sm:$0xf]  ;;  %v306_v40 = vld [vmem:[%s4030_s5 + $0x140] sm:$0xf]  ;;  %303 = vst [vmem:[%s4037_s6 + $0x98] sm:$0xf] %v302_v38 }
  0x30   : > { %305 = vst [vmem:[%s4037_s6 + $0x9c] sm:$0xf] %v304_v39  ;;  %307 = vst [vmem:[%s4037_s6 + $0xa0] sm:$0xf] %v306_v40  ;;  %v308_v41 = vld [vmem:[%s4030_s5 + $0x148] sm:$0xf] }
  0x31   : > { %v310_v42 = vld [vmem:[%s4030_s5 + $0x150] sm:$0xf]  ;;  %v312_v43 = vld [vmem:[%s4030_s5 + $0x158] sm:$0xf]  ;;  %309 = vst [vmem:[%s4037_s6 + $0xa4] sm:$0xf] %v308_v41 }
  0x32   : > { %311 = vst [vmem:[%s4037_s6 + $0xa8] sm:$0xf] %v310_v42  ;;  %313 = vst [vmem:[%s4037_s6 + $0xac] sm:$0xf] %v312_v43  ;;  %v314_v44 = vld [vmem:[%s4030_s5 + $0x160] sm:$0xf] }
  0x33   : > { %v316_v45 = vld [vmem:[%s4030_s5 + $0x168] sm:$0xf]  ;;  %v318_v46 = vld [vmem:[%s4030_s5 + $0x170] sm:$0xf]  ;;  %315 = vst [vmem:[%s4037_s6 + $0xb0] sm:$0xf] %v314_v44 }
  0x34   : > { %317 = vst [vmem:[%s4037_s6 + $0xb4] sm:$0xf] %v316_v45  ;;  %319 = vst [vmem:[%s4037_s6 + $0xb8] sm:$0xf] %v318_v46  ;;  %v320_v47 = vld [vmem:[%s4030_s5 + $0x178] sm:$0xf] }
  0x35   : > { %v322_v48 = vld [vmem:[%s4030_s5 + $0x180] sm:$0xf]  ;;  %v324_v49 = vld [vmem:[%s4030_s5 + $0x188] sm:$0xf]  ;;  %321 = vst [vmem:[%s4037_s6 + $0xbc] sm:$0xf] %v320_v47 }
  0x36   : > { %323 = vst [vmem:[%s4037_s6 + $0xc0] sm:$0xf] %v322_v48  ;;  %325 = vst [vmem:[%s4037_s6 + $0xc4] sm:$0xf] %v324_v49  ;;  %v326_v50 = vld [vmem:[%s4030_s5 + $0x190] sm:$0xf] }
  0x37   : > { %v328_v51 = vld [vmem:[%s4030_s5 + $0x198] sm:$0xf]  ;;  %v330_v52 = vld [vmem:[%s4030_s5 + $0x1a0] sm:$0xf]  ;;  %327 = vst [vmem:[%s4037_s6 + $0xc8] sm:$0xf] %v326_v50 }
  0x38   : > { %329 = vst [vmem:[%s4037_s6 + $0xcc] sm:$0xf] %v328_v51  ;;  %331 = vst [vmem:[%s4037_s6 + $0xd0] sm:$0xf] %v330_v52  ;;  %v332_v53 = vld [vmem:[%s4030_s5 + $0x1a8] sm:$0xf] }
  0x39   : > { %v334_v54 = vld [vmem:[%s4030_s5 + $0x1b0] sm:$0xf]  ;;  %v336_v55 = vld [vmem:[%s4030_s5 + $0x1b8] sm:$0xf]  ;;  %333 = vst [vmem:[%s4037_s6 + $0xd4] sm:$0xf] %v332_v53 }
  0x3a   : > { %335 = vst [vmem:[%s4037_s6 + $0xd8] sm:$0xf] %v334_v54  ;;  %337 = vst [vmem:[%s4037_s6 + $0xdc] sm:$0xf] %v336_v55  ;;  %v338_v56 = vld [vmem:[%s4030_s5 + $0x1c0] sm:$0xf] }
  0x3b   : > { %v340_v57 = vld [vmem:[%s4030_s5 + $0x1c8] sm:$0xf]  ;;  %v342_v58 = vld [vmem:[%s4030_s5 + $0x1d0] sm:$0xf]  ;;  %339 = vst [vmem:[%s4037_s6 + $0xe0] sm:$0xf] %v338_v56 }
  0x3c   : > { %341 = vst [vmem:[%s4037_s6 + $0xe4] sm:$0xf] %v340_v57  ;;  %343 = vst [vmem:[%s4037_s6 + $0xe8] sm:$0xf] %v342_v58  ;;  %v344_v59 = vld [vmem:[%s4030_s5 + $0x1d8] sm:$0xf] }
  0x3d   : > { %v346_v60 = vld [vmem:[%s4030_s5 + $0x1e0] sm:$0xf]  ;;  %v348_v61 = vld [vmem:[%s4030_s5 + $0x1e8] sm:$0xf]  ;;  %345 = vst [vmem:[%s4037_s6 + $0xec] sm:$0xf] %v344_v59 }
  0x3e   : > { %347 = vst [vmem:[%s4037_s6 + $0xf0] sm:$0xf] %v346_v60  ;;  %349 = vst [vmem:[%s4037_s6 + $0xf4] sm:$0xf] %v348_v61  ;;  %v350_v62 = vld [vmem:[%s4030_s5 + $0x1f0] sm:$0xf] }
  0x3f   : > { %v352_v63 = vld [vmem:[%s4030_s5 + $0x1f8] sm:$0xf]  ;;  %v354_v0 = vld [vmem:[%s4030_s5 + $0x200] sm:$0xf]  ;;  %351 = vst [vmem:[%s4037_s6 + $0xf8] sm:$0xf] %v350_v62 }
  0x40   : > { %353 = vst [vmem:[%s4037_s6 + $0xfc] sm:$0xf] %v352_v63  ;;  %355 = vst [vmem:[%s4037_s6 + $0x100] sm:$0xf] %v354_v0  ;;  %v356_v1 = vld [vmem:[%s4030_s5 + $0x208] sm:$0xf] }
  0x41   : > { %v358_v2 = vld [vmem:[%s4030_s5 + $0x210] sm:$0xf]  ;;  %v360_v3 = vld [vmem:[%s4030_s5 + $0x218] sm:$0xf]  ;;  %357 = vst [vmem:[%s4037_s6 + $0x104] sm:$0xf] %v356_v1 }
  0x42   : > { %359 = vst [vmem:[%s4037_s6 + $0x108] sm:$0xf] %v358_v2  ;;  %361 = vst [vmem:[%s4037_s6 + $0x10c] sm:$0xf] %v360_v3  ;;  %v362_v4 = vld [vmem:[%s4030_s5 + $0x220] sm:$0xf] }
  0x43   : > { %v364_v5 = vld [vmem:[%s4030_s5 + $0x228] sm:$0xf]  ;;  %v366_v6 = vld [vmem:[%s4030_s5 + $0x230] sm:$0xf]  ;;  %363 = vst [vmem:[%s4037_s6 + $0x110] sm:$0xf] %v362_v4 }
  0x44   : > { %365 = vst [vmem:[%s4037_s6 + $0x114] sm:$0xf] %v364_v5  ;;  %367 = vst [vmem:[%s4037_s6 + $0x118] sm:$0xf] %v366_v6  ;;  %v368_v7 = vld [vmem:[%s4030_s5 + $0x238] sm:$0xf] }
  0x45   : > { %v370_v8 = vld [vmem:[%s4030_s5 + $0x240] sm:$0xf]  ;;  %v372_v9 = vld [vmem:[%s4030_s5 + $0x248] sm:$0xf]  ;;  %369 = vst [vmem:[%s4037_s6 + $0x11c] sm:$0xf] %v368_v7 }
  0x46   : > { %371 = vst [vmem:[%s4037_s6 + $0x120] sm:$0xf] %v370_v8  ;;  %373 = vst [vmem:[%s4037_s6 + $0x124] sm:$0xf] %v372_v9  ;;  %v374_v10 = vld [vmem:[%s4030_s5 + $0x250] sm:$0xf] }
  0x47   : > { %v376_v11 = vld [vmem:[%s4030_s5 + $0x258] sm:$0xf]  ;;  %v378_v12 = vld [vmem:[%s4030_s5 + $0x260] sm:$0xf]  ;;  %375 = vst [vmem:[%s4037_s6 + $0x128] sm:$0xf] %v374_v10 }
  0x48   : > { %377 = vst [vmem:[%s4037_s6 + $0x12c] sm:$0xf] %v376_v11  ;;  %379 = vst [vmem:[%s4037_s6 + $0x130] sm:$0xf] %v378_v12  ;;  %v380_v13 = vld [vmem:[%s4030_s5 + $0x268] sm:$0xf] }
  0x49   : > { %v382_v14 = vld [vmem:[%s4030_s5 + $0x270] sm:$0xf]  ;;  %v384_v15 = vld [vmem:[%s4030_s5 + $0x278] sm:$0xf]  ;;  %381 = vst [vmem:[%s4037_s6 + $0x134] sm:$0xf] %v380_v13 }
  0x4a   : > { %383 = vst [vmem:[%s4037_s6 + $0x138] sm:$0xf] %v382_v14  ;;  %385 = vst [vmem:[%s4037_s6 + $0x13c] sm:$0xf] %v384_v15  ;;  %v386_v16 = vld [vmem:[%s4030_s5 + $0x280] sm:$0xf] }
  0x4b   : > { %v388_v17 = vld [vmem:[%s4030_s5 + $0x288] sm:$0xf]  ;;  %v390_v18 = vld [vmem:[%s4030_s5 + $0x290] sm:$0xf]  ;;  %387 = vst [vmem:[%s4037_s6 + $0x140] sm:$0xf] %v386_v16 }
  0x4c   : > { %389 = vst [vmem:[%s4037_s6 + $0x144] sm:$0xf] %v388_v17  ;;  %391 = vst [vmem:[%s4037_s6 + $0x148] sm:$0xf] %v390_v18  ;;  %v392_v19 = vld [vmem:[%s4030_s5 + $0x298] sm:$0xf] }
  0x4d   : > { %v394_v20 = vld [vmem:[%s4030_s5 + $0x2a0] sm:$0xf]  ;;  %v396_v21 = vld [vmem:[%s4030_s5 + $0x2a8] sm:$0xf]  ;;  %393 = vst [vmem:[%s4037_s6 + $0x14c] sm:$0xf] %v392_v19 }
  0x4e   : > { %395 = vst [vmem:[%s4037_s6 + $0x150] sm:$0xf] %v394_v20  ;;  %397 = vst [vmem:[%s4037_s6 + $0x154] sm:$0xf] %v396_v21  ;;  %v398_v22 = vld [vmem:[%s4030_s5 + $0x2b0] sm:$0xf] }
  0x4f   : > { %v400_v23 = vld [vmem:[%s4030_s5 + $0x2b8] sm:$0xf]  ;;  %v402_v24 = vld [vmem:[%s4030_s5 + $0x2c0] sm:$0xf]  ;;  %399 = vst [vmem:[%s4037_s6 + $0x158] sm:$0xf] %v398_v22 }
  0x50   : > { %401 = vst [vmem:[%s4037_s6 + $0x15c] sm:$0xf] %v400_v23  ;;  %403 = vst [vmem:[%s4037_s6 + $0x160] sm:$0xf] %v402_v24  ;;  %v404_v25 = vld [vmem:[%s4030_s5 + $0x2c8] sm:$0xf] }
  0x51   : > { %v406_v26 = vld [vmem:[%s4030_s5 + $0x2d0] sm:$0xf]  ;;  %v408_v27 = vld [vmem:[%s4030_s5 + $0x2d8] sm:$0xf]  ;;  %405 = vst [vmem:[%s4037_s6 + $0x164] sm:$0xf] %v404_v25 }
  0x52   : > { %407 = vst [vmem:[%s4037_s6 + $0x168] sm:$0xf] %v406_v26  ;;  %409 = vst [vmem:[%s4037_s6 + $0x16c] sm:$0xf] %v408_v27  ;;  %v410_v28 = vld [vmem:[%s4030_s5 + $0x2e0] sm:$0xf] }
  0x53   : > { %v412_v29 = vld [vmem:[%s4030_s5 + $0x2e8] sm:$0xf]  ;;  %v414_v30 = vld [vmem:[%s4030_s5 + $0x2f0] sm:$0xf]  ;;  %411 = vst [vmem:[%s4037_s6 + $0x170] sm:$0xf] %v410_v28 }
  0x54   : > { %413 = vst [vmem:[%s4037_s6 + $0x174] sm:$0xf] %v412_v29  ;;  %415 = vst [vmem:[%s4037_s6 + $0x178] sm:$0xf] %v414_v30  ;;  %v416_v31 = vld [vmem:[%s4030_s5 + $0x2f8] sm:$0xf] }
  0x55   : > { %v418_v32 = vld [vmem:[%s4030_s5 + $0x300] sm:$0xf]  ;;  %v420_v33 = vld [vmem:[%s4030_s5 + $0x308] sm:$0xf]  ;;  %417 = vst [vmem:[%s4037_s6 + $0x17c] sm:$0xf] %v416_v31 }
  0x56   : > { %419 = vst [vmem:[%s4037_s6 + $0x180] sm:$0xf] %v418_v32  ;;  %421 = vst [vmem:[%s4037_s6 + $0x184] sm:$0xf] %v420_v33  ;;  %v422_v34 = vld [vmem:[%s4030_s5 + $0x310] sm:$0xf] }
  0x57   : > { %v424_v35 = vld [vmem:[%s4030_s5 + $0x318] sm:$0xf]  ;;  %v426_v36 = vld [vmem:[%s4030_s5 + $0x320] sm:$0xf]  ;;  %423 = vst [vmem:[%s4037_s6 + $0x188] sm:$0xf] %v422_v34 }
  0x58   : > { %425 = vst [vmem:[%s4037_s6 + $0x18c] sm:$0xf] %v424_v35  ;;  %427 = vst [vmem:[%s4037_s6 + $0x190] sm:$0xf] %v426_v36  ;;  %v428_v37 = vld [vmem:[%s4030_s5 + $0x328] sm:$0xf] }
  0x59   : > { %v430_v38 = vld [vmem:[%s4030_s5 + $0x330] sm:$0xf]  ;;  %v432_v39 = vld [vmem:[%s4030_s5 + $0x338] sm:$0xf]  ;;  %429 = vst [vmem:[%s4037_s6 + $0x194] sm:$0xf] %v428_v37 }
  0x5a   : > { %431 = vst [vmem:[%s4037_s6 + $0x198] sm:$0xf] %v430_v38  ;;  %433 = vst [vmem:[%s4037_s6 + $0x19c] sm:$0xf] %v432_v39  ;;  %v434_v40 = vld [vmem:[%s4030_s5 + $0x340] sm:$0xf] }
  0x5b   : > { %v436_v41 = vld [vmem:[%s4030_s5 + $0x348] sm:$0xf]  ;;  %v438_v42 = vld [vmem:[%s4030_s5 + $0x350] sm:$0xf]  ;;  %435 = vst [vmem:[%s4037_s6 + $0x1a0] sm:$0xf] %v434_v40 }
  0x5c   : > { %437 = vst [vmem:[%s4037_s6 + $0x1a4] sm:$0xf] %v436_v41  ;;  %439 = vst [vmem:[%s4037_s6 + $0x1a8] sm:$0xf] %v438_v42  ;;  %v440_v43 = vld [vmem:[%s4030_s5 + $0x358] sm:$0xf] }
  0x5d   : > { %v442_v44 = vld [vmem:[%s4030_s5 + $0x360] sm:$0xf]  ;;  %v444_v45 = vld [vmem:[%s4030_s5 + $0x368] sm:$0xf]  ;;  %441 = vst [vmem:[%s4037_s6 + $0x1ac] sm:$0xf] %v440_v43 }
  0x5e   : > { %443 = vst [vmem:[%s4037_s6 + $0x1b0] sm:$0xf] %v442_v44  ;;  %445 = vst [vmem:[%s4037_s6 + $0x1b4] sm:$0xf] %v444_v45  ;;  %v446_v46 = vld [vmem:[%s4030_s5 + $0x370] sm:$0xf] }
  0x5f   : > { %v448_v47 = vld [vmem:[%s4030_s5 + $0x378] sm:$0xf]  ;;  %v450_v48 = vld [vmem:[%s4030_s5 + $0x380] sm:$0xf]  ;;  %447 = vst [vmem:[%s4037_s6 + $0x1b8] sm:$0xf] %v446_v46 }
  0x60   : > { %449 = vst [vmem:[%s4037_s6 + $0x1bc] sm:$0xf] %v448_v47  ;;  %451 = vst [vmem:[%s4037_s6 + $0x1c0] sm:$0xf] %v450_v48  ;;  %v452_v49 = vld [vmem:[%s4030_s5 + $0x388] sm:$0xf] }
  0x61   : > { %v454_v50 = vld [vmem:[%s4030_s5 + $0x390] sm:$0xf]  ;;  %v456_v51 = vld [vmem:[%s4030_s5 + $0x398] sm:$0xf]  ;;  %453 = vst [vmem:[%s4037_s6 + $0x1c4] sm:$0xf] %v452_v49 }
  0x62   : > { %455 = vst [vmem:[%s4037_s6 + $0x1c8] sm:$0xf] %v454_v50  ;;  %457 = vst [vmem:[%s4037_s6 + $0x1cc] sm:$0xf] %v456_v51  ;;  %v458_v52 = vld [vmem:[%s4030_s5 + $0x3a0] sm:$0xf] }
  0x63   : > { %v460_v53 = vld [vmem:[%s4030_s5 + $0x3a8] sm:$0xf]  ;;  %v462_v54 = vld [vmem:[%s4030_s5 + $0x3b0] sm:$0xf]  ;;  %459 = vst [vmem:[%s4037_s6 + $0x1d0] sm:$0xf] %v458_v52 }
  0x64   : > { %461 = vst [vmem:[%s4037_s6 + $0x1d4] sm:$0xf] %v460_v53  ;;  %463 = vst [vmem:[%s4037_s6 + $0x1d8] sm:$0xf] %v462_v54  ;;  %v464_v55 = vld [vmem:[%s4030_s5 + $0x3b8] sm:$0xf] }
  0x65   : > { %v466_v56 = vld [vmem:[%s4030_s5 + $0x3c0] sm:$0xf]  ;;  %v468_v57 = vld [vmem:[%s4030_s5 + $0x3c8] sm:$0xf]  ;;  %465 = vst [vmem:[%s4037_s6 + $0x1dc] sm:$0xf] %v464_v55 }
  0x66   : > { %467 = vst [vmem:[%s4037_s6 + $0x1e0] sm:$0xf] %v466_v56  ;;  %469 = vst [vmem:[%s4037_s6 + $0x1e4] sm:$0xf] %v468_v57  ;;  %v470_v58 = vld [vmem:[%s4030_s5 + $0x3d0] sm:$0xf] }
  0x67   : > { %v472_v59 = vld [vmem:[%s4030_s5 + $0x3d8] sm:$0xf]  ;;  %v474_v60 = vld [vmem:[%s4030_s5 + $0x3e0] sm:$0xf]  ;;  %471 = vst [vmem:[%s4037_s6 + $0x1e8] sm:$0xf] %v470_v58 }
  0x68   : > { %473 = vst [vmem:[%s4037_s6 + $0x1ec] sm:$0xf] %v472_v59  ;;  %475 = vst [vmem:[%s4037_s6 + $0x1f0] sm:$0xf] %v474_v60  ;;  %v476_v61 = vld [vmem:[%s4030_s5 + $0x3e8] sm:$0xf] }
  0x69   : > { %v478_v62 = vld [vmem:[%s4030_s5 + $0x3f0] sm:$0xf]  ;;  %v480_v63 = vld [vmem:[%s4030_s5 + $0x3f8] sm:$0xf]  ;;  %477 = vst [vmem:[%s4037_s6 + $0x1f4] sm:$0xf] %v476_v61 }
  0x6a   : > { %479 = vst [vmem:[%s4037_s6 + $0x1f8] sm:$0xf] %v478_v62  ;;  %481 = vst [vmem:[%s4037_s6 + $0x1fc] sm:$0xf] %v480_v63  ;;  %v482_v0 = vld [vmem:[%s4030_s5 + $0x400] sm:$0xf] }
  0x6b   : > { %v484_v1 = vld [vmem:[%s4030_s5 + $0x408] sm:$0xf]  ;;  %v486_v2 = vld [vmem:[%s4030_s5 + $0x410] sm:$0xf]  ;;  %483 = vst [vmem:[%s4037_s6 + $0x200] sm:$0xf] %v482_v0 }
  0x6c   : > { %485 = vst [vmem:[%s4037_s6 + $0x204] sm:$0xf] %v484_v1  ;;  %487 = vst [vmem:[%s4037_s6 + $0x208] sm:$0xf] %v486_v2  ;;  %v488_v3 = vld [vmem:[%s4030_s5 + $0x418] sm:$0xf] }
  0x6d   : > { %v490_v4 = vld [vmem:[%s4030_s5 + $0x420] sm:$0xf]  ;;  %v492_v5 = vld [vmem:[%s4030_s5 + $0x428] sm:$0xf]  ;;  %489 = vst [vmem:[%s4037_s6 + $0x20c] sm:$0xf] %v488_v3 }
  0x6e   : > { %491 = vst [vmem:[%s4037_s6 + $0x210] sm:$0xf] %v490_v4  ;;  %493 = vst [vmem:[%s4037_s6 + $0x214] sm:$0xf] %v492_v5  ;;  %v494_v6 = vld [vmem:[%s4030_s5 + $0x430] sm:$0xf] }
  0x6f   : > { %v496_v7 = vld [vmem:[%s4030_s5 + $0x438] sm:$0xf]  ;;  %v498_v8 = vld [vmem:[%s4030_s5 + $0x440] sm:$0xf]  ;;  %495 = vst [vmem:[%s4037_s6 + $0x218] sm:$0xf] %v494_v6 }
  0x70   : > { %497 = vst [vmem:[%s4037_s6 + $0x21c] sm:$0xf] %v496_v7  ;;  %499 = vst [vmem:[%s4037_s6 + $0x220] sm:$0xf] %v498_v8  ;;  %v500_v9 = vld [vmem:[%s4030_s5 + $0x448] sm:$0xf] }
  0x71   : > { %v502_v10 = vld [vmem:[%s4030_s5 + $0x450] sm:$0xf]  ;;  %v504_v11 = vld [vmem:[%s4030_s5 + $0x458] sm:$0xf]  ;;  %501 = vst [vmem:[%s4037_s6 + $0x224] sm:$0xf] %v500_v9 }
  0x72   : > { %503 = vst [vmem:[%s4037_s6 + $0x228] sm:$0xf] %v502_v10  ;;  %505 = vst [vmem:[%s4037_s6 + $0x22c] sm:$0xf] %v504_v11  ;;  %v506_v12 = vld [vmem:[%s4030_s5 + $0x460] sm:$0xf] }
  0x73   : > { %v508_v13 = vld [vmem:[%s4030_s5 + $0x468] sm:$0xf]  ;;  %v510_v14 = vld [vmem:[%s4030_s5 + $0x470] sm:$0xf]  ;;  %507 = vst [vmem:[%s4037_s6 + $0x230] sm:$0xf] %v506_v12 }
  0x74   : > { %509 = vst [vmem:[%s4037_s6 + $0x234] sm:$0xf] %v508_v13  ;;  %511 = vst [vmem:[%s4037_s6 + $0x238] sm:$0xf] %v510_v14  ;;  %v512_v15 = vld [vmem:[%s4030_s5 + $0x478] sm:$0xf] }
  0x75   : > { %v514_v16 = vld [vmem:[%s4030_s5 + $0x480] sm:$0xf]  ;;  %v516_v17 = vld [vmem:[%s4030_s5 + $0x488] sm:$0xf]  ;;  %513 = vst [vmem:[%s4037_s6 + $0x23c] sm:$0xf] %v512_v15 }
  0x76   : > { %515 = vst [vmem:[%s4037_s6 + $0x240] sm:$0xf] %v514_v16  ;;  %517 = vst [vmem:[%s4037_s6 + $0x244] sm:$0xf] %v516_v17  ;;  %v518_v18 = vld [vmem:[%s4030_s5 + $0x490] sm:$0xf] }
  0x77   : > { %v520_v19 = vld [vmem:[%s4030_s5 + $0x498] sm:$0xf]  ;;  %v522_v20 = vld [vmem:[%s4030_s5 + $0x4a0] sm:$0xf]  ;;  %519 = vst [vmem:[%s4037_s6 + $0x248] sm:$0xf] %v518_v18 }
  0x78   : > { %521 = vst [vmem:[%s4037_s6 + $0x24c] sm:$0xf] %v520_v19  ;;  %523 = vst [vmem:[%s4037_s6 + $0x250] sm:$0xf] %v522_v20  ;;  %v524_v21 = vld [vmem:[%s4030_s5 + $0x4a8] sm:$0xf] }
  0x79   : > { %v526_v22 = vld [vmem:[%s4030_s5 + $0x4b0] sm:$0xf]  ;;  %v528_v23 = vld [vmem:[%s4030_s5 + $0x4b8] sm:$0xf]  ;;  %525 = vst [vmem:[%s4037_s6 + $0x254] sm:$0xf] %v524_v21 }
  0x7a   : > { %527 = vst [vmem:[%s4037_s6 + $0x258] sm:$0xf] %v526_v22  ;;  %529 = vst [vmem:[%s4037_s6 + $0x25c] sm:$0xf] %v528_v23  ;;  %v530_v24 = vld [vmem:[%s4030_s5 + $0x4c0] sm:$0xf] }
  0x7b   : > { %v532_v25 = vld [vmem:[%s4030_s5 + $0x4c8] sm:$0xf]  ;;  %v534_v26 = vld [vmem:[%s4030_s5 + $0x4d0] sm:$0xf]  ;;  %531 = vst [vmem:[%s4037_s6 + $0x260] sm:$0xf] %v530_v24 }
  0x7c   : > { %533 = vst [vmem:[%s4037_s6 + $0x264] sm:$0xf] %v532_v25  ;;  %535 = vst [vmem:[%s4037_s6 + $0x268] sm:$0xf] %v534_v26  ;;  %v536_v27 = vld [vmem:[%s4030_s5 + $0x4d8] sm:$0xf] }
  0x7d   : > { %v538_v28 = vld [vmem:[%s4030_s5 + $0x4e0] sm:$0xf]  ;;  %v540_v29 = vld [vmem:[%s4030_s5 + $0x4e8] sm:$0xf]  ;;  %537 = vst [vmem:[%s4037_s6 + $0x26c] sm:$0xf] %v536_v27 }
  0x7e   : > { %539 = vst [vmem:[%s4037_s6 + $0x270] sm:$0xf] %v538_v28  ;;  %541 = vst [vmem:[%s4037_s6 + $0x274] sm:$0xf] %v540_v29  ;;  %v542_v30 = vld [vmem:[%s4030_s5 + $0x4f0] sm:$0xf] }
  0x7f   : > { %v544_v31 = vld [vmem:[%s4030_s5 + $0x4f8] sm:$0xf]  ;;  %v546_v32 = vld [vmem:[%s4030_s5 + $0x500] sm:$0xf]  ;;  %543 = vst [vmem:[%s4037_s6 + $0x278] sm:$0xf] %v542_v30 }
  0x80   : > { %545 = vst [vmem:[%s4037_s6 + $0x27c] sm:$0xf] %v544_v31  ;;  %547 = vst [vmem:[%s4037_s6 + $0x280] sm:$0xf] %v546_v32  ;;  %v548_v33 = vld [vmem:[%s4030_s5 + $0x508] sm:$0xf] }
  0x81   : > { %v550_v34 = vld [vmem:[%s4030_s5 + $0x510] sm:$0xf]  ;;  %v552_v35 = vld [vmem:[%s4030_s5 + $0x518] sm:$0xf]  ;;  %549 = vst [vmem:[%s4037_s6 + $0x284] sm:$0xf] %v548_v33 }
  0x82   : > { %551 = vst [vmem:[%s4037_s6 + $0x288] sm:$0xf] %v550_v34  ;;  %553 = vst [vmem:[%s4037_s6 + $0x28c] sm:$0xf] %v552_v35  ;;  %v554_v36 = vld [vmem:[%s4030_s5 + $0x520] sm:$0xf] }
  0x83   : > { %v556_v37 = vld [vmem:[%s4030_s5 + $0x528] sm:$0xf]  ;;  %v558_v38 = vld [vmem:[%s4030_s5 + $0x530] sm:$0xf]  ;;  %555 = vst [vmem:[%s4037_s6 + $0x290] sm:$0xf] %v554_v36 }
  0x84   : > { %557 = vst [vmem:[%s4037_s6 + $0x294] sm:$0xf] %v556_v37  ;;  %559 = vst [vmem:[%s4037_s6 + $0x298] sm:$0xf] %v558_v38  ;;  %v560_v39 = vld [vmem:[%s4030_s5 + $0x538] sm:$0xf] }
  0x85   : > { %v562_v40 = vld [vmem:[%s4030_s5 + $0x540] sm:$0xf]  ;;  %v564_v41 = vld [vmem:[%s4030_s5 + $0x548] sm:$0xf]  ;;  %561 = vst [vmem:[%s4037_s6 + $0x29c] sm:$0xf] %v560_v39 }
  0x86   : > { %563 = vst [vmem:[%s4037_s6 + $0x2a0] sm:$0xf] %v562_v40  ;;  %565 = vst [vmem:[%s4037_s6 + $0x2a4] sm:$0xf] %v564_v41  ;;  %v566_v42 = vld [vmem:[%s4030_s5 + $0x550] sm:$0xf] }
  0x87   : > { %v568_v43 = vld [vmem:[%s4030_s5 + $0x558] sm:$0xf]  ;;  %v570_v44 = vld [vmem:[%s4030_s5 + $0x560] sm:$0xf]  ;;  %567 = vst [vmem:[%s4037_s6 + $0x2a8] sm:$0xf] %v566_v42 }
  0x88   : > { %569 = vst [vmem:[%s4037_s6 + $0x2ac] sm:$0xf] %v568_v43  ;;  %571 = vst [vmem:[%s4037_s6 + $0x2b0] sm:$0xf] %v570_v44  ;;  %v572_v45 = vld [vmem:[%s4030_s5 + $0x568] sm:$0xf] }
  0x89   : > { %v574_v46 = vld [vmem:[%s4030_s5 + $0x570] sm:$0xf]  ;;  %v576_v47 = vld [vmem:[%s4030_s5 + $0x578] sm:$0xf]  ;;  %573 = vst [vmem:[%s4037_s6 + $0x2b4] sm:$0xf] %v572_v45 }
  0x8a   : > { %575 = vst [vmem:[%s4037_s6 + $0x2b8] sm:$0xf] %v574_v46  ;;  %577 = vst [vmem:[%s4037_s6 + $0x2bc] sm:$0xf] %v576_v47  ;;  %v578_v48 = vld [vmem:[%s4030_s5 + $0x580] sm:$0xf] }
  0x8b   : > { %v580_v49 = vld [vmem:[%s4030_s5 + $0x588] sm:$0xf]  ;;  %v582_v50 = vld [vmem:[%s4030_s5 + $0x590] sm:$0xf]  ;;  %579 = vst [vmem:[%s4037_s6 + $0x2c0] sm:$0xf] %v578_v48 }
  0x8c   : > { %581 = vst [vmem:[%s4037_s6 + $0x2c4] sm:$0xf] %v580_v49  ;;  %583 = vst [vmem:[%s4037_s6 + $0x2c8] sm:$0xf] %v582_v50  ;;  %v584_v51 = vld [vmem:[%s4030_s5 + $0x598] sm:$0xf] }
  0x8d   : > { %v586_v52 = vld [vmem:[%s4030_s5 + $0x5a0] sm:$0xf]  ;;  %v588_v53 = vld [vmem:[%s4030_s5 + $0x5a8] sm:$0xf]  ;;  %585 = vst [vmem:[%s4037_s6 + $0x2cc] sm:$0xf] %v584_v51 }
  0x8e   : > { %587 = vst [vmem:[%s4037_s6 + $0x2d0] sm:$0xf] %v586_v52  ;;  %589 = vst [vmem:[%s4037_s6 + $0x2d4] sm:$0xf] %v588_v53  ;;  %v590_v54 = vld [vmem:[%s4030_s5 + $0x5b0] sm:$0xf] }
  0x8f   : > { %v592_v55 = vld [vmem:[%s4030_s5 + $0x5b8] sm:$0xf]  ;;  %v594_v56 = vld [vmem:[%s4030_s5 + $0x5c0] sm:$0xf]  ;;  %591 = vst [vmem:[%s4037_s6 + $0x2d8] sm:$0xf] %v590_v54 }
  0x90   : > { %593 = vst [vmem:[%s4037_s6 + $0x2dc] sm:$0xf] %v592_v55  ;;  %595 = vst [vmem:[%s4037_s6 + $0x2e0] sm:$0xf] %v594_v56  ;;  %v596_v57 = vld [vmem:[%s4030_s5 + $0x5c8] sm:$0xf] }
  0x91   : > { %v598_v58 = vld [vmem:[%s4030_s5 + $0x5d0] sm:$0xf]  ;;  %v600_v59 = vld [vmem:[%s4030_s5 + $0x5d8] sm:$0xf]  ;;  %597 = vst [vmem:[%s4037_s6 + $0x2e4] sm:$0xf] %v596_v57 }
  0x92   : > { %599 = vst [vmem:[%s4037_s6 + $0x2e8] sm:$0xf] %v598_v58  ;;  %601 = vst [vmem:[%s4037_s6 + $0x2ec] sm:$0xf] %v600_v59  ;;  %v602_v60 = vld [vmem:[%s4030_s5 + $0x5e0] sm:$0xf] }
  0x93   : > { %v604_v61 = vld [vmem:[%s4030_s5 + $0x5e8] sm:$0xf]  ;;  %v606_v62 = vld [vmem:[%s4030_s5 + $0x5f0] sm:$0xf]  ;;  %603 = vst [vmem:[%s4037_s6 + $0x2f0] sm:$0xf] %v602_v60 }
  0x94   : > { %605 = vst [vmem:[%s4037_s6 + $0x2f4] sm:$0xf] %v604_v61  ;;  %607 = vst [vmem:[%s4037_s6 + $0x2f8] sm:$0xf] %v606_v62  ;;  %v608_v63 = vld [vmem:[%s4030_s5 + $0x5f8] sm:$0xf] }
  0x95   : > { %v610_v0 = vld [vmem:[%s4030_s5 + $0x600] sm:$0xf]  ;;  %v612_v1 = vld [vmem:[%s4030_s5 + $0x608] sm:$0xf]  ;;  %609 = vst [vmem:[%s4037_s6 + $0x2fc] sm:$0xf] %v608_v63 }
  0x96   : > { %611 = vst [vmem:[%s4037_s6 + $0x300] sm:$0xf] %v610_v0  ;;  %613 = vst [vmem:[%s4037_s6 + $0x304] sm:$0xf] %v612_v1  ;;  %v614_v2 = vld [vmem:[%s4030_s5 + $0x610] sm:$0xf] }
  0x97   : > { %v616_v3 = vld [vmem:[%s4030_s5 + $0x618] sm:$0xf]  ;;  %v618_v4 = vld [vmem:[%s4030_s5 + $0x620] sm:$0xf]  ;;  %615 = vst [vmem:[%s4037_s6 + $0x308] sm:$0xf] %v614_v2 }
  0x98   : > { %617 = vst [vmem:[%s4037_s6 + $0x30c] sm:$0xf] %v616_v3  ;;  %619 = vst [vmem:[%s4037_s6 + $0x310] sm:$0xf] %v618_v4  ;;  %v620_v5 = vld [vmem:[%s4030_s5 + $0x628] sm:$0xf] }
  0x99   : > { %v622_v6 = vld [vmem:[%s4030_s5 + $0x630] sm:$0xf]  ;;  %v624_v7 = vld [vmem:[%s4030_s5 + $0x638] sm:$0xf]  ;;  %621 = vst [vmem:[%s4037_s6 + $0x314] sm:$0xf] %v620_v5 }
  0x9a   : > { %623 = vst [vmem:[%s4037_s6 + $0x318] sm:$0xf] %v622_v6  ;;  %625 = vst [vmem:[%s4037_s6 + $0x31c] sm:$0xf] %v624_v7  ;;  %v626_v8 = vld [vmem:[%s4030_s5 + $0x640] sm:$0xf] }
  0x9b   : > { %v628_v9 = vld [vmem:[%s4030_s5 + $0x648] sm:$0xf]  ;;  %v630_v10 = vld [vmem:[%s4030_s5 + $0x650] sm:$0xf]  ;;  %627 = vst [vmem:[%s4037_s6 + $0x320] sm:$0xf] %v626_v8 }
  0x9c   : > { %629 = vst [vmem:[%s4037_s6 + $0x324] sm:$0xf] %v628_v9  ;;  %631 = vst [vmem:[%s4037_s6 + $0x328] sm:$0xf] %v630_v10  ;;  %v632_v11 = vld [vmem:[%s4030_s5 + $0x658] sm:$0xf] }
  0x9d   : > { %v634_v12 = vld [vmem:[%s4030_s5 + $0x660] sm:$0xf]  ;;  %v636_v13 = vld [vmem:[%s4030_s5 + $0x668] sm:$0xf]  ;;  %633 = vst [vmem:[%s4037_s6 + $0x32c] sm:$0xf] %v632_v11 }
  0x9e   : > { %635 = vst [vmem:[%s4037_s6 + $0x330] sm:$0xf] %v634_v12  ;;  %637 = vst [vmem:[%s4037_s6 + $0x334] sm:$0xf] %v636_v13  ;;  %v638_v14 = vld [vmem:[%s4030_s5 + $0x670] sm:$0xf] }
  0x9f   : > { %v640_v15 = vld [vmem:[%s4030_s5 + $0x678] sm:$0xf]  ;;  %v642_v16 = vld [vmem:[%s4030_s5 + $0x680] sm:$0xf]  ;;  %639 = vst [vmem:[%s4037_s6 + $0x338] sm:$0xf] %v638_v14 }
  0xa0   : > { %641 = vst [vmem:[%s4037_s6 + $0x33c] sm:$0xf] %v640_v15  ;;  %643 = vst [vmem:[%s4037_s6 + $0x340] sm:$0xf] %v642_v16  ;;  %v644_v17 = vld [vmem:[%s4030_s5 + $0x688] sm:$0xf] }
  0xa1   : > { %v646_v18 = vld [vmem:[%s4030_s5 + $0x690] sm:$0xf]  ;;  %v648_v19 = vld [vmem:[%s4030_s5 + $0x698] sm:$0xf]  ;;  %645 = vst [vmem:[%s4037_s6 + $0x344] sm:$0xf] %v644_v17 }
  0xa2   : > { %647 = vst [vmem:[%s4037_s6 + $0x348] sm:$0xf] %v646_v18  ;;  %649 = vst [vmem:[%s4037_s6 + $0x34c] sm:$0xf] %v648_v19  ;;  %v650_v20 = vld [vmem:[%s4030_s5 + $0x6a0] sm:$0xf] }
  0xa3   : > { %v652_v21 = vld [vmem:[%s4030_s5 + $0x6a8] sm:$0xf]  ;;  %v654_v22 = vld [vmem:[%s4030_s5 + $0x6b0] sm:$0xf]  ;;  %651 = vst [vmem:[%s4037_s6 + $0x350] sm:$0xf] %v650_v20 }
  0xa4   : > { %653 = vst [vmem:[%s4037_s6 + $0x354] sm:$0xf] %v652_v21  ;;  %655 = vst [vmem:[%s4037_s6 + $0x358] sm:$0xf] %v654_v22  ;;  %v656_v23 = vld [vmem:[%s4030_s5 + $0x6b8] sm:$0xf] }
  0xa5   : > { %v658_v24 = vld [vmem:[%s4030_s5 + $0x6c0] sm:$0xf]  ;;  %v660_v25 = vld [vmem:[%s4030_s5 + $0x6c8] sm:$0xf]  ;;  %657 = vst [vmem:[%s4037_s6 + $0x35c] sm:$0xf] %v656_v23 }
  0xa6   : > { %659 = vst [vmem:[%s4037_s6 + $0x360] sm:$0xf] %v658_v24  ;;  %661 = vst [vmem:[%s4037_s6 + $0x364] sm:$0xf] %v660_v25  ;;  %v662_v26 = vld [vmem:[%s4030_s5 + $0x6d0] sm:$0xf] }
  0xa7   : > { %v664_v27 = vld [vmem:[%s4030_s5 + $0x6d8] sm:$0xf]  ;;  %v666_v28 = vld [vmem:[%s4030_s5 + $0x6e0] sm:$0xf]  ;;  %663 = vst [vmem:[%s4037_s6 + $0x368] sm:$0xf] %v662_v26 }
  0xa8   : > { %665 = vst [vmem:[%s4037_s6 + $0x36c] sm:$0xf] %v664_v27  ;;  %667 = vst [vmem:[%s4037_s6 + $0x370] sm:$0xf] %v666_v28  ;;  %v668_v29 = vld [vmem:[%s4030_s5 + $0x6e8] sm:$0xf] }
  0xa9   : > { %v670_v30 = vld [vmem:[%s4030_s5 + $0x6f0] sm:$0xf]  ;;  %v672_v31 = vld [vmem:[%s4030_s5 + $0x6f8] sm:$0xf]  ;;  %669 = vst [vmem:[%s4037_s6 + $0x374] sm:$0xf] %v668_v29 }
  0xaa   : > { %671 = vst [vmem:[%s4037_s6 + $0x378] sm:$0xf] %v670_v30  ;;  %673 = vst [vmem:[%s4037_s6 + $0x37c] sm:$0xf] %v672_v31  ;;  %v674_v32 = vld [vmem:[%s4030_s5 + $0x700] sm:$0xf] }
  0xab   : > { %v676_v33 = vld [vmem:[%s4030_s5 + $0x708] sm:$0xf]  ;;  %v678_v34 = vld [vmem:[%s4030_s5 + $0x710] sm:$0xf]  ;;  %675 = vst [vmem:[%s4037_s6 + $0x380] sm:$0xf] %v674_v32 }
  0xac   : > { %677 = vst [vmem:[%s4037_s6 + $0x384] sm:$0xf] %v676_v33  ;;  %679 = vst [vmem:[%s4037_s6 + $0x388] sm:$0xf] %v678_v34  ;;  %v680_v35 = vld [vmem:[%s4030_s5 + $0x718] sm:$0xf] }
  0xad   : > { %v682_v36 = vld [vmem:[%s4030_s5 + $0x720] sm:$0xf]  ;;  %v684_v37 = vld [vmem:[%s4030_s5 + $0x728] sm:$0xf]  ;;  %681 = vst [vmem:[%s4037_s6 + $0x38c] sm:$0xf] %v680_v35 }
  0xae   : > { %683 = vst [vmem:[%s4037_s6 + $0x390] sm:$0xf] %v682_v36  ;;  %685 = vst [vmem:[%s4037_s6 + $0x394] sm:$0xf] %v684_v37  ;;  %v686_v38 = vld [vmem:[%s4030_s5 + $0x730] sm:$0xf] }
  0xaf   : > { %v688_v39 = vld [vmem:[%s4030_s5 + $0x738] sm:$0xf]  ;;  %v690_v40 = vld [vmem:[%s4030_s5 + $0x740] sm:$0xf]  ;;  %687 = vst [vmem:[%s4037_s6 + $0x398] sm:$0xf] %v686_v38 }
  0xb0   : > { %689 = vst [vmem:[%s4037_s6 + $0x39c] sm:$0xf] %v688_v39  ;;  %691 = vst [vmem:[%s4037_s6 + $0x3a0] sm:$0xf] %v690_v40  ;;  %v692_v41 = vld [vmem:[%s4030_s5 + $0x748] sm:$0xf] }
  0xb1   : > { %v694_v42 = vld [vmem:[%s4030_s5 + $0x750] sm:$0xf]  ;;  %v696_v43 = vld [vmem:[%s4030_s5 + $0x758] sm:$0xf]  ;;  %693 = vst [vmem:[%s4037_s6 + $0x3a4] sm:$0xf] %v692_v41 }
  0xb2   : > { %695 = vst [vmem:[%s4037_s6 + $0x3a8] sm:$0xf] %v694_v42  ;;  %697 = vst [vmem:[%s4037_s6 + $0x3ac] sm:$0xf] %v696_v43  ;;  %v698_v44 = vld [vmem:[%s4030_s5 + $0x760] sm:$0xf] }
  0xb3   : > { %v700_v45 = vld [vmem:[%s4030_s5 + $0x768] sm:$0xf]  ;;  %v702_v46 = vld [vmem:[%s4030_s5 + $0x770] sm:$0xf]  ;;  %699 = vst [vmem:[%s4037_s6 + $0x3b0] sm:$0xf] %v698_v44 }
  0xb4   : > { %701 = vst [vmem:[%s4037_s6 + $0x3b4] sm:$0xf] %v700_v45  ;;  %703 = vst [vmem:[%s4037_s6 + $0x3b8] sm:$0xf] %v702_v46  ;;  %v704_v47 = vld [vmem:[%s4030_s5 + $0x778] sm:$0xf] }
  0xb5   : > { %v706_v48 = vld [vmem:[%s4030_s5 + $0x780] sm:$0xf]  ;;  %v708_v49 = vld [vmem:[%s4030_s5 + $0x788] sm:$0xf]  ;;  %705 = vst [vmem:[%s4037_s6 + $0x3bc] sm:$0xf] %v704_v47 }
  0xb6   : > { %707 = vst [vmem:[%s4037_s6 + $0x3c0] sm:$0xf] %v706_v48  ;;  %709 = vst [vmem:[%s4037_s6 + $0x3c4] sm:$0xf] %v708_v49  ;;  %v710_v50 = vld [vmem:[%s4030_s5 + $0x790] sm:$0xf] }
  0xb7   : > { %v712_v51 = vld [vmem:[%s4030_s5 + $0x798] sm:$0xf]  ;;  %v714_v52 = vld [vmem:[%s4030_s5 + $0x7a0] sm:$0xf]  ;;  %711 = vst [vmem:[%s4037_s6 + $0x3c8] sm:$0xf] %v710_v50 }
  0xb8   : > { %713 = vst [vmem:[%s4037_s6 + $0x3cc] sm:$0xf] %v712_v51  ;;  %715 = vst [vmem:[%s4037_s6 + $0x3d0] sm:$0xf] %v714_v52  ;;  %v716_v53 = vld [vmem:[%s4030_s5 + $0x7a8] sm:$0xf] }
  0xb9   : > { %v718_v54 = vld [vmem:[%s4030_s5 + $0x7b0] sm:$0xf]  ;;  %v720_v55 = vld [vmem:[%s4030_s5 + $0x7b8] sm:$0xf]  ;;  %717 = vst [vmem:[%s4037_s6 + $0x3d4] sm:$0xf] %v716_v53 }
  0xba   : > { %719 = vst [vmem:[%s4037_s6 + $0x3d8] sm:$0xf] %v718_v54  ;;  %721 = vst [vmem:[%s4037_s6 + $0x3dc] sm:$0xf] %v720_v55  ;;  %v722_v56 = vld [vmem:[%s4030_s5 + $0x7c0] sm:$0xf] }
  0xbb   : > { %v724_v57 = vld [vmem:[%s4030_s5 + $0x7c8] sm:$0xf]  ;;  %v726_v58 = vld [vmem:[%s4030_s5 + $0x7d0] sm:$0xf]  ;;  %723 = vst [vmem:[%s4037_s6 + $0x3e0] sm:$0xf] %v722_v56 }
  0xbc   : > { %725 = vst [vmem:[%s4037_s6 + $0x3e4] sm:$0xf] %v724_v57  ;;  %727 = vst [vmem:[%s4037_s6 + $0x3e8] sm:$0xf] %v726_v58  ;;  %v728_v59 = vld [vmem:[%s4030_s5 + $0x7d8] sm:$0xf] }
  0xbd   : > { %v730_v60 = vld [vmem:[%s4030_s5 + $0x7e0] sm:$0xf]  ;;  %v732_v61 = vld [vmem:[%s4030_s5 + $0x7e8] sm:$0xf]  ;;  %729 = vst [vmem:[%s4037_s6 + $0x3ec] sm:$0xf] %v728_v59 }
  0xbe   : > { %731 = vst [vmem:[%s4037_s6 + $0x3f0] sm:$0xf] %v730_v60  ;;  %733 = vst [vmem:[%s4037_s6 + $0x3f4] sm:$0xf] %v732_v61  ;;  %v734_v62 = vld [vmem:[%s4030_s5 + $0x7f0] sm:$0xf] }
  0xbf   : > { %v736_v63 = vld [vmem:[%s4030_s5 + $0x7f8] sm:$0xf]  ;;  %v738_v0 = vld [vmem:[%s4030_s5 + $0x800] sm:$0xf]  ;;  %735 = vst [vmem:[%s4037_s6 + $0x3f8] sm:$0xf] %v734_v62 }
  0xc0   : > { %737 = vst [vmem:[%s4037_s6 + $0x3fc] sm:$0xf] %v736_v63  ;;  %739 = vst [vmem:[%s4037_s6 + $0x400] sm:$0xf] %v738_v0  ;;  %v740_v1 = vld [vmem:[%s4030_s5 + $0x808] sm:$0xf] }
  0xc1   : > { %v742_v2 = vld [vmem:[%s4030_s5 + $0x810] sm:$0xf]  ;;  %v744_v3 = vld [vmem:[%s4030_s5 + $0x818] sm:$0xf]  ;;  %741 = vst [vmem:[%s4037_s6 + $0x404] sm:$0xf] %v740_v1 }
  0xc2   : > { %743 = vst [vmem:[%s4037_s6 + $0x408] sm:$0xf] %v742_v2  ;;  %745 = vst [vmem:[%s4037_s6 + $0x40c] sm:$0xf] %v744_v3  ;;  %v746_v4 = vld [vmem:[%s4030_s5 + $0x820] sm:$0xf] }
  0xc3   : > { %v748_v5 = vld [vmem:[%s4030_s5 + $0x828] sm:$0xf]  ;;  %v750_v6 = vld [vmem:[%s4030_s5 + $0x830] sm:$0xf]  ;;  %747 = vst [vmem:[%s4037_s6 + $0x410] sm:$0xf] %v746_v4 }
  0xc4   : > { %749 = vst [vmem:[%s4037_s6 + $0x414] sm:$0xf] %v748_v5  ;;  %751 = vst [vmem:[%s4037_s6 + $0x418] sm:$0xf] %v750_v6  ;;  %v752_v7 = vld [vmem:[%s4030_s5 + $0x838] sm:$0xf] }
  0xc5   : > { %v754_v8 = vld [vmem:[%s4030_s5 + $0x840] sm:$0xf]  ;;  %v756_v9 = vld [vmem:[%s4030_s5 + $0x848] sm:$0xf]  ;;  %753 = vst [vmem:[%s4037_s6 + $0x41c] sm:$0xf] %v752_v7 }
  0xc6   : > { %755 = vst [vmem:[%s4037_s6 + $0x420] sm:$0xf] %v754_v8  ;;  %757 = vst [vmem:[%s4037_s6 + $0x424] sm:$0xf] %v756_v9  ;;  %v758_v10 = vld [vmem:[%s4030_s5 + $0x850] sm:$0xf] }
  0xc7   : > { %v760_v11 = vld [vmem:[%s4030_s5 + $0x858] sm:$0xf]  ;;  %v762_v12 = vld [vmem:[%s4030_s5 + $0x860] sm:$0xf]  ;;  %759 = vst [vmem:[%s4037_s6 + $0x428] sm:$0xf] %v758_v10 }
  0xc8   : > { %761 = vst [vmem:[%s4037_s6 + $0x42c] sm:$0xf] %v760_v11  ;;  %763 = vst [vmem:[%s4037_s6 + $0x430] sm:$0xf] %v762_v12  ;;  %v764_v13 = vld [vmem:[%s4030_s5 + $0x868] sm:$0xf] }
  0xc9   : > { %v766_v14 = vld [vmem:[%s4030_s5 + $0x870] sm:$0xf]  ;;  %v768_v15 = vld [vmem:[%s4030_s5 + $0x878] sm:$0xf]  ;;  %765 = vst [vmem:[%s4037_s6 + $0x434] sm:$0xf] %v764_v13 }
  0xca   : > { %767 = vst [vmem:[%s4037_s6 + $0x438] sm:$0xf] %v766_v14  ;;  %769 = vst [vmem:[%s4037_s6 + $0x43c] sm:$0xf] %v768_v15  ;;  %v770_v16 = vld [vmem:[%s4030_s5 + $0x880] sm:$0xf] }
  0xcb   : > { %v772_v17 = vld [vmem:[%s4030_s5 + $0x888] sm:$0xf]  ;;  %v774_v18 = vld [vmem:[%s4030_s5 + $0x890] sm:$0xf]  ;;  %771 = vst [vmem:[%s4037_s6 + $0x440] sm:$0xf] %v770_v16 }
  0xcc   : > { %773 = vst [vmem:[%s4037_s6 + $0x444] sm:$0xf] %v772_v17  ;;  %775 = vst [vmem:[%s4037_s6 + $0x448] sm:$0xf] %v774_v18  ;;  %v776_v19 = vld [vmem:[%s4030_s5 + $0x898] sm:$0xf] }
  0xcd   : > { %v778_v20 = vld [vmem:[%s4030_s5 + $0x8a0] sm:$0xf]  ;;  %v780_v21 = vld [vmem:[%s4030_s5 + $0x8a8] sm:$0xf]  ;;  %777 = vst [vmem:[%s4037_s6 + $0x44c] sm:$0xf] %v776_v19 }
  0xce   : > { %779 = vst [vmem:[%s4037_s6 + $0x450] sm:$0xf] %v778_v20  ;;  %781 = vst [vmem:[%s4037_s6 + $0x454] sm:$0xf] %v780_v21  ;;  %v782_v22 = vld [vmem:[%s4030_s5 + $0x8b0] sm:$0xf] }
  0xcf   : > { %v784_v23 = vld [vmem:[%s4030_s5 + $0x8b8] sm:$0xf]  ;;  %v786_v24 = vld [vmem:[%s4030_s5 + $0x8c0] sm:$0xf]  ;;  %783 = vst [vmem:[%s4037_s6 + $0x458] sm:$0xf] %v782_v22 }
  0xd0   : > { %785 = vst [vmem:[%s4037_s6 + $0x45c] sm:$0xf] %v784_v23  ;;  %787 = vst [vmem:[%s4037_s6 + $0x460] sm:$0xf] %v786_v24  ;;  %v788_v25 = vld [vmem:[%s4030_s5 + $0x8c8] sm:$0xf] }
  0xd1   : > { %v790_v26 = vld [vmem:[%s4030_s5 + $0x8d0] sm:$0xf]  ;;  %v792_v27 = vld [vmem:[%s4030_s5 + $0x8d8] sm:$0xf]  ;;  %789 = vst [vmem:[%s4037_s6 + $0x464] sm:$0xf] %v788_v25 }
  0xd2   : > { %791 = vst [vmem:[%s4037_s6 + $0x468] sm:$0xf] %v790_v26  ;;  %793 = vst [vmem:[%s4037_s6 + $0x46c] sm:$0xf] %v792_v27  ;;  %v794_v28 = vld [vmem:[%s4030_s5 + $0x8e0] sm:$0xf] }
  0xd3   : > { %v796_v29 = vld [vmem:[%s4030_s5 + $0x8e8] sm:$0xf]  ;;  %v798_v30 = vld [vmem:[%s4030_s5 + $0x8f0] sm:$0xf]  ;;  %795 = vst [vmem:[%s4037_s6 + $0x470] sm:$0xf] %v794_v28 }
  0xd4   : > { %797 = vst [vmem:[%s4037_s6 + $0x474] sm:$0xf] %v796_v29  ;;  %799 = vst [vmem:[%s4037_s6 + $0x478] sm:$0xf] %v798_v30  ;;  %v800_v31 = vld [vmem:[%s4030_s5 + $0x8f8] sm:$0xf] }
  0xd5   : > { %801 = vst [vmem:[%s4037_s6 + $0x47c] sm:$0xf] %v800_v31 }
  0xd6 PF: > { %p3327_p8 = scmp.ge.s32.totalorder %s3955_s19, 1  ;;  %p1411_p9 = scmp.lt.s32.totalorder %s3955_s19, 3 }
  0xd8   : > { %p1412_p10 = pnand %p3327_p8, %p1411_p9 }
  0xd9   : > { %s1418_s7 = sand.u32 (!%p1412_p10), 1, %s3939_s15   ;;  %v3780_v32 = vld [vmem:[%s4846_s0 + $0x4] ss:$72 sps:$4 sm:$0xff] (!%p1412_p10)   ;;  %v3778_v0 = vld [vmem:[%s4846_s0] ss:$72 sps:$4 sm:$0xff] (!%p1412_p10)   ;;  %p1471_p11 = scmp.lt.s32.totalorder (!%p1412_p10), %s3947_s17, 1 }
  0xda   : > { %1415 = sbr.rel (%p1412_p10) target bundleno = 620 (0x26c), region = 73  ;;  %v3783_v33 = vld [vmem:[%s4846_s0 + $0xc] ss:$72 sps:$4 sm:$0xff] (!%p1412_p10)   ;;  %2779 = vmatprep.mubr.bf16.mxu0 (!%p1412_p10), %v3780_v32  ;;  %v3781_v2 = vld [vmem:[%s4846_s0 + $0x8] ss:$72 sps:$4 sm:$0xff] (!%p1412_p10)   ;;  %s3328_s28 = sshll.u32 (!%p1412_p10), %s1418_s7, 3 }
  0xdb   : > { %s3705_s8 = smul.u32 (!%p1412_p10), 1152, %s1418_s7  ;;  %2820 = vmatprep.mubr.bf16.mxu1 (!%p1412_p10), %v3783_v33  ;;  %v3817_v4 = vld [vmem:[%s4846_s0 + $0x14] ss:$72 sps:$4 sm:$0xff] (!%p1412_p10)   ;;  %s1457_s29 = scalar_lea.vmem (!%p1412_p10), [#allocation4], %s3328_s28 }
  0xdd   : > { %s4621_s13 = scalar_lea.vmem (!%p1412_p10), [#allocation3], %s3705_s8 }
  0xde   : > { %v3746_v34 = vld [vmem:[%s4621_s13 + $0x40] sm:$0xff] (!%p1412_p10)   ;;  %v3750_v38 = vld [vmem:[%s4621_s13 + $0x48] sm:$0xff] (!%p1412_p10)   ;;  %v3754_v42 = vld [vmem:[%s4621_s13 + $0x50] sm:$0xff] (!%p1412_p10)  }
  0xdf   : > { %v3747_v35 = vld [vmem:[%s4621_s13 + $0xc0] sm:$0xff] (!%p1412_p10)   ;;  %3506 = vmatprep.subr.bf16.mxu0 (!%p1412_p10), %v3746_v34  ;;  %v3751_v39 = vld [vmem:[%s4621_s13 + $0xc8] sm:$0xff] (!%p1412_p10)   ;;  %v3755_v43 = vld [vmem:[%s4621_s13 + $0xd0] sm:$0xff] (!%p1412_p10)  }
  0xe0   : > { %v3748_v36 = vld [vmem:[%s4621_s13] sm:$0xff] (!%p1412_p10)   ;;  %3528 = vmatprep.subr.bf16.mxu1 (!%p1412_p10), %v3747_v35  ;;  %v3752_v40 = vld [vmem:[%s4621_s13 + $0x8] sm:$0xff] (!%p1412_p10)   ;;  %v3756_v44 = vld [vmem:[%s4621_s13 + $0x10] sm:$0xff] (!%p1412_p10)  }
  0xe1   : > { %v3749_v37 = vld [vmem:[%s4621_s13 + $0x80] sm:$0xff]   ;;  %3507 = vmatpush3.bf16.msra.mxu0 %v3748_v36  ;;  %v3753_v41 = vld [vmem:[%s4621_s13 + $0x88] sm:$0xff]   ;;  %v3757_v45 = vld [vmem:[%s4621_s13 + $0x90] sm:$0xff]   ;;  %s3496_s30 = sshll.u32 (%p4017_p6), %s3947_s17, 2 }
  0xe2   : > { %3529 = vmatpush3.bf16.msra.mxu1 %v3749_v37  ;;  %3508 = vmatprep.subr.bf16.mxu0 %v3750_v38  ;;  %v3758_v46 = vld [vmem:[%s4621_s13 + $0x58] sm:$0xff]   ;;  %v3762_v50 = vld [vmem:[%s4621_s13 + $0x60] sm:$0xff]   ;;  %v3766_v54 = vld [vmem:[%s4621_s13 + $0x68] sm:$0xff]   ;;  %s3166_s8 = scalar_lea.vmem (%p4017_p6), %s4850_s4, %s3496_s30 }
  0xe3   : > { %3530 = vmatprep.subr.bf16.mxu1 %v3751_v39  ;;  %v3759_v47 = vld [vmem:[%s4621_s13 + $0xd8] sm:$0xff]   ;;  %v3763_v51 = vld [vmem:[%s4621_s13 + $0xe0] sm:$0xff]   ;;  %v3767_v55 = vld [vmem:[%s4621_s13 + $0xe8] sm:$0xff]  }
  0xe4   : > { %v3760_v48 = vld [vmem:[%s4621_s13 + $0x18] sm:$0xff]   ;;  %v3764_v52 = vld [vmem:[%s4621_s13 + $0x20] sm:$0xff]   ;;  %v3768_v56 = vld [vmem:[%s4621_s13 + $0x28] sm:$0xff]  }
  0xe5   : > { %3509 = vmatpush3.bf16.msra.mxu0 %v3752_v40  ;;  %v3761_v49 = vld [vmem:[%s4621_s13 + $0x98] sm:$0xff]   ;;  %v3765_v53 = vld [vmem:[%s4621_s13 + $0xa0] sm:$0xff]   ;;  %v3769_v57 = vld [vmem:[%s4621_s13 + $0xa8] sm:$0xff]  }
  0xe6   : > { %3531 = vmatpush3.bf16.msra.mxu1 %v3753_v41  ;;  %3510 = vmatprep.subr.bf16.mxu0 %v3754_v42  ;;  %v3770_v58 = vld [vmem:[%s4621_s13 + $0x70] sm:$0xff]   ;;  %v3774_v62 = vld [vmem:[%s4621_s13 + $0x78] sm:$0xff]   ;;  %v3784_v5 = vld [vmem:[%s4621_s13 + $0x140] sm:$0xff]  }
  0xe7   : > { %3532 = vmatprep.subr.bf16.mxu1 %v3755_v43  ;;  %v3771_v59 = vld [vmem:[%s4621_s13 + $0xf0] sm:$0xff]   ;;  %v3775_v63 = vld [vmem:[%s4621_s13 + $0xf8] sm:$0xff]   ;;  %v3785_v6 = vld [vmem:[%s4621_s13 + $0x100] sm:$0xff]  }
  0xe8   : > { %v3772_v60 = vld [vmem:[%s4621_s13 + $0x30] sm:$0xff]   ;;  %v3776_v1 = vld [vmem:[%s4621_s13 + $0x38] sm:$0xff]   ;;  %v3786_v7 = vld [vmem:[%s4621_s13 + $0x1c0] sm:$0xff]  }
  0xe9   : > { %3511 = vmatpush3.bf16.msra.mxu0 %v3756_v44  ;;  %v3773_v61 = vld [vmem:[%s4621_s13 + $0xb0] sm:$0xff]   ;;  %v3777_v3 = vld [vmem:[%s4621_s13 + $0xb8] sm:$0xff]   ;;  %v3787_v8 = vld [vmem:[%s4621_s13 + $0x180] sm:$0xff]  }
  0xea   : > { %3533 = vmatpush3.bf16.msra.mxu1 %v3757_v45  ;;  %3512 = vmatprep.subr.bf16.mxu0 %v3758_v46  ;;  %v3788_v9 = vld [vmem:[%s4621_s13 + $0x148] sm:$0xff]   ;;  %v3792_v13 = vld [vmem:[%s4621_s13 + $0x150] sm:$0xff]   ;;  %v3796_v17 = vld [vmem:[%s4621_s13 + $0x158] sm:$0xff]  }
  0xeb   : > { %3534 = vmatprep.subr.bf16.mxu1 %v3759_v47  ;;  %v3789_v10 = vld [vmem:[%s4621_s13 + $0x108] sm:$0xff]   ;;  %v3793_v14 = vld [vmem:[%s4621_s13 + $0x110] sm:$0xff]   ;;  %v3797_v18 = vld [vmem:[%s4621_s13 + $0x118] sm:$0xff]  }
  0xec   : > { %v3790_v11 = vld [vmem:[%s4621_s13 + $0x1c8] sm:$0xff]   ;;  %v3794_v15 = vld [vmem:[%s4621_s13 + $0x1d0] sm:$0xff]   ;;  %v3798_v19 = vld [vmem:[%s4621_s13 + $0x1d8] sm:$0xff]  }
  0xed   : > { %3513 = vmatpush3.bf16.msra.mxu0 %v3760_v48  ;;  %v3791_v12 = vld [vmem:[%s4621_s13 + $0x188] sm:$0xff]   ;;  %v3795_v16 = vld [vmem:[%s4621_s13 + $0x190] sm:$0xff]   ;;  %v3799_v20 = vld [vmem:[%s4621_s13 + $0x198] sm:$0xff]  }
  0xee   : > { %3535 = vmatpush3.bf16.msra.mxu1 %v3761_v49  ;;  %3514 = vmatprep.subr.bf16.mxu0 %v3762_v50  ;;  %v3800_v21 = vld [vmem:[%s4621_s13 + $0x160] sm:$0xff]   ;;  %v3804_v25 = vld [vmem:[%s4621_s13 + $0x168] sm:$0xff]   ;;  %v3808_v29 = vld [vmem:[%s4621_s13 + $0x170] sm:$0xff]  }
  0xef   : > { %3536 = vmatprep.subr.bf16.mxu1 %v3763_v51  ;;  %v3801_v22 = vld [vmem:[%s4621_s13 + $0x120] sm:$0xff]   ;;  %v3805_v26 = vld [vmem:[%s4621_s13 + $0x128] sm:$0xff]   ;;  %v3809_v30 = vld [vmem:[%s4621_s13 + $0x130] sm:$0xff]  }
  0xf0   : > { %v3802_v23 = vld [vmem:[%s4621_s13 + $0x1e0] sm:$0xff]   ;;  %v3806_v27 = vld [vmem:[%s4621_s13 + $0x1e8] sm:$0xff]   ;;  %v3810_v31 = vld [vmem:[%s4621_s13 + $0x1f0] sm:$0xff]  }
  0xf1   : > { %3515 = vmatpush3.bf16.msra.mxu0 %v3764_v52  ;;  %v3803_v24 = vld [vmem:[%s4621_s13 + $0x1a0] sm:$0xff]   ;;  %v3807_v28 = vld [vmem:[%s4621_s13 + $0x1a8] sm:$0xff]   ;;  %v3811_v32 = vld [vmem:[%s4621_s13 + $0x1b0] sm:$0xff]  }
  0xf2   : > { %3537 = vmatpush3.bf16.msra.mxu1 %v3765_v53  ;;  %3516 = vmatprep.subr.bf16.mxu0 %v3766_v54  ;;  %v3812_v33 = vld [vmem:[%s4621_s13 + $0x178] sm:$0xff]   ;;  %v3819_v38 = vld [vmem:[%s4621_s13 + $0x240] sm:$0xff]   ;;  %v3826_v44 = vld [vmem:[%s4621_s13 + $0x248] sm:$0xff]  }
  0xf3   : > { %3538 = vmatprep.subr.bf16.mxu1 %v3767_v55  ;;  %v3813_v34 = vld [vmem:[%s4621_s13 + $0x138] sm:$0xff]   ;;  %v3823_v41 = vld [vmem:[%s4621_s13 + $0x200] sm:$0xff]   ;;  %v3827_v45 = vld [vmem:[%s4621_s13 + $0x208] sm:$0xff]  }
  0xf4   : > { %v3815_v35 = vld [vmem:[%s4846_s0 + $0x10] ss:$72 sps:$4 sm:$0xff]   ;;  %v3822_v40 = vld [vmem:[%s4846_s0 + $0x1c] ss:$72 sps:$4 sm:$0xff]   ;;  %v3828_v46 = vld [vmem:[%s4621_s13 + $0x2c8] sm:$0xff]  }
  0xf5   : > { %3517 = vmatpush3.bf16.msra.mxu0 %v3768_v56  ;;  %v3814_v36 = vld [vmem:[%s4621_s13 + $0x1f8] sm:$0xff]   ;;  %v3824_v42 = vld [vmem:[%s4621_s13 + $0x2c0] sm:$0xff]   ;;  %v3829_v47 = vld [vmem:[%s4621_s13 + $0x288] sm:$0xff]  }
  0xf6   : > { %3539 = vmatpush3.bf16.msra.mxu1 %v3769_v57  ;;  %3518 = vmatprep.subr.bf16.mxu0 %v3770_v58  ;;  %v3818_v37 = vld [vmem:[%s4621_s13 + $0x1b8] sm:$0xff]   ;;  %v3825_v43 = vld [vmem:[%s4621_s13 + $0x280] sm:$0xff]   ;;  %v3830_v48 = vld [vmem:[%s4621_s13 + $0x250] sm:$0xff]  }
  0xf7   : > { %3540 = vmatprep.subr.bf16.mxu1 %v3771_v59  ;;  %v3820_v39 = vld [vmem:[%s4846_s0 + $0x18] ss:$72 sps:$4 sm:$0xff]   ;;  %v3831_v49 = vld [vmem:[%s4621_s13 + $0x210] sm:$0xff]  }
  0xf8   : > { %v3832_v50 = vld [vmem:[%s4621_s13 + $0x2d0] sm:$0xff]   ;;  %v3834_v52 = vld [vmem:[%s4621_s13 + $0x258] sm:$0xff]   ;;  %v3838_v56 = vld [vmem:[%s4621_s13 + $0x260] sm:$0xff]  }
  0xf9   : > { %3519 = vmatpush3.bf16.msra.mxu0 %v3772_v60  ;;  %v3833_v51 = vld [vmem:[%s4621_s13 + $0x290] sm:$0xff]   ;;  %v3835_v53 = vld [vmem:[%s4621_s13 + $0x218] sm:$0xff]   ;;  %v3839_v57 = vld [vmem:[%s4621_s13 + $0x220] sm:$0xff]  }
  0xfa   : > { %3541 = vmatpush3.bf16.msra.mxu1 %v3773_v61  ;;  %3520 = vmatprep.subr.bf16.mxu0 %v3774_v62  ;;  %v3836_v54 = vld [vmem:[%s4621_s13 + $0x2d8] sm:$0xff]   ;;  %v3840_v58 = vld [vmem:[%s4621_s13 + $0x2e0] sm:$0xff]   ;;  %v3842_v60 = vld [vmem:[%s4621_s13 + $0x268] sm:$0xff]  }
  0xfb   : > { %3542 = vmatprep.subr.bf16.mxu1 %v3775_v63  ;;  %v3837_v55 = vld [vmem:[%s4621_s13 + $0x298] sm:$0xff]   ;;  %v3841_v59 = vld [vmem:[%s4621_s13 + $0x2a0] sm:$0xff]   ;;  %v3843_v61 = vld [vmem:[%s4621_s13 + $0x228] sm:$0xff]  }
  0xfc   : > { %v3844_v62 = vld [vmem:[%s4621_s13 + $0x2e8] sm:$0xff]  }
  0xfd   : > { %3521 = vmatpush3.bf16.msra.mxu0 %v3776_v1  ;;  %v3845_v63 = vld [vmem:[%s4621_s13 + $0x2a8] sm:$0xff]   ;;  %v3847_v1 = vld [vmem:[%s4621_s13 + $0x230] sm:$0xff]  }
  0xfe   : > { %3543 = vmatpush3.bf16.msra.mxu1 %v3777_v3  ;;  %3550 = vmatprep.subr.bf16.mxu0 %v3784_v5  ;;  %v3849_v3 = vld [vmem:[%s4621_s13 + $0x2b0] sm:$0xff]   ;;  %v3851_v5 = vld [vmem:[%s4621_s13 + $0x238] sm:$0xff]  }
  0xff   : > { %3572 = vmatprep.subr.bf16.mxu1 %v3786_v7  ;;  %v3853_v7 = vld [vmem:[%s4846_s0 + $0x20] ss:$72 sps:$4 sm:$0xff]  }
 0x100   : > { %2780 = vmatmul.mubr.bf16.vlgmr.msra.gmra.mrb[0].mxu0 %v3778_v0  ;;  %v3846_v0 = vld [vmem:[%s4621_s13 + $0x270] sm:$0xff]  }
 0x101   : > { %2821 = vmatmul.mubr.bf16.vlgmr.msra.gmra.mrb[0].mxu1 %v3781_v2  ;;  %3551 = vmatpush3.bf16.msra.mxu0 %v3785_v6  ;;  %v3848_v2 = vld [vmem:[%s4621_s13 + $0x2f0] sm:$0xff]   ;;  %v3852_v6 = vld [vmem:[%s4621_s13 + $0x2f8] sm:$0xff]  }
 0x102   : > { %2861 = vmatprep.mubr.bf16.mxu0 %v3817_v4  ;;  %3573 = vmatpush3.bf16.msra.mxu1 %v3787_v8  ;;  %v3850_v4 = vld [vmem:[%s4621_s13 + $0x278] sm:$0xff]   ;;  %v3855_v8 = vld [vmem:[%s4846_s0 + $0x24] ss:$72 sps:$4 sm:$0xff]  }
 0x103   : > { %3552 = vmatprep.subr.bf16.mxu0 %v3788_v9  ;;  %3574 = vmatprep.subr.bf16.mxu1 %v3790_v11  ;;  %v3856_v9 = vld [vmem:[%s4621_s13 + $0x2b8] sm:$0xff]   ;;  %v3858_v11 = vld [vmem:[%s4846_s0 + $0x28] ss:$72 sps:$4 sm:$0xff]  }
 0x104   : > { %2902 = vmatprep.mubr.bf16.mxu1 %v3822_v40  ;;  %v3888_v40 = vld [vmem:[%s4621_s13 + $0x378] sm:$0xff]  }
 0x105   : > { %3553 = vmatpush3.bf16.msra.mxu0 %v3789_v10  ;;  %v3857_v10 = vld [vmem:[%s4621_s13 + $0x340] sm:$0xff]  }
 0x106   : > { %3575 = vmatpush3.bf16.msra.mxu1 %v3791_v12  ;;  %3554 = vmatprep.subr.bf16.mxu0 %v3792_v13  ;;  %v3860_v12 = vld [vmem:[%s4846_s0 + $0x2c] ss:$72 sps:$4 sm:$0xff]   ;;  %v3861_v13 = vld [vmem:[%s4621_s13 + $0x300] sm:$0xff]  }
 0x107   : > { %3576 = vmatprep.subr.bf16.mxu1 %v3794_v15  ;;  %v3863_v15 = vld [vmem:[%s4621_s13 + $0x380] sm:$0xff]  }
 0x109   : > { %3555 = vmatpush3.bf16.msra.mxu0 %v3793_v14  ;;  %v3862_v14 = vld [vmem:[%s4621_s13 + $0x3c0] sm:$0xff]  }
 0x10a   : > { %3577 = vmatpush3.bf16.msra.mxu1 %v3795_v16  ;;  %3556 = vmatprep.subr.bf16.mxu0 %v3796_v17  ;;  %v3864_v16 = vld [vmem:[%s4621_s13 + $0x348] sm:$0xff]  }
 0x10b   : > { %3578 = vmatprep.subr.bf16.mxu1 %v3798_v19  ;;  %v3865_v17 = vld [vmem:[%s4621_s13 + $0x308] sm:$0xff]  }
 0x10c   : > { %v3867_v19 = vld [vmem:[%s4621_s13 + $0x388] sm:$0xff]  }
 0x10d   : > { %3557 = vmatpush3.bf16.msra.mxu0 %v3797_v18  ;;  %v3866_v18 = vld [vmem:[%s4621_s13 + $0x3c8] sm:$0xff]  }
 0x10e   : > { %3579 = vmatpush3.bf16.msra.mxu1 %v3799_v20  ;;  %3558 = vmatprep.subr.bf16.mxu0 %v3800_v21  ;;  %v3868_v20 = vld [vmem:[%s4621_s13 + $0x350] sm:$0xff]  }
 0x10f   : > { %3580 = vmatprep.subr.bf16.mxu1 %v3802_v23  ;;  %v3869_v21 = vld [vmem:[%s4621_s13 + $0x310] sm:$0xff]  }
 0x110   : > { %v3871_v23 = vld [vmem:[%s4621_s13 + $0x390] sm:$0xff]  }
 0x111   : > { %3559 = vmatpush3.bf16.msra.mxu0 %v3801_v22  ;;  %v3870_v22 = vld [vmem:[%s4621_s13 + $0x3d0] sm:$0xff]  }
 0x112   : > { %3581 = vmatpush3.bf16.msra.mxu1 %v3803_v24  ;;  %3560 = vmatprep.subr.bf16.mxu0 %v3804_v25  ;;  %v3872_v24 = vld [vmem:[%s4621_s13 + $0x358] sm:$0xff]  }
 0x113   : > { %3582 = vmatprep.subr.bf16.mxu1 %v3806_v27  ;;  %v3873_v25 = vld [vmem:[%s4621_s13 + $0x318] sm:$0xff]  }
 0x114   : > { %v3875_v27 = vld [vmem:[%s4621_s13 + $0x398] sm:$0xff]  }
 0x115   : > { %3561 = vmatpush3.bf16.msra.mxu0 %v3805_v26  ;;  %v3874_v26 = vld [vmem:[%s4621_s13 + $0x3d8] sm:$0xff]  }
 0x116   : > { %3583 = vmatpush3.bf16.msra.mxu1 %v3807_v28  ;;  %3562 = vmatprep.subr.bf16.mxu0 %v3808_v29  ;;  %v3876_v28 = vld [vmem:[%s4621_s13 + $0x360] sm:$0xff]  }
 0x117   : > { %3584 = vmatprep.subr.bf16.mxu1 %v3810_v31  ;;  %v3877_v29 = vld [vmem:[%s4621_s13 + $0x320] sm:$0xff]  }
 0x118   : > { %v3879_v31 = vld [vmem:[%s4621_s13 + $0x3a0] sm:$0xff]  }
 0x119   : > { %3563 = vmatpush3.bf16.msra.mxu0 %v3809_v30  ;;  %v3878_v30 = vld [vmem:[%s4621_s13 + $0x3e0] sm:$0xff]  }
 0x11a   : > { %3585 = vmatpush3.bf16.msra.mxu1 %v3811_v32  ;;  %3564 = vmatprep.subr.bf16.mxu0 %v3812_v33  ;;  %v3880_v32 = vld [vmem:[%s4621_s13 + $0x368] sm:$0xff]  }
 0x11b   : > { %3586 = vmatprep.subr.bf16.mxu1 %v3814_v36  ;;  %v3881_v33 = vld [vmem:[%s4621_s13 + $0x328] sm:$0xff]   ;;  %v3884_v36 = vld [vmem:[%s4621_s13 + $0x370] sm:$0xff]  }
 0x11d   : > { %3565 = vmatpush3.bf16.msra.mxu0 %v3813_v34  ;;  %v3882_v34 = vld [vmem:[%s4621_s13 + $0x3e8] sm:$0xff]  }
 0x11e   : > { %3587 = vmatpush3.bf16.msra.mxu1 %v3818_v37  ;;  %3594 = vmatprep.subr.bf16.mxu0 %v3819_v38  ;;  %v3885_v37 = vld [vmem:[%s4621_s13 + $0x330] sm:$0xff]  }
 0x11f   : > { %3616 = vmatprep.subr.bf16.mxu1 %v3824_v42  ;;  %v3886_v38 = vld [vmem:[%s4621_s13 + $0x3f0] sm:$0xff]   ;;  %v3890_v42 = vld [vmem:[%s4621_s13 + $0x3f8] sm:$0xff]  }
 0x120   : > { %2862 = vmatmul.mubr.bf16.vlgmr.msra.gmra.mrb[4].mxu0 %v3815_v35  ;;  %v3883_v35 = vld [vmem:[%s4621_s13 + $0x3a8] sm:$0xff]  }
 0x121   : > { %3595 = vmatpush3.bf16.msra.mxu0 %v3823_v41  ;;  %2903 = vmatmul.mubr.bf16.vlgmr.msra.gmra.mrb[4].mxu1 %v3820_v39  ;;  %v3887_v39 = vld [vmem:[%s4621_s13 + $0x3b0] sm:$0xff]   ;;  %v3889_v41 = vld [vmem:[%s4621_s13 + $0x338] sm:$0xff]  }
 0x122   : > { %3617 = vmatpush3.bf16.msra.mxu1 %v3825_v43  ;;  %3596 = vmatprep.subr.bf16.mxu0 %v3826_v44  ;;  %v3891_v43 = vld [vmem:[%s4846_s0 + $0x30] ss:$72 sps:$4 sm:$0xff]   ;;  %v3893_v44 = vld [vmem:[%s4846_s0 + $0x34] ss:$72 sps:$4 sm:$0xff]  }
 0x123   : > { %3618 = vmatprep.subr.bf16.mxu1 %v3828_v46  ;;  %2943 = vmatprep.mubr.bf16.mxu0 %v3855_v8  ;;  %v3895_v46 = vld [vmem:[%s4621_s13 + $0x440] sm:$0xff]  }
 0x124   : > { %2984 = vmatprep.mubr.bf16.mxu1 %v3860_v12 }
 0x125   : > { %3597 = vmatpush3.bf16.msra.mxu0 %v3827_v45  ;;  %v3894_v45 = vld [vmem:[%s4621_s13 + $0x3b8] sm:$0xff]  }
 0x126   : > { %3619 = vmatpush3.bf16.msra.mxu1 %v3829_v47  ;;  %3598 = vmatprep.subr.bf16.mxu0 %v3830_v48  ;;  %v3896_v47 = vld [vmem:[%s4846_s0 + $0x38] ss:$72 sps:$4 sm:$0xff]   ;;  %v3898_v48 = vld [vmem:[%s4846_s0 + $0x3c] ss:$72 sps:$4 sm:$0xff]  }
 0x127   : > { %3620 = vmatprep.subr.bf16.mxu1 %v3832_v50  ;;  %v3900_v50 = vld [vmem:[%s4621_s13 + $0x448] sm:$0xff]  }
 0x129   : > { %3599 = vmatpush3.bf16.msra.mxu0 %v3831_v49  ;;  %v3899_v49 = vld [vmem:[%s4621_s13 + $0x400] sm:$0xff]  }
 0x12a   : > { %3621 = vmatpush3.bf16.msra.mxu1 %v3833_v51  ;;  %3600 = vmatprep.subr.bf16.mxu0 %v3834_v52  ;;  %v3901_v51 = vld [vmem:[%s4621_s13 + $0x408] sm:$0xff]   ;;  %v3902_v52 = vld [vmem:[%s4621_s13 + $0x450] sm:$0xff]  }
 0x12b   : > { %3622 = vmatprep.subr.bf16.mxu1 %v3836_v54  ;;  %v3904_v54 = vld [vmem:[%s4621_s13 + $0x458] sm:$0xff]  }
 0x12d   : > { %3601 = vmatpush3.bf16.msra.mxu0 %v3835_v53  ;;  %v3903_v53 = vld [vmem:[%s4621_s13 + $0x410] sm:$0xff]  }
 0x12e   : > { %3623 = vmatpush3.bf16.msra.mxu1 %v3837_v55  ;;  %3602 = vmatprep.subr.bf16.mxu0 %v3838_v56  ;;  %v3905_v55 = vld [vmem:[%s4621_s13 + $0x418] sm:$0xff]   ;;  %v3906_v56 = vld [vmem:[%s4621_s13 + $0x460] sm:$0xff]  }
 0x12f   : > { %3624 = vmatprep.subr.bf16.mxu1 %v3840_v58  ;;  %v3908_v58 = vld [vmem:[%s4621_s13 + $0x468] sm:$0xff]  }
 0x131   : > { %3603 = vmatpush3.bf16.msra.mxu0 %v3839_v57  ;;  %v3907_v57 = vld [vmem:[%s4621_s13 + $0x420] sm:$0xff]  }
 0x132   : > { %3625 = vmatpush3.bf16.msra.mxu1 %v3841_v59  ;;  %3604 = vmatprep.subr.bf16.mxu0 %v3842_v60  ;;  %v3916_v59 = vld [vmem:[%s4846_s0 + $0x44] ss:$72 sps:$4 sm:$0xff]  }
 0x133   : > { %3626 = vmatprep.subr.bf16.mxu1 %v3844_v62  ;;  %v3909_v60 = vld [vmem:[%s4621_s13 + $0x428] sm:$0xff]   ;;  %v3911_v62 = vld [vmem:[%s4621_s13 + $0x430] sm:$0xff]  }
 0x135   : > { %3605 = vmatpush3.bf16.msra.mxu0 %v3843_v61  ;;  %v3910_v61 = vld [vmem:[%s4621_s13 + $0x470] sm:$0xff]  }
 0x136   : > { %3627 = vmatpush3.bf16.msra.mxu1 %v3845_v63  ;;  %3606 = vmatprep.subr.bf16.mxu0 %v3846_v0  ;;  %v3912_v63 = vld [vmem:[%s4621_s13 + $0x478] sm:$0xff]  }
 0x137   : > { %3628 = vmatprep.subr.bf16.mxu1 %v3848_v2  ;;  %v3913_v0 = vld [vmem:[%s4621_s13 + $0x438] sm:$0xff]   ;;  %s1472_s13 = scalar_select %p1471_p11, %s3947_s17, 1 }
 0x139   : > { %3607 = vmatpush3.bf16.msra.mxu0 %v3847_v1  ;;  %v3914_v1 = vld [vmem:[%s4846_s0 + $0x40] ss:$72 sps:$4 sm:$0xff]   ;;  %s1473_s22 = scalar_lea.vmem %s4848_s2, %s1472_s13  ;;  %s1476_s27 = scalar_lea.vmem %s4849_s3, %s1472_s13 }
 0x13a   : > { %3629 = vmatpush3.bf16.msra.mxu1 %v3849_v3  ;;  %3608 = vmatprep.subr.bf16.mxu0 %v3850_v4 }
 0x13b   : > { %3630 = vmatprep.subr.bf16.mxu1 %v3852_v6 }
 0x13d   : > { %3609 = vmatpush3.bf16.msra.mxu0 %v3851_v5 }
 0x13e   : > { %3631 = vmatpush3.bf16.msra.mxu1 %v3856_v9  ;;  %3638 = vmatprep.subr.bf16.mxu0 %v3857_v10 }
 0x13f   : > { %3660 = vmatprep.subr.bf16.mxu1 %v3862_v14 }
 0x140   : > { %2944 = vmatmul.mubr.bf16.vlgmr.msra.gmra.mrb[8].mxu0 %v3853_v7 }
 0x141   : > { %3639 = vmatpush3.bf16.msra.mxu0 %v3861_v13  ;;  %2985 = vmatmul.mubr.bf16.vlgmr.msra.gmra.mrb[8].mxu1 %v3858_v11 }
 0x142   : > { %3661 = vmatpush3.bf16.msra.mxu1 %v3863_v15  ;;  %3640 = vmatprep.subr.bf16.mxu0 %v3864_v16 }
 0x143   : > { %3662 = vmatprep.subr.bf16.mxu1 %v3866_v18  ;;  %3025 = vmatprep.mubr.bf16.mxu0 %v3893_v44 }
 0x144   : > { %3066 = vmatprep.mubr.bf16.mxu1 %v3898_v48 }
 0x145   : > { %3641 = vmatpush3.bf16.msra.mxu0 %v3865_v17 }
 0x146   : > { %3663 = vmatpush3.bf16.msra.mxu1 %v3867_v19  ;;  %3642 = vmatprep.subr.bf16.mxu0 %v3868_v20 }
 0x147   : > { %3664 = vmatprep.subr.bf16.mxu1 %v3870_v22 }
 0x149   : > { %3643 = vmatpush3.bf16.msra.mxu0 %v3869_v21 }
 0x14a   : > { %3665 = vmatpush3.bf16.msra.mxu1 %v3871_v23  ;;  %3644 = vmatprep.subr.bf16.mxu0 %v3872_v24 }
 0x14b   : > { %3666 = vmatprep.subr.bf16.mxu1 %v3874_v26 }
 0x14d   : > { %3645 = vmatpush3.bf16.msra.mxu0 %v3873_v25 }
 0x14e   : > { %3667 = vmatpush3.bf16.msra.mxu1 %v3875_v27  ;;  %3646 = vmatprep.subr.bf16.mxu0 %v3876_v28 }
 0x14f   : > { %3668 = vmatprep.subr.bf16.mxu1 %v3878_v30 }
 0x151   : > { %3647 = vmatpush3.bf16.msra.mxu0 %v3877_v29 }
 0x152   : > { %3669 = vmatpush3.bf16.msra.mxu1 %v3879_v31  ;;  %3648 = vmatprep.subr.bf16.mxu0 %v3880_v32 }
 0x153   : > { %3670 = vmatprep.subr.bf16.mxu1 %v3882_v34 }
 0x155   : > { %3649 = vmatpush3.bf16.msra.mxu0 %v3881_v33 }
 0x156   : > { %3671 = vmatpush3.bf16.msra.mxu1 %v3883_v35  ;;  %3650 = vmatprep.subr.bf16.mxu0 %v3884_v36 }
 0x157   : > { %3672 = vmatprep.subr.bf16.mxu1 %v3886_v38 }
 0x159   : > { %3651 = vmatpush3.bf16.msra.mxu0 %v3885_v37 }
 0x15a   : > { %3673 = vmatpush3.bf16.msra.mxu1 %v3887_v39  ;;  %3652 = vmatprep.subr.bf16.mxu0 %v3888_v40 }
 0x15b   : > { %3674 = vmatprep.subr.bf16.mxu1 %v3890_v42 }
 0x15d   : > { %3653 = vmatpush3.bf16.msra.mxu0 %v3889_v41 }
 0x15e   : > { %3675 = vmatpush3.bf16.msra.mxu1 %v3894_v45  ;;  %3682 = vmatprep.subr.bf16.mxu0 %v3895_v46 }
 0x160   : > { %3026 = vmatmul.mubr.bf16.vlgmr.msra.gmra.mrb[12].mxu0 %v3891_v43 }
 0x161   : > { %3683 = vmatpush3.bf16.msra.mxu0 %v3899_v49  ;;  %3067 = vmatmul.mubr.bf16.vlgmr.msra.gmra.mrb[12].mxu1 %v3896_v47 }
 0x162   : > { %3684 = vmatprep.subr.bf16.mxu0 %v3900_v50  ;;  %3107 = vmatprep.mubr.bf16.mxu0 %v3916_v59 }
 0x165   : > { %3685 = vmatpush3.bf16.msra.mxu0 %v3901_v51 }
 0x166   : > { %3686 = vmatprep.subr.bf16.mxu0 %v3902_v52 }
 0x169   : > { %3687 = vmatpush3.bf16.msra.mxu0 %v3903_v53 }
 0x16a   : > { %3688 = vmatprep.subr.bf16.mxu0 %v3904_v54 }
 0x16d   : > { %3689 = vmatpush3.bf16.msra.mxu0 %v3905_v55 }
 0x16e   : > { %3690 = vmatprep.subr.bf16.mxu0 %v3906_v56 }
 0x171   : > { %3691 = vmatpush3.bf16.msra.mxu0 %v3907_v57 }
 0x172   : > { %3692 = vmatprep.subr.bf16.mxu0 %v3908_v58 }
 0x175   : > { %3693 = vmatpush3.bf16.msra.mxu0 %v3909_v60 }
 0x176   : > { %3694 = vmatprep.subr.bf16.mxu0 %v3910_v61 }
 0x179   : > { %3695 = vmatpush3.bf16.msra.mxu0 %v3911_v62 }
 0x17a   : > { %3696 = vmatprep.subr.bf16.mxu0 %v3912_v63 }
 0x17d   : > { %3697 = vmatpush3.bf16.msra.mxu0 %v3913_v0 }
 0x180   : > { %3108 = vmatmul.mubr.bf16.vlgmr.msra.gmra.mrb[16].mxu0 %v3914_v1 }
 0x1d3   : > { %v3522_v2 = vpop.f32.mrb[0].mxu0 }
 0x1d4   : > { %v3544_v3 = vpop.f32.mrb[0].mxu1  ;;  %v3523_v4 = vpop.f32.mrb[1].mxu0 }
 0x1d5   : > { %v3524_v5 = vadd.f32 %v3523_v4, %v3522_v2  ;;  %v3545_v6 = vpop.f32.mrb[1].mxu1  ;;  %v3525_v7 = vpop.f32.mrb[2].mxu0  ;;  %v3491_v4 = vld [vmem:[%s1473_s22] ss:$0 sm:$0xff] }
 0x1d6   : > { %v3546_v8 = vadd.f32 %v3545_v6, %v3544_v3  ;;  %v3547_v9 = vpop.f32.mrb[2].mxu1  ;;  %v3526_v10 = vpop.f32.mrb[3].mxu0 }
 0x1d7   : > { %v3527_v11 = vadd.f32 %v3526_v10, %v3525_v7  ;;  %v3548_v12 = vpop.f32.mrb[3].mxu1 }
 0x1d8   : > { %v2823_v13 = vadd.f32 %v3546_v8, %v3524_v5  ;;  %v3549_v14 = vadd.f32 %v3548_v12, %v3547_v9  ;;  %v3492_v8 = vld [vmem:[%s1476_s27] ss:$0 sm:$0xff] }
 0x1da   : > { %v2826_v15 = vadd.f32 %v3549_v14, %v3527_v11 }
 0x1f3   : > { %v3566_v16 = vpop.f32.mrb[4].mxu0 }
 0x1f4   : > { %v3567_v17 = vpop.f32.mrb[5].mxu0  ;;  %v3588_v20 = vpop.f32.mrb[4].mxu1 }
 0x1f5   : > { %v3568_v18 = vadd.f32 %v3567_v17, %v3566_v16  ;;  %v3569_v19 = vpop.f32.mrb[6].mxu0  ;;  %v3589_v22 = vpop.f32.mrb[5].mxu1 }
 0x1f6   : > { %v3570_v21 = vpop.f32.mrb[7].mxu0  ;;  %v3590_v25 = vadd.f32 %v3589_v22, %v3588_v20  ;;  %v3591_v26 = vpop.f32.mrb[6].mxu1 }
 0x1f7   : > { %v2864_v23 = vadd.f32 %v3568_v18, %v2823_v13  ;;  %v3571_v24 = vadd.f32 %v3570_v21, %v3569_v19  ;;  %v3592_v27 = vpop.f32.mrb[7].mxu1 }
 0x1f8   : > { %v3593_v30 = vadd.f32 %v3592_v27, %v3591_v26 }
 0x1f9   : > { %v2867_v28 = vadd.f32 %v3571_v24, %v2826_v15  ;;  %v2905_v29 = vadd.f32 %v3590_v25, %v2864_v23 }
 0x1fb   : > { %v2908_v31 = vadd.f32 %v3593_v30, %v2867_v28 }
 0x213   : > { %v3610_v32 = vpop.f32.mrb[8].mxu0 }
 0x214   : > { %v3611_v33 = vpop.f32.mrb[9].mxu0  ;;  %v3632_v36 = vpop.f32.mrb[8].mxu1 }
 0x215   : > { %v3612_v34 = vadd.f32 %v3611_v33, %v3610_v32  ;;  %v3613_v35 = vpop.f32.mrb[10].mxu0  ;;  %v3633_v40 = vpop.f32.mrb[9].mxu1 }
 0x216   : > { %v3614_v37 = vpop.f32.mrb[11].mxu0  ;;  %v3634_v41 = vadd.f32 %v3633_v40, %v3632_v36  ;;  %v3635_v42 = vpop.f32.mrb[10].mxu1 }
 0x217   : > { %v2946_v38 = vadd.f32 %v3612_v34, %v2905_v29  ;;  %v3615_v39 = vadd.f32 %v3614_v37, %v3613_v35  ;;  %v3636_v44 = vpop.f32.mrb[11].mxu1 }
 0x218   : > { %v3637_v46 = vadd.f32 %v3636_v44, %v3635_v42 }
 0x219   : > { %v2949_v43 = vadd.f32 %v3615_v39, %v2908_v31  ;;  %v2987_v45 = vadd.f32 %v3634_v41, %v2946_v38 }
 0x21b   : > { %v2990_v47 = vadd.f32 %v3637_v46, %v2949_v43 }
 0x233   : > { %v3654_v48 = vpop.f32.mrb[12].mxu0 }
 0x234   : > { %v3655_v49 = vpop.f32.mrb[13].mxu0  ;;  %v3676_v52 = vpop.f32.mrb[12].mxu1 }
 0x235   : > { %v3656_v50 = vadd.f32 %v3655_v49, %v3654_v48  ;;  %v3657_v51 = vpop.f32.mrb[14].mxu0  ;;  %v3677_v56 = vpop.f32.mrb[13].mxu1 }
 0x236   : > { %v3658_v53 = vpop.f32.mrb[15].mxu0  ;;  %v3678_v57 = vadd.f32 %v3677_v56, %v3676_v52  ;;  %v3679_v58 = vpop.f32.mrb[14].mxu1 }
 0x237   : > { %v3028_v54 = vadd.f32 %v3656_v50, %v2987_v45  ;;  %v3659_v55 = vadd.f32 %v3658_v53, %v3657_v51  ;;  %v3680_v60 = vpop.f32.mrb[15].mxu1 }
 0x238   : > { %v3681_v62 = vadd.f32 %v3680_v60, %v3679_v58 }
 0x239   : > { %v3031_v59 = vadd.f32 %v3659_v55, %v2990_v47  ;;  %v3069_v61 = vadd.f32 %v3678_v57, %v3028_v54 }
 0x23b   : > { %v3072_v63 = vadd.f32 %v3681_v62, %v3031_v59 }
 0x253   : > { %v3698_v0 = vpop.f32.mrb[16].mxu0 }
 0x254   : > { %v3699_v1 = vpop.f32.mrb[17].mxu0 }
 0x255   : > { %v3700_v2 = vadd.f32 %v3699_v1, %v3698_v0  ;;  %v3701_v3 = vpop.f32.mrb[18].mxu0 }
 0x256   : > { %v3702_v5 = vpop.f32.mrb[19].mxu0 }
 0x257   : > { %v3110_v6 = vadd.f32 %v3700_v2, %v3069_v61  ;;  %v3703_v7 = vadd.f32 %v3702_v5, %v3701_v3 }
 0x259   : > { %v3132_v9 = vmul.f32 %v3491_v4, %v3110_v6  ;;  %v3113_v10 = vadd.f32 %v3703_v7, %v3072_v63 }
 0x25b   : > { %v3141_v11 = vadd.f32 %v3492_v8, %v3132_v9  ;;  %v3133_v12 = vmul.f32 %v3491_v4, %v3113_v10 }
 0x25d   : > { %v3142_v13 = vadd.f32 %v3492_v8, %v3133_v12  ;;  %v3143_v14 = vmax.f32 %v3141_v11, 0.0  ;;  %3161 = sbr.rel (!%p4017_p6) target bundleno = 620 (0x26c), region = 89 }
 0x25f   : > { %v3144_v15 = vmax.f32 %v3142_v13, 0.0 }
 0x261   : > { %v3504_v16 = vpack.c.bf16 %v3144_v15, %v3143_v14 }
 0x263   : > { %3505 = vst [vmem:[%s1457_s29] sm:$0xff] %v3504_v16  }
 0x26a   : > { %v3182_v17 = vld [vmem:[%s1457_s29] sm:$0xf]  ;;  %v3184_v18 = vld [vmem:[%s1457_s29 + $0x4] sm:$0xf] }
 0x26b   : > { %3183 = vst [vmem:[%s3166_s8] sm:$0xf] %v3182_v17  ;;  %3185 = vst [vmem:[%s3166_s8 + $0x8] sm:$0xf] %v3184_v18 }
 0x26c PF: > { %s14_s19 = sadd.s32 1, %s3955_s19   ;;  %s4852_s15 = smov %s3943_s16 }
 0x26d   : > { %p11_p12 = scmp.ge.s32.totalorder %s14_s19, 4   ;;  %s4853_s16 = smov %s4022_s25 }
 0x26e   : > { %s4854_s17 = smov %s3951_s18  ;;  %s4855_s18 = smov %s4857_s20 }
 0x26f   :  { %13 = sbr.rel (!%p11_p12) target bundleno = 3 (0x3), region = 170 }

// kernel: _lambda_.33
= control target key start
LH: loop header
LB: loop body
LE: loop exit
PB: predicated region body
PF: predicated region fallthrough
CT: control target
= control target key end

     0   :  { %vm245_vm0 = vcmask 1041409   ;;  %vm247_vm1 = vcmask 1042434   ;;  %vm249_vm2 = vcmask 1043459   ;;  %vm251_vm3 = vcmask 1044484   ;;  %s740_s1 = inlined_call_operand.vmem [shape: f32[256,128], index: 1, kind: input, shape index: {}]   ;;  %s741_s0 = inlined_call_operand.vmem [shape: bf16[8,16,256], index: 0, kind: input, shape index: {}]   ;;  %s742_s2 = inlined_call_operand.vmem [shape: f32[1,128], index: 2, kind: input, shape index: {}]   ;;  %s743_s3 = inlined_call_operand.vmem [shape: f32[8,128], index: 3, kind: output, shape index: {}]  }
   0x1   :  { %v206_v0 = vld [vmem:[%s740_s1 + $0x80] sm:$0xff]  ;;  %v207_v1 = vld [vmem:[%s740_s1 + $0x88] sm:$0xff]  ;;  %v208_v5 = vld [vmem:[%s740_s1 + $0x90] sm:$0xff]  ;;  %vm253_vm4 = vcmask 1045509   ;;  %vm255_vm5 = vcmask 1046534   ;;  %vm257_vm6 = vcmask 1047559  }
   0x2   :  { %v190_v2 = vld [vmem:[%s740_s1] sm:$0xff]  ;;  %v379_v3 = vpack.c.bf16 %v207_v1, %v206_v0  ;;  %v191_v4 = vld [vmem:[%s740_s1 + $0x8] sm:$0xff]  ;;  %v209_v6 = vld [vmem:[%s740_s1 + $0x98] sm:$0xff] }
   0x3   :  { %v381_v7 = vpack.c.bf16 %v191_v4, %v190_v2  ;;  %v383_v8 = vpack.c.bf16 %v209_v6, %v208_v5  ;;  %v192_v9 = vld [vmem:[%s740_s1 + $0x10] sm:$0xff]  ;;  %v193_v10 = vld [vmem:[%s740_s1 + $0x18] sm:$0xff]  ;;  %v210_v11 = vld [vmem:[%s740_s1 + $0xa0] sm:$0xff] }
   0x4   :  { %380 = vmatprep.subr.bf16.mxu0 %v379_v3  ;;  %v211_v12 = vld [vmem:[%s740_s1 + $0xa8] sm:$0xff]  ;;  %v194_v13 = vld [vmem:[%s740_s1 + $0x20] sm:$0xff]  ;;  %v385_v15 = vpack.c.bf16 %v193_v10, %v192_v9  ;;  %v212_v16 = vld [vmem:[%s740_s1 + $0xb0] sm:$0xff] }
   0x5   :  { %v195_v14 = vld [vmem:[%s740_s1 + $0x28] sm:$0xff]  ;;  %382 = vmatpush3.bf16.msra.mxu0 %v381_v7  ;;  %v213_v17 = vld [vmem:[%s740_s1 + $0xb8] sm:$0xff]  ;;  %v476_v18 = vld [vmem:[%s740_s1 + $0x30] sm:$0xff]  ;;  %v387_v19 = vpack.c.bf16 %v211_v12, %v210_v11 }
   0x6   :  { %384 = vmatprep.subr.bf16.mxu0 %v383_v8  ;;  %v481_v20 = vld [vmem:[%s740_s1 + $0x38] sm:$0xff]  ;;  %v486_v21 = vld [vmem:[%s740_s1 + $0xc0] sm:$0xff]  ;;  %v491_v22 = vld [vmem:[%s740_s1 + $0xc8] sm:$0xff]  ;;  %v389_v29 = vpack.c.bf16 %v195_v14, %v194_v13  ;;  %v391_v33 = vpack.c.bf16 %v213_v17, %v212_v16 }
   0x7   :  { %v496_v23 = vld [vmem:[%s740_s1 + $0x40] sm:$0xff]  ;;  %v501_v24 = vld [vmem:[%s740_s1 + $0x48] sm:$0xff]  ;;  %v506_v25 = vld [vmem:[%s740_s1 + $0xd0] sm:$0xff]  ;;  %v393_v34 = vpack.c.bf16 %v481_v20, %v476_v18  ;;  %v395_v35 = vpack.c.bf16 %v491_v22, %v486_v21 }
   0x8   :  { %v511_v26 = vld [vmem:[%s740_s1 + $0xd8] sm:$0xff]  ;;  %v516_v27 = vld [vmem:[%s740_s1 + $0x50] sm:$0xff]  ;;  %v526_v30 = vld [vmem:[%s740_s1 + $0xe0] sm:$0xff]  ;;  %v397_v36 = vpack.c.bf16 %v501_v24, %v496_v23 }
   0x9   :  { %v521_v28 = vld [vmem:[%s740_s1 + $0x58] sm:$0xff]  ;;  %386 = vmatpush3.bf16.msra.mxu0 %v385_v15  ;;  %v531_v31 = vld [vmem:[%s740_s1 + $0xe8] sm:$0xff]  ;;  %v536_v32 = vld [vmem:[%s740_s1 + $0x60] sm:$0xff]  ;;  %v399_v40 = vpack.c.bf16 %v511_v26, %v506_v25 }
   0xa   :  { %388 = vmatprep.subr.bf16.mxu0 %v387_v19  ;;  %v547_v37 = vld [vmem:[%s740_s1 + $0x68] sm:$0xff]  ;;  %v552_v38 = vld [vmem:[%s740_s1 + $0xf0] sm:$0xff]  ;;  %v557_v39 = vld [vmem:[%s740_s1 + $0xf8] sm:$0xff]  ;;  %v401_v41 = vpack.c.bf16 %v521_v28, %v516_v27 }
   0xb   :  { %v570_v44 = vld [vmem:[%s740_s1 + $0x70] sm:$0xff]  ;;  %v575_v45 = vld [vmem:[%s740_s1 + $0x78] sm:$0xff]  ;;  %v580_v46 = vld [vmem:[%s741_s0] sm:$0xff] }
   0xc   :  { %v589_v49 = vld [vmem:[%s741_s0 + $0x8] sm:$0xff]  ;;  %v594_v50 = vld [vmem:[%s741_s0 + $0x10] sm:$0xff]  ;;  %v599_v51 = vld [vmem:[%s741_s0 + $0x18] sm:$0xff]  ;;  %v31_v52 = vunpack.c.h.bf16 %v580_v46 }
   0xd   :  { %390 = vmatpush3.bf16.msra.mxu0 %v389_v29  ;;  %v606_v54 = vld [vmem:[%s741_s0 + $0x20] sm:$0xff]  ;;  %v611_v55 = vld [vmem:[%s741_s0 + $0x28] sm:$0xff]  ;;  %v616_v56 = vld [vmem:[%s741_s0 + $0x30] sm:$0xff]  ;;  %v33_v57 = vunpack.c.h.bf16 %v589_v49  ;;  %v35_v58 = vunpack.c.h.bf16 %v594_v50  ;;  %v37_v59 = vunpack.c.h.bf16 %v599_v51 }
   0xe   :  { %392 = vmatprep.subr.bf16.mxu0 %v391_v33  ;;  %v625_v61 = vld [vmem:[%s741_s0 + $0x38] sm:$0xff]  ;;  %v630_v62 = vld [vmem:[%s741_s0 + $0x40] sm:$0xff]  ;;  %v635_v63 = vld [vmem:[%s741_s0 + $0x48] sm:$0xff]  ;;  %v39_v0 = vunpack.c.h.bf16 %v606_v54  ;;  %v41_v1 = vunpack.c.h.bf16 %v611_v55  ;;  %v43_v2 = vunpack.c.h.bf16 %v616_v56 }
   0xf   :  { %v644_v4 = vld [vmem:[%s741_s0 + $0x50] sm:$0xff]  ;;  %v649_v5 = vld [vmem:[%s741_s0 + $0x58] sm:$0xff]  ;;  %v654_v6 = vld [vmem:[%s741_s0 + $0x60] sm:$0xff]  ;;  %v45_v7 = vunpack.c.h.bf16 %v625_v61  ;;  %v47_v8 = vunpack.c.h.bf16 %v630_v62  ;;  %v49_v9 = vunpack.c.h.bf16 %v635_v63  ;;  %v69_v10 = vadd.f32 %v33_v57, %v31_v52 }
  0x10   :  { %v662_v11 = vld [vmem:[%s741_s0 + $0x68] sm:$0xff]  ;;  %v667_v12 = vld [vmem:[%s741_s0 + $0x70] sm:$0xff]  ;;  %v672_v13 = vld [vmem:[%s741_s0 + $0x78] sm:$0xff]  ;;  %v51_v14 = vunpack.c.h.bf16 %v644_v4  ;;  %v53_v15 = vunpack.c.h.bf16 %v649_v5  ;;  %v55_v16 = vunpack.c.h.bf16 %v654_v6  ;;  %v83_v17 = vadd.f32 %v37_v59, %v35_v58 }
  0x11   :  { %394 = vmatpush3.bf16.msra.mxu0 %v393_v34  ;;  %v57_v18 = vunpack.c.h.bf16 %v662_v11  ;;  %v59_v19 = vunpack.c.h.bf16 %v667_v12  ;;  %v61_v20 = vunpack.c.h.bf16 %v672_v13  ;;  %v70_v21 = vrot.slane %v69_v10, 4 }
  0x12   :  { %396 = vmatprep.subr.bf16.mxu0 %v395_v35  ;;  %v84_v22 = vrot.slane %v83_v17, 4  ;;  %v97_v29 = vadd.f32 %v41_v1, %v39_v0  ;;  %v111_v33 = vadd.f32 %v45_v7, %v43_v2  ;;  %v125_v52 = vadd.f32 %v49_v9, %v47_v8 }
  0x13   :  { %v71_v57 = vadd.f32 %v70_v21, %v69_v10  ;;  %v139_v3 = vadd.f32 %v53_v15, %v51_v14  ;;  %v153_v60 = vadd.f32 %v57_v18, %v55_v16  ;;  %v167_v53 = vadd.f32 %v61_v20, %v59_v19 }
  0x14   :  { %v85_v48 = vadd.f32 %v84_v22, %v83_v17  ;;  %v98_v47 = vrot.slane %v97_v29, 4  ;;  %v112_v58 = vrot.slane %v111_v33, 4  ;;  %v126_v34 = vrot.slane %v125_v52, 4 }
  0x15   :  { %398 = vmatpush3.bf16.msra.mxu0 %v397_v36  ;;  %v72_v59 = vrot.slane %v71_v57, 2  ;;  %v140_v43 = vrot.slane %v139_v3, 4  ;;  %v154_v42 = vrot.slane %v153_v60, 4  ;;  %v168_v35 = vrot.slane %v167_v53, 4 }
  0x16   :  { %400 = vmatprep.subr.bf16.mxu0 %v399_v40  ;;  %v86_v0 = vrot.slane %v85_v48, 2  ;;  %v99_v1 = vadd.f32 %v98_v47, %v97_v29  ;;  %v113_v2 = vadd.f32 %v112_v58, %v111_v33  ;;  %v127_v7 = vadd.f32 %v126_v34, %v125_v52 }
  0x17   :  { %v73_v8 = vadd.f32 %v72_v59, %v71_v57  ;;  %v141_v9 = vadd.f32 %v140_v43, %v139_v3  ;;  %v155_v10 = vadd.f32 %v154_v42, %v153_v60  ;;  %v169_v14 = vadd.f32 %v168_v35, %v167_v53 }
  0x18   :  { %v87_v23 = vadd.f32 %v86_v0, %v85_v48  ;;  %v100_v24 = vrot.slane %v99_v1, 2  ;;  %v114_v36 = vrot.slane %v113_v2, 2  ;;  %v128_v15 = vrot.slane %v127_v7, 2 }
  0x19   :  { %402 = vmatpush3.bf16.msra.mxu0 %v401_v41  ;;  %v74_v25 = vrot.slane %v73_v8, 1  ;;  %v142_v26 = vrot.slane %v141_v9, 2  ;;  %v156_v40 = vrot.slane %v155_v10, 2  ;;  %v170_v47 = vrot.slane %v169_v14, 2 }
  0x1a   :  { %v744_v43 = vpack.c.bf16 %v531_v31, %v526_v30  ;;  %v88_v42 = vrot.slane %v87_v23, 1  ;;  %v101_v53 = vadd.f32 %v100_v24, %v99_v1  ;;  %v115_v48 = vadd.f32 %v114_v36, %v113_v2 }
  0x1b   :  { %v129_v60 = vadd.f32 %v128_v15, %v127_v7  ;;  %v75_v3 = vadd.f32 %v74_v25, %v73_v8  ;;  %v143_v16 = vadd.f32 %v142_v26, %v141_v9  ;;  %v157_v17 = vadd.f32 %v156_v40, %v155_v10 }
  0x1c   :  { %404 = vmatprep.subr.bf16.mxu0 %v744_v43  ;;  %v171_v18 = vadd.f32 %v170_v47, %v169_v14  ;;  %v89_v27 = vadd.f32 %v88_v42, %v87_v23  ;;  %v102_v28 = vrot.slane %v101_v53, 1  ;;  %v116_v41 = vrot.slane %v115_v48, 1 }
  0x1d   :  { %v130_v19 = vrot.slane %v129_v60, 1  ;;  %v745_v20 = vpack.c.bf16 %v547_v37, %v536_v32  ;;  %v144_v30 = vrot.slane %v143_v16, 1  ;;  %v158_v31 = vrot.slane %v157_v17, 1 }
  0x1e   :  { %v172_v21 = vrot.slane %v171_v18, 1  ;;  %v175_v22 = vmul.f32 0.25, %v75_v3  ;;  %v746_v29 = vpack.c.bf16 %v557_v39, %v552_v38  ;;  %v103_v33 = vadd.f32 %v102_v28, %v101_v53 }
  0x1f   :  { %406 = vmatpush3.bf16.msra.mxu0 %v745_v20  ;;  %v117_v52 = vadd.f32 %v116_v41, %v115_v48  ;;  %v131_v57 = vadd.f32 %v130_v19, %v129_v60  ;;  %v177_v58 = vmul.f32 0.25, %v89_v27  ;;  %v145_v34 = vadd.f32 %v144_v30, %v143_v16 }
  0x20   :  { %408 = vmatprep.subr.bf16.mxu0 %v746_v29  ;;  %v159_v59 = vadd.f32 %v158_v31, %v157_v17  ;;  %v173_v35 = vadd.f32 %v172_v21, %v171_v18  ;;  %v36_v0 = vunpack.c.l.bf16 %v599_v51  ;;  %v179_v1 = vmul.f32 0.25, %v103_v33 }
  0x21   :  { %v181_v32 = vmul.f32 0.25, %v117_v52  ;;  %v183_v37 = vmul.f32 0.25, %v131_v57  ;;  %v259_v2 = vsel %vm245_vm0, %v177_v58, %v175_v22  ;;  %v747_v7 = vpack.c.bf16 %v575_v45, %v570_v44 }
  0x22   :  { %v185_v38 = vmul.f32 0.25, %v145_v34  ;;  %v187_v39 = vmul.f32 0.25, %v159_v59  ;;  %v189_v8 = vmul.f32 0.25, %v173_v35  ;;  %v38_v9 = vunpack.c.l.bf16 %v606_v54 }
  0x23   :  { %410 = vmatpush3.bf16.msra.mxu0 %v747_v7  ;;  %v260_v10 = vsel %vm247_vm1, %v179_v1, %v259_v2  ;;  %v40_v14 = vunpack.c.l.bf16 %v611_v55  ;;  %v42_v51 = vunpack.c.l.bf16 %v616_v56  ;;  %v44_v23 = vunpack.c.l.bf16 %v625_v61 }
  0x24   :  { %v261_v24 = vsel %vm249_vm2, %v181_v32, %v260_v10  ;;  %v46_v36 = vunpack.c.l.bf16 %v630_v62  ;;  %v48_v44 = vunpack.c.l.bf16 %v635_v63  ;;  %v50_v45 = vunpack.c.l.bf16 %v644_v4 }
  0x25   :  { %v262_v15 = vsel %vm251_vm3, %v183_v37, %v261_v24  ;;  %v52_v54 = vunpack.c.l.bf16 %v649_v5  ;;  %v54_v25 = vunpack.c.l.bf16 %v654_v6  ;;  %v56_v55 = vunpack.c.l.bf16 %v662_v11 }
  0x26   :  { %v263_v56 = vsel %vm253_vm4, %v185_v38, %v262_v15  ;;  %v58_v61 = vunpack.c.l.bf16 %v667_v12  ;;  %v60_v26 = vunpack.c.l.bf16 %v672_v13  ;;  %v748_v62 = vunpack.c.l.bf16 %v580_v46 }
  0x27   :  { %v749_v63 = vunpack.c.l.bf16 %v589_v49  ;;  %v264_v4 = vsel %vm255_vm5, %v187_v39, %v263_v56  ;;  %v750_v47 = vunpack.c.l.bf16 %v594_v50  ;;  %v90_v43 = vadd.f32 %v40_v14, %v38_v9 }
  0x28   :  { %v104_v6 = vadd.f32 %v44_v23, %v42_v51  ;;  %v265_v11 = vsel %vm257_vm6, %v189_v8, %v264_v4  ;;  %v118_v53 = vadd.f32 %v48_v44, %v46_v36  ;;  %v132_v48 = vadd.f32 %v52_v54, %v50_v45 }
  0x29   :  { %v62_v40 = vadd.f32 %v749_v63, %v748_v62  ;;  %v76_v5 = vadd.f32 %v36_v0, %v750_v47  ;;  %332 = vmatprep.mubr.f32.mxu0 %v265_v11  ;;  %v91_v13 = vrot.slane %v90_v43, 4  ;;  %v146_v46 = vadd.f32 %v56_v55, %v54_v25 }
  0x2a   :  { %v105_v60 = vrot.slane %v104_v6, 4  ;;  %v119_v49 = vrot.slane %v118_v53, 4  ;;  %v133_v16 = vrot.slane %v132_v48, 4  ;;  %v160_v17 = vadd.f32 %v60_v26, %v58_v61 }
  0x2b   :  { %v63_v42 = vrot.slane %v62_v40, 4  ;;  %v77_v12 = vrot.slane %v76_v5, 4  ;;  %v92_v27 = vadd.f32 %v91_v13, %v90_v43  ;;  %v147_v28 = vrot.slane %v146_v46, 4  ;;  %v343_v13 = vld [vmem:[%s742_s2] ss:$0 sm:$0xff] }
  0x2c   :  { %v106_v50 = vadd.f32 %v105_v60, %v104_v6  ;;  %v120_v19 = vadd.f32 %v119_v49, %v118_v53  ;;  %v134_v20 = vadd.f32 %v133_v16, %v132_v48  ;;  %v161_v30 = vrot.slane %v160_v17, 4 }
  0x2d   :  { %v64_v3 = vadd.f32 %v63_v42, %v62_v40  ;;  %v78_v18 = vadd.f32 %v77_v12, %v76_v5  ;;  %v93_v21 = vrot.slane %v92_v27, 2  ;;  %v148_v29 = vadd.f32 %v147_v28, %v146_v46 }
  0x2e   :  { %v107_v22 = vrot.slane %v106_v50, 2  ;;  %v121_v52 = vrot.slane %v120_v19, 2  ;;  %v135_v57 = vrot.slane %v134_v20, 2  ;;  %v162_v58 = vadd.f32 %v161_v30, %v160_v17 }
  0x2f   :  { %v65_v41 = vrot.slane %v64_v3, 2  ;;  %v79_v31 = vrot.slane %v78_v18, 2  ;;  %v94_v59 = vadd.f32 %v93_v21, %v92_v27  ;;  %v149_v0 = vrot.slane %v148_v29, 2 }
  0x30   :  { %v108_v35 = vadd.f32 %v107_v22, %v106_v50  ;;  %v122_v32 = vadd.f32 %v121_v52, %v120_v19  ;;  %v136_v37 = vadd.f32 %v135_v57, %v134_v20  ;;  %v163_v2 = vrot.slane %v162_v58, 2 }
  0x31   :  { %v66_v33 = vadd.f32 %v65_v41, %v64_v3  ;;  %v80_v34 = vadd.f32 %v79_v31, %v78_v18  ;;  %v95_v38 = vrot.slane %v94_v59, 1  ;;  %v150_v8 = vadd.f32 %v149_v0, %v148_v29 }
  0x32   :  { %v109_v39 = vrot.slane %v108_v35, 1  ;;  %v123_v10 = vrot.slane %v122_v32, 1  ;;  %v137_v14 = vrot.slane %v136_v37, 1  ;;  %v164_v51 = vadd.f32 %v163_v2, %v162_v58 }
  0x33   :  { %v67_v1 = vrot.slane %v66_v33, 1  ;;  %v81_v7 = vrot.slane %v80_v34, 1  ;;  %v96_v24 = vadd.f32 %v95_v38, %v94_v59  ;;  %v151_v44 = vrot.slane %v150_v8, 1 }
  0x34   :  { %v110_v36 = vadd.f32 %v109_v39, %v108_v35  ;;  %v124_v45 = vadd.f32 %v123_v10, %v122_v32  ;;  %v138_v15 = vadd.f32 %v137_v14, %v136_v37  ;;  %v165_v54 = vrot.slane %v164_v51, 1 }
  0x35   :  { %v68_v9 = vadd.f32 %v67_v1, %v66_v33  ;;  %v82_v23 = vadd.f32 %v81_v7, %v80_v34  ;;  %v152_v55 = vadd.f32 %v151_v44, %v150_v8  ;;  %v178_v61 = vmul.f32 0.25, %v96_v24 }
  0x36   :  { %v180_v26 = vmul.f32 0.25, %v110_v36  ;;  %v166_v62 = vadd.f32 %v165_v54, %v164_v51  ;;  %v182_v63 = vmul.f32 0.25, %v124_v45  ;;  %v184_v40 = vmul.f32 0.25, %v138_v15 }
  0x37   :  { %v174_v25 = vmul.f32 0.25, %v68_v9  ;;  %v176_v56 = vmul.f32 0.25, %v82_v23  ;;  %v186_v47 = vmul.f32 0.25, %v152_v55 }
  0x38   :  { %v188_v43 = vmul.f32 0.25, %v166_v62 }
  0x39   :  { %v246_v4 = vsel %vm245_vm0, %v176_v56, %v174_v25 }
  0x3a   :  { %v248_v5 = vsel %vm247_vm1, %v178_v61, %v246_v4 }
  0x3b   :  { %v250_v6 = vsel %vm249_vm2, %v180_v26, %v248_v5 }
  0x3c   :  { %v252_v11 = vsel %vm251_vm3, %v182_v63, %v250_v6 }
  0x3d   :  { %v254_v42 = vsel %vm253_vm4, %v184_v40, %v252_v11 }
  0x3e   :  { %v256_v53 = vsel %vm255_vm5, %v186_v47, %v254_v42 }
  0x3f   :  { %v258_v48 = vsel %vm257_vm6, %v188_v43, %v256_v53 }
  0x40   :  { %333 = vmatmul.mubr.f32.vlgmr.msra.gmra.mrb[0].mxu0 %v258_v48 }
 0x113   :  { %v376_v12 = vpop.f32.mrb[0].mxu0 }
 0x114   :  { %v377_v60 = vpop.f32.mrb[1].mxu0 }
 0x115   :  { %v378_v46 = vadd.f32 %v377_v60, %v376_v12 }
 0x117   :  { %v335_v3 = vadd.f32 %v378_v46, %v343_v13 }
 0x119   :  { %338 = vst [vmem:[%s743_s3] sm:$0xff] %v335_v3 }

</bundles_post_ra>
